<compile_context>
chip_gen: v7x
topology: tpu7x:2x2x1
jax: 0.10.0
libtpu: 0.0.40
codegen_flags: <defaults>
</compile_context>

<pallas_src>
import math
from functools import partial

import jax
import jax.numpy as jnp
from jax import lax
from jax.experimental import pallas as pl
from jax.experimental.pallas import tpu as pltpu


# --------------------------------------------------------------------------
# In-kernel math helpers (traced inside Pallas kernel bodies, all f32)
# --------------------------------------------------------------------------

def _layernorm(x, g, b, eps=1e-5):
    mu = jnp.mean(x, axis=-1, keepdims=True)
    var = jnp.mean((x - mu) ** 2, axis=-1, keepdims=True)
    return (x - mu) * lax.rsqrt(var + eps) * g + b


def _mha(q, k, v, wo, H, Qd, Vd, causal):
    """Multi-head attention + output projection (bias excluded).

    q,k: (T, H*Qd), v: (T, H*Vd), wo: (H*Vd, D). Returns (T, D) in f32.
    All heads handled in one kernel invocation (static unrolled loop); the
    causal mask is built once; q@k^T uses dot_general contracting last dims
    (no explicit transpose); the output projection is folded into the head
    loop so no in-kernel concatenation is needed.
    """
    T = q.shape[0]
    D = wo.shape[1]
    scale = 1.0 / math.sqrt(Qd)
    dn = (((1,), (1,)), ((), ()))                 # contract last dims of both
    if causal:
        row = lax.broadcasted_iota(jnp.int32, (T, T), 0)
        col = lax.broadcasted_iota(jnp.int32, (T, T), 1)
        keep = col <= row
    out = jnp.zeros((T, D), jnp.float32)
    for h in range(H):
        qh = q[:, h * Qd:(h + 1) * Qd]
        kh = k[:, h * Qd:(h + 1) * Qd]
        vh = v[:, h * Vd:(h + 1) * Vd]
        s = lax.dot_general(qh, kh, dn, preferred_element_type=jnp.float32) * scale
        if causal:
            s = jnp.where(keep, s, jnp.float32(-1e30))
        s = s - jnp.max(s, axis=-1, keepdims=True)
        p = jnp.exp(s)
        p = p * pl.reciprocal(jnp.sum(p, axis=-1, keepdims=True), approx=True)
        ah = jnp.dot(p, vh, preferred_element_type=jnp.float32)          # (T, Vd)
        out = out + jnp.dot(ah, wo[h * Vd:(h + 1) * Vd, :],
                            preferred_element_type=jnp.float32)          # (T, D)
    return out


# --------------------------------------------------------------------------
# Fused kernels
# --------------------------------------------------------------------------

def _embed_kernel(x_ref, w_ref, b_ref, pe_ref, o_ref):
    x = x_ref[0].astype(jnp.float32)                                     # (T, D_in)
    y = jnp.dot(x, w_ref[...], preferred_element_type=jnp.float32)
    y = y + b_ref[...] + pe_ref[...]
    o_ref[0] = y.astype(o_ref.dtype)


def _encoder_layer_kernel(H, Qd, Vd):
    HQ, HV = H * Qd, H * Vd

    def kernel(x_ref, wqkv_ref, bqkv_ref, wo_ref, bo_ref,
               ln1g_ref, ln1b_ref,
               w1_ref, b1_ref, w2_ref, b2_ref,
               ln2g_ref, ln2b_ref, o_ref):
        x = x_ref[0].astype(jnp.float32)                                 # (T, D)
        # fused QKV projection: one wide MXU matmul
        qkv = jnp.dot(x, wqkv_ref[...],
                      preferred_element_type=jnp.float32) + bqkv_ref[...]
        attn = _mha(qkv[:, :HQ], qkv[:, HQ:2 * HQ], qkv[:, 2 * HQ:],
                    wo_ref[...], H, Qd, Vd, causal=False) + bo_ref[...]
        h1 = _layernorm(x + attn, ln1g_ref[...], ln1b_ref[...])          # fused add+LN
        # fused FFN: hidden (T, d_ff) never leaves VMEM/vregs
        f = jnp.maximum(jnp.dot(h1, w1_ref[...],
                                preferred_element_type=jnp.float32) + b1_ref[...], 0.0)
        f = jnp.dot(f, w2_ref[...],
                    preferred_element_type=jnp.float32) + b2_ref[...]
        o_ref[0] = _layernorm(h1 + f, ln2g_ref[...], ln2b_ref[...]).astype(o_ref.dtype)

    return kernel


def _decoder_layer_kernel(H, Qd, Vd):
    HQ, HV = H * Qd, H * Vd

    def kernel(x_ref, mem_ref,
               swqkv_ref, sbqkv_ref, swo_ref, sbo_ref, ln1g_ref, ln1b_ref,
               cwq_ref, cbq_ref, cwkv_ref, cbkv_ref, cwo_ref, cbo_ref,
               ln2g_ref, ln2b_ref,
               w1_ref, b1_ref, w2_ref, b2_ref, ln3g_ref, ln3b_ref, o_ref):
        x = x_ref[0].astype(jnp.float32)                                 # (T, D)
        mem = mem_ref[0].astype(jnp.float32)                             # (T, D)
        # causal ("forward") self-attention, fused QKV
        qkv = jnp.dot(x, swqkv_ref[...],
                      preferred_element_type=jnp.float32) + sbqkv_ref[...]
        attn = _mha(qkv[:, :HQ], qkv[:, HQ:2 * HQ], qkv[:, 2 * HQ:],
                    swo_ref[...], H, Qd, Vd, causal=True) + sbo_ref[...]
        h1 = _layernorm(x + attn, ln1g_ref[...], ln1b_ref[...])
        # cross-attention: queries from h1, keys/values from encoder memory
        # (assumes T_kv == T_q, true for this model)
        q = jnp.dot(h1, cwq_ref[...],
                    preferred_element_type=jnp.float32) + cbq_ref[...]
        kv = jnp.dot(mem, cwkv_ref[...],
                     preferred_element_type=jnp.float32) + cbkv_ref[...]
        attn2 = _mha(q, kv[:, :HQ], kv[:, HQ:],
                     cwo_ref[...], H, Qd, Vd, causal=False) + cbo_ref[...]
        h2 = _layernorm(h1 + attn2, ln2g_ref[...], ln2b_ref[...])
        # fused FFN
        f = jnp.maximum(jnp.dot(h2, w1_ref[...],
                                preferred_element_type=jnp.float32) + b1_ref[...], 0.0)
        f = jnp.dot(f, w2_ref[...],
                    preferred_element_type=jnp.float32) + b2_ref[...]
        o_ref[0] = _layernorm(h2 + f, ln3g_ref[...], ln3b_ref[...]).astype(o_ref.dtype)

    return kernel


def _head_kernel(x_ref, w1_ref, b1_ref, w2_ref, b2_ref, o_ref):
    # fused ctx_layer -> ReLU -> output_layer
    h = jnp.dot(x_ref[...].astype(jnp.float32), w1_ref[...],
                preferred_element_type=jnp.float32) + b1_ref[...]
    h = jnp.maximum(h, 0.0)
    y = jnp.dot(h, w2_ref[...], preferred_element_type=jnp.float32) + b2_ref[...]
    o_ref[...] = y.astype(o_ref.dtype)


# --------------------------------------------------------------------------
# pallas_call wrappers
# --------------------------------------------------------------------------

def _full(shape):
    """Full-array block replicated across the grid."""
    n = len(shape)
    return pl.BlockSpec(shape, lambda *_: (0,) * n)


def embed_pallas(x, w, b, pe):
    B, T, D_in = x.shape
    D = w.shape[1]
    return pl.pallas_call(
        _embed_kernel,
        out_shape=jax.ShapeDtypeStruct((B, T, D), x.dtype),
        grid=(B,),
        in_specs=[
            pl.BlockSpec((1, T, D_in), lambda i: (i, 0, 0)),
            _full((D_in, D)),
            _full((1, D)),
            _full((T, D)),
        ],
        out_specs=pl.BlockSpec((1, T, D), lambda i: (i, 0, 0)),
        compiler_params=pltpu.CompilerParams(dimension_semantics=("parallel",)),
    )(x, w, b.reshape(1, D), pe)


def encoder_layer_pallas(p, x, H, Qd, Vd):
    B, T, D = x.shape
    args = [
        x,
        p["mha"]["wqkv"]["w"], p["mha"]["wqkv"]["b"][None, :],
        p["mha"]["wo"]["w"], p["mha"]["wo"]["b"][None, :],
        p["ln1"]["g"][None, :], p["ln1"]["b"][None, :],
        p["ffn"]["l1"]["w"], p["ffn"]["l1"]["b"][None, :],
        p["ffn"]["l2"]["w"], p["ffn"]["l2"]["b"][None, :],
        p["ln2"]["g"][None, :], p["ln2"]["b"][None, :],
    ]
    in_specs = ([pl.BlockSpec((1, T, D), lambda b: (b, 0, 0))]
                + [_full(a.shape) for a in args[1:]])
    return pl.pallas_call(
        _encoder_layer_kernel(H, Qd, Vd),
        out_shape=jax.ShapeDtypeStruct((B, T, D), x.dtype),
        grid=(B,),
        in_specs=in_specs,
        out_specs=pl.BlockSpec((1, T, D), lambda b: (b, 0, 0)),
        compiler_params=pltpu.CompilerParams(dimension_semantics=("parallel",)),
    )(*args)


def decoder_layer_pallas(p, x, memory, H, Qd, Vd):
    B, T, D = x.shape
    args = [
        x, memory,
        p["self_mha"]["wqkv"]["w"], p["self_mha"]["wqkv"]["b"][None, :],
        p["self_mha"]["wo"]["w"], p["self_mha"]["wo"]["b"][None, :],
        p["ln1"]["g"][None, :], p["ln1"]["b"][None, :],
        p["cross_mha"]["wq"]["w"], p["cross_mha"]["wq"]["b"][None, :],
        p["cross_mha"]["wkv"]["w"], p["cross_mha"]["wkv"]["b"][None, :],
        p["cross_mha"]["wo"]["w"], p["cross_mha"]["wo"]["b"][None, :],
        p["ln2"]["g"][None, :], p["ln2"]["b"][None, :],
        p["ffn"]["l1"]["w"], p["ffn"]["l1"]["b"][None, :],
        p["ffn"]["l2"]["w"], p["ffn"]["l2"]["b"][None, :],
        p["ln3"]["g"][None, :], p["ln3"]["b"][None, :],
    ]
    x_spec = pl.BlockSpec((1, T, D), lambda b: (b, 0, 0))
    in_specs = [x_spec, x_spec] + [_full(a.shape) for a in args[2:]]
    return pl.pallas_call(
        _decoder_layer_kernel(H, Qd, Vd),
        out_shape=jax.ShapeDtypeStruct((B, T, D), x.dtype),
        grid=(B,),
        in_specs=in_specs,
        out_specs=pl.BlockSpec((1, T, D), lambda b: (b, 0, 0)),
        compiler_params=pltpu.CompilerParams(dimension_semantics=("parallel",)),
    )(*args)


def head_pallas(x, w1, b1, w2, b2):
    B, M = x.shape
    Nh = w1.shape[1]
    D_out = w2.shape[1]
    return pl.pallas_call(
        _head_kernel,
        out_shape=jax.ShapeDtypeStruct((B, D_out), x.dtype),
        grid=(1,),
        in_specs=[
            _full((B, M)),
            _full((M, Nh)),
            _full((1, Nh)),
            _full((Nh, D_out)),
            _full((1, D_out)),
        ],
        out_specs=_full((B, D_out)),
    )(x, w1, b1.reshape(1, Nh), w2, b2.reshape(1, D_out))


# --------------------------------------------------------------------------
# Model pieces / parameter init
# --------------------------------------------------------------------------

def pos_encodings_attn(T, D):
    # TODO(synk): pos_encodings_attn source not provided; standard sinusoidal PE used.
    pos = jnp.arange(T, dtype=jnp.float32)[:, None]
    i = jnp.arange(D, dtype=jnp.float32)[None, :]
    angle = pos / jnp.power(10000.0, (2.0 * jnp.floor(i / 2.0)) / D)
    even = (jnp.arange(D) % 2) == 0
    return jnp.where(even[None, :], jnp.sin(angle), jnp.cos(angle))      # (T, D)


def init_linear(key, d_in, d_out, scale=0.05):
    k1, k2 = jax.random.split(key)
    return {
        "w": scale * jax.random.normal(k1, (d_in, d_out), jnp.float32),
        "b": scale * jax.random.normal(k2, (d_out,), jnp.float32),
    }


def init_self_mha(key, D, Q, V, H):
    k1, k2 = jax.random.split(key)
    return {
        "wqkv": init_linear(k1, D, H * (2 * Q + V)),   # fused [Wq | Wk | Wv]
        "wo": init_linear(k2, H * V, D),
    }


def init_cross_mha(key, D, Q, V, H):
    k1, k2, k3 = jax.random.split(key, 3)
    return {
        "wq": init_linear(k1, D, H * Q),
        "wkv": init_linear(k2, D, H * (Q + V)),        # fused [Wk | Wv]
        "wo": init_linear(k3, H * V, D),
    }


def init_ln(D):
    return {"g": jnp.ones((D,), jnp.float32), "b": jnp.zeros((D,), jnp.float32)}


def init_transformer(key, D_in, D_embed, D_ctx, D_out, Q, V, H, N, d_ff):
    keys = jax.random.split(key, 3 + 2 * N)
    params = {
        "embedding": init_linear(keys[0], D_in, D_embed),
        "ctx_layer": init_linear(keys[1], Q * D_embed + D_ctx, 2 * (Q * D_embed + D_ctx)),
        "output_layer": init_linear(keys[2], 2 * (Q * D_embed + D_ctx), D_out),
        "encoders": [],
        "decoders": [],
    }
    for n in range(N):
        ke = jax.random.split(keys[3 + n], 3)
        params["encoders"].append({
            "mha": init_self_mha(ke[0], D_embed, Q, V, H),
            "ffn": {"l1": init_linear(ke[1], D_embed, d_ff),
                    "l2": init_linear(ke[2], d_ff, D_embed)},
            "ln1": init_ln(D_embed), "ln2": init_ln(D_embed),
        })
    for n in range(N):
        kd = jax.random.split(keys[3 + N + n], 4)
        params["decoders"].append({
            "self_mha": init_self_mha(kd[0], D_embed, Q, V, H),
            "cross_mha": init_cross_mha(kd[1], D_embed, Q, V, H),
            "ffn": {"l1": init_linear(kd[2], D_embed, d_ff),
                    "l2": init_linear(kd[3], d_ff, D_embed)},
            "ln1": init_ln(D_embed), "ln2": init_ln(D_embed), "ln3": init_ln(D_embed),
        })
    return params


def transformer_forward(params, X_fin, X_ctx, D_embed, Q, V, H):
    B, T, D_in = X_fin.shape
    assert T == Q, "ctx_layer in-dim (Q*D_embed+D_ctx) implies T == Q"
    PE = pos_encodings_attn(T, D_embed)                                  # (T, D_embed)

    # embedding + PE (fused in one kernel)
    X = embed_pallas(X_fin, params["embedding"]["w"], params["embedding"]["b"], PE)

    for p in params["encoders"]:
        X = encoder_layer_pallas(p, X, H, Q, V)

    # in-place add_ in the reference aliases encoded_attn -> memory = enc_out + PE
    X = X + PE[None]
    memory = X

    for p in params["decoders"]:
        X = decoder_layer_pallas(p, X, memory, H, Q, V)

    Xf = X.reshape(B, T * D_embed)
    X_cat = jnp.concatenate([Xf, X_ctx.reshape(B, -1)], axis=1)
    y = head_pallas(X_cat, params["ctx_layer"]["w"], params["ctx_layer"]["b"],
                    params["output_layer"]["w"], params["output_layer"]["b"])
    return y                                                             # (B, D_out)


# --------------------------------------------------------------------------
# Main
# --------------------------------------------------------------------------

if __name__ == "__main__":
    B, T = 2, 8
    D_in, D_embed, D_ctx, D_out = 4, 32, 16, 4
    Q, V, H, N = 8, 8, 4, 2
    d_ff = 4 * D_embed

    key = jax.random.PRNGKey(0)
    kp, kx, kc = jax.random.split(key, 3)
    params = init_transformer(kp, D_in, D_embed, D_ctx, D_out, Q, V, H, N, d_ff)

    X_fin = jax.random.normal(kx, (B, T, D_in), jnp.float32)
    X_ctx = jax.random.normal(kc, (B, 1, D_ctx), jnp.float32)

    fwd = jax.jit(partial(transformer_forward, D_embed=D_embed, Q=Q, V=V, H=H))
    y = jax.block_until_ready(fwd(params, X_fin, X_ctx))
    assert y.shape == (B, D_out) and bool(jnp.all(jnp.isfinite(y)))
    print("KERNEL_OK")
</pallas_src>

<mosaic_0001>
module attributes {stable_mosaic.version = 11 : i64} {
  func.func @_embed_kernel(%arg0: i32, %arg1: memref<1x8x4xf32, #tpu.memory_space<vmem>>, %arg2: memref<4x32xf32, #tpu.memory_space<vmem>>, %arg3: memref<1x32xf32, #tpu.memory_space<vmem>>, %arg4: memref<8x32xf32, #tpu.memory_space<vmem>>, %arg5: memref<1x8x32xf32, #tpu.memory_space<vmem>>) attributes {dimension_semantics = [#tpu.dimension_semantics<parallel>], iteration_bounds = array<i64: 2>, scalar_prefetch = 0 : i64, scratch_operands = 0 : i64, tpu.core_type = #tpu.core_type<tc>, window_params = [{transform_indices = @transform_0, window_bounds = array<i64: 1, 8, 4>}, {pipeline_mode = #tpu.pipeline_mode<synchronous>, transform_indices = @transform_1, window_bounds = array<i64: 4, 32>}, {pipeline_mode = #tpu.pipeline_mode<synchronous>, transform_indices = @transform_2, window_bounds = array<i64: 1, 32>}, {pipeline_mode = #tpu.pipeline_mode<synchronous>, transform_indices = @transform_3, window_bounds = array<i64: 8, 32>}, {transform_indices = @transform_4, window_bounds = array<i64: 1, 8, 32>}]} {
    %c0 = arith.constant 0 : index
    %c0_0 = arith.constant 0 : index
    %c0_1 = arith.constant 0 : index
    %0 = vector.load %arg1[%c0, %c0_0, %c0_1] : memref<1x8x4xf32, #tpu.memory_space<vmem>>, vector<1x8x4xf32>
    %1 = vector.shape_cast %0 : vector<1x8x4xf32> to vector<8x4xf32>
    %c0_2 = arith.constant 0 : index
    %c0_3 = arith.constant 0 : index
    %2 = vector.load %arg2[%c0_2, %c0_3] : memref<4x32xf32, #tpu.memory_space<vmem>>, vector<4x32xf32>
    %cst = arith.constant dense<0.000000e+00> : vector<8x32xf32>
    %3 = tpu.matmul %1, %2, %cst {dimension_numbers = #tpu.dot_dimension_numbers<[1], [0], [0], [1], [0, 0, 1, 1], [], []>} : vector<8x4xf32>, vector<4x32xf32>, vector<8x32xf32> -> vector<8x32xf32>
    %c0_4 = arith.constant 0 : index
    %c0_5 = arith.constant 0 : index
    %4 = vector.load %arg3[%c0_4, %c0_5] : memref<1x32xf32, #tpu.memory_space<vmem>>, vector<1x32xf32>
    %5 = vector.broadcast %4 : vector<1x32xf32> to vector<8x32xf32>
    %6 = arith.addf %3, %5 : vector<8x32xf32>
    %c0_6 = arith.constant 0 : index
    %c0_7 = arith.constant 0 : index
    %7 = vector.load %arg4[%c0_6, %c0_7] : memref<8x32xf32, #tpu.memory_space<vmem>>, vector<8x32xf32>
    %8 = arith.addf %6, %7 : vector<8x32xf32>
    %c0_8 = arith.constant 0 : index
    %c0_9 = arith.constant 0 : index
    %c0_10 = arith.constant 0 : index
    %9 = vector.load %arg5[%c0_8, %c0_9, %c0_10] : memref<1x8x32xf32, #tpu.memory_space<vmem>>, vector<1x8x32xf32>
    %10 = vector.shape_cast %9 : vector<1x8x32xf32> to vector<8x32xf32>
    %11 = vector.shape_cast %8 : vector<8x32xf32> to vector<1x8x32xf32>
    tpu.vector_store %arg5[%c0_8, %c0_9, %c0_10], %11 {strides = array<i32>} : memref<1x8x32xf32, #tpu.memory_space<vmem>>, vector<1x8x32xf32>,
    return
  }
  func.func @transform_0(%arg0: i32) -> (i32, i32, i32) {
    %c0_i32 = arith.constant 0 : i32
    %c0_i32_0 = arith.constant 0 : i32
    %c0_i32_1 = arith.constant 0 : i32
    return %arg0, %c0_i32, %c0_i32_0 : i32, i32, i32
  }
  func.func @transform_1(%arg0: i32) -> (i32, i32) {
    %c0_i32 = arith.constant 0 : i32
    %c0_i32_0 = arith.constant 0 : i32
    %c0_i32_1 = arith.constant 0 : i32
    return %c0_i32, %c0_i32_0 : i32, i32
  }
  func.func @transform_2(%arg0: i32) -> (i32, i32) {
    %c0_i32 = arith.constant 0 : i32
    %c0_i32_0 = arith.constant 0 : i32
    %c0_i32_1 = arith.constant 0 : i32
    return %c0_i32, %c0_i32_0 : i32, i32
  }
  func.func @transform_3(%arg0: i32) -> (i32, i32) {
    %c0_i32 = arith.constant 0 : i32
    %c0_i32_0 = arith.constant 0 : i32
    %c0_i32_1 = arith.constant 0 : i32
    return %c0_i32, %c0_i32_0 : i32, i32
  }
  func.func @transform_4(%arg0: i32) -> (i32, i32, i32) {
    %c0_i32 = arith.constant 0 : i32
    %c0_i32_0 = arith.constant 0 : i32
    %c0_i32_1 = arith.constant 0 : i32
    return %arg0, %c0_i32, %c0_i32_0 : i32, i32, i32
  }
}

module attributes {stable_mosaic.version = 11 : i64} {
  func.func @kernel(%arg0: i32, %arg1: memref<1x8x32xf32, #tpu.memory_space<vmem>>, %arg2: memref<32x96xf32, #tpu.memory_space<vmem>>, %arg3: memref<1x96xf32, #tpu.memory_space<vmem>>, %arg4: memref<32x32xf32, #tpu.memory_space<vmem>>, %arg5: memref<1x32xf32, #tpu.memory_space<vmem>>, %arg6: memref<1x32xf32, #tpu.memory_space<vmem>>, %arg7: memref<1x32xf32, #tpu.memory_space<vmem>>, %arg8: memref<32x128xf32, #tpu.memory_space<vmem>>, %arg9: memref<1x128xf32, #tpu.memory_space<vmem>>, %arg10: memref<128x32xf32, #tpu.memory_space<vmem>>, %arg11: memref<1x32xf32, #tpu.memory_space<vmem>>, %arg12: memref<1x32xf32, #tpu.memory_space<vmem>>, %arg13: memref<1x32xf32, #tpu.memory_space<vmem>>, %arg14: memref<1x8x32xf32, #tpu.memory_space<vmem>>) attributes {dimension_semantics = [#tpu.dimension_semantics<parallel>], iteration_bounds = array<i64: 2>, scalar_prefetch = 0 : i64, scratch_operands = 0 : i64, tpu.core_type = #tpu.core_type<tc>, window_params = [{transform_indices = @transform_0, window_bounds = array<i64: 1, 8, 32>}, {pipeline_mode = #tpu.pipeline_mode<synchronous>, transform_indices = @transform_1, window_bounds = array<i64: 32, 96>}, {pipeline_mode = #tpu.pipeline_mode<synchronous>, transform_indices = @transform_2, window_bounds = array<i64: 1, 96>}, {pipeline_mode = #tpu.pipeline_mode<synchronous>, transform_indices = @transform_3, window_bounds = array<i64: 32, 32>}, {pipeline_mode = #tpu.pipeline_mode<synchronous>, transform_indices = @transform_4, window_bounds = array<i64: 1, 32>}, {pipeline_mode = #tpu.pipeline_mode<synchronous>, transform_indices = @transform_5, window_bounds = array<i64: 1, 32>}, {pipeline_mode = #tpu.pipeline_mode<synchronous>, transform_indices = @transform_6, window_bounds = array<i64: 1, 32>}, {pipeline_mode = #tpu.pipeline_mode<synchronous>, transform_indices = @transform_7, window_bounds = array<i64: 32, 128>}, {pipeline_mode = #tpu.pipeline_mode<synchronous>, transform_indices = @transform_8, window_bounds = array<i64: 1, 128>}, {pipeline_mode = #tpu.pipeline_mode<synchronous>, transform_indices = @transform_9, window_bounds = array<i64: 128, 32>}, {pipeline_mode = #tpu.pipeline_mode<synchronous>, transform_indices = @transform_10, window_bounds = array<i64: 1, 32>}, {pipeline_mode = #tpu.pipeline_mode<synchronous>, transform_indices = @transform_11, window_bounds = array<i64: 1, 32>}, {pipeline_mode = #tpu.pipeline_mode<synchronous>, transform_indices = @transform_12, window_bounds = array<i64: 1, 32>}, {transform_indices = @transform_13, window_bounds = array<i64: 1, 8, 32>}]} {
    %c0 = arith.constant 0 : index
    %c0_0 = arith.constant 0 : index
    %c0_1 = arith.constant 0 : index
    %0 = vector.load %arg1[%c0, %c0_0, %c0_1] : memref<1x8x32xf32, #tpu.memory_space<vmem>>, vector<1x8x32xf32>
    %1 = vector.shape_cast %0 : vector<1x8x32xf32> to vector<8x32xf32>
    %c0_2 = arith.constant 0 : index
    %c0_3 = arith.constant 0 : index
    %2 = vector.load %arg2[%c0_2, %c0_3] : memref<32x96xf32, #tpu.memory_space<vmem>>, vector<32x96xf32>
    %cst = arith.constant dense<0.000000e+00> : vector<8x96xf32>
    %3 = tpu.matmul %1, %2, %cst {dimension_numbers = #tpu.dot_dimension_numbers<[1], [0], [0], [1], [0, 0, 1, 1], [], []>} : vector<8x32xf32>, vector<32x96xf32>, vector<8x96xf32> -> vector<8x96xf32>
    %c0_4 = arith.constant 0 : index
    %c0_5 = arith.constant 0 : index
    %4 = vector.load %arg3[%c0_4, %c0_5] : memref<1x96xf32, #tpu.memory_space<vmem>>, vector<1x96xf32>
    %5 = vector.broadcast %4 : vector<1x96xf32> to vector<8x96xf32>
    %6 = arith.addf %3, %5 : vector<8x96xf32>
    %7 = vector.extract_strided_slice %6 {offsets = [0, 0], sizes = [8, 32], strides = [1, 1]} : vector<8x96xf32> to vector<8x32xf32>
    %8 = vector.extract_strided_slice %6 {offsets = [0, 32], sizes = [8, 32], strides = [1, 1]} : vector<8x96xf32> to vector<8x32xf32>
    %9 = vector.extract_strided_slice %6 {offsets = [0, 64], sizes = [8, 32], strides = [1, 1]} : vector<8x96xf32> to vector<8x32xf32>
    %c0_6 = arith.constant 0 : index
    %c0_7 = arith.constant 0 : index
    %10 = vector.load %arg4[%c0_6, %c0_7] : memref<32x32xf32, #tpu.memory_space<vmem>>, vector<32x32xf32>
    %cst_8 = arith.constant 0.000000e+00 : f32
    %11 = vector.broadcast %cst_8 : f32 to vector<8x32xf32>
    %12 = vector.extract_strided_slice %7 {offsets = [0, 0], sizes = [8, 8], strides = [1, 1]} : vector<8x32xf32> to vector<8x8xf32>
    %13 = vector.extract_strided_slice %8 {offsets = [0, 0], sizes = [8, 8], strides = [1, 1]} : vector<8x32xf32> to vector<8x8xf32>
    %14 = vector.extract_strided_slice %9 {offsets = [0, 0], sizes = [8, 8], strides = [1, 1]} : vector<8x32xf32> to vector<8x8xf32>
    %cst_9 = arith.constant dense<0.000000e+00> : vector<8x8xf32>
    %15 = tpu.matmul %12, %13, %cst_9 {dimension_numbers = #tpu.dot_dimension_numbers<[1], [1], [0], [0], [0, 0, 1, 0], [], []>} : vector<8x8xf32>, vector<8x8xf32>, vector<8x8xf32> -> vector<8x8xf32>
    %cst_10 = arith.constant 0.353553385 : f32
    %16 = vector.broadcast %cst_10 : f32 to vector<8x8xf32>
    %17 = arith.mulf %15, %16 : vector<8x8xf32>
    %cst_11 = arith.constant dense<0xFF800000> : vector<8xf32>
    %18 = vector.multi_reduction <maximumf>, %17, %cst_11 [1] : vector<8x8xf32> to vector<8xf32>
    %19 = vector.shape_cast %18 : vector<8xf32> to vector<8x1xf32>
    %20 = vector.broadcast %19 : vector<8x1xf32> to vector<8x8xf32>
    %21 = arith.subf %17, %20 : vector<8x8xf32>
    %22 = math.exp %21 : vector<8x8xf32>
    %cst_12 = arith.constant dense<0.000000e+00> : vector<8xf32>
    %23 = vector.multi_reduction <add>, %22, %cst_12 [1] : vector<8x8xf32> to vector<8xf32>
    %24 = vector.shape_cast %23 : vector<8xf32> to vector<8x1xf32>
    %25 = tpu.reciprocal %24 {approx = true} : vector<8x1xf32> -> vector<8x1xf32>
    %26 = vector.broadcast %25 : vector<8x1xf32> to vector<8x8xf32>
    %27 = arith.mulf %22, %26 : vector<8x8xf32>
    %cst_13 = arith.constant dense<0.000000e+00> : vector<8x8xf32>
    %28 = tpu.matmul %27, %14, %cst_13 {dimension_numbers = #tpu.dot_dimension_numbers<[1], [0], [0], [1], [0, 0, 1, 1], [], []>} : vector<8x8xf32>, vector<8x8xf32>, vector<8x8xf32> -> vector<8x8xf32>
    %29 = vector.extract_strided_slice %10 {offsets = [0, 0], sizes = [8, 32], strides = [1, 1]} : vector<32x32xf32> to vector<8x32xf32>
    %cst_14 = arith.constant dense<0.000000e+00> : vector<8x32xf32>
    %30 = tpu.matmul %28, %29, %cst_14 {dimension_numbers = #tpu.dot_dimension_numbers<[1], [0], [0], [1], [0, 0, 1, 1], [], []>} : vector<8x8xf32>, vector<8x32xf32>, vector<8x32xf32> -> vector<8x32xf32>
    %31 = arith.addf %11, %30 : vector<8x32xf32>
    %32 = vector.extract_strided_slice %7 {offsets = [0, 8], sizes = [8, 8], strides = [1, 1]} : vector<8x32xf32> to vector<8x8xf32>
    %33 = vector.extract_strided_slice %8 {offsets = [0, 8], sizes = [8, 8], strides = [1, 1]} : vector<8x32xf32> to vector<8x8xf32>
    %34 = vector.extract_strided_slice %9 {offsets = [0, 8], sizes = [8, 8], strides = [1, 1]} : vector<8x32xf32> to vector<8x8xf32>
    %cst_15 = arith.constant dense<0.000000e+00> : vector<8x8xf32>
    %35 = tpu.matmul %32, %33, %cst_15 {dimension_numbers = #tpu.dot_dimension_numbers<[1], [1], [0], [0], [0, 0, 1, 0], [], []>} : vector<8x8xf32>, vector<8x8xf32>, vector<8x8xf32> -> vector<8x8xf32>
    %cst_16 = arith.constant 0.353553385 : f32
    %36 = vector.broadcast %cst_16 : f32 to vector<8x8xf32>
    %37 = arith.mulf %35, %36 : vector<8x8xf32>
    %cst_17 = arith.constant dense<0xFF800000> : vector<8xf32>
    %38 = vector.multi_reduction <maximumf>, %37, %cst_17 [1] : vector<8x8xf32> to vector<8xf32>
    %39 = vector.shape_cast %38 : vector<8xf32> to vector<8x1xf32>
    %40 = vector.broadcast %39 : vector<8x1xf32> to vector<8x8xf32>
    %41 = arith.subf %37, %40 : vector<8x8xf32>
    %42 = math.exp %41 : vector<8x8xf32>
    %cst_18 = arith.constant dense<0.000000e+00> : vector<8xf32>
    %43 = vector.multi_reduction <add>, %42, %cst_18 [1] : vector<8x8xf32> to vector<8xf32>
    %44 = vector.shape_cast %43 : vector<8xf32> to vector<8x1xf32>
    %45 = tpu.reciprocal %44 {approx = true} : vector<8x1xf32> -> vector<8x1xf32>
    %46 = vector.broadcast %45 : vector<8x1xf32> to vector<8x8xf32>
    %47 = arith.mulf %42, %46 : vector<8x8xf32>
    %cst_19 = arith.constant dense<0.000000e+00> : vector<8x8xf32>
    %48 = tpu.matmul %47, %34, %cst_19 {dimension_numbers = #tpu.dot_dimension_numbers<[1], [0], [0], [1], [0, 0, 1, 1], [], []>} : vector<8x8xf32>, vector<8x8xf32>, vector<8x8xf32> -> vector<8x8xf32>
    %49 = vector.extract_strided_slice %10 {offsets = [8, 0], sizes = [8, 32], strides = [1, 1]} : vector<32x32xf32> to vector<8x32xf32>
    %cst_20 = arith.constant dense<0.000000e+00> : vector<8x32xf32>
    %50 = tpu.matmul %48, %49, %cst_20 {dimension_numbers = #tpu.dot_dimension_numbers<[1], [0], [0], [1], [0, 0, 1, 1], [], []>} : vector<8x8xf32>, vector<8x32xf32>, vector<8x32xf32> -> vector<8x32xf32>
    %51 = arith.addf %31, %50 : vector<8x32xf32>
    %52 = vector.extract_strided_slice %7 {offsets = [0, 16], sizes = [8, 8], strides = [1, 1]} : vector<8x32xf32> to vector<8x8xf32>
    %53 = vector.extract_strided_slice %8 {offsets = [0, 16], sizes = [8, 8], strides = [1, 1]} : vector<8x32xf32> to vector<8x8xf32>
    %54 = vector.extract_strided_slice %9 {offsets = [0, 16], sizes = [8, 8], strides = [1, 1]} : vector<8x32xf32> to vector<8x8xf32>
    %cst_21 = arith.constant dense<0.000000e+00> : vector<8x8xf32>
    %55 = tpu.matmul %52, %53, %cst_21 {dimension_numbers = #tpu.dot_dimension_numbers<[1], [1], [0], [0], [0, 0, 1, 0], [], []>} : vector<8x8xf32>, vector<8x8xf32>, vector<8x8xf32> -> vector<8x8xf32>
    %cst_22 = arith.constant 0.353553385 : f32
    %56 = vector.broadcast %cst_22 : f32 to vector<8x8xf32>
    %57 = arith.mulf %55, %56 : vector<8x8xf32>
    %cst_23 = arith.constant dense<0xFF800000> : vector<8xf32>
    %58 = vector.multi_reduction <maximumf>, %57, %cst_23 [1] : vector<8x8xf32> to vector<8xf32>
    %59 = vector.shape_cast %58 : vector<8xf32> to vector<8x1xf32>
    %60 = vector.broadcast %59 : vector<8x1xf32> to vector<8x8xf32>
    %61 = arith.subf %57, %60 : vector<8x8xf32>
    %62 = math.exp %61 : vector<8x8xf32>
    %cst_24 = arith.constant dense<0.000000e+00> : vector<8xf32>
    %63 = vector.multi_reduction <add>, %62, %cst_24 [1] : vector<8x8xf32> to vector<8xf32>
    %64 = vector.shape_cast %63 : vector<8xf32> to vector<8x1xf32>
    %65 = tpu.reciprocal %64 {approx = true} : vector<8x1xf32> -> vector<8x1xf32>
    %66 = vector.broadcast %65 : vector<8x1xf32> to vector<8x8xf32>
    %67 = arith.mulf %62, %66 : vector<8x8xf32>
    %cst_25 = arith.constant dense<0.000000e+00> : vector<8x8xf32>
    %68 = tpu.matmul %67, %54, %cst_25 {dimension_numbers = #tpu.dot_dimension_numbers<[1], [0], [0], [1], [0, 0, 1, 1], [], []>} : vector<8x8xf32>, vector<8x8xf32>, vector<8x8xf32> -> vector<8x8xf32>
    %69 = vector.extract_strided_slice %10 {offsets = [16, 0], sizes = [8, 32], strides = [1, 1]} : vector<32x32xf32> to vector<8x32xf32>
    %cst_26 = arith.constant dense<0.000000e+00> : vector<8x32xf32>
    %70 = tpu.matmul %68, %69, %cst_26 {dimension_numbers = #tpu.dot_dimension_numbers<[1], [0], [0], [1], [0, 0, 1, 1], [], []>} : vector<8x8xf32>, vector<8x32xf32>, vector<8x32xf32> -> vector<8x32xf32>
    %71 = arith.addf %51, %70 : vector<8x32xf32>
    %72 = vector.extract_strided_slice %7 {offsets = [0, 24], sizes = [8, 8], strides = [1, 1]} : vector<8x32xf32> to vector<8x8xf32>
    %73 = vector.extract_strided_slice %8 {offsets = [0, 24], sizes = [8, 8], strides = [1, 1]} : vector<8x32xf32> to vector<8x8xf32>
    %74 = vector.extract_strided_slice %9 {offsets = [0, 24], sizes = [8, 8], strides = [1, 1]} : vector<8x32xf32> to vector<8x8xf32>
    %cst_27 = arith.constant dense<0.000000e+00> : vector<8x8xf32>
    %75 = tpu.matmul %72, %73, %cst_27 {dimension_numbers = #tpu.dot_dimension_numbers<[1], [1], [0], [0], [0, 0, 1, 0], [], []>} : vector<8x8xf32>, vector<8x8xf32>, vector<8x8xf32> -> vector<8x8xf32>
    %cst_28 = arith.constant 0.353553385 : f32
    %76 = vector.broadcast %cst_28 : f32 to vector<8x8xf32>
    %77 = arith.mulf %75, %76 : vector<8x8xf32>
    %cst_29 = arith.constant dense<0xFF800000> : vector<8xf32>
    %78 = vector.multi_reduction <maximumf>, %77, %cst_29 [1] : vector<8x8xf32> to vector<8xf32>
    %79 = vector.shape_cast %78 : vector<8xf32> to vector<8x1xf32>
    %80 = vector.broadcast %79 : vector<8x1xf32> to vector<8x8xf32>
    %81 = arith.subf %77, %80 : vector<8x8xf32>
    %82 = math.exp %81 : vector<8x8xf32>
    %cst_30 = arith.constant dense<0.000000e+00> : vector<8xf32>
    %83 = vector.multi_reduction <add>, %82, %cst_30 [1] : vector<8x8xf32> to vector<8xf32>
    %84 = vector.shape_cast %83 : vector<8xf32> to vector<8x1xf32>
    %85 = tpu.reciprocal %84 {approx = true} : vector<8x1xf32> -> vector<8x1xf32>
    %86 = vector.broadcast %85 : vector<8x1xf32> to vector<8x8xf32>
    %87 = arith.mulf %82, %86 : vector<8x8xf32>
    %cst_31 = arith.constant dense<0.000000e+00> : vector<8x8xf32>
    %88 = tpu.matmul %87, %74, %cst_31 {dimension_numbers = #tpu.dot_dimension_numbers<[1], [0], [0], [1], [0, 0, 1, 1], [], []>} : vector<8x8xf32>, vector<8x8xf32>, vector<8x8xf32> -> vector<8x8xf32>
    %89 = vector.extract_strided_slice %10 {offsets = [24, 0], sizes = [8, 32], strides = [1, 1]} : vector<32x32xf32> to vector<8x32xf32>
    %cst_32 = arith.constant dense<0.000000e+00> : vector<8x32xf32>
    %90 = tpu.matmul %88, %89, %cst_32 {dimension_numbers = #tpu.dot_dimension_numbers<[1], [0], [0], [1], [0, 0, 1, 1], [], []>} : vector<8x8xf32>, vector<8x32xf32>, vector<8x32xf32> -> vector<8x32xf32>
    %91 = arith.addf %71, %90 : vector<8x32xf32>
    %c0_33 = arith.constant 0 : index
    %c0_34 = arith.constant 0 : index
    %92 = vector.load %arg5[%c0_33, %c0_34] : memref<1x32xf32, #tpu.memory_space<vmem>>, vector<1x32xf32>
    %93 = vector.broadcast %92 : vector<1x32xf32> to vector<8x32xf32>
    %94 = arith.addf %91, %93 : vector<8x32xf32>
    %95 = arith.addf %1, %94 : vector<8x32xf32>
    %c0_35 = arith.constant 0 : index
    %c0_36 = arith.constant 0 : index
    %96 = vector.load %arg6[%c0_35, %c0_36] : memref<1x32xf32, #tpu.memory_space<vmem>>, vector<1x32xf32>
    %c0_37 = arith.constant 0 : index
    %c0_38 = arith.constant 0 : index
    %97 = vector.load %arg7[%c0_37, %c0_38] : memref<1x32xf32, #tpu.memory_space<vmem>>, vector<1x32xf32>
    %cst_39 = arith.constant dense<0.000000e+00> : vector<8xf32>
    %98 = vector.multi_reduction <add>, %95, %cst_39 [1] : vector<8x32xf32> to vector<8xf32>
    %99 = vector.shape_cast %98 : vector<8xf32> to vector<8x1xf32>
    %cst_40 = arith.constant 3.200000e+01 : f32
    %100 = vector.broadcast %cst_40 : f32 to vector<8x1xf32>
    %101 = arith.divf %99, %100 : vector<8x1xf32>
    %102 = vector.broadcast %101 : vector<8x1xf32> to vector<8x32xf32>
    %103 = arith.subf %95, %102 : vector<8x32xf32>
    %104 = arith.mulf %103, %103 : vector<8x32xf32>
    %cst_41 = arith.constant dense<0.000000e+00> : vector<8xf32>
    %105 = vector.multi_reduction <add>, %104, %cst_41 [1] : vector<8x32xf32> to vector<8xf32>
    %106 = vector.shape_cast %105 : vector<8xf32> to vector<8x1xf32>
    %cst_42 = arith.constant 3.200000e+01 : f32
    %107 = vector.broadcast %cst_42 : f32 to vector<8x1xf32>
    %108 = arith.divf %106, %107 : vector<8x1xf32>
    %109 = vector.broadcast %101 : vector<8x1xf32> to vector<8x32xf32>
    %110 = arith.subf %95, %109 : vector<8x32xf32>
    %cst_43 = arith.constant 9.99999974E-6 : f32
    %111 = vector.broadcast %cst_43 : f32 to vector<8x1xf32>
    %112 = arith.addf %108, %111 : vector<8x1xf32>
    %113 = math.rsqrt %112 : vector<8x1xf32>
    %114 = vector.broadcast %113 : vector<8x1xf32> to vector<8x32xf32>
    %115 = arith.mulf %110, %114 : vector<8x32xf32>
    %116 = vector.broadcast %96 : vector<1x32xf32> to vector<8x32xf32>
    %117 = arith.mulf %115, %116 : vector<8x32xf32>
    %118 = vector.broadcast %97 : vector<1x32xf32> to vector<8x32xf32>
    %119 = arith.addf %117, %118 : vector<8x32xf32>
    %c0_44 = arith.constant 0 : index
    %c0_45 = arith.constant 0 : index
    %120 = vector.load %arg8[%c0_44, %c0_45] : memref<32x128xf32, #tpu.memory_space<vmem>>, vector<32x128xf32>
    %cst_46 = arith.constant dense<0.000000e+00> : vector<8x128xf32>
    %121 = tpu.matmul %119, %120, %cst_46 {dimension_numbers = #tpu.dot_dimension_numbers<[1], [0], [0], [1], [0, 0, 1, 1], [], []>} : vector<8x32xf32>, vector<32x128xf32>, vector<8x128xf32> -> vector<8x128xf32>
    %c0_47 = arith.constant 0 : index
    %c0_48 = arith.constant 0 : index
    %122 = vector.load %arg9[%c0_47, %c0_48] : memref<1x128xf32, #tpu.memory_space<vmem>>, vector<1x128xf32>
    %123 = vector.broadcast %122 : vector<1x128xf32> to vector<8x128xf32>
    %124 = arith.addf %121, %123 : vector<8x128xf32>
    %cst_49 = arith.constant 0.000000e+00 : f32
    %125 = vector.broadcast %cst_49 : f32 to vector<8x128xf32>
    %126 = arith.maximumf %124, %125 : vector<8x128xf32>
    %c0_50 = arith.constant 0 : index
    %c0_51 = arith.constant 0 : index
    %127 = vector.load %arg10[%c0_50, %c0_51] : memref<128x32xf32, #tpu.memory_space<vmem>>, vector<128x32xf32>
    %cst_52 = arith.constant dense<0.000000e+00> : vector<8x32xf32>
    %128 = tpu.matmul %126, %127, %cst_52 {dimension_numbers = #tpu.dot_dimension_numbers<[1], [0], [0], [1], [0, 0, 1, 1], [], []>} : vector<8x128xf32>, vector<128x32xf32>, vector<8x32xf32> -> vector<8x32xf32>
    %c0_53 = arith.constant 0 : index
    %c0_54 = arith.constant 0 : index
    %129 = vector.load %arg11[%c0_53, %c0_54] : memref<1x32xf32, #tpu.memory_space<vmem>>, vector<1x32xf32>
    %130 = vector.broadcast %129 : vector<1x32xf32> to vector<8x32xf32>
    %131 = arith.addf %128, %130 : vector<8x32xf32>
    %132 = arith.addf %119, %131 : vector<8x32xf32>
    %c0_55 = arith.constant 0 : index
    %c0_56 = arith.constant 0 : index
    %133 = vector.load %arg12[%c0_55, %c0_56] : memref<1x32xf32, #tpu.memory_space<vmem>>, vector<1x32xf32>
    %c0_57 = arith.constant 0 : index
    %c0_58 = arith.constant 0 : index
    %134 = vector.load %arg13[%c0_57, %c0_58] : memref<1x32xf32, #tpu.memory_space<vmem>>, vector<1x32xf32>
    %cst_59 = arith.constant dense<0.000000e+00> : vector<8xf32>
    %135 = vector.multi_reduction <add>, %132, %cst_59 [1] : vector<8x32xf32> to vector<8xf32>
    %136 = vector.shape_cast %135 : vector<8xf32> to vector<8x1xf32>
    %cst_60 = arith.constant 3.200000e+01 : f32
    %137 = vector.broadcast %cst_60 : f32 to vector<8x1xf32>
    %138 = arith.divf %136, %137 : vector<8x1xf32>
    %139 = vector.broadcast %138 : vector<8x1xf32> to vector<8x32xf32>
    %140 = arith.subf %132, %139 : vector<8x32xf32>
    %141 = arith.mulf %140, %140 : vector<8x32xf32>
    %cst_61 = arith.constant dense<0.000000e+00> : vector<8xf32>
    %142 = vector.multi_reduction <add>, %141, %cst_61 [1] : vector<8x32xf32> to vector<8xf32>
    %143 = vector.shape_cast %142 : vector<8xf32> to vector<8x1xf32>
    %cst_62 = arith.constant 3.200000e+01 : f32
    %144 = vector.broadcast %cst_62 : f32 to vector<8x1xf32>
    %145 = arith.divf %143, %144 : vector<8x1xf32>
    %146 = vector.broadcast %138 : vector<8x1xf32> to vector<8x32xf32>
    %147 = arith.subf %132, %146 : vector<8x32xf32>
    %cst_63 = arith.constant 9.99999974E-6 : f32
    %148 = vector.broadcast %cst_63 : f32 to vector<8x1xf32>
    %149 = arith.addf %145, %148 : vector<8x1xf32>
    %150 = math.rsqrt %149 : vector<8x1xf32>
    %151 = vector.broadcast %150 : vector<8x1xf32> to vector<8x32xf32>
    %152 = arith.mulf %147, %151 : vector<8x32xf32>
    %153 = vector.broadcast %133 : vector<1x32xf32> to vector<8x32xf32>
    %154 = arith.mulf %152, %153 : vector<8x32xf32>
    %155 = vector.broadcast %134 : vector<1x32xf32> to vector<8x32xf32>
    %156 = arith.addf %154, %155 : vector<8x32xf32>
    %c0_64 = arith.constant 0 : index
    %c0_65 = arith.constant 0 : index
    %c0_66 = arith.constant 0 : index
    %157 = vector.load %arg14[%c0_64, %c0_65, %c0_66] : memref<1x8x32xf32, #tpu.memory_space<vmem>>, vector<1x8x32xf32>
    %158 = vector.shape_cast %157 : vector<1x8x32xf32> to vector<8x32xf32>
    %159 = vector.shape_cast %156 : vector<8x32xf32> to vector<1x8x32xf32>
    tpu.vector_store %arg14[%c0_64, %c0_65, %c0_66], %159 {strides = array<i32>} : memref<1x8x32xf32, #tpu.memory_space<vmem>>, vector<1x8x32xf32>,
    return
  }
  func.func @transform_0(%arg0: i32) -> (i32, i32, i32) {
    %c0_i32 = arith.constant 0 : i32
    %c0_i32_0 = arith.constant 0 : i32
    %c0_i32_1 = arith.constant 0 : i32
    return %arg0, %c0_i32, %c0_i32_0 : i32, i32, i32
  }
  func.func @transform_1(%arg0: i32) -> (i32, i32) {
    %c0_i32 = arith.constant 0 : i32
    %c0_i32_0 = arith.constant 0 : i32
    %c0_i32_1 = arith.constant 0 : i32
    return %c0_i32, %c0_i32_0 : i32, i32
  }
  func.func @transform_2(%arg0: i32) -> (i32, i32) {
    %c0_i32 = arith.constant 0 : i32
    %c0_i32_0 = arith.constant 0 : i32
    %c0_i32_1 = arith.constant 0 : i32
    return %c0_i32, %c0_i32_0 : i32, i32
  }
  func.func @transform_3(%arg0: i32) -> (i32, i32) {
    %c0_i32 = arith.constant 0 : i32
    %c0_i32_0 = arith.constant 0 : i32
    %c0_i32_1 = arith.constant 0 : i32
    return %c0_i32, %c0_i32_0 : i32, i32
  }
  func.func @transform_4(%arg0: i32) -> (i32, i32) {
    %c0_i32 = arith.constant 0 : i32
    %c0_i32_0 = arith.constant 0 : i32
    %c0_i32_1 = arith.constant 0 : i32
    return %c0_i32, %c0_i32_0 : i32, i32
  }
  func.func @transform_5(%arg0: i32) -> (i32, i32) {
    %c0_i32 = arith.constant 0 : i32
    %c0_i32_0 = arith.constant 0 : i32
    %c0_i32_1 = arith.constant 0 : i32
    return %c0_i32, %c0_i32_0 : i32, i32
  }
  func.func @transform_6(%arg0: i32) -> (i32, i32) {
    %c0_i32 = arith.constant 0 : i32
    %c0_i32_0 = arith.constant 0 : i32
    %c0_i32_1 = arith.constant 0 : i32
    return %c0_i32, %c0_i32_0 : i32, i32
  }
  func.func @transform_7(%arg0: i32) -> (i32, i32) {
    %c0_i32 = arith.constant 0 : i32
    %c0_i32_0 = arith.constant 0 : i32
    %c0_i32_1 = arith.constant 0 : i32
    return %c0_i32, %c0_i32_0 : i32, i32
  }
  func.func @transform_8(%arg0: i32) -> (i32, i32) {
    %c0_i32 = arith.constant 0 : i32
    %c0_i32_0 = arith.constant 0 : i32
    %c0_i32_1 = arith.constant 0 : i32
    return %c0_i32, %c0_i32_0 : i32, i32
  }
  func.func @transform_9(%arg0: i32) -> (i32, i32) {
    %c0_i32 = arith.constant 0 : i32
    %c0_i32_0 = arith.constant 0 : i32
    %c0_i32_1 = arith.constant 0 : i32
    return %c0_i32, %c0_i32_0 : i32, i32
  }
  func.func @transform_10(%arg0: i32) -> (i32, i32) {
    %c0_i32 = arith.constant 0 : i32
    %c0_i32_0 = arith.constant 0 : i32
    %c0_i32_1 = arith.constant 0 : i32
    return %c0_i32, %c0_i32_0 : i32, i32
  }
  func.func @transform_11(%arg0: i32) -> (i32, i32) {
    %c0_i32 = arith.constant 0 : i32
    %c0_i32_0 = arith.constant 0 : i32
    %c0_i32_1 = arith.constant 0 : i32
    return %c0_i32, %c0_i32_0 : i32, i32
  }
  func.func @transform_12(%arg0: i32) -> (i32, i32) {
    %c0_i32 = arith.constant 0 : i32
    %c0_i32_0 = arith.constant 0 : i32
    %c0_i32_1 = arith.constant 0 : i32
    return %c0_i32, %c0_i32_0 : i32, i32
  }
  func.func @transform_13(%arg0: i32) -> (i32, i32, i32) {
    %c0_i32 = arith.constant 0 : i32
    %c0_i32_0 = arith.constant 0 : i32
    %c0_i32_1 = arith.constant 0 : i32
    return %arg0, %c0_i32, %c0_i32_0 : i32, i32, i32
  }
}

module attributes {stable_mosaic.version = 11 : i64} {
  func.func @kernel(%arg0: i32, %arg1: memref<1x8x32xf32, #tpu.memory_space<vmem>>, %arg2: memref<1x8x32xf32, #tpu.memory_space<vmem>>, %arg3: memref<32x96xf32, #tpu.memory_space<vmem>>, %arg4: memref<1x96xf32, #tpu.memory_space<vmem>>, %arg5: memref<32x32xf32, #tpu.memory_space<vmem>>, %arg6: memref<1x32xf32, #tpu.memory_space<vmem>>, %arg7: memref<1x32xf32, #tpu.memory_space<vmem>>, %arg8: memref<1x32xf32, #tpu.memory_space<vmem>>, %arg9: memref<32x32xf32, #tpu.memory_space<vmem>>, %arg10: memref<1x32xf32, #tpu.memory_space<vmem>>, %arg11: memref<32x64xf32, #tpu.memory_space<vmem>>, %arg12: memref<1x64xf32, #tpu.memory_space<vmem>>, %arg13: memref<32x32xf32, #tpu.memory_space<vmem>>, %arg14: memref<1x32xf32, #tpu.memory_space<vmem>>, %arg15: memref<1x32xf32, #tpu.memory_space<vmem>>, %arg16: memref<1x32xf32, #tpu.memory_space<vmem>>, %arg17: memref<32x128xf32, #tpu.memory_space<vmem>>, %arg18: memref<1x128xf32, #tpu.memory_space<vmem>>, %arg19: memref<128x32xf32, #tpu.memory_space<vmem>>, %arg20: memref<1x32xf32, #tpu.memory_space<vmem>>, %arg21: memref<1x32xf32, #tpu.memory_space<vmem>>, %arg22: memref<1x32xf32, #tpu.memory_space<vmem>>, %arg23: memref<1x8x32xf32, #tpu.memory_space<vmem>>) attributes {dimension_semantics = [#tpu.dimension_semantics<parallel>], iteration_bounds = array<i64: 2>, scalar_prefetch = 0 : i64, scratch_operands = 0 : i64, tpu.core_type = #tpu.core_type<tc>, window_params = [{transform_indices = @transform_0, window_bounds = array<i64: 1, 8, 32>}, {transform_indices = @transform_1, window_bounds = array<i64: 1, 8, 32>}, {pipeline_mode = #tpu.pipeline_mode<synchronous>, transform_indices = @transform_2, window_bounds = array<i64: 32, 96>}, {pipeline_mode = #tpu.pipeline_mode<synchronous>, transform_indices = @transform_3, window_bounds = array<i64: 1, 96>}, {pipeline_mode = #tpu.pipeline_mode<synchronous>, transform_indices = @transform_4, window_bounds = array<i64: 32, 32>}, {pipeline_mode = #tpu.pipeline_mode<synchronous>, transform_indices = @transform_5, window_bounds = array<i64: 1, 32>}, {pipeline_mode = #tpu.pipeline_mode<synchronous>, transform_indices = @transform_6, window_bounds = array<i64: 1, 32>}, {pipeline_mode = #tpu.pipeline_mode<synchronous>, transform_indices = @transform_7, window_bounds = array<i64: 1, 32>}, {pipeline_mode = #tpu.pipeline_mode<synchronous>, transform_indices = @transform_8, window_bounds = array<i64: 32, 32>}, {pipeline_mode = #tpu.pipeline_mode<synchronous>, transform_indices = @transform_9, window_bounds = array<i64: 1, 32>}, {pipeline_mode = #tpu.pipeline_mode<synchronous>, transform_indices = @transform_10, window_bounds = array<i64: 32, 64>}, {pipeline_mode = #tpu.pipeline_mode<synchronous>, transform_indices = @transform_11, window_bounds = array<i64: 1, 64>}, {pipeline_mode = #tpu.pipeline_mode<synchronous>, transform_indices = @transform_12, window_bounds = array<i64: 32, 32>}, {pipeline_mode = #tpu.pipeline_mode<synchronous>, transform_indices = @transform_13, window_bounds = array<i64: 1, 32>}, {pipeline_mode = #tpu.pipeline_mode<synchronous>, transform_indices = @transform_14, window_bounds = array<i64: 1, 32>}, {pipeline_mode = #tpu.pipeline_mode<synchronous>, transform_indices = @transform_15, window_bounds = array<i64: 1, 32>}, {pipeline_mode = #tpu.pipeline_mode<synchronous>, transform_indices = @transform_16, window_bounds = array<i64: 32, 128>}, {pipeline_mode = #tpu.pipeline_mode<synchronous>, transform_indices = @transform_17, window_bounds = array<i64: 1, 128>}, {pipeline_mode = #tpu.pipeline_mode<synchronous>, transform_indices = @transform_18, window_bounds = array<i64: 128, 32>}, {pipeline_mode = #tpu.pipeline_mode<synchronous>, transform_indices = @transform_19, window_bounds = array<i64: 1, 32>}, {pipeline_mode = #tpu.pipeline_mode<synchronous>, transform_indices = @transform_20, window_bounds = array<i64: 1, 32>}, {pipeline_mode = #tpu.pipeline_mode<synchronous>, transform_indices = @transform_21, window_bounds = array<i64: 1, 32>}, {transform_indices = @transform_22, window_bounds = array<i64: 1, 8, 32>}]} {
    %c0 = arith.constant 0 : index
    %c0_0 = arith.constant 0 : index
    %c0_1 = arith.constant 0 : index
    %0 = vector.load %arg1[%c0, %c0_0, %c0_1] : memref<1x8x32xf32, #tpu.memory_space<vmem>>, vector<1x8x32xf32>
    %1 = vector.shape_cast %0 : vector<1x8x32xf32> to vector<8x32xf32>
    %c0_2 = arith.constant 0 : index
    %c0_3 = arith.constant 0 : index
    %c0_4 = arith.constant 0 : index
    %2 = vector.load %arg2[%c0_2, %c0_3, %c0_4] : memref<1x8x32xf32, #tpu.memory_space<vmem>>, vector<1x8x32xf32>
    %3 = vector.shape_cast %2 : vector<1x8x32xf32> to vector<8x32xf32>
    %c0_5 = arith.constant 0 : index
    %c0_6 = arith.constant 0 : index
    %4 = vector.load %arg3[%c0_5, %c0_6] : memref<32x96xf32, #tpu.memory_space<vmem>>, vector<32x96xf32>
    %cst = arith.constant dense<0.000000e+00> : vector<8x96xf32>
    %5 = tpu.matmul %1, %4, %cst {dimension_numbers = #tpu.dot_dimension_numbers<[1], [0], [0], [1], [0, 0, 1, 1], [], []>} : vector<8x32xf32>, vector<32x96xf32>, vector<8x96xf32> -> vector<8x96xf32>
    %c0_7 = arith.constant 0 : index
    %c0_8 = arith.constant 0 : index
    %6 = vector.load %arg4[%c0_7, %c0_8] : memref<1x96xf32, #tpu.memory_space<vmem>>, vector<1x96xf32>
    %7 = vector.broadcast %6 : vector<1x96xf32> to vector<8x96xf32>
    %8 = arith.addf %5, %7 : vector<8x96xf32>
    %9 = vector.extract_strided_slice %8 {offsets = [0, 0], sizes = [8, 32], strides = [1, 1]} : vector<8x96xf32> to vector<8x32xf32>
    %10 = vector.extract_strided_slice %8 {offsets = [0, 32], sizes = [8, 32], strides = [1, 1]} : vector<8x96xf32> to vector<8x32xf32>
    %11 = vector.extract_strided_slice %8 {offsets = [0, 64], sizes = [8, 32], strides = [1, 1]} : vector<8x96xf32> to vector<8x32xf32>
    %c0_9 = arith.constant 0 : index
    %c0_10 = arith.constant 0 : index
    %12 = vector.load %arg5[%c0_9, %c0_10] : memref<32x32xf32, #tpu.memory_space<vmem>>, vector<32x32xf32>
    %13 = tpu.iota {dimensions = array<i32: 0>} : vector<8x8xi32>
    %14 = tpu.iota {dimensions = array<i32: 1>} : vector<8x8xi32>
    %15 = arith.cmpi sle, %14, %13 : vector<8x8xi32>
    %cst_11 = arith.constant 0.000000e+00 : f32
    %16 = vector.broadcast %cst_11 : f32 to vector<8x32xf32>
    %17 = vector.extract_strided_slice %9 {offsets = [0, 0], sizes = [8, 8], strides = [1, 1]} : vector<8x32xf32> to vector<8x8xf32>
    %18 = vector.extract_strided_slice %10 {offsets = [0, 0], sizes = [8, 8], strides = [1, 1]} : vector<8x32xf32> to vector<8x8xf32>
    %19 = vector.extract_strided_slice %11 {offsets = [0, 0], sizes = [8, 8], strides = [1, 1]} : vector<8x32xf32> to vector<8x8xf32>
    %cst_12 = arith.constant dense<0.000000e+00> : vector<8x8xf32>
    %20 = tpu.matmul %17, %18, %cst_12 {dimension_numbers = #tpu.dot_dimension_numbers<[1], [1], [0], [0], [0, 0, 1, 0], [], []>} : vector<8x8xf32>, vector<8x8xf32>, vector<8x8xf32> -> vector<8x8xf32>
    %cst_13 = arith.constant 0.353553385 : f32
    %21 = vector.broadcast %cst_13 : f32 to vector<8x8xf32>
    %22 = arith.mulf %20, %21 : vector<8x8xf32>
    %cst_14 = arith.constant -1.000000e+30 : f32
    %23 = vector.broadcast %cst_14 : f32 to vector<8x8xf32>
    %24 = arith.select %15, %22, %23 : vector<8x8xi1>, vector<8x8xf32>
    %cst_15 = arith.constant dense<0xFF800000> : vector<8xf32>
    %25 = vector.multi_reduction <maximumf>, %24, %cst_15 [1] : vector<8x8xf32> to vector<8xf32>
    %26 = vector.shape_cast %25 : vector<8xf32> to vector<8x1xf32>
    %27 = vector.broadcast %26 : vector<8x1xf32> to vector<8x8xf32>
    %28 = arith.subf %24, %27 : vector<8x8xf32>
    %29 = math.exp %28 : vector<8x8xf32>
    %cst_16 = arith.constant dense<0.000000e+00> : vector<8xf32>
    %30 = vector.multi_reduction <add>, %29, %cst_16 [1] : vector<8x8xf32> to vector<8xf32>
    %31 = vector.shape_cast %30 : vector<8xf32> to vector<8x1xf32>
    %32 = tpu.reciprocal %31 {approx = true} : vector<8x1xf32> -> vector<8x1xf32>
    %33 = vector.broadcast %32 : vector<8x1xf32> to vector<8x8xf32>
    %34 = arith.mulf %29, %33 : vector<8x8xf32>
    %cst_17 = arith.constant dense<0.000000e+00> : vector<8x8xf32>
    %35 = tpu.matmul %34, %19, %cst_17 {dimension_numbers = #tpu.dot_dimension_numbers<[1], [0], [0], [1], [0, 0, 1, 1], [], []>} : vector<8x8xf32>, vector<8x8xf32>, vector<8x8xf32> -> vector<8x8xf32>
    %36 = vector.extract_strided_slice %12 {offsets = [0, 0], sizes = [8, 32], strides = [1, 1]} : vector<32x32xf32> to vector<8x32xf32>
    %cst_18 = arith.constant dense<0.000000e+00> : vector<8x32xf32>
    %37 = tpu.matmul %35, %36, %cst_18 {dimension_numbers = #tpu.dot_dimension_numbers<[1], [0], [0], [1], [0, 0, 1, 1], [], []>} : vector<8x8xf32>, vector<8x32xf32>, vector<8x32xf32> -> vector<8x32xf32>
    %38 = arith.addf %16, %37 : vector<8x32xf32>
    %39 = vector.extract_strided_slice %9 {offsets = [0, 8], sizes = [8, 8], strides = [1, 1]} : vector<8x32xf32> to vector<8x8xf32>
    %40 = vector.extract_strided_slice %10 {offsets = [0, 8], sizes = [8, 8], strides = [1, 1]} : vector<8x32xf32> to vector<8x8xf32>
    %41 = vector.extract_strided_slice %11 {offsets = [0, 8], sizes = [8, 8], strides = [1, 1]} : vector<8x32xf32> to vector<8x8xf32>
    %cst_19 = arith.constant dense<0.000000e+00> : vector<8x8xf32>
    %42 = tpu.matmul %39, %40, %cst_19 {dimension_numbers = #tpu.dot_dimension_numbers<[1], [1], [0], [0], [0, 0, 1, 0], [], []>} : vector<8x8xf32>, vector<8x8xf32>, vector<8x8xf32> -> vector<8x8xf32>
    %cst_20 = arith.constant 0.353553385 : f32
    %43 = vector.broadcast %cst_20 : f32 to vector<8x8xf32>
    %44 = arith.mulf %42, %43 : vector<8x8xf32>
    %cst_21 = arith.constant -1.000000e+30 : f32
    %45 = vector.broadcast %cst_21 : f32 to vector<8x8xf32>
    %46 = arith.select %15, %44, %45 : vector<8x8xi1>, vector<8x8xf32>
    %cst_22 = arith.constant dense<0xFF800000> : vector<8xf32>
    %47 = vector.multi_reduction <maximumf>, %46, %cst_22 [1] : vector<8x8xf32> to vector<8xf32>
    %48 = vector.shape_cast %47 : vector<8xf32> to vector<8x1xf32>
    %49 = vector.broadcast %48 : vector<8x1xf32> to vector<8x8xf32>
    %50 = arith.subf %46, %49 : vector<8x8xf32>
    %51 = math.exp %50 : vector<8x8xf32>
    %cst_23 = arith.constant dense<0.000000e+00> : vector<8xf32>
    %52 = vector.multi_reduction <add>, %51, %cst_23 [1] : vector<8x8xf32> to vector<8xf32>
    %53 = vector.shape_cast %52 : vector<8xf32> to vector<8x1xf32>
    %54 = tpu.reciprocal %53 {approx = true} : vector<8x1xf32> -> vector<8x1xf32>
    %55 = vector.broadcast %54 : vector<8x1xf32> to vector<8x8xf32>
    %56 = arith.mulf %51, %55 : vector<8x8xf32>
    %cst_24 = arith.constant dense<0.000000e+00> : vector<8x8xf32>
    %57 = tpu.matmul %56, %41, %cst_24 {dimension_numbers = #tpu.dot_dimension_numbers<[1], [0], [0], [1], [0, 0, 1, 1], [], []>} : vector<8x8xf32>, vector<8x8xf32>, vector<8x8xf32> -> vector<8x8xf32>
    %58 = vector.extract_strided_slice %12 {offsets = [8, 0], sizes = [8, 32], strides = [1, 1]} : vector<32x32xf32> to vector<8x32xf32>
    %cst_25 = arith.constant dense<0.000000e+00> : vector<8x32xf32>
    %59 = tpu.matmul %57, %58, %cst_25 {dimension_numbers = #tpu.dot_dimension_numbers<[1], [0], [0], [1], [0, 0, 1, 1], [], []>} : vector<8x8xf32>, vector<8x32xf32>, vector<8x32xf32> -> vector<8x32xf32>
    %60 = arith.addf %38, %59 : vector<8x32xf32>
    %61 = vector.extract_strided_slice %9 {offsets = [0, 16], sizes = [8, 8], strides = [1, 1]} : vector<8x32xf32> to vector<8x8xf32>
    %62 = vector.extract_strided_slice %10 {offsets = [0, 16], sizes = [8, 8], strides = [1, 1]} : vector<8x32xf32> to vector<8x8xf32>
    %63 = vector.extract_strided_slice %11 {offsets = [0, 16], sizes = [8, 8], strides = [1, 1]} : vector<8x32xf32> to vector<8x8xf32>
    %cst_26 = arith.constant dense<0.000000e+00> : vector<8x8xf32>
    %64 = tpu.matmul %61, %62, %cst_26 {dimension_numbers = #tpu.dot_dimension_numbers<[1], [1], [0], [0], [0, 0, 1, 0], [], []>} : vector<8x8xf32>, vector<8x8xf32>, vector<8x8xf32> -> vector<8x8xf32>
    %cst_27 = arith.constant 0.353553385 : f32
    %65 = vector.broadcast %cst_27 : f32 to vector<8x8xf32>
    %66 = arith.mulf %64, %65 : vector<8x8xf32>
    %cst_28 = arith.constant -1.000000e+30 : f32
    %67 = vector.broadcast %cst_28 : f32 to vector<8x8xf32>
    %68 = arith.select %15, %66, %67 : vector<8x8xi1>, vector<8x8xf32>
    %cst_29 = arith.constant dense<0xFF800000> : vector<8xf32>
    %69 = vector.multi_reduction <maximumf>, %68, %cst_29 [1] : vector<8x8xf32> to vector<8xf32>
    %70 = vector.shape_cast %69 : vector<8xf32> to vector<8x1xf32>
    %71 = vector.broadcast %70 : vector<8x1xf32> to vector<8x8xf32>
    %72 = arith.subf %68, %71 : vector<8x8xf32>
    %73 = math.exp %72 : vector<8x8xf32>
    %cst_30 = arith.constant dense<0.000000e+00> : vector<8xf32>
    %74 = vector.multi_reduction <add>, %73, %cst_30 [1] : vector<8x8xf32> to vector<8xf32>
    %75 = vector.shape_cast %74 : vector<8xf32> to vector<8x1xf32>
    %76 = tpu.reciprocal %75 {approx = true} : vector<8x1xf32> -> vector<8x1xf32>
    %77 = vector.broadcast %76 : vector<8x1xf32> to vector<8x8xf32>
    %78 = arith.mulf %73, %77 : vector<8x8xf32>
    %cst_31 = arith.constant dense<0.000000e+00> : vector<8x8xf32>
    %79 = tpu.matmul %78, %63, %cst_31 {dimension_numbers = #tpu.dot_dimension_numbers<[1], [0], [0], [1], [0, 0, 1, 1], [], []>} : vector<8x8xf32>, vector<8x8xf32>, vector<8x8xf32> -> vector<8x8xf32>
    %80 = vector.extract_strided_slice %12 {offsets = [16, 0], sizes = [8, 32], strides = [1, 1]} : vector<32x32xf32> to vector<8x32xf32>
    %cst_32 = arith.constant dense<0.000000e+00> : vector<8x32xf32>
    %81 = tpu.matmul %79, %80, %cst_32 {dimension_numbers = #tpu.dot_dimension_numbers<[1], [0], [0], [1], [0, 0, 1, 1], [], []>} : vector<8x8xf32>, vector<8x32xf32>, vector<8x32xf32> -> vector<8x32xf32>
    %82 = arith.addf %60, %81 : vector<8x32xf32>
    %83 = vector.extract_strided_slice %9 {offsets = [0, 24], sizes = [8, 8], strides = [1, 1]} : vector<8x32xf32> to vector<8x8xf32>
    %84 = vector.extract_strided_slice %10 {offsets = [0, 24], sizes = [8, 8], strides = [1, 1]} : vector<8x32xf32> to vector<8x8xf32>
    %85 = vector.extract_strided_slice %11 {offsets = [0, 24], sizes = [8, 8], strides = [1, 1]} : vector<8x32xf32> to vector<8x8xf32>
    %cst_33 = arith.constant dense<0.000000e+00> : vector<8x8xf32>
    %86 = tpu.matmul %83, %84, %cst_33 {dimension_numbers = #tpu.dot_dimension_numbers<[1], [1], [0], [0], [0, 0, 1, 0], [], []>} : vector<8x8xf32>, vector<8x8xf32>, vector<8x8xf32> -> vector<8x8xf32>
    %cst_34 = arith.constant 0.353553385 : f32
    %87 = vector.broadcast %cst_34 : f32 to vector<8x8xf32>
    %88 = arith.mulf %86, %87 : vector<8x8xf32>
    %cst_35 = arith.constant -1.000000e+30 : f32
    %89 = vector.broadcast %cst_35 : f32 to vector<8x8xf32>
    %90 = arith.select %15, %88, %89 : vector<8x8xi1>, vector<8x8xf32>
    %cst_36 = arith.constant dense<0xFF800000> : vector<8xf32>
    %91 = vector.multi_reduction <maximumf>, %90, %cst_36 [1] : vector<8x8xf32> to vector<8xf32>
    %92 = vector.shape_cast %91 : vector<8xf32> to vector<8x1xf32>
    %93 = vector.broadcast %92 : vector<8x1xf32> to vector<8x8xf32>
    %94 = arith.subf %90, %93 : vector<8x8xf32>
    %95 = math.exp %94 : vector<8x8xf32>
    %cst_37 = arith.constant dense<0.000000e+00> : vector<8xf32>
    %96 = vector.multi_reduction <add>, %95, %cst_37 [1] : vector<8x8xf32> to vector<8xf32>
    %97 = vector.shape_cast %96 : vector<8xf32> to vector<8x1xf32>
    %98 = tpu.reciprocal %97 {approx = true} : vector<8x1xf32> -> vector<8x1xf32>
    %99 = vector.broadcast %98 : vector<8x1xf32> to vector<8x8xf32>
    %100 = arith.mulf %95, %99 : vector<8x8xf32>
    %cst_38 = arith.constant dense<0.000000e+00> : vector<8x8xf32>
    %101 = tpu.matmul %100, %85, %cst_38 {dimension_numbers = #tpu.dot_dimension_numbers<[1], [0], [0], [1], [0, 0, 1, 1], [], []>} : vector<8x8xf32>, vector<8x8xf32>, vector<8x8xf32> -> vector<8x8xf32>
    %102 = vector.extract_strided_slice %12 {offsets = [24, 0], sizes = [8, 32], strides = [1, 1]} : vector<32x32xf32> to vector<8x32xf32>
    %cst_39 = arith.constant dense<0.000000e+00> : vector<8x32xf32>
    %103 = tpu.matmul %101, %102, %cst_39 {dimension_numbers = #tpu.dot_dimension_numbers<[1], [0], [0], [1], [0, 0, 1, 1], [], []>} : vector<8x8xf32>, vector<8x32xf32>, vector<8x32xf32> -> vector<8x32xf32>
    %104 = arith.addf %82, %103 : vector<8x32xf32>
    %c0_40 = arith.constant 0 : index
    %c0_41 = arith.constant 0 : index
    %105 = vector.load %arg6[%c0_40, %c0_41] : memref<1x32xf32, #tpu.memory_space<vmem>>, vector<1x32xf32>
    %106 = vector.broadcast %105 : vector<1x32xf32> to vector<8x32xf32>
    %107 = arith.addf %104, %106 : vector<8x32xf32>
    %108 = arith.addf %1, %107 : vector<8x32xf32>
    %c0_42 = arith.constant 0 : index
    %c0_43 = arith.constant 0 : index
    %109 = vector.load %arg7[%c0_42, %c0_43] : memref<1x32xf32, #tpu.memory_space<vmem>>, vector<1x32xf32>
    %c0_44 = arith.constant 0 : index
    %c0_45 = arith.constant 0 : index
    %110 = vector.load %arg8[%c0_44, %c0_45] : memref<1x32xf32, #tpu.memory_space<vmem>>, vector<1x32xf32>
    %cst_46 = arith.constant dense<0.000000e+00> : vector<8xf32>
    %111 = vector.multi_reduction <add>, %108, %cst_46 [1] : vector<8x32xf32> to vector<8xf32>
    %112 = vector.shape_cast %111 : vector<8xf32> to vector<8x1xf32>
    %cst_47 = arith.constant 3.200000e+01 : f32
    %113 = vector.broadcast %cst_47 : f32 to vector<8x1xf32>
    %114 = arith.divf %112, %113 : vector<8x1xf32>
    %115 = vector.broadcast %114 : vector<8x1xf32> to vector<8x32xf32>
    %116 = arith.subf %108, %115 : vector<8x32xf32>
    %117 = arith.mulf %116, %116 : vector<8x32xf32>
    %cst_48 = arith.constant dense<0.000000e+00> : vector<8xf32>
    %118 = vector.multi_reduction <add>, %117, %cst_48 [1] : vector<8x32xf32> to vector<8xf32>
    %119 = vector.shape_cast %118 : vector<8xf32> to vector<8x1xf32>
    %cst_49 = arith.constant 3.200000e+01 : f32
    %120 = vector.broadcast %cst_49 : f32 to vector<8x1xf32>
    %121 = arith.divf %119, %120 : vector<8x1xf32>
    %122 = vector.broadcast %114 : vector<8x1xf32> to vector<8x32xf32>
    %123 = arith.subf %108, %122 : vector<8x32xf32>
    %cst_50 = arith.constant 9.99999974E-6 : f32
    %124 = vector.broadcast %cst_50 : f32 to vector<8x1xf32>
    %125 = arith.addf %121, %124 : vector<8x1xf32>
    %126 = math.rsqrt %125 : vector<8x1xf32>
    %127 = vector.broadcast %126 : vector<8x1xf32> to vector<8x32xf32>
    %128 = arith.mulf %123, %127 : vector<8x32xf32>
    %129 = vector.broadcast %109 : vector<1x32xf32> to vector<8x32xf32>
    %130 = arith.mulf %128, %129 : vector<8x32xf32>
    %131 = vector.broadcast %110 : vector<1x32xf32> to vector<8x32xf32>
    %132 = arith.addf %130, %131 : vector<8x32xf32>
    %c0_51 = arith.constant 0 : index
    %c0_52 = arith.constant 0 : index
    %133 = vector.load %arg9[%c0_51, %c0_52] : memref<32x32xf32, #tpu.memory_space<vmem>>, vector<32x32xf32>
    %cst_53 = arith.constant dense<0.000000e+00> : vector<8x32xf32>
    %134 = tpu.matmul %132, %133, %cst_53 {dimension_numbers = #tpu.dot_dimension_numbers<[1], [0], [0], [1], [0, 0, 1, 1], [], []>} : vector<8x32xf32>, vector<32x32xf32>, vector<8x32xf32> -> vector<8x32xf32>
    %c0_54 = arith.constant 0 : index
    %c0_55 = arith.constant 0 : index
    %135 = vector.load %arg10[%c0_54, %c0_55] : memref<1x32xf32, #tpu.memory_space<vmem>>, vector<1x32xf32>
    %136 = vector.broadcast %135 : vector<1x32xf32> to vector<8x32xf32>
    %137 = arith.addf %134, %136 : vector<8x32xf32>
    %c0_56 = arith.constant 0 : index
    %c0_57 = arith.constant 0 : index
    %138 = vector.load %arg11[%c0_56, %c0_57] : memref<32x64xf32, #tpu.memory_space<vmem>>, vector<32x64xf32>
    %cst_58 = arith.constant dense<0.000000e+00> : vector<8x64xf32>
    %139 = tpu.matmul %3, %138, %cst_58 {dimension_numbers = #tpu.dot_dimension_numbers<[1], [0], [0], [1], [0, 0, 1, 1], [], []>} : vector<8x32xf32>, vector<32x64xf32>, vector<8x64xf32> -> vector<8x64xf32>
    %c0_59 = arith.constant 0 : index
    %c0_60 = arith.constant 0 : index
    %140 = vector.load %arg12[%c0_59, %c0_60] : memref<1x64xf32, #tpu.memory_space<vmem>>, vector<1x64xf32>
    %141 = vector.broadcast %140 : vector<1x64xf32> to vector<8x64xf32>
    %142 = arith.addf %139, %141 : vector<8x64xf32>
    %143 = vector.extract_strided_slice %142 {offsets = [0, 0], sizes = [8, 32], strides = [1, 1]} : vector<8x64xf32> to vector<8x32xf32>
    %144 = vector.extract_strided_slice %142 {offsets = [0, 32], sizes = [8, 32], strides = [1, 1]} : vector<8x64xf32> to vector<8x32xf32>
    %c0_61 = arith.constant 0 : index
    %c0_62 = arith.constant 0 : index
    %145 = vector.load %arg13[%c0_61, %c0_62] : memref<32x32xf32, #tpu.memory_space<vmem>>, vector<32x32xf32>
    %cst_63 = arith.constant 0.000000e+00 : f32
    %146 = vector.broadcast %cst_63 : f32 to vector<8x32xf32>
    %147 = vector.extract_strided_slice %137 {offsets = [0, 0], sizes = [8, 8], strides = [1, 1]} : vector<8x32xf32> to vector<8x8xf32>
    %148 = vector.extract_strided_slice %143 {offsets = [0, 0], sizes = [8, 8], strides = [1, 1]} : vector<8x32xf32> to vector<8x8xf32>
    %149 = vector.extract_strided_slice %144 {offsets = [0, 0], sizes = [8, 8], strides = [1, 1]} : vector<8x32xf32> to vector<8x8xf32>
    %cst_64 = arith.constant dense<0.000000e+00> : vector<8x8xf32>
    %150 = tpu.matmul %147, %148, %cst_64 {dimension_numbers = #tpu.dot_dimension_numbers<[1], [1], [0], [0], [0, 0, 1, 0], [], []>} : vector<8x8xf32>, vector<8x8xf32>, vector<8x8xf32> -> vector<8x8xf32>
    %cst_65 = arith.constant 0.353553385 : f32
    %151 = vector.broadcast %cst_65 : f32 to vector<8x8xf32>
    %152 = arith.mulf %150, %151 : vector<8x8xf32>
    %cst_66 = arith.constant dense<0xFF800000> : vector<8xf32>
    %153 = vector.multi_reduction <maximumf>, %152, %cst_66 [1] : vector<8x8xf32> to vector<8xf32>
    %154 = vector.shape_cast %153 : vector<8xf32> to vector<8x1xf32>
    %155 = vector.broadcast %154 : vector<8x1xf32> to vector<8x8xf32>
    %156 = arith.subf %152, %155 : vector<8x8xf32>
    %157 = math.exp %156 : vector<8x8xf32>
    %cst_67 = arith.constant dense<0.000000e+00> : vector<8xf32>
    %158 = vector.multi_reduction <add>, %157, %cst_67 [1] : vector<8x8xf32> to vector<8xf32>
    %159 = vector.shape_cast %158 : vector<8xf32> to vector<8x1xf32>
    %160 = tpu.reciprocal %159 {approx = true} : vector<8x1xf32> -> vector<8x1xf32>
    %161 = vector.broadcast %160 : vector<8x1xf32> to vector<8x8xf32>
    %162 = arith.mulf %157, %161 : vector<8x8xf32>
    %cst_68 = arith.constant dense<0.000000e+00> : vector<8x8xf32>
    %163 = tpu.matmul %162, %149, %cst_68 {dimension_numbers = #tpu.dot_dimension_numbers<[1], [0], [0], [1], [0, 0, 1, 1], [], []>} : vector<8x8xf32>, vector<8x8xf32>, vector<8x8xf32> -> vector<8x8xf32>
    %164 = vector.extract_strided_slice %145 {offsets = [0, 0], sizes = [8, 32], strides = [1, 1]} : vector<32x32xf32> to vector<8x32xf32>
    %cst_69 = arith.constant dense<0.000000e+00> : vector<8x32xf32>
    %165 = tpu.matmul %163, %164, %cst_69 {dimension_numbers = #tpu.dot_dimension_numbers<[1], [0], [0], [1], [0, 0, 1, 1], [], []>} : vector<8x8xf32>, vector<8x32xf32>, vector<8x32xf32> -> vector<8x32xf32>
    %166 = arith.addf %146, %165 : vector<8x32xf32>
    %167 = vector.extract_strided_slice %137 {offsets = [0, 8], sizes = [8, 8], strides = [1, 1]} : vector<8x32xf32> to vector<8x8xf32>
    %168 = vector.extract_strided_slice %143 {offsets = [0, 8], sizes = [8, 8], strides = [1, 1]} : vector<8x32xf32> to vector<8x8xf32>
    %169 = vector.extract_strided_slice %144 {offsets = [0, 8], sizes = [8, 8], strides = [1, 1]} : vector<8x32xf32> to vector<8x8xf32>
    %cst_70 = arith.constant dense<0.000000e+00> : vector<8x8xf32>
    %170 = tpu.matmul %167, %168, %cst_70 {dimension_numbers = #tpu.dot_dimension_numbers<[1], [1], [0], [0], [0, 0, 1, 0], [], []>} : vector<8x8xf32>, vector<8x8xf32>, vector<8x8xf32> -> vector<8x8xf32>
    %cst_71 = arith.constant 0.353553385 : f32
    %171 = vector.broadcast %cst_71 : f32 to vector<8x8xf32>
    %172 = arith.mulf %170, %171 : vector<8x8xf32>
    %cst_72 = arith.constant dense<0xFF800000> : vector<8xf32>
    %173 = vector.multi_reduction <maximumf>, %172, %cst_72 [1] : vector<8x8xf32> to vector<8xf32>
    %174 = vector.shape_cast %173 : vector<8xf32> to vector<8x1xf32>
    %175 = vector.broadcast %174 : vector<8x1xf32> to vector<8x8xf32>
    %176 = arith.subf %172, %175 : vector<8x8xf32>
    %177 = math.exp %176 : vector<8x8xf32>
    %cst_73 = arith.constant dense<0.000000e+00> : vector<8xf32>
    %178 = vector.multi_reduction <add>, %177, %cst_73 [1] : vector<8x8xf32> to vector<8xf32>
    %179 = vector.shape_cast %178 : vector<8xf32> to vector<8x1xf32>
    %180 = tpu.reciprocal %179 {approx = true} : vector<8x1xf32> -> vector<8x1xf32>
    %181 = vector.broadcast %180 : vector<8x1xf32> to vector<8x8xf32>
    %182 = arith.mulf %177, %181 : vector<8x8xf32>
    %cst_74 = arith.constant dense<0.000000e+00> : vector<8x8xf32>
    %183 = tpu.matmul %182, %169, %cst_74 {dimension_numbers = #tpu.dot_dimension_numbers<[1], [0], [0], [1], [0, 0, 1, 1], [], []>} : vector<8x8xf32>, vector<8x8xf32>, vector<8x8xf32> -> vector<8x8xf32>
    %184 = vector.extract_strided_slice %145 {offsets = [8, 0], sizes = [8, 32], strides = [1, 1]} : vector<32x32xf32> to vector<8x32xf32>
    %cst_75 = arith.constant dense<0.000000e+00> : vector<8x32xf32>
    %185 = tpu.matmul %183, %184, %cst_75 {dimension_numbers = #tpu.dot_dimension_numbers<[1], [0], [0], [1], [0, 0, 1, 1], [], []>} : vector<8x8xf32>, vector<8x32xf32>, vector<8x32xf32> -> vector<8x32xf32>
    %186 = arith.addf %166, %185 : vector<8x32xf32>
    %187 = vector.extract_strided_slice %137 {offsets = [0, 16], sizes = [8, 8], strides = [1, 1]} : vector<8x32xf32> to vector<8x8xf32>
    %188 = vector.extract_strided_slice %143 {offsets = [0, 16], sizes = [8, 8], strides = [1, 1]} : vector<8x32xf32> to vector<8x8xf32>
    %189 = vector.extract_strided_slice %144 {offsets = [0, 16], sizes = [8, 8], strides = [1, 1]} : vector<8x32xf32> to vector<8x8xf32>
    %cst_76 = arith.constant dense<0.000000e+00> : vector<8x8xf32>
    %190 = tpu.matmul %187, %188, %cst_76 {dimension_numbers = #tpu.dot_dimension_numbers<[1], [1], [0], [0], [0, 0, 1, 0], [], []>} : vector<8x8xf32>, vector<8x8xf32>, vector<8x8xf32> -> vector<8x8xf32>
    %cst_77 = arith.constant 0.353553385 : f32
    %191 = vector.broadcast %cst_77 : f32 to vector<8x8xf32>
    %192 = arith.mulf %190, %191 : vector<8x8xf32>
    %cst_78 = arith.constant dense<0xFF800000> : vector<8xf32>
    %193 = vector.multi_reduction <maximumf>, %192, %cst_78 [1] : vector<8x8xf32> to vector<8xf32>
    %194 = vector.shape_cast %193 : vector<8xf32> to vector<8x1xf32>
    %195 = vector.broadcast %194 : vector<8x1xf32> to vector<8x8xf32>
    %196 = arith.subf %192, %195 : vector<8x8xf32>
    %197 = math.exp %196 : vector<8x8xf32>
    %cst_79 = arith.constant dense<0.000000e+00> : vector<8xf32>
    %198 = vector.multi_reduction <add>, %197, %cst_79 [1] : vector<8x8xf32> to vector<8xf32>
    %199 = vector.shape_cast %198 : vector<8xf32> to vector<8x1xf32>
    %200 = tpu.reciprocal %199 {approx = true} : vector<8x1xf32> -> vector<8x1xf32>
    %201 = vector.broadcast %200 : vector<8x1xf32> to vector<8x8xf32>
    %202 = arith.mulf %197, %201 : vector<8x8xf32>
    %cst_80 = arith.constant dense<0.000000e+00> : vector<8x8xf32>
    %203 = tpu.matmul %202, %189, %cst_80 {dimension_numbers = #tpu.dot_dimension_numbers<[1], [0], [0], [1], [0, 0, 1, 1], [], []>} : vector<8x8xf32>, vector<8x8xf32>, vector<8x8xf32> -> vector<8x8xf32>
    %204 = vector.extract_strided_slice %145 {offsets = [16, 0], sizes = [8, 32], strides = [1, 1]} : vector<32x32xf32> to vector<8x32xf32>
    %cst_81 = arith.constant dense<0.000000e+00> : vector<8x32xf32>
    %205 = tpu.matmul %203, %204, %cst_81 {dimension_numbers = #tpu.dot_dimension_numbers<[1], [0], [0], [1], [0, 0, 1, 1], [], []>} : vector<8x8xf32>, vector<8x32xf32>, vector<8x32xf32> -> vector<8x32xf32>
    %206 = arith.addf %186, %205 : vector<8x32xf32>
    %207 = vector.extract_strided_slice %137 {offsets = [0, 24], sizes = [8, 8], strides = [1, 1]} : vector<8x32xf32> to vector<8x8xf32>
    %208 = vector.extract_strided_slice %143 {offsets = [0, 24], sizes = [8, 8], strides = [1, 1]} : vector<8x32xf32> to vector<8x8xf32>
    %209 = vector.extract_strided_slice %144 {offsets = [0, 24], sizes = [8, 8], strides = [1, 1]} : vector<8x32xf32> to vector<8x8xf32>
    %cst_82 = arith.constant dense<0.000000e+00> : vector<8x8xf32>
    %210 = tpu.matmul %207, %208, %cst_82 {dimension_numbers = #tpu.dot_dimension_numbers<[1], [1], [0], [0], [0, 0, 1, 0], [], []>} : vector<8x8xf32>, vector<8x8xf32>, vector<8x8xf32> -> vector<8x8xf32>
    %cst_83 = arith.constant 0.353553385 : f32
    %211 = vector.broadcast %cst_83 : f32 to vector<8x8xf32>
    %212 = arith.mulf %210, %211 : vector<8x8xf32>
    %cst_84 = arith.constant dense<0xFF800000> : vector<8xf32>
    %213 = vector.multi_reduction <maximumf>, %212, %cst_84 [1] : vector<8x8xf32> to vector<8xf32>
    %214 = vector.shape_cast %213 : vector<8xf32> to vector<8x1xf32>
    %215 = vector.broadcast %214 : vector<8x1xf32> to vector<8x8xf32>
    %216 = arith.subf %212, %215 : vector<8x8xf32>
    %217 = math.exp %216 : vector<8x8xf32>
    %cst_85 = arith.constant dense<0.000000e+00> : vector<8xf32>
    %218 = vector.multi_reduction <add>, %217, %cst_85 [1] : vector<8x8xf32> to vector<8xf32>
    %219 = vector.shape_cast %218 : vector<8xf32> to vector<8x1xf32>
    %220 = tpu.reciprocal %219 {approx = true} : vector<8x1xf32> -> vector<8x1xf32>
    %221 = vector.broadcast %220 : vector<8x1xf32> to vector<8x8xf32>
    %222 = arith.mulf %217, %221 : vector<8x8xf32>
    %cst_86 = arith.constant dense<0.000000e+00> : vector<8x8xf32>
    %223 = tpu.matmul %222, %209, %cst_86 {dimension_numbers = #tpu.dot_dimension_numbers<[1], [0], [0], [1], [0, 0, 1, 1], [], []>} : vector<8x8xf32>, vector<8x8xf32>, vector<8x8xf32> -> vector<8x8xf32>
    %224 = vector.extract_strided_slice %145 {offsets = [24, 0], sizes = [8, 32], strides = [1, 1]} : vector<32x32xf32> to vector<8x32xf32>
    %cst_87 = arith.constant dense<0.000000e+00> : vector<8x32xf32>
    %225 = tpu.matmul %223, %224, %cst_87 {dimension_numbers = #tpu.dot_dimension_numbers<[1], [0], [0], [1], [0, 0, 1, 1], [], []>} : vector<8x8xf32>, vector<8x32xf32>, vector<8x32xf32> -> vector<8x32xf32>
    %226 = arith.addf %206, %225 : vector<8x32xf32>
    %c0_88 = arith.constant 0 : index
    %c0_89 = arith.constant 0 : index
    %227 = vector.load %arg14[%c0_88, %c0_89] : memref<1x32xf32, #tpu.memory_space<vmem>>, vector<1x32xf32>
    %228 = vector.broadcast %227 : vector<1x32xf32> to vector<8x32xf32>
    %229 = arith.addf %226, %228 : vector<8x32xf32>
    %230 = arith.addf %132, %229 : vector<8x32xf32>
    %c0_90 = arith.constant 0 : index
    %c0_91 = arith.constant 0 : index
    %231 = vector.load %arg15[%c0_90, %c0_91] : memref<1x32xf32, #tpu.memory_space<vmem>>, vector<1x32xf32>
    %c0_92 = arith.constant 0 : index
    %c0_93 = arith.constant 0 : index
    %232 = vector.load %arg16[%c0_92, %c0_93] : memref<1x32xf32, #tpu.memory_space<vmem>>, vector<1x32xf32>
    %cst_94 = arith.constant dense<0.000000e+00> : vector<8xf32>
    %233 = vector.multi_reduction <add>, %230, %cst_94 [1] : vector<8x32xf32> to vector<8xf32>
    %234 = vector.shape_cast %233 : vector<8xf32> to vector<8x1xf32>
    %cst_95 = arith.constant 3.200000e+01 : f32
    %235 = vector.broadcast %cst_95 : f32 to vector<8x1xf32>
    %236 = arith.divf %234, %235 : vector<8x1xf32>
    %237 = vector.broadcast %236 : vector<8x1xf32> to vector<8x32xf32>
    %238 = arith.subf %230, %237 : vector<8x32xf32>
    %239 = arith.mulf %238, %238 : vector<8x32xf32>
    %cst_96 = arith.constant dense<0.000000e+00> : vector<8xf32>
    %240 = vector.multi_reduction <add>, %239, %cst_96 [1] : vector<8x32xf32> to vector<8xf32>
    %241 = vector.shape_cast %240 : vector<8xf32> to vector<8x1xf32>
    %cst_97 = arith.constant 3.200000e+01 : f32
    %242 = vector.broadcast %cst_97 : f32 to vector<8x1xf32>
    %243 = arith.divf %241, %242 : vector<8x1xf32>
    %244 = vector.broadcast %236 : vector<8x1xf32> to vector<8x32xf32>
    %245 = arith.subf %230, %244 : vector<8x32xf32>
    %cst_98 = arith.constant 9.99999974E-6 : f32
    %246 = vector.broadcast %cst_98 : f32 to vector<8x1xf32>
    %247 = arith.addf %243, %246 : vector<8x1xf32>
    %248 = math.rsqrt %247 : vector<8x1xf32>
    %249 = vector.broadcast %248 : vector<8x1xf32> to vector<8x32xf32>
    %250 = arith.mulf %245, %249 : vector<8x32xf32>
    %251 = vector.broadcast %231 : vector<1x32xf32> to vector<8x32xf32>
    %252 = arith.mulf %250, %251 : vector<8x32xf32>
    %253 = vector.broadcast %232 : vector<1x32xf32> to vector<8x32xf32>
    %254 = arith.addf %252, %253 : vector<8x32xf32>
    %c0_99 = arith.constant 0 : index
    %c0_100 = arith.constant 0 : index
    %255 = vector.load %arg17[%c0_99, %c0_100] : memref<32x128xf32, #tpu.memory_space<vmem>>, vector<32x128xf32>
    %cst_101 = arith.constant dense<0.000000e+00> : vector<8x128xf32>
    %256 = tpu.matmul %254, %255, %cst_101 {dimension_numbers = #tpu.dot_dimension_numbers<[1], [0], [0], [1], [0, 0, 1, 1], [], []>} : vector<8x32xf32>, vector<32x128xf32>, vector<8x128xf32> -> vector<8x128xf32>
    %c0_102 = arith.constant 0 : index
    %c0_103 = arith.constant 0 : index
    %257 = vector.load %arg18[%c0_102, %c0_103] : memref<1x128xf32, #tpu.memory_space<vmem>>, vector<1x128xf32>
    %258 = vector.broadcast %257 : vector<1x128xf32> to vector<8x128xf32>
    %259 = arith.addf %256, %258 : vector<8x128xf32>
    %cst_104 = arith.constant 0.000000e+00 : f32
    %260 = vector.broadcast %cst_104 : f32 to vector<8x128xf32>
    %261 = arith.maximumf %259, %260 : vector<8x128xf32>
    %c0_105 = arith.constant 0 : index
    %c0_106 = arith.constant 0 : index
    %262 = vector.load %arg19[%c0_105, %c0_106] : memref<128x32xf32, #tpu.memory_space<vmem>>, vector<128x32xf32>
    %cst_107 = arith.constant dense<0.000000e+00> : vector<8x32xf32>
    %263 = tpu.matmul %261, %262, %cst_107 {dimension_numbers = #tpu.dot_dimension_numbers<[1], [0], [0], [1], [0, 0, 1, 1], [], []>} : vector<8x128xf32>, vector<128x32xf32>, vector<8x32xf32> -> vector<8x32xf32>
    %c0_108 = arith.constant 0 : index
    %c0_109 = arith.constant 0 : index
    %264 = vector.load %arg20[%c0_108, %c0_109] : memref<1x32xf32, #tpu.memory_space<vmem>>, vector<1x32xf32>
    %265 = vector.broadcast %264 : vector<1x32xf32> to vector<8x32xf32>
    %266 = arith.addf %263, %265 : vector<8x32xf32>
    %267 = arith.addf %254, %266 : vector<8x32xf32>
    %c0_110 = arith.constant 0 : index
    %c0_111 = arith.constant 0 : index
    %268 = vector.load %arg21[%c0_110, %c0_111] : memref<1x32xf32, #tpu.memory_space<vmem>>, vector<1x32xf32>
    %c0_112 = arith.constant 0 : index
    %c0_113 = arith.constant 0 : index
    %269 = vector.load %arg22[%c0_112, %c0_113] : memref<1x32xf32, #tpu.memory_space<vmem>>, vector<1x32xf32>
    %cst_114 = arith.constant dense<0.000000e+00> : vector<8xf32>
    %270 = vector.multi_reduction <add>, %267, %cst_114 [1] : vector<8x32xf32> to vector<8xf32>
    %271 = vector.shape_cast %270 : vector<8xf32> to vector<8x1xf32>
    %cst_115 = arith.constant 3.200000e+01 : f32
    %272 = vector.broadcast %cst_115 : f32 to vector<8x1xf32>
    %273 = arith.divf %271, %272 : vector<8x1xf32>
    %274 = vector.broadcast %273 : vector<8x1xf32> to vector<8x32xf32>
    %275 = arith.subf %267, %274 : vector<8x32xf32>
    %276 = arith.mulf %275, %275 : vector<8x32xf32>
    %cst_116 = arith.constant dense<0.000000e+00> : vector<8xf32>
    %277 = vector.multi_reduction <add>, %276, %cst_116 [1] : vector<8x32xf32> to vector<8xf32>
    %278 = vector.shape_cast %277 : vector<8xf32> to vector<8x1xf32>
    %cst_117 = arith.constant 3.200000e+01 : f32
    %279 = vector.broadcast %cst_117 : f32 to vector<8x1xf32>
    %280 = arith.divf %278, %279 : vector<8x1xf32>
    %281 = vector.broadcast %273 : vector<8x1xf32> to vector<8x32xf32>
    %282 = arith.subf %267, %281 : vector<8x32xf32>
    %cst_118 = arith.constant 9.99999974E-6 : f32
    %283 = vector.broadcast %cst_118 : f32 to vector<8x1xf32>
    %284 = arith.addf %280, %283 : vector<8x1xf32>
    %285 = math.rsqrt %284 : vector<8x1xf32>
    %286 = vector.broadcast %285 : vector<8x1xf32> to vector<8x32xf32>
    %287 = arith.mulf %282, %286 : vector<8x32xf32>
    %288 = vector.broadcast %268 : vector<1x32xf32> to vector<8x32xf32>
    %289 = arith.mulf %287, %288 : vector<8x32xf32>
    %290 = vector.broadcast %269 : vector<1x32xf32> to vector<8x32xf32>
    %291 = arith.addf %289, %290 : vector<8x32xf32>
    %c0_119 = arith.constant 0 : index
    %c0_120 = arith.constant 0 : index
    %c0_121 = arith.constant 0 : index
    %292 = vector.load %arg23[%c0_119, %c0_120, %c0_121] : memref<1x8x32xf32, #tpu.memory_space<vmem>>, vector<1x8x32xf32>
    %293 = vector.shape_cast %292 : vector<1x8x32xf32> to vector<8x32xf32>
    %294 = vector.shape_cast %291 : vector<8x32xf32> to vector<1x8x32xf32>
    tpu.vector_store %arg23[%c0_119, %c0_120, %c0_121], %294 {strides = array<i32>} : memref<1x8x32xf32, #tpu.memory_space<vmem>>, vector<1x8x32xf32>,
    return
  }
  func.func @transform_0(%arg0: i32) -> (i32, i32, i32) {
    %c0_i32 = arith.constant 0 : i32
    %c0_i32_0 = arith.constant 0 : i32
    %c0_i32_1 = arith.constant 0 : i32
    return %arg0, %c0_i32, %c0_i32_0 : i32, i32, i32
  }
  func.func @transform_1(%arg0: i32) -> (i32, i32, i32) {
    %c0_i32 = arith.constant 0 : i32
    %c0_i32_0 = arith.constant 0 : i32
    %c0_i32_1 = arith.constant 0 : i32
    return %arg0, %c0_i32, %c0_i32_0 : i32, i32, i32
  }
  func.func @transform_2(%arg0: i32) -> (i32, i32) {
    %c0_i32 = arith.constant 0 : i32
    %c0_i32_0 = arith.constant 0 : i32
    %c0_i32_1 = arith.constant 0 : i32
    return %c0_i32, %c0_i32_0 : i32, i32
  }
  func.func @transform_3(%arg0: i32) -> (i32, i32) {
    %c0_i32 = arith.constant 0 : i32
    %c0_i32_0 = arith.constant 0 : i32
    %c0_i32_1 = arith.constant 0 : i32
    return %c0_i32, %c0_i32_0 : i32, i32
  }
  func.func @transform_4(%arg0: i32) -> (i32, i32) {
    %c0_i32 = arith.constant 0 : i32
    %c0_i32_0 = arith.constant 0 : i32
    %c0_i32_1 = arith.constant 0 : i32
    return %c0_i32, %c0_i32_0 : i32, i32
  }
  func.func @transform_5(%arg0: i32) -> (i32, i32) {
    %c0_i32 = arith.constant 0 : i32
    %c0_i32_0 = arith.constant 0 : i32
    %c0_i32_1 = arith.constant 0 : i32
    return %c0_i32, %c0_i32_0 : i32, i32
  }
  func.func @transform_6(%arg0: i32) -> (i32, i32) {
    %c0_i32 = arith.constant 0 : i32
    %c0_i32_0 = arith.constant 0 : i32
    %c0_i32_1 = arith.constant 0 : i32
    return %c0_i32, %c0_i32_0 : i32, i32
  }
  func.func @transform_7(%arg0: i32) -> (i32, i32) {
    %c0_i32 = arith.constant 0 : i32
    %c0_i32_0 = arith.constant 0 : i32
    %c0_i32_1 = arith.constant 0 : i32
    return %c0_i32, %c0_i32_0 : i32, i32
  }
  func.func @transform_8(%arg0: i32) -> (i32, i32) {
    %c0_i32 = arith.constant 0 : i32
    %c0_i32_0 = arith.constant 0 : i32
    %c0_i32_1 = arith.constant 0 : i32
    return %c0_i32, %c0_i32_0 : i32, i32
  }
  func.func @transform_9(%arg0: i32) -> (i32, i32) {
    %c0_i32 = arith.constant 0 : i32
    %c0_i32_0 = arith.constant 0 : i32
    %c0_i32_1 = arith.constant 0 : i32
    return %c0_i32, %c0_i32_0 : i32, i32
  }
  func.func @transform_10(%arg0: i32) -> (i32, i32) {
    %c0_i32 = arith.constant 0 : i32
    %c0_i32_0 = arith.constant 0 : i32
    %c0_i32_1 = arith.constant 0 : i32
    return %c0_i32, %c0_i32_0 : i32, i32
  }
  func.func @transform_11(%arg0: i32) -> (i32, i32) {
    %c0_i32 = arith.constant 0 : i32
    %c0_i32_0 = arith.constant 0 : i32
    %c0_i32_1 = arith.constant 0 : i32
    return %c0_i32, %c0_i32_0 : i32, i32
  }
  func.func @transform_12(%arg0: i32) -> (i32, i32) {
    %c0_i32 = arith.constant 0 : i32
    %c0_i32_0 = arith.constant 0 : i32
    %c0_i32_1 = arith.constant 0 : i32
    return %c0_i32, %c0_i32_0 : i32, i32
  }
  func.func @transform_13(%arg0: i32) -> (i32, i32) {
    %c0_i32 = arith.constant 0 : i32
    %c0_i32_0 = arith.constant 0 : i32
    %c0_i32_1 = arith.constant 0 : i32
    return %c0_i32, %c0_i32_0 : i32, i32
  }
  func.func @transform_14(%arg0: i32) -> (i32, i32) {
    %c0_i32 = arith.constant 0 : i32
    %c0_i32_0 = arith.constant 0 : i32
    %c0_i32_1 = arith.constant 0 : i32
    return %c0_i32, %c0_i32_0 : i32, i32
  }
  func.func @transform_15(%arg0: i32) -> (i32, i32) {
    %c0_i32 = arith.constant 0 : i32
    %c0_i32_0 = arith.constant 0 : i32
    %c0_i32_1 = arith.constant 0 : i32
    return %c0_i32, %c0_i32_0 : i32, i32
  }
  func.func @transform_16(%arg0: i32) -> (i32, i32) {
    %c0_i32 = arith.constant 0 : i32
    %c0_i32_0 = arith.constant 0 : i32
    %c0_i32_1 = arith.constant 0 : i32
    return %c0_i32, %c0_i32_0 : i32, i32
  }
  func.func @transform_17(%arg0: i32) -> (i32, i32) {
    %c0_i32 = arith.constant 0 : i32
    %c0_i32_0 = arith.constant 0 : i32
    %c0_i32_1 = arith.constant 0 : i32
    return %c0_i32, %c0_i32_0 : i32, i32
  }
  func.func @transform_18(%arg0: i32) -> (i32, i32) {
    %c0_i32 = arith.constant 0 : i32
    %c0_i32_0 = arith.constant 0 : i32
    %c0_i32_1 = arith.constant 0 : i32
    return %c0_i32, %c0_i32_0 : i32, i32
  }
  func.func @transform_19(%arg0: i32) -> (i32, i32) {
    %c0_i32 = arith.constant 0 : i32
    %c0_i32_0 = arith.constant 0 : i32
    %c0_i32_1 = arith.constant 0 : i32
    return %c0_i32, %c0_i32_0 : i32, i32
  }
  func.func @transform_20(%arg0: i32) -> (i32, i32) {
    %c0_i32 = arith.constant 0 : i32
    %c0_i32_0 = arith.constant 0 : i32
    %c0_i32_1 = arith.constant 0 : i32
    return %c0_i32, %c0_i32_0 : i32, i32
  }
  func.func @transform_21(%arg0: i32) -> (i32, i32) {
    %c0_i32 = arith.constant 0 : i32
    %c0_i32_0 = arith.constant 0 : i32
    %c0_i32_1 = arith.constant 0 : i32
    return %c0_i32, %c0_i32_0 : i32, i32
  }
  func.func @transform_22(%arg0: i32) -> (i32, i32, i32) {
    %c0_i32 = arith.constant 0 : i32
    %c0_i32_0 = arith.constant 0 : i32
    %c0_i32_1 = arith.constant 0 : i32
    return %arg0, %c0_i32, %c0_i32_0 : i32, i32, i32
  }
}

module attributes {stable_mosaic.version = 11 : i64} {
  func.func @kernel(%arg0: i32, %arg1: memref<1x8x32xf32, #tpu.memory_space<vmem>>, %arg2: memref<1x8x32xf32, #tpu.memory_space<vmem>>, %arg3: memref<32x96xf32, #tpu.memory_space<vmem>>, %arg4: memref<1x96xf32, #tpu.memory_space<vmem>>, %arg5: memref<32x32xf32, #tpu.memory_space<vmem>>, %arg6: memref<1x32xf32, #tpu.memory_space<vmem>>, %arg7: memref<1x32xf32, #tpu.memory_space<vmem>>, %arg8: memref<1x32xf32, #tpu.memory_space<vmem>>, %arg9: memref<32x32xf32, #tpu.memory_space<vmem>>, %arg10: memref<1x32xf32, #tpu.memory_space<vmem>>, %arg11: memref<32x64xf32, #tpu.memory_space<vmem>>, %arg12: memref<1x64xf32, #tpu.memory_space<vmem>>, %arg13: memref<32x32xf32, #tpu.memory_space<vmem>>, %arg14: memref<1x32xf32, #tpu.memory_space<vmem>>, %arg15: memref<1x32xf32, #tpu.memory_space<vmem>>, %arg16: memref<1x32xf32, #tpu.memory_space<vmem>>, %arg17: memref<32x128xf32, #tpu.memory_space<vmem>>, %arg18: memref<1x128xf32, #tpu.memory_space<vmem>>, %arg19: memref<128x32xf32, #tpu.memory_space<vmem>>, %arg20: memref<1x32xf32, #tpu.memory_space<vmem>>, %arg21: memref<1x32xf32, #tpu.memory_space<vmem>>, %arg22: memref<1x32xf32, #tpu.memory_space<vmem>>, %arg23: memref<1x8x32xf32, #tpu.memory_space<vmem>>) attributes {dimension_semantics = [#tpu.dimension_semantics<parallel>], iteration_bounds = array<i64: 2>, scalar_prefetch = 0 : i64, scratch_operands = 0 : i64, tpu.core_type = #tpu.core_type<tc>, window_params = [{transform_indices = @transform_0, window_bounds = array<i64: 1, 8, 32>}, {transform_indices = @transform_1, window_bounds = array<i64: 1, 8, 32>}, {pipeline_mode = #tpu.pipeline_mode<synchronous>, transform_indices = @transform_2, window_bounds = array<i64: 32, 96>}, {pipeline_mode = #tpu.pipeline_mode<synchronous>, transform_indices = @transform_3, window_bounds = array<i64: 1, 96>}, {pipeline_mode = #tpu.pipeline_mode<synchronous>, transform_indices = @transform_4, window_bounds = array<i64: 32, 32>}, {pipeline_mode = #tpu.pipeline_mode<synchronous>, transform_indices = @transform_5, window_bounds = array<i64: 1, 32>}, {pipeline_mode = #tpu.pipeline_mode<synchronous>, transform_indices = @transform_6, window_bounds = array<i64: 1, 32>}, {pipeline_mode = #tpu.pipeline_mode<synchronous>, transform_indices = @transform_7, window_bounds = array<i64: 1, 32>}, {pipeline_mode = #tpu.pipeline_mode<synchronous>, transform_indices = @transform_8, window_bounds = array<i64: 32, 32>}, {pipeline_mode = #tpu.pipeline_mode<synchronous>, transform_indices = @transform_9, window_bounds = array<i64: 1, 32>}, {pipeline_mode = #tpu.pipeline_mode<synchronous>, transform_indices = @transform_10, window_bounds = array<i64: 32, 64>}, {pipeline_mode = #tpu.pipeline_mode<synchronous>, transform_indices = @transform_11, window_bounds = array<i64: 1, 64>}, {pipeline_mode = #tpu.pipeline_mode<synchronous>, transform_indices = @transform_12, window_bounds = array<i64: 32, 32>}, {pipeline_mode = #tpu.pipeline_mode<synchronous>, transform_indices = @transform_13, window_bounds = array<i64: 1, 32>}, {pipeline_mode = #tpu.pipeline_mode<synchronous>, transform_indices = @transform_14, window_bounds = array<i64: 1, 32>}, {pipeline_mode = #tpu.pipeline_mode<synchronous>, transform_indices = @transform_15, window_bounds = array<i64: 1, 32>}, {pipeline_mode = #tpu.pipeline_mode<synchronous>, transform_indices = @transform_16, window_bounds = array<i64: 32, 128>}, {pipeline_mode = #tpu.pipeline_mode<synchronous>, transform_indices = @transform_17, window_bounds = array<i64: 1, 128>}, {pipeline_mode = #tpu.pipeline_mode<synchronous>, transform_indices = @transform_18, window_bounds = array<i64: 128, 32>}, {pipeline_mode = #tpu.pipeline_mode<synchronous>, transform_indices = @transform_19, window_bounds = array<i64: 1, 32>}, {pipeline_mode = #tpu.pipeline_mode<synchronous>, transform_indices = @transform_20, window_bounds = array<i64: 1, 32>}, {pipeline_mode = #tpu.pipeline_mode<synchronous>, transform_indices = @transform_21, window_bounds = array<i64: 1, 32>}, {transform_indices = @transform_22, window_bounds = array<i64: 1, 8, 32>}]} {
    %c0 = arith.constant 0 : index
    %c0_0 = arith.constant 0 : index
    %c0_1 = arith.constant 0 : index
    %0 = vector.load %arg1[%c0, %c0_0, %c0_1] : memref<1x8x32xf32, #tpu.memory_space<vmem>>, vector<1x8x32xf32>
    %1 = vector.shape_cast %0 : vector<1x8x32xf32> to vector<8x32xf32>
    %c0_2 = arith.constant 0 : index
    %c0_3 = arith.constant 0 : index
    %c0_4 = arith.constant 0 : index
    %2 = vector.load %arg2[%c0_2, %c0_3, %c0_4] : memref<1x8x32xf32, #tpu.memory_space<vmem>>, vector<1x8x32xf32>
    %3 = vector.shape_cast %2 : vector<1x8x32xf32> to vector<8x32xf32>
    %c0_5 = arith.constant 0 : index
    %c0_6 = arith.constant 0 : index
    %4 = vector.load %arg3[%c0_5, %c0_6] : memref<32x96xf32, #tpu.memory_space<vmem>>, vector<32x96xf32>
    %cst = arith.constant dense<0.000000e+00> : vector<8x96xf32>
    %5 = tpu.matmul %1, %4, %cst {dimension_numbers = #tpu.dot_dimension_numbers<[1], [0], [0], [1], [0, 0, 1, 1], [], []>} : vector<8x32xf32>, vector<32x96xf32>, vector<8x96xf32> -> vector<8x96xf32>
    %c0_7 = arith.constant 0 : index
    %c0_8 = arith.constant 0 : index
    %6 = vector.load %arg4[%c0_7, %c0_8] : memref<1x96xf32, #tpu.memory_space<vmem>>, vector<1x96xf32>
    %7 = vector.broadcast %6 : vector<1x96xf32> to vector<8x96xf32>
    %8 = arith.addf %5, %7 : vector<8x96xf32>
    %9 = vector.extract_strided_slice %8 {offsets = [0, 0], sizes = [8, 32], strides = [1, 1]} : vector<8x96xf32> to vector<8x32xf32>
    %10 = vector.extract_strided_slice %8 {offsets = [0, 32], sizes = [8, 32], strides = [1, 1]} : vector<8x96xf32> to vector<8x32xf32>
    %11 = vector.extract_strided_slice %8 {offsets = [0, 64], sizes = [8, 32], strides = [1, 1]} : vector<8x96xf32> to vector<8x32xf32>
    %c0_9 = arith.constant 0 : index
    %c0_10 = arith.constant 0 : index
    %12 = vector.load %arg5[%c0_9, %c0_10] : memref<32x32xf32, #tpu.memory_space<vmem>>, vector<32x32xf32>
    %13 = tpu.iota {dimensions = array<i32: 0>} : vector<8x8xi32>
    %14 = tpu.iota {dimensions = array<i32: 1>} : vector<8x8xi32>
    %15 = arith.cmpi sle, %14, %13 : vector<8x8xi32>
    %cst_11 = arith.constant 0.000000e+00 : f32
    %16 = vector.broadcast %cst_11 : f32 to vector<8x32xf32>
    %17 = vector.extract_strided_slice %9 {offsets = [0, 0], sizes = [8, 8], strides = [1, 1]} : vector<8x32xf32> to vector<8x8xf32>
    %18 = vector.extract_strided_slice %10 {offsets = [0, 0], sizes = [8, 8], strides = [1, 1]} : vector<8x32xf32> to vector<8x8xf32>
    %19 = vector.extract_strided_slice %11 {offsets = [0, 0], sizes = [8, 8], strides = [1, 1]} : vector<8x32xf32> to vector<8x8xf32>
    %cst_12 = arith.constant dense<0.000000e+00> : vector<8x8xf32>
    %20 = tpu.matmul %17, %18, %cst_12 {dimension_numbers = #tpu.dot_dimension_numbers<[1], [1], [0], [0], [0, 0, 1, 0], [], []>} : vector<8x8xf32>, vector<8x8xf32>, vector<8x8xf32> -> vector<8x8xf32>
    %cst_13 = arith.constant 0.353553385 : f32
    %21 = vector.broadcast %cst_13 : f32 to vector<8x8xf32>
    %22 = arith.mulf %20, %21 : vector<8x8xf32>
    %cst_14 = arith.constant -1.000000e+30 : f32
    %23 = vector.broadcast %cst_14 : f32 to vector<8x8xf32>
    %24 = arith.select %15, %22, %23 : vector<8x8xi1>, vector<8x8xf32>
    %cst_15 = arith.constant dense<0xFF800000> : vector<8xf32>
    %25 = vector.multi_reduction <maximumf>, %24, %cst_15 [1] : vector<8x8xf32> to vector<8xf32>
    %26 = vector.shape_cast %25 : vector<8xf32> to vector<8x1xf32>
    %27 = vector.broadcast %26 : vector<8x1xf32> to vector<8x8xf32>
    %28 = arith.subf %24, %27 : vector<8x8xf32>
    %29 = math.exp %28 : vector<8x8xf32>
    %cst_16 = arith.constant dense<0.000000e+00> : vector<8xf32>
    %30 = vector.multi_reduction <add>, %29, %cst_16 [1] : vector<8x8xf32> to vector<8xf32>
    %31 = vector.shape_cast %30 : vector<8xf32> to vector<8x1xf32>
    %32 = tpu.reciprocal %31 {approx = true} : vector<8x1xf32> -> vector<8x1xf32>
    %33 = vector.broadcast %32 : vector<8x1xf32> to vector<8x8xf32>
    %34 = arith.mulf %29, %33 : vector<8x8xf32>
    %cst_17 = arith.constant dense<0.000000e+00> : vector<8x8xf32>
    %35 = tpu.matmul %34, %19, %cst_17 {dimension_numbers = #tpu.dot_dimension_numbers<[1], [0], [0], [1], [0, 0, 1, 1], [], []>} : vector<8x8xf32>, vector<8x8xf32>, vector<8x8xf32> -> vector<8x8xf32>
    %36 = vector.extract_strided_slice %12 {offsets = [0, 0], sizes = [8, 32], strides = [1, 1]} : vector<32x32xf32> to vector<8x32xf32>
    %cst_18 = arith.constant dense<0.000000e+00> : vector<8x32xf32>
    %37 = tpu.matmul %35, %36, %cst_18 {dimension_numbers = #tpu.dot_dimension_numbers<[1], [0], [0], [1], [0, 0, 1, 1], [], []>} : vector<8x8xf32>, vector<8x32xf32>, vector<8x32xf32> -> vector<8x32xf32>
    %38 = arith.addf %16, %37 : vector<8x32xf32>
    %39 = vector.extract_strided_slice %9 {offsets = [0, 8], sizes = [8, 8], strides = [1, 1]} : vector<8x32xf32> to vector<8x8xf32>
    %40 = vector.extract_strided_slice %10 {offsets = [0, 8], sizes = [8, 8], strides = [1, 1]} : vector<8x32xf32> to vector<8x8xf32>
    %41 = vector.extract_strided_slice %11 {offsets = [0, 8], sizes = [8, 8], strides = [1, 1]} : vector<8x32xf32> to vector<8x8xf32>
    %cst_19 = arith.constant dense<0.000000e+00> : vector<8x8xf32>
    %42 = tpu.matmul %39, %40, %cst_19 {dimension_numbers = #tpu.dot_dimension_numbers<[1], [1], [0], [0], [0, 0, 1, 0], [], []>} : vector<8x8xf32>, vector<8x8xf32>, vector<8x8xf32> -> vector<8x8xf32>
    %cst_20 = arith.constant 0.353553385 : f32
    %43 = vector.broadcast %cst_20 : f32 to vector<8x8xf32>
    %44 = arith.mulf %42, %43 : vector<8x8xf32>
    %cst_21 = arith.constant -1.000000e+30 : f32
    %45 = vector.broadcast %cst_21 : f32 to vector<8x8xf32>
    %46 = arith.select %15, %44, %45 : vector<8x8xi1>, vector<8x8xf32>
    %cst_22 = arith.constant dense<0xFF800000> : vector<8xf32>
    %47 = vector.multi_reduction <maximumf>, %46, %cst_22 [1] : vector<8x8xf32> to vector<8xf32>
    %48 = vector.shape_cast %47 : vector<8xf32> to vector<8x1xf32>
    %49 = vector.broadcast %48 : vector<8x1xf32> to vector<8x8xf32>
    %50 = arith.subf %46, %49 : vector<8x8xf32>
    %51 = math.exp %50 : vector<8x8xf32>
    %cst_23 = arith.constant dense<0.000000e+00> : vector<8xf32>
    %52 = vector.multi_reduction <add>, %51, %cst_23 [1] : vector<8x8xf32> to vector<8xf32>
    %53 = vector.shape_cast %52 : vector<8xf32> to vector<8x1xf32>
    %54 = tpu.reciprocal %53 {approx = true} : vector<8x1xf32> -> vector<8x1xf32>
    %55 = vector.broadcast %54 : vector<8x1xf32> to vector<8x8xf32>
    %56 = arith.mulf %51, %55 : vector<8x8xf32>
    %cst_24 = arith.constant dense<0.000000e+00> : vector<8x8xf32>
    %57 = tpu.matmul %56, %41, %cst_24 {dimension_numbers = #tpu.dot_dimension_numbers<[1], [0], [0], [1], [0, 0, 1, 1], [], []>} : vector<8x8xf32>, vector<8x8xf32>, vector<8x8xf32> -> vector<8x8xf32>
    %58 = vector.extract_strided_slice %12 {offsets = [8, 0], sizes = [8, 32], strides = [1, 1]} : vector<32x32xf32> to vector<8x32xf32>
    %cst_25 = arith.constant dense<0.000000e+00> : vector<8x32xf32>
    %59 = tpu.matmul %57, %58, %cst_25 {dimension_numbers = #tpu.dot_dimension_numbers<[1], [0], [0], [1], [0, 0, 1, 1], [], []>} : vector<8x8xf32>, vector<8x32xf32>, vector<8x32xf32> -> vector<8x32xf32>
    %60 = arith.addf %38, %59 : vector<8x32xf32>
    %61 = vector.extract_strided_slice %9 {offsets = [0, 16], sizes = [8, 8], strides = [1, 1]} : vector<8x32xf32> to vector<8x8xf32>
    %62 = vector.extract_strided_slice %10 {offsets = [0, 16], sizes = [8, 8], strides = [1, 1]} : vector<8x32xf32> to vector<8x8xf32>
    %63 = vector.extract_strided_slice %11 {offsets = [0, 16], sizes = [8, 8], strides = [1, 1]} : vector<8x32xf32> to vector<8x8xf32>
    %cst_26 = arith.constant dense<0.000000e+00> : vector<8x8xf32>
    %64 = tpu.matmul %61, %62, %cst_26 {dimension_numbers = #tpu.dot_dimension_numbers<[1], [1], [0], [0], [0, 0, 1, 0], [], []>} : vector<8x8xf32>, vector<8x8xf32>, vector<8x8xf32> -> vector<8x8xf32>
    %cst_27 = arith.constant 0.353553385 : f32
    %65 = vector.broadcast %cst_27 : f32 to vector<8x8xf32>
    %66 = arith.mulf %64, %65 : vector<8x8xf32>
    %cst_28 = arith.constant -1.000000e+30 : f32
    %67 = vector.broadcast %cst_28 : f32 to vector<8x8xf32>
    %68 = arith.select %15, %66, %67 : vector<8x8xi1>, vector<8x8xf32>
    %cst_29 = arith.constant dense<0xFF800000> : vector<8xf32>
    %69 = vector.multi_reduction <maximumf>, %68, %cst_29 [1] : vector<8x8xf32> to vector<8xf32>
    %70 = vector.shape_cast %69 : vector<8xf32> to vector<8x1xf32>
    %71 = vector.broadcast %70 : vector<8x1xf32> to vector<8x8xf32>
    %72 = arith.subf %68, %71 : vector<8x8xf32>
    %73 = math.exp %72 : vector<8x8xf32>
    %cst_30 = arith.constant dense<0.000000e+00> : vector<8xf32>
    %74 = vector.multi_reduction <add>, %73, %cst_30 [1] : vector<8x8xf32> to vector<8xf32>
    %75 = vector.shape_cast %74 : vector<8xf32> to vector<8x1xf32>
    %76 = tpu.reciprocal %75 {approx = true} : vector<8x1xf32> -> vector<8x1xf32>
    %77 = vector.broadcast %76 : vector<8x1xf32> to vector<8x8xf32>
    %78 = arith.mulf %73, %77 : vector<8x8xf32>
    %cst_31 = arith.constant dense<0.000000e+00> : vector<8x8xf32>
    %79 = tpu.matmul %78, %63, %cst_31 {dimension_numbers = #tpu.dot_dimension_numbers<[1], [0], [0], [1], [0, 0, 1, 1], [], []>} : vector<8x8xf32>, vector<8x8xf32>, vector<8x8xf32> -> vector<8x8xf32>
    %80 = vector.extract_strided_slice %12 {offsets = [16, 0], sizes = [8, 32], strides = [1, 1]} : vector<32x32xf32> to vector<8x32xf32>
    %cst_32 = arith.constant dense<0.000000e+00> : vector<8x32xf32>
    %81 = tpu.matmul %79, %80, %cst_32 {dimension_numbers = #tpu.dot_dimension_numbers<[1], [0], [0], [1], [0, 0, 1, 1], [], []>} : vector<8x8xf32>, vector<8x32xf32>, vector<8x32xf32> -> vector<8x32xf32>
    %82 = arith.addf %60, %81 : vector<8x32xf32>
    %83 = vector.extract_strided_slice %9 {offsets = [0, 24], sizes = [8, 8], strides = [1, 1]} : vector<8x32xf32> to vector<8x8xf32>
    %84 = vector.extract_strided_slice %10 {offsets = [0, 24], sizes = [8, 8], strides = [1, 1]} : vector<8x32xf32> to vector<8x8xf32>
    %85 = vector.extract_strided_slice %11 {offsets = [0, 24], sizes = [8, 8], strides = [1, 1]} : vector<8x32xf32> to vector<8x8xf32>
    %cst_33 = arith.constant dense<0.000000e+00> : vector<8x8xf32>
    %86 = tpu.matmul %83, %84, %cst_33 {dimension_numbers = #tpu.dot_dimension_numbers<[1], [1], [0], [0], [0, 0, 1, 0], [], []>} : vector<8x8xf32>, vector<8x8xf32>, vector<8x8xf32> -> vector<8x8xf32>
    %cst_34 = arith.constant 0.353553385 : f32
    %87 = vector.broadcast %cst_34 : f32 to vector<8x8xf32>
    %88 = arith.mulf %86, %87 : vector<8x8xf32>
    %cst_35 = arith.constant -1.000000e+30 : f32
    %89 = vector.broadcast %cst_35 : f32 to vector<8x8xf32>
    %90 = arith.select %15, %88, %89 : vector<8x8xi1>, vector<8x8xf32>
    %cst_36 = arith.constant dense<0xFF800000> : vector<8xf32>
    %91 = vector.multi_reduction <maximumf>, %90, %cst_36 [1] : vector<8x8xf32> to vector<8xf32>
    %92 = vector.shape_cast %91 : vector<8xf32> to vector<8x1xf32>
    %93 = vector.broadcast %92 : vector<8x1xf32> to vector<8x8xf32>
    %94 = arith.subf %90, %93 : vector<8x8xf32>
    %95 = math.exp %94 : vector<8x8xf32>
    %cst_37 = arith.constant dense<0.000000e+00> : vector<8xf32>
    %96 = vector.multi_reduction <add>, %95, %cst_37 [1] : vector<8x8xf32> to vector<8xf32>
    %97 = vector.shape_cast %96 : vector<8xf32> to vector<8x1xf32>
    %98 = tpu.reciprocal %97 {approx = true} : vector<8x1xf32> -> vector<8x1xf32>
    %99 = vector.broadcast %98 : vector<8x1xf32> to vector<8x8xf32>
    %100 = arith.mulf %95, %99 : vector<8x8xf32>
    %cst_38 = arith.constant dense<0.000000e+00> : vector<8x8xf32>
    %101 = tpu.matmul %100, %85, %cst_38 {dimension_numbers = #tpu.dot_dimension_numbers<[1], [0], [0], [1], [0, 0, 1, 1], [], []>} : vector<8x8xf32>, vector<8x8xf32>, vector<8x8xf32> -> vector<8x8xf32>
    %102 = vector.extract_strided_slice %12 {offsets = [24, 0], sizes = [8, 32], strides = [1, 1]} : vector<32x32xf32> to vector<8x32xf32>
    %cst_39 = arith.constant dense<0.000000e+00> : vector<8x32xf32>
    %103 = tpu.matmul %101, %102, %cst_39 {dimension_numbers = #tpu.dot_dimension_numbers<[1], [0], [0], [1], [0, 0, 1, 1], [], []>} : vector<8x8xf32>, vector<8x32xf32>, vector<8x32xf32> -> vector<8x32xf32>
    %104 = arith.addf %82, %103 : vector<8x32xf32>
    %c0_40 = arith.constant 0 : index
    %c0_41 = arith.constant 0 : index
    %105 = vector.load %arg6[%c0_40, %c0_41] : memref<1x32xf32, #tpu.memory_space<vmem>>, vector<1x32xf32>
    %106 = vector.broadcast %105 : vector<1x32xf32> to vector<8x32xf32>
    %107 = arith.addf %104, %106 : vector<8x32xf32>
    %108 = arith.addf %1, %107 : vector<8x32xf32>
    %c0_42 = arith.constant 0 : index
    %c0_43 = arith.constant 0 : index
    %109 = vector.load %arg7[%c0_42, %c0_43] : memref<1x32xf32, #tpu.memory_space<vmem>>, vector<1x32xf32>
    %c0_44 = arith.constant 0 : index
    %c0_45 = arith.constant 0 : index
    %110 = vector.load %arg8[%c0_44, %c0_45] : memref<1x32xf32, #tpu.memory_space<vmem>>, vector<1x32xf32>
    %cst_46 = arith.constant dense<0.000000e+00> : vector<8xf32>
    %111 = vector.multi_reduction <add>, %108, %cst_46 [1] : vector<8x32xf32> to vector<8xf32>
    %112 = vector.shape_cast %111 : vector<8xf32> to vector<8x1xf32>
    %cst_47 = arith.constant 3.200000e+01 : f32
    %113 = vector.broadcast %cst_47 : f32 to vector<8x1xf32>
    %114 = arith.divf %112, %113 : vector<8x1xf32>
    %115 = vector.broadcast %114 : vector<8x1xf32> to vector<8x32xf32>
    %116 = arith.subf %108, %115 : vector<8x32xf32>
    %117 = arith.mulf %116, %116 : vector<8x32xf32>
    %cst_48 = arith.constant dense<0.000000e+00> : vector<8xf32>
    %118 = vector.multi_reduction <add>, %117, %cst_48 [1] : vector<8x32xf32> to vector<8xf32>
    %119 = vector.shape_cast %118 : vector<8xf32> to vector<8x1xf32>
    %cst_49 = arith.constant 3.200000e+01 : f32
    %120 = vector.broadcast %cst_49 : f32 to vector<8x1xf32>
    %121 = arith.divf %119, %120 : vector<8x1xf32>
    %122 = vector.broadcast %114 : vector<8x1xf32> to vector<8x32xf32>
    %123 = arith.subf %108, %122 : vector<8x32xf32>
    %cst_50 = arith.constant 9.99999974E-6 : f32
    %124 = vector.broadcast %cst_50 : f32 to vector<8x1xf32>
    %125 = arith.addf %121, %124 : vector<8x1xf32>
    %126 = math.rsqrt %125 : vector<8x1xf32>
    %127 = vector.broadcast %126 : vector<8x1xf32> to vector<8x32xf32>
    %128 = arith.mulf %123, %127 : vector<8x32xf32>
    %129 = vector.broadcast %109 : vector<1x32xf32> to vector<8x32xf32>
    %130 = arith.mulf %128, %129 : vector<8x32xf32>
    %131 = vector.broadcast %110 : vector<1x32xf32> to vector<8x32xf32>
    %132 = arith.addf %130, %131 : vector<8x32xf32>
    %c0_51 = arith.constant 0 : index
    %c0_52 = arith.constant 0 : index
    %133 = vector.load %arg9[%c0_51, %c0_52] : memref<32x32xf32, #tpu.memory_space<vmem>>, vector<32x32xf32>
    %cst_53 = arith.constant dense<0.000000e+00> : vector<8x32xf32>
    %134 = tpu.matmul %132, %133, %cst_53 {dimension_numbers = #tpu.dot_dimension_numbers<[1], [0], [0], [1], [0, 0, 1, 1], [], []>} : vector<8x32xf32>, vector<32x32xf32>, vector<8x32xf32> -> vector<8x32xf32>
    %c0_54 = arith.constant 0 : index
    %c0_55 = arith.constant 0 : index
    %135 = vector.load %arg10[%c0_54, %c0_55] : memref<1x32xf32, #tpu.memory_space<vmem>>, vector<1x32xf32>
    %136 = vector.broadcast %135 : vector<1x32xf32> to vector<8x32xf32>
    %137 = arith.addf %134, %136 : vector<8x32xf32>
    %c0_56 = arith.constant 0 : index
    %c0_57 = arith.constant 0 : index
    %138 = vector.load %arg11[%c0_56, %c0_57] : memref<32x64xf32, #tpu.memory_space<vmem>>, vector<32x64xf32>
    %cst_58 = arith.constant dense<0.000000e+00> : vector<8x64xf32>
    %139 = tpu.matmul %3, %138, %cst_58 {dimension_numbers = #tpu.dot_dimension_numbers<[1], [0], [0], [1], [0, 0, 1, 1], [], []>} : vector<8x32xf32>, vector<32x64xf32>, vector<8x64xf32> -> vector<8x64xf32>
    %c0_59 = arith.constant 0 : index
    %c0_60 = arith.constant 0 : index
    %140 = vector.load %arg12[%c0_59, %c0_60] : memref<1x64xf32, #tpu.memory_space<vmem>>, vector<1x64xf32>
    %141 = vector.broadcast %140 : vector<1x64xf32> to vector<8x64xf32>
    %142 = arith.addf %139, %141 : vector<8x64xf32>
    %143 = vector.extract_strided_slice %142 {offsets = [0, 0], sizes = [8, 32], strides = [1, 1]} : vector<8x64xf32> to vector<8x32xf32>
    %144 = vector.extract_strided_slice %142 {offsets = [0, 32], sizes = [8, 32], strides = [1, 1]} : vector<8x64xf32> to vector<8x32xf32>
    %c0_61 = arith.constant 0 : index
    %c0_62 = arith.constant 0 : index
    %145 = vector.load %arg13[%c0_61, %c0_62] : memref<32x32xf32, #tpu.memory_space<vmem>>, vector<32x32xf32>
    %cst_63 = arith.constant 0.000000e+00 : f32
    %146 = vector.broadcast %cst_63 : f32 to vector<8x32xf32>
    %147 = vector.extract_strided_slice %137 {offsets = [0, 0], sizes = [8, 8], strides = [1, 1]} : vector<8x32xf32> to vector<8x8xf32>
    %148 = vector.extract_strided_slice %143 {offsets = [0, 0], sizes = [8, 8], strides = [1, 1]} : vector<8x32xf32> to vector<8x8xf32>
    %149 = vector.extract_strided_slice %144 {offsets = [0, 0], sizes = [8, 8], strides = [1, 1]} : vector<8x32xf32> to vector<8x8xf32>
    %cst_64 = arith.constant dense<0.000000e+00> : vector<8x8xf32>
    %150 = tpu.matmul %147, %148, %cst_64 {dimension_numbers = #tpu.dot_dimension_numbers<[1], [1], [0], [0], [0, 0, 1, 0], [], []>} : vector<8x8xf32>, vector<8x8xf32>, vector<8x8xf32> -> vector<8x8xf32>
    %cst_65 = arith.constant 0.353553385 : f32
    %151 = vector.broadcast %cst_65 : f32 to vector<8x8xf32>
    %152 = arith.mulf %150, %151 : vector<8x8xf32>
    %cst_66 = arith.constant dense<0xFF800000> : vector<8xf32>
    %153 = vector.multi_reduction <maximumf>, %152, %cst_66 [1] : vector<8x8xf32> to vector<8xf32>
    %154 = vector.shape_cast %153 : vector<8xf32> to vector<8x1xf32>
    %155 = vector.broadcast %154 : vector<8x1xf32> to vector<8x8xf32>
    %156 = arith.subf %152, %155 : vector<8x8xf32>
    %157 = math.exp %156 : vector<8x8xf32>
    %cst_67 = arith.constant dense<0.000000e+00> : vector<8xf32>
    %158 = vector.multi_reduction <add>, %157, %cst_67 [1] : vector<8x8xf32> to vector<8xf32>
    %159 = vector.shape_cast %158 : vector<8xf32> to vector<8x1xf32>
    %160 = tpu.reciprocal %159 {approx = true} : vector<8x1xf32> -> vector<8x1xf32>
    %161 = vector.broadcast %160 : vector<8x1xf32> to vector<8x8xf32>
    %162 = arith.mulf %157, %161 : vector<8x8xf32>
    %cst_68 = arith.constant dense<0.000000e+00> : vector<8x8xf32>
    %163 = tpu.matmul %162, %149, %cst_68 {dimension_numbers = #tpu.dot_dimension_numbers<[1], [0], [0], [1], [0, 0, 1, 1], [], []>} : vector<8x8xf32>, vector<8x8xf32>, vector<8x8xf32> -> vector<8x8xf32>
    %164 = vector.extract_strided_slice %145 {offsets = [0, 0], sizes = [8, 32], strides = [1, 1]} : vector<32x32xf32> to vector<8x32xf32>
    %cst_69 = arith.constant dense<0.000000e+00> : vector<8x32xf32>
    %165 = tpu.matmul %163, %164, %cst_69 {dimension_numbers = #tpu.dot_dimension_numbers<[1], [0], [0], [1], [0, 0, 1, 1], [], []>} : vector<8x8xf32>, vector<8x32xf32>, vector<8x32xf32> -> vector<8x32xf32>
    %166 = arith.addf %146, %165 : vector<8x32xf32>
    %167 = vector.extract_strided_slice %137 {offsets = [0, 8], sizes = [8, 8], strides = [1, 1]} : vector<8x32xf32> to vector<8x8xf32>
    %168 = vector.extract_strided_slice %143 {offsets = [0, 8], sizes = [8, 8], strides = [1, 1]} : vector<8x32xf32> to vector<8x8xf32>
    %169 = vector.extract_strided_slice %144 {offsets = [0, 8], sizes = [8, 8], strides = [1, 1]} : vector<8x32xf32> to vector<8x8xf32>
    %cst_70 = arith.constant dense<0.000000e+00> : vector<8x8xf32>
    %170 = tpu.matmul %167, %168, %cst_70 {dimension_numbers = #tpu.dot_dimension_numbers<[1], [1], [0], [0], [0, 0, 1, 0], [], []>} : vector<8x8xf32>, vector<8x8xf32>, vector<8x8xf32> -> vector<8x8xf32>
    %cst_71 = arith.constant 0.353553385 : f32
    %171 = vector.broadcast %cst_71 : f32 to vector<8x8xf32>
    %172 = arith.mulf %170, %171 : vector<8x8xf32>
    %cst_72 = arith.constant dense<0xFF800000> : vector<8xf32>
    %173 = vector.multi_reduction <maximumf>, %172, %cst_72 [1] : vector<8x8xf32> to vector<8xf32>
    %174 = vector.shape_cast %173 : vector<8xf32> to vector<8x1xf32>
    %175 = vector.broadcast %174 : vector<8x1xf32> to vector<8x8xf32>
    %176 = arith.subf %172, %175 : vector<8x8xf32>
    %177 = math.exp %176 : vector<8x8xf32>
    %cst_73 = arith.constant dense<0.000000e+00> : vector<8xf32>
    %178 = vector.multi_reduction <add>, %177, %cst_73 [1] : vector<8x8xf32> to vector<8xf32>
    %179 = vector.shape_cast %178 : vector<8xf32> to vector<8x1xf32>
    %180 = tpu.reciprocal %179 {approx = true} : vector<8x1xf32> -> vector<8x1xf32>
    %181 = vector.broadcast %180 : vector<8x1xf32> to vector<8x8xf32>
    %182 = arith.mulf %177, %181 : vector<8x8xf32>
    %cst_74 = arith.constant dense<0.000000e+00> : vector<8x8xf32>
    %183 = tpu.matmul %182, %169, %cst_74 {dimension_numbers = #tpu.dot_dimension_numbers<[1], [0], [0], [1], [0, 0, 1, 1], [], []>} : vector<8x8xf32>, vector<8x8xf32>, vector<8x8xf32> -> vector<8x8xf32>
    %184 = vector.extract_strided_slice %145 {offsets = [8, 0], sizes = [8, 32], strides = [1, 1]} : vector<32x32xf32> to vector<8x32xf32>
    %cst_75 = arith.constant dense<0.000000e+00> : vector<8x32xf32>
    %185 = tpu.matmul %183, %184, %cst_75 {dimension_numbers = #tpu.dot_dimension_numbers<[1], [0], [0], [1], [0, 0, 1, 1], [], []>} : vector<8x8xf32>, vector<8x32xf32>, vector<8x32xf32> -> vector<8x32xf32>
    %186 = arith.addf %166, %185 : vector<8x32xf32>
    %187 = vector.extract_strided_slice %137 {offsets = [0, 16], sizes = [8, 8], strides = [1, 1]} : vector<8x32xf32> to vector<8x8xf32>
    %188 = vector.extract_strided_slice %143 {offsets = [0, 16], sizes = [8, 8], strides = [1, 1]} : vector<8x32xf32> to vector<8x8xf32>
    %189 = vector.extract_strided_slice %144 {offsets = [0, 16], sizes = [8, 8], strides = [1, 1]} : vector<8x32xf32> to vector<8x8xf32>
    %cst_76 = arith.constant dense<0.000000e+00> : vector<8x8xf32>
    %190 = tpu.matmul %187, %188, %cst_76 {dimension_numbers = #tpu.dot_dimension_numbers<[1], [1], [0], [0], [0, 0, 1, 0], [], []>} : vector<8x8xf32>, vector<8x8xf32>, vector<8x8xf32> -> vector<8x8xf32>
    %cst_77 = arith.constant 0.353553385 : f32
    %191 = vector.broadcast %cst_77 : f32 to vector<8x8xf32>
    %192 = arith.mulf %190, %191 : vector<8x8xf32>
    %cst_78 = arith.constant dense<0xFF800000> : vector<8xf32>
    %193 = vector.multi_reduction <maximumf>, %192, %cst_78 [1] : vector<8x8xf32> to vector<8xf32>
    %194 = vector.shape_cast %193 : vector<8xf32> to vector<8x1xf32>
    %195 = vector.broadcast %194 : vector<8x1xf32> to vector<8x8xf32>
    %196 = arith.subf %192, %195 : vector<8x8xf32>
    %197 = math.exp %196 : vector<8x8xf32>
    %cst_79 = arith.constant dense<0.000000e+00> : vector<8xf32>
    %198 = vector.multi_reduction <add>, %197, %cst_79 [1] : vector<8x8xf32> to vector<8xf32>
    %199 = vector.shape_cast %198 : vector<8xf32> to vector<8x1xf32>
    %200 = tpu.reciprocal %199 {approx = true} : vector<8x1xf32> -> vector<8x1xf32>
    %201 = vector.broadcast %200 : vector<8x1xf32> to vector<8x8xf32>
    %202 = arith.mulf %197, %201 : vector<8x8xf32>
    %cst_80 = arith.constant dense<0.000000e+00> : vector<8x8xf32>
    %203 = tpu.matmul %202, %189, %cst_80 {dimension_numbers = #tpu.dot_dimension_numbers<[1], [0], [0], [1], [0, 0, 1, 1], [], []>} : vector<8x8xf32>, vector<8x8xf32>, vector<8x8xf32> -> vector<8x8xf32>
    %204 = vector.extract_strided_slice %145 {offsets = [16, 0], sizes = [8, 32], strides = [1, 1]} : vector<32x32xf32> to vector<8x32xf32>
    %cst_81 = arith.constant dense<0.000000e+00> : vector<8x32xf32>
    %205 = tpu.matmul %203, %204, %cst_81 {dimension_numbers = #tpu.dot_dimension_numbers<[1], [0], [0], [1], [0, 0, 1, 1], [], []>} : vector<8x8xf32>, vector<8x32xf32>, vector<8x32xf32> -> vector<8x32xf32>
    %206 = arith.addf %186, %205 : vector<8x32xf32>
    %207 = vector.extract_strided_slice %137 {offsets = [0, 24], sizes = [8, 8], strides = [1, 1]} : vector<8x32xf32> to vector<8x8xf32>
    %208 = vector.extract_strided_slice %143 {offsets = [0, 24], sizes = [8, 8], strides = [1, 1]} : vector<8x32xf32> to vector<8x8xf32>
    %209 = vector.extract_strided_slice %144 {offsets = [0, 24], sizes = [8, 8], strides = [1, 1]} : vector<8x32xf32> to vector<8x8xf32>
    %cst_82 = arith.constant dense<0.000000e+00> : vector<8x8xf32>
    %210 = tpu.matmul %207, %208, %cst_82 {dimension_numbers = #tpu.dot_dimension_numbers<[1], [1], [0], [0], [0, 0, 1, 0], [], []>} : vector<8x8xf32>, vector<8x8xf32>, vector<8x8xf32> -> vector<8x8xf32>
    %cst_83 = arith.constant 0.353553385 : f32
    %211 = vector.broadcast %cst_83 : f32 to vector<8x8xf32>
    %212 = arith.mulf %210, %211 : vector<8x8xf32>
    %cst_84 = arith.constant dense<0xFF800000> : vector<8xf32>
    %213 = vector.multi_reduction <maximumf>, %212, %cst_84 [1] : vector<8x8xf32> to vector<8xf32>
    %214 = vector.shape_cast %213 : vector<8xf32> to vector<8x1xf32>
    %215 = vector.broadcast %214 : vector<8x1xf32> to vector<8x8xf32>
    %216 = arith.subf %212, %215 : vector<8x8xf32>
    %217 = math.exp %216 : vector<8x8xf32>
    %cst_85 = arith.constant dense<0.000000e+00> : vector<8xf32>
    %218 = vector.multi_reduction <add>, %217, %cst_85 [1] : vector<8x8xf32> to vector<8xf32>
    %219 = vector.shape_cast %218 : vector<8xf32> to vector<8x1xf32>
    %220 = tpu.reciprocal %219 {approx = true} : vector<8x1xf32> -> vector<8x1xf32>
    %221 = vector.broadcast %220 : vector<8x1xf32> to vector<8x8xf32>
    %222 = arith.mulf %217, %221 : vector<8x8xf32>
    %cst_86 = arith.constant dense<0.000000e+00> : vector<8x8xf32>
    %223 = tpu.matmul %222, %209, %cst_86 {dimension_numbers = #tpu.dot_dimension_numbers<[1], [0], [0], [1], [0, 0, 1, 1], [], []>} : vector<8x8xf32>, vector<8x8xf32>, vector<8x8xf32> -> vector<8x8xf32>
    %224 = vector.extract_strided_slice %145 {offsets = [24, 0], sizes = [8, 32], strides = [1, 1]} : vector<32x32xf32> to vector<8x32xf32>
    %cst_87 = arith.constant dense<0.000000e+00> : vector<8x32xf32>
    %225 = tpu.matmul %223, %224, %cst_87 {dimension_numbers = #tpu.dot_dimension_numbers<[1], [0], [0], [1], [0, 0, 1, 1], [], []>} : vector<8x8xf32>, vector<8x32xf32>, vector<8x32xf32> -> vector<8x32xf32>
    %226 = arith.addf %206, %225 : vector<8x32xf32>
    %c0_88 = arith.constant 0 : index
    %c0_89 = arith.constant 0 : index
    %227 = vector.load %arg14[%c0_88, %c0_89] : memref<1x32xf32, #tpu.memory_space<vmem>>, vector<1x32xf32>
    %228 = vector.broadcast %227 : vector<1x32xf32> to vector<8x32xf32>
    %229 = arith.addf %226, %228 : vector<8x32xf32>
    %230 = arith.addf %132, %229 : vector<8x32xf32>
    %c0_90 = arith.constant 0 : index
    %c0_91 = arith.constant 0 : index
    %231 = vector.load %arg15[%c0_90, %c0_91] : memref<1x32xf32, #tpu.memory_space<vmem>>, vector<1x32xf32>
    %c0_92 = arith.constant 0 : index
    %c0_93 = arith.constant 0 : index
    %232 = vector.load %arg16[%c0_92, %c0_93] : memref<1x32xf32, #tpu.memory_space<vmem>>, vector<1x32xf32>
    %cst_94 = arith.constant dense<0.000000e+00> : vector<8xf32>
    %233 = vector.multi_reduction <add>, %230, %cst_94 [1] : vector<8x32xf32> to vector<8xf32>
    %234 = vector.shape_cast %233 : vector<8xf32> to vector<8x1xf32>
    %cst_95 = arith.constant 3.200000e+01 : f32
    %235 = vector.broadcast %cst_95 : f32 to vector<8x1xf32>
    %236 = arith.divf %234, %235 : vector<8x1xf32>
    %237 = vector.broadcast %236 : vector<8x1xf32> to vector<8x32xf32>
    %238 = arith.subf %230, %237 : vector<8x32xf32>
    %239 = arith.mulf %238, %238 : vector<8x32xf32>
    %cst_96 = arith.constant dense<0.000000e+00> : vector<8xf32>
    %240 = vector.multi_reduction <add>, %239, %cst_96 [1] : vector<8x32xf32> to vector<8xf32>
    %241 = vector.shape_cast %240 : vector<8xf32> to vector<8x1xf32>
    %cst_97 = arith.constant 3.200000e+01 : f32
    %242 = vector.broadcast %cst_97 : f32 to vector<8x1xf32>
    %243 = arith.divf %241, %242 : vector<8x1xf32>
    %244 = vector.broadcast %236 : vector<8x1xf32> to vector<8x32xf32>
    %245 = arith.subf %230, %244 : vector<8x32xf32>
    %cst_98 = arith.constant 9.99999974E-6 : f32
    %246 = vector.broadcast %cst_98 : f32 to vector<8x1xf32>
    %247 = arith.addf %243, %246 : vector<8x1xf32>
    %248 = math.rsqrt %247 : vector<8x1xf32>
    %249 = vector.broadcast %248 : vector<8x1xf32> to vector<8x32xf32>
    %250 = arith.mulf %245, %249 : vector<8x32xf32>
    %251 = vector.broadcast %231 : vector<1x32xf32> to vector<8x32xf32>
    %252 = arith.mulf %250, %251 : vector<8x32xf32>
    %253 = vector.broadcast %232 : vector<1x32xf32> to vector<8x32xf32>
    %254 = arith.addf %252, %253 : vector<8x32xf32>
    %c0_99 = arith.constant 0 : index
    %c0_100 = arith.constant 0 : index
    %255 = vector.load %arg17[%c0_99, %c0_100] : memref<32x128xf32, #tpu.memory_space<vmem>>, vector<32x128xf32>
    %cst_101 = arith.constant dense<0.000000e+00> : vector<8x128xf32>
    %256 = tpu.matmul %254, %255, %cst_101 {dimension_numbers = #tpu.dot_dimension_numbers<[1], [0], [0], [1], [0, 0, 1, 1], [], []>} : vector<8x32xf32>, vector<32x128xf32>, vector<8x128xf32> -> vector<8x128xf32>
    %c0_102 = arith.constant 0 : index
    %c0_103 = arith.constant 0 : index
    %257 = vector.load %arg18[%c0_102, %c0_103] : memref<1x128xf32, #tpu.memory_space<vmem>>, vector<1x128xf32>
    %258 = vector.broadcast %257 : vector<1x128xf32> to vector<8x128xf32>
    %259 = arith.addf %256, %258 : vector<8x128xf32>
    %cst_104 = arith.constant 0.000000e+00 : f32
    %260 = vector.broadcast %cst_104 : f32 to vector<8x128xf32>
    %261 = arith.maximumf %259, %260 : vector<8x128xf32>
    %c0_105 = arith.constant 0 : index
    %c0_106 = arith.constant 0 : index
    %262 = vector.load %arg19[%c0_105, %c0_106] : memref<128x32xf32, #tpu.memory_space<vmem>>, vector<128x32xf32>
    %cst_107 = arith.constant dense<0.000000e+00> : vector<8x32xf32>
    %263 = tpu.matmul %261, %262, %cst_107 {dimension_numbers = #tpu.dot_dimension_numbers<[1], [0], [0], [1], [0, 0, 1, 1], [], []>} : vector<8x128xf32>, vector<128x32xf32>, vector<8x32xf32> -> vector<8x32xf32>
    %c0_108 = arith.constant 0 : index
    %c0_109 = arith.constant 0 : index
    %264 = vector.load %arg20[%c0_108, %c0_109] : memref<1x32xf32, #tpu.memory_space<vmem>>, vector<1x32xf32>
    %265 = vector.broadcast %264 : vector<1x32xf32> to vector<8x32xf32>
    %266 = arith.addf %263, %265 : vector<8x32xf32>
    %267 = arith.addf %254, %266 : vector<8x32xf32>
    %c0_110 = arith.constant 0 : index
    %c0_111 = arith.constant 0 : index
    %268 = vector.load %arg21[%c0_110, %c0_111] : memref<1x32xf32, #tpu.memory_space<vmem>>, vector<1x32xf32>
    %c0_112 = arith.constant 0 : index
    %c0_113 = arith.constant 0 : index
    %269 = vector.load %arg22[%c0_112, %c0_113] : memref<1x32xf32, #tpu.memory_space<vmem>>, vector<1x32xf32>
    %cst_114 = arith.constant dense<0.000000e+00> : vector<8xf32>
    %270 = vector.multi_reduction <add>, %267, %cst_114 [1] : vector<8x32xf32> to vector<8xf32>
    %271 = vector.shape_cast %270 : vector<8xf32> to vector<8x1xf32>
    %cst_115 = arith.constant 3.200000e+01 : f32
    %272 = vector.broadcast %cst_115 : f32 to vector<8x1xf32>
    %273 = arith.divf %271, %272 : vector<8x1xf32>
    %274 = vector.broadcast %273 : vector<8x1xf32> to vector<8x32xf32>
    %275 = arith.subf %267, %274 : vector<8x32xf32>
    %276 = arith.mulf %275, %275 : vector<8x32xf32>
    %cst_116 = arith.constant dense<0.000000e+00> : vector<8xf32>
    %277 = vector.multi_reduction <add>, %276, %cst_116 [1] : vector<8x32xf32> to vector<8xf32>
    %278 = vector.shape_cast %277 : vector<8xf32> to vector<8x1xf32>
    %cst_117 = arith.constant 3.200000e+01 : f32
    %279 = vector.broadcast %cst_117 : f32 to vector<8x1xf32>
    %280 = arith.divf %278, %279 : vector<8x1xf32>
    %281 = vector.broadcast %273 : vector<8x1xf32> to vector<8x32xf32>
    %282 = arith.subf %267, %281 : vector<8x32xf32>
    %cst_118 = arith.constant 9.99999974E-6 : f32
    %283 = vector.broadcast %cst_118 : f32 to vector<8x1xf32>
    %284 = arith.addf %280, %283 : vector<8x1xf32>
    %285 = math.rsqrt %284 : vector<8x1xf32>
    %286 = vector.broadcast %285 : vector<8x1xf32> to vector<8x32xf32>
    %287 = arith.mulf %282, %286 : vector<8x32xf32>
    %288 = vector.broadcast %268 : vector<1x32xf32> to vector<8x32xf32>
    %289 = arith.mulf %287, %288 : vector<8x32xf32>
    %290 = vector.broadcast %269 : vector<1x32xf32> to vector<8x32xf32>
    %291 = arith.addf %289, %290 : vector<8x32xf32>
    %c0_119 = arith.constant 0 : index
    %c0_120 = arith.constant 0 : index
    %c0_121 = arith.constant 0 : index
    %292 = vector.load %arg23[%c0_119, %c0_120, %c0_121] : memref<1x8x32xf32, #tpu.memory_space<vmem>>, vector<1x8x32xf32>
    %293 = vector.shape_cast %292 : vector<1x8x32xf32> to vector<8x32xf32>
    %294 = vector.shape_cast %291 : vector<8x32xf32> to vector<1x8x32xf32>
    tpu.vector_store %arg23[%c0_119, %c0_120, %c0_121], %294 {strides = array<i32>} : memref<1x8x32xf32, #tpu.memory_space<vmem>>, vector<1x8x32xf32>,
    return
  }
  func.func @transform_0(%arg0: i32) -> (i32, i32, i32) {
    %c0_i32 = arith.constant 0 : i32
    %c0_i32_0 = arith.constant 0 : i32
    %c0_i32_1 = arith.constant 0 : i32
    return %arg0, %c0_i32, %c0_i32_0 : i32, i32, i32
  }
  func.func @transform_1(%arg0: i32) -> (i32, i32, i32) {
    %c0_i32 = arith.constant 0 : i32
    %c0_i32_0 = arith.constant 0 : i32
    %c0_i32_1 = arith.constant 0 : i32
    return %arg0, %c0_i32, %c0_i32_0 : i32, i32, i32
  }
  func.func @transform_2(%arg0: i32) -> (i32, i32) {
    %c0_i32 = arith.constant 0 : i32
    %c0_i32_0 = arith.constant 0 : i32
    %c0_i32_1 = arith.constant 0 : i32
    return %c0_i32, %c0_i32_0 : i32, i32
  }
  func.func @transform_3(%arg0: i32) -> (i32, i32) {
    %c0_i32 = arith.constant 0 : i32
    %c0_i32_0 = arith.constant 0 : i32
    %c0_i32_1 = arith.constant 0 : i32
    return %c0_i32, %c0_i32_0 : i32, i32
  }
  func.func @transform_4(%arg0: i32) -> (i32, i32) {
    %c0_i32 = arith.constant 0 : i32
    %c0_i32_0 = arith.constant 0 : i32
    %c0_i32_1 = arith.constant 0 : i32
    return %c0_i32, %c0_i32_0 : i32, i32
  }
  func.func @transform_5(%arg0: i32) -> (i32, i32) {
    %c0_i32 = arith.constant 0 : i32
    %c0_i32_0 = arith.constant 0 : i32
    %c0_i32_1 = arith.constant 0 : i32
    return %c0_i32, %c0_i32_0 : i32, i32
  }
  func.func @transform_6(%arg0: i32) -> (i32, i32) {
    %c0_i32 = arith.constant 0 : i32
    %c0_i32_0 = arith.constant 0 : i32
    %c0_i32_1 = arith.constant 0 : i32
    return %c0_i32, %c0_i32_0 : i32, i32
  }
  func.func @transform_7(%arg0: i32) -> (i32, i32) {
    %c0_i32 = arith.constant 0 : i32
    %c0_i32_0 = arith.constant 0 : i32
    %c0_i32_1 = arith.constant 0 : i32
    return %c0_i32, %c0_i32_0 : i32, i32
  }
  func.func @transform_8(%arg0: i32) -> (i32, i32) {
    %c0_i32 = arith.constant 0 : i32
    %c0_i32_0 = arith.constant 0 : i32
    %c0_i32_1 = arith.constant 0 : i32
    return %c0_i32, %c0_i32_0 : i32, i32
  }
  func.func @transform_9(%arg0: i32) -> (i32, i32) {
    %c0_i32 = arith.constant 0 : i32
    %c0_i32_0 = arith.constant 0 : i32
    %c0_i32_1 = arith.constant 0 : i32
    return %c0_i32, %c0_i32_0 : i32, i32
  }
  func.func @transform_10(%arg0: i32) -> (i32, i32) {
    %c0_i32 = arith.constant 0 : i32
    %c0_i32_0 = arith.constant 0 : i32
    %c0_i32_1 = arith.constant 0 : i32
    return %c0_i32, %c0_i32_0 : i32, i32
  }
  func.func @transform_11(%arg0: i32) -> (i32, i32) {
    %c0_i32 = arith.constant 0 : i32
    %c0_i32_0 = arith.constant 0 : i32
    %c0_i32_1 = arith.constant 0 : i32
    return %c0_i32, %c0_i32_0 : i32, i32
  }
  func.func @transform_12(%arg0: i32) -> (i32, i32) {
    %c0_i32 = arith.constant 0 : i32
    %c0_i32_0 = arith.constant 0 : i32
    %c0_i32_1 = arith.constant 0 : i32
    return %c0_i32, %c0_i32_0 : i32, i32
  }
  func.func @transform_13(%arg0: i32) -> (i32, i32) {
    %c0_i32 = arith.constant 0 : i32
    %c0_i32_0 = arith.constant 0 : i32
    %c0_i32_1 = arith.constant 0 : i32
    return %c0_i32, %c0_i32_0 : i32, i32
  }
  func.func @transform_14(%arg0: i32) -> (i32, i32) {
    %c0_i32 = arith.constant 0 : i32
    %c0_i32_0 = arith.constant 0 : i32
    %c0_i32_1 = arith.constant 0 : i32
    return %c0_i32, %c0_i32_0 : i32, i32
  }
  func.func @transform_15(%arg0: i32) -> (i32, i32) {
    %c0_i32 = arith.constant 0 : i32
    %c0_i32_0 = arith.constant 0 : i32
    %c0_i32_1 = arith.constant 0 : i32
    return %c0_i32, %c0_i32_0 : i32, i32
  }
  func.func @transform_16(%arg0: i32) -> (i32, i32) {
    %c0_i32 = arith.constant 0 : i32
    %c0_i32_0 = arith.constant 0 : i32
    %c0_i32_1 = arith.constant 0 : i32
    return %c0_i32, %c0_i32_0 : i32, i32
  }
  func.func @transform_17(%arg0: i32) -> (i32, i32) {
    %c0_i32 = arith.constant 0 : i32
    %c0_i32_0 = arith.constant 0 : i32
    %c0_i32_1 = arith.constant 0 : i32
    return %c0_i32, %c0_i32_0 : i32, i32
  }
  func.func @transform_18(%arg0: i32) -> (i32, i32) {
    %c0_i32 = arith.constant 0 : i32
    %c0_i32_0 = arith.constant 0 : i32
    %c0_i32_1 = arith.constant 0 : i32
    return %c0_i32, %c0_i32_0 : i32, i32
  }
  func.func @transform_19(%arg0: i32) -> (i32, i32) {
    %c0_i32 = arith.constant 0 : i32
    %c0_i32_0 = arith.constant 0 : i32
    %c0_i32_1 = arith.constant 0 : i32
    return %c0_i32, %c0_i32_0 : i32, i32
  }
  func.func @transform_20(%arg0: i32) -> (i32, i32) {
    %c0_i32 = arith.constant 0 : i32
    %c0_i32_0 = arith.constant 0 : i32
    %c0_i32_1 = arith.constant 0 : i32
    return %c0_i32, %c0_i32_0 : i32, i32
  }
  func.func @transform_21(%arg0: i32) -> (i32, i32) {
    %c0_i32 = arith.constant 0 : i32
    %c0_i32_0 = arith.constant 0 : i32
    %c0_i32_1 = arith.constant 0 : i32
    return %c0_i32, %c0_i32_0 : i32, i32
  }
  func.func @transform_22(%arg0: i32) -> (i32, i32, i32) {
    %c0_i32 = arith.constant 0 : i32
    %c0_i32_0 = arith.constant 0 : i32
    %c0_i32_1 = arith.constant 0 : i32
    return %arg0, %c0_i32, %c0_i32_0 : i32, i32, i32
  }
}

module attributes {stable_mosaic.version = 11 : i64} {
  func.func @_head_kernel(%arg0: i32, %arg1: memref<2x272xf32, #tpu.memory_space<vmem>>, %arg2: memref<272x544xf32, #tpu.memory_space<vmem>>, %arg3: memref<1x544xf32, #tpu.memory_space<vmem>>, %arg4: memref<544x4xf32, #tpu.memory_space<vmem>>, %arg5: memref<1x4xf32, #tpu.memory_space<vmem>>, %arg6: memref<2x4xf32, #tpu.memory_space<vmem>>) attributes {dimension_semantics = [#tpu.dimension_semantics<arbitrary>], iteration_bounds = array<i64: 1>, scalar_prefetch = 0 : i64, scratch_operands = 0 : i64, tpu.core_type = #tpu.core_type<tc>, window_params = [{pipeline_mode = #tpu.pipeline_mode<synchronous>, transform_indices = @transform_0, window_bounds = array<i64: 2, 272>}, {pipeline_mode = #tpu.pipeline_mode<synchronous>, transform_indices = @transform_1, window_bounds = array<i64: 272, 544>}, {pipeline_mode = #tpu.pipeline_mode<synchronous>, transform_indices = @transform_2, window_bounds = array<i64: 1, 544>}, {pipeline_mode = #tpu.pipeline_mode<synchronous>, transform_indices = @transform_3, window_bounds = array<i64: 544, 4>}, {pipeline_mode = #tpu.pipeline_mode<synchronous>, transform_indices = @transform_4, window_bounds = array<i64: 1, 4>}, {pipeline_mode = #tpu.pipeline_mode<synchronous>, transform_indices = @transform_5, window_bounds = array<i64: 2, 4>}]} {
    %c0 = arith.constant 0 : index
    %c0_0 = arith.constant 0 : index
    %0 = vector.load %arg1[%c0, %c0_0] : memref<2x272xf32, #tpu.memory_space<vmem>>, vector<2x272xf32>
    %c0_1 = arith.constant 0 : index
    %c0_2 = arith.constant 0 : index
    %1 = vector.load %arg2[%c0_1, %c0_2] : memref<272x544xf32, #tpu.memory_space<vmem>>, vector<272x544xf32>
    %cst = arith.constant dense<0.000000e+00> : vector<2x544xf32>
    %2 = tpu.matmul %0, %1, %cst {dimension_numbers = #tpu.dot_dimension_numbers<[1], [0], [0], [1], [0, 0, 1, 1], [], []>} : vector<2x272xf32>, vector<272x544xf32>, vector<2x544xf32> -> vector<2x544xf32>
    %c0_3 = arith.constant 0 : index
    %c0_4 = arith.constant 0 : index
    %3 = vector.load %arg3[%c0_3, %c0_4] : memref<1x544xf32, #tpu.memory_space<vmem>>, vector<1x544xf32>
    %4 = vector.broadcast %3 : vector<1x544xf32> to vector<2x544xf32>
    %5 = arith.addf %2, %4 : vector<2x544xf32>
    %cst_5 = arith.constant 0.000000e+00 : f32
    %6 = vector.broadcast %cst_5 : f32 to vector<2x544xf32>
    %7 = arith.maximumf %5, %6 : vector<2x544xf32>
    %c0_6 = arith.constant 0 : index
    %c0_7 = arith.constant 0 : index
    %8 = vector.load %arg4[%c0_6, %c0_7] : memref<544x4xf32, #tpu.memory_space<vmem>>, vector<544x4xf32>
    %cst_8 = arith.constant dense<0.000000e+00> : vector<2x4xf32>
    %9 = tpu.matmul %7, %8, %cst_8 {dimension_numbers = #tpu.dot_dimension_numbers<[1], [0], [0], [1], [0, 0, 1, 1], [], []>} : vector<2x544xf32>, vector<544x4xf32>, vector<2x4xf32> -> vector<2x4xf32>
    %c0_9 = arith.constant 0 : index
    %c0_10 = arith.constant 0 : index
    %10 = vector.load %arg5[%c0_9, %c0_10] : memref<1x4xf32, #tpu.memory_space<vmem>>, vector<1x4xf32>
    %11 = vector.broadcast %10 : vector<1x4xf32> to vector<2x4xf32>
    %12 = arith.addf %9, %11 : vector<2x4xf32>
    %c0_11 = arith.constant 0 : index
    %c0_12 = arith.constant 0 : index
    %13 = vector.load %arg6[%c0_11, %c0_12] : memref<2x4xf32, #tpu.memory_space<vmem>>, vector<2x4xf32>
    tpu.vector_store %arg6[%c0_11, %c0_12], %12 {strides = array<i32>} : memref<2x4xf32, #tpu.memory_space<vmem>>, vector<2x4xf32>,
    return
  }
  func.func @transform_0(%arg0: i32) -> (i32, i32) {
    %c0_i32 = arith.constant 0 : i32
    %c0_i32_0 = arith.constant 0 : i32
    %c0_i32_1 = arith.constant 0 : i32
    return %c0_i32, %c0_i32_0 : i32, i32
  }
  func.func @transform_1(%arg0: i32) -> (i32, i32) {
    %c0_i32 = arith.constant 0 : i32
    %c0_i32_0 = arith.constant 0 : i32
    %c0_i32_1 = arith.constant 0 : i32
    return %c0_i32, %c0_i32_0 : i32, i32
  }
  func.func @transform_2(%arg0: i32) -> (i32, i32) {
    %c0_i32 = arith.constant 0 : i32
    %c0_i32_0 = arith.constant 0 : i32
    %c0_i32_1 = arith.constant 0 : i32
    return %c0_i32, %c0_i32_0 : i32, i32
  }
  func.func @transform_3(%arg0: i32) -> (i32, i32) {
    %c0_i32 = arith.constant 0 : i32
    %c0_i32_0 = arith.constant 0 : i32
    %c0_i32_1 = arith.constant 0 : i32
    return %c0_i32, %c0_i32_0 : i32, i32
  }
  func.func @transform_4(%arg0: i32) -> (i32, i32) {
    %c0_i32 = arith.constant 0 : i32
    %c0_i32_0 = arith.constant 0 : i32
    %c0_i32_1 = arith.constant 0 : i32
    return %c0_i32, %c0_i32_0 : i32, i32
  }
  func.func @transform_5(%arg0: i32) -> (i32, i32) {
    %c0_i32 = arith.constant 0 : i32
    %c0_i32_0 = arith.constant 0 : i32
    %c0_i32_1 = arith.constant 0 : i32
    return %c0_i32, %c0_i32_0 : i32, i32
  }
}

</mosaic_0001>

<bundles_post_ra>
// kernel: transformer_forward.6
= control target key start
LH: loop header
LB: loop body
LE: loop exit
PB: predicated region body
PF: predicated region fallthrough
CT: control target
= control target key end

     0   :  { %s401_s15 = smov 0   ;;  %s427_s0 = inlined_call_operand.vmem [shape: f32[2,8,4], index: 0, kind: input, shape index: {}]   ;;  %s428_s1 = inlined_call_operand.vmem [shape: f32[4,32], index: 1, kind: input, shape index: {}]   ;;  %s429_s2 = inlined_call_operand.vmem [shape: f32[1,32], index: 2, kind: input, shape index: {}]   ;;  %s430_s3 = inlined_call_operand.vmem [shape: f32[8,32], index: 3, kind: input, shape index: {}]   ;;  %s431_s4 = inlined_call_operand.vmem [shape: f32[2,8,32], index: 4, kind: output, shape index: {}]  }
   0x1 LB: > { %s337_s16 = sadd.s32 4294967295, %s372_s15   ;;  %p341_p0 = scmp.ge.s32.totalorder %s372_s15, 1  ;;  %s372_s15 = sphi %s401_s15, %s14_s15  }
   0x2   : > { %p161_p1 = scmp.lt.s32.totalorder %s372_s15, 3 }
   0x4   : > { %p162_p2 = pnand %p341_p0, %p161_p1 }
   0x5   : > { %v194_v0 = vld [vmem:[%s428_s1] sm:$0xf] (!%p162_p2)  ;;  %vm206_vm0 = vcmask (!%p162_p2), 1043456   ;;  %p185_p3 = scmp.lt.s32.totalorder (!%p162_p2), %s337_s16, 1  ;;  %v374_v1 = vmov (!%p162_p2), 0.0   ;;  %vm375_vm1 = vmmov (!%p162_p2), 0  }
   0x6   : > { %165 = sbr.rel (%p162_p2) target bundleno = 234 (0xea), region = 36  ;;  %351 = vmatprep.subr.mxu0 (!%p162_p2), %v374_v1  ;;  %353 = vmatprep.mubr.msk.f32.mxu0 (!%p162_p2), %vm375_vm1, %v374_v1  ;;  %vm202_vm2 = vcmask (!%p162_p2), 31744   ;;  %v344_v3 = vld [vmem:[%s429_s2] ss:$0 sm:$0xff] (!%p162_p2)  ;;  %vm282_vm3 = vcmask (!%p162_p2), 261120  }
   0x7   : > { %352 = vmatpush3.msk.msra.mxu0 (!%p162_p2), %vm206_vm0, %v194_v0  ;;  %v280_v5 = vld [vmem:[%s430_s3] sm:$0xff] (!%p162_p2) }
   0xd   : > { %s433_s16 = smov (!%p185_p3, %s337_s16), 1 }
   0xe   : > { %s342_s19 = sshll.u32 %s433_s16, 3 }
   0xf   : > { %s188_s22 = scalar_lea.vmem %s427_s0, %s342_s19  ;;  %s192_s29 = scalar_lea.vmem %s431_s4, %s342_s19 }
  0x10   : > { %v193_v2 = vld [vmem:[%s188_s22] sm:$0xff] }
  0x11   : > { %354 = vmatmul.mubr.msk.f32.vlgmr.msra.gmra.mrb[0].mxu0 %vm202_vm2, %v193_v2 }
  0xe4   : > { %v276_v4 = vpop.f32.mrb[0].mxu0 }
  0xe5   : > { %v277_v6 = vadd.f32 %v344_v3, %v276_v4  ;;  %v355_v7 = vpop.f32.mrb[1].mxu0 }
  0xe7   : > { %v281_v8 = vadd.f32 %v280_v5, %v277_v6 }
  0xe9   : > { %283 = vst.msk [vmem:[%s192_s29] sm:$0xff] %vm282_vm3, %v281_v8 }
  0xea PF: > { %s14_s15 = sadd.s32 1, %s372_s15  }
  0xeb   : > { %p11_p4 = scmp.ge.s32.totalorder %s14_s15, 4  }
  0xed   :  { %13 = sbr.rel (!%p11_p4) target bundleno = 1 (0x1), region = 66 }

// kernel: transformer_forward.7
= control target key start
LH: loop header
LB: loop body
LE: loop exit
PB: predicated region body
PF: predicated region fallthrough
CT: control target
= control target key end

     0   :  { %s2158_s25 = smov 0   ;;  %s2393_s0 = inlined_call_operand.vmem [shape: f32[2,8,32], index: 0, kind: input, shape index: {}]   ;;  %s2394_s1 = inlined_call_operand.vmem [shape: f32[32,96], index: 1, kind: input, shape index: {}]   ;;  %s2395_s2 = inlined_call_operand.vmem [shape: f32[1,96], index: 2, kind: input, shape index: {}]   ;;  %s2396_s3 = inlined_call_operand.vmem [shape: f32[32,32], index: 3, kind: input, shape index: {}]   ;;  %s2397_s4 = inlined_call_operand.vmem [shape: f32[1,32], index: 4, kind: input, shape index: {}]   ;;  %s2398_s5 = inlined_call_operand.vmem [shape: f32[1,32], index: 5, kind: input, shape index: {}]   ;;  %s2399_s6 = inlined_call_operand.vmem [shape: f32[1,32], index: 6, kind: input, shape index: {}]   ;;  %s2400_s7 = inlined_call_operand.vmem [shape: f32[32,128], index: 7, kind: input, shape index: {}]   ;;  %s2401_s8 = inlined_call_operand.vmem [shape: f32[1,128], index: 8, kind: input, shape index: {}]   ;;  %s2402_s9 = inlined_call_operand.vmem [shape: f32[128,32], index: 9, kind: input, shape index: {}]   ;;  %s2403_s10 = inlined_call_operand.vmem [shape: f32[1,32], index: 10, kind: input, shape index: {}]   ;;  %s2404_s11 = inlined_call_operand.vmem [shape: f32[1,32], index: 11, kind: input, shape index: {}]   ;;  %s2405_s12 = inlined_call_operand.vmem [shape: f32[1,32], index: 12, kind: input, shape index: {}]   ;;  %s2406_s13 = inlined_call_operand.vmem [shape: f32[2,8,32], index: 13, kind: output, shape index: {}]  }
   0x1 LB: > { %s1785_s26 = sadd.s32 4294967295, %s2072_s25   ;;  %p1789_p0 = scmp.ge.s32.totalorder %s2072_s25, 1  ;;  %s2072_s25 = sphi %s2158_s25, %s23_s25  }
   0x2   : > { %p386_p1 = scmp.lt.s32.totalorder %s2072_s25, 3 }
   0x4   : > { %p387_p2 = pnand %p1789_p0, %p386_p1 }
   0x5   : > { %v437_v0 = vld [vmem:[%s2394_s1] sm:$0xff] (!%p387_p2)  ;;  %v438_v1 = vld [vmem:[%s2394_s1 + $0x8] sm:$0xff] (!%p387_p2)  ;;  %v439_v2 = vld [vmem:[%s2394_s1 + $0x10] sm:$0xff] (!%p387_p2)  ;;  %v2074_v3 = vmov (!%p387_p2), 0.0|0.0   ;;  %vm2075_vm0 = vmmov (!%p387_p2), 0   ;;  %v2076_v6 = vmov (!%p387_p2), 0.0  }
   0x6   : > { %390 = sbr.rel (%p387_p2) target bundleno = 4174 (0x104e), region = 72  ;;  %1988 = vmatprep.subr.bf16.mxu0 (!%p387_p2), %v2074_v3  ;;  %v1989_v4 = vpack.c.bf16 (!%p387_p2), %v438_v1, %v437_v0  ;;  %v440_v5 = vld [vmem:[%s2394_s1 + $0x18] sm:$0xff] (!%p387_p2)  ;;  %1879 = vmatprep.mubr.msk.f32.mxu0 (!%p387_p2), %vm2075_vm0, %v2076_v6  ;;  %p428_p3 = scmp.lt.s32.totalorder (!%p387_p2), %s1785_s26, 1  ;;  %vm448_vm1 = vcmask (!%p387_p2), 261120   ;;  %v1792_v9 = vld [vmem:[%s2395_s2] ss:$0 sm:$0xff] (!%p387_p2) }
   0x7   : > { %1907 = vmatprep.subr.mxu1 (!%p387_p2), %v2076_v6  ;;  %1909 = vmatprep.mubr.msk.f32.mxu1 (!%p387_p2), %vm2075_vm0, %v2076_v6  ;;  %v1992_v7 = vpack.c.bf16 (!%p387_p2), %v440_v5, %v439_v2  ;;  %s2077_s24 = smov (!%p387_p2), 64   ;;  %s2078_s27 = smov (!%p387_p2), 96   ;;  %vm529_vm2 = vcmask (!%p387_p2), 64512   ;;  %v522_v29 = vld [vmem:[%s2396_s3] sm:$0xff] (!%p387_p2)  ;;  %v523_v47 = vld [vmem:[%s2396_s3 + $0x8] sm:$0xff] (!%p387_p2) }
   0x8   : > { %1990 = vmatpush3.bf16.msra.mxu0 (!%p387_p2), %v1989_v4  ;;  %s2079_s28 = smov (!%p387_p2), 88   ;;  %s2080_s29 = smov (!%p387_p2), 120   ;;  %1908 = vmatpush3.msra.mxu1 (!%p387_p2), %v522_v29 }
   0x9   : > { %1991 = vmatprep.subr.bf16.mxu0 (!%p387_p2), %v2074_v3  ;;  %1917 = vmatprep.subr.mxu1 (!%p387_p2), %v2076_v6  ;;  %s2081_s15 = smov (!%p387_p2), 56   ;;  %s2082_s16 = smov (!%p387_p2), 80  }
   0xa   : > { %s2083_s17 = smov (!%p387_p2), 112   ;;  %s2085_s22 = smov (!%p387_p2), 72  }
   0xb   : > { %s2086_s23 = smov (!%p387_p2), 104  }
   0xc   : > { %1993 = vmatpush3.bf16.msra.mxu0 (!%p387_p2), %v1992_v7 }
   0xd   : > { %s2408_s26 = smov (!%p428_p3, %s1785_s26), 1  ;;  %1882 = vmatprep.subr.mxu0 %v2076_v6 }
   0xe   : > { %s1790_s18 = sshll.u32 %s2408_s26, 3 }
   0xf   : > { %s431_s21 = scalar_lea.vmem %s2393_s0, %s1790_s18  ;;  %s435_s14 = scalar_lea.vmem %s2406_s13, %s1790_s18 }
  0x10   : > { %v2193_v8 = vld [vmem:[%s431_s21] sm:$0xff]  ;;  %s2084_s21 = smov 48  }
  0x11   : > { %1880 = vmatmul.mubr.msk.f32.vlgmr.msra.gmra.mrb[0].mxu0 %vm448_vm1, %v2193_v8 }
  0x12   : > { %1884 = vmatprep.mubr.msk.f32.mxu0 %vm2075_vm0, %v2076_v6 }
  0xe4   : > { %v518_v10 = vpop.f32.mrb[0].mxu0 }
  0xe5   : > { %v2203_v11 = vadd.f32 %v1792_v9, %v518_v10  ;;  %v1881_v12 = vpop.f32.mrb[1].mxu0  ;;  %v524_v9 = vld [vmem:[%s2396_s3 + $0x10] sm:$0xff] }
  0xe7   : > { %616 = vrot.lane.b32.xlu1 %v2203_v11, %s2077_s24  ;;  %527 = vrot.lane.b32.xlu0 %v2203_v11, %s2078_s27 }
  0xeb   : > { %694 = vrot.lane.b32.xlu1 %v2203_v11, %s2079_s28  ;;  %s2087_s28 = smov 40  }
 0x159   : > { %v528_v13 = vpop.permute.xlu0 %527  ;;  %v617_v14 = vpop.permute.xlu1 %616 }
 0x15a   : > { %1883 = vmatpush3.xpose.msk.msra.mxu0 %vm529_vm2, %v528_v13 }
 0x15b   : > { %1887 = vmatprep.subr.mxu0 %v2076_v6 }
 0x15d   : > { %1885 = vmatmul.mubr.msk.f32.vlgmr.msra.gmra.mrb[2].mxu0 %vm529_vm2, %v2203_v11  ;;  %v695_v24 = vpop.permute.xlu1 %694 }
 0x15e   : > { %1888 = vmatpush3.msra.mxu0 %v617_v14  ;;  %1889 = vmatprep.mubr.msk.f32.mxu0 %vm2075_vm0, %v2076_v6 }
 0x15f   : > { %1892 = vmatprep.subr.mxu0 %v2076_v6 }
 0x230   : > { %v600_v15 = vpop.f32.mrb[2].mxu0 }
 0x231   : > { %v604_v16 = vmul.f32 0.35355338, %v600_v15  ;;  %v1886_v17 = vpop.f32.mrb[3].mxu0 }
 0x233   : > { %v605_v18 = vsel %vm529_vm2, %v604_v16, -inf }
 0x234   : > { %606 = vmax.xlane.f32.xlu0 %v605_v18 }
 0x2c1   : > { %v607_v19 = vpop.xlane.xlu0 %606 }
 0x2c2   : > { %v608_v20 = vsub.f32 %v604_v16, %v607_v19 }
 0x2c4   : > { %v609_v21 = vmul.f32 1.442695, %v608_v20 }
 0x2c6   : > { %2046 = vpow2.f32 %v609_v21 }
 0x2d0   : > { %v2047_v22 = vpop.eup %2046 }
 0x2d1   : > { %v611_v23 = vsel %vm529_vm2, %v2047_v22, 0.0 }
 0x2d2   : > { %612 = vadd.xlane.f32.xlu1 %v611_v23 }
 0x2e3   : > { %692 = vrot.lane.b32.xlu1 %v2203_v11, %s2080_s29 }
 0x35f   : > { %v613_v25 = vpop.xlane.xlu1 %612 }
 0x360   : > { %2048 = vrcp.f32 %v613_v25 }
 0x363   : > { %v693_v28 = vpop.permute.xlu1 %692 }
 0x36a   : > { %v2049_v26 = vpop.eup %2048 }
 0x36b   : > { %v615_v27 = vmul.f32 %v2049_v26, %v2047_v22  ;;  %v525_v22 = vld [vmem:[%s2396_s3 + $0x18] sm:$0xff] }
 0x36d   : > { %1890 = vmatmul.mubr.msk.f32.vlgmr.msra.gmra.mrb[4].mxu0 %vm529_vm2, %v615_v27 }
 0x36e   : > { %1893 = vmatpush3.xpose.msk.msra.mxu0 %vm529_vm2, %v695_v24  ;;  %1894 = vmatprep.mubr.msk.f32.mxu0 %vm2075_vm0, %v2076_v6 }
 0x36f   : > { %1897 = vmatprep.subr.mxu0 %v2076_v6 }
 0x371   : > { %1895 = vmatmul.mubr.msk.f32.vlgmr.msra.gmra.mrb[6].mxu0 %vm529_vm2, %v693_v28 }
 0x372   : > { %1899 = vmatprep.mubr.msk.f32.mxu0 %vm2075_vm0, %v2076_v6 }
 0x440   : > { %v688_v30 = vpop.f32.mrb[4].mxu0 }
 0x441   : > { %v1891_v31 = vpop.f32.mrb[5].mxu0  ;;  %1910 = vmatmul.mubr.msk.f32.vlgmr.msra.gmra.mrb[0].mxu1 %vm529_vm2, %v688_v30 }
 0x442   : > { %1919 = vmatprep.mubr.msk.f32.mxu1 %vm2075_vm0, %v2076_v6 }
 0x444   : > { %v766_v32 = vpop.f32.mrb[6].mxu0 }
 0x445   : > { %v770_v33 = vmul.f32 0.35355338, %v766_v32  ;;  %v1896_v34 = vpop.f32.mrb[7].mxu0  ;;  %v1810_v32 = vld [vmem:[%s2397_s4] ss:$0 sm:$0xff] }
 0x447   : > { %v771_v35 = vsel %vm529_vm2, %v770_v33, -inf }
 0x448   : > { %772 = vmax.xlane.f32.xlu1 %v771_v35 }
 0x4d5   : > { %v773_v36 = vpop.xlane.xlu1 %772 }
 0x4d6   : > { %v774_v37 = vsub.f32 %v770_v33, %v773_v36 }
 0x4d8   : > { %v775_v38 = vmul.f32 1.442695, %v774_v37 }
 0x4da   : > { %2050 = vpow2.f32 %v775_v38 }
 0x4e4   : > { %v2051_v39 = vpop.eup %2050 }
 0x4e5   : > { %v777_v40 = vsel %vm529_vm2, %v2051_v39, 0.0 }
 0x4e6   : > { %778 = vadd.xlane.f32.xlu0 %v777_v40 }
 0x4fc   : > { %782 = vrot.lane.b32.xlu0 %v2203_v11, %s2081_s15 }
 0x500   : > { %1006 = vrot.lane.b32.xlu0 %v2203_v11, %s2082_s16 }
 0x504   : > { %1004 = vrot.lane.b32.xlu0 %v2203_v11, %s2083_s17 }
 0x514   : > { %v1000_v41 = vpop.f32.mrb[0].mxu1 }
 0x515   : > { %v1911_v42 = vpop.f32.mrb[1].mxu1 }
 0x573   : > { %v779_v43 = vpop.xlane.xlu0 %778 }
 0x574   : > { %2052 = vrcp.f32 %v779_v43  ;;  %v1524_v43 = vld [vmem:[%s2400_s7 + $0x8] sm:$0xff] }
 0x577   : > { %v783_v44 = vpop.permute.xlu0 %782 }
 0x578   : > { %1898 = vmatpush3.msra.mxu0 %v783_v44 }
 0x579   : > { %1902 = vmatprep.subr.mxu0 %v2076_v6 }
 0x57b   : > { %v1007_v48 = vpop.permute.xlu0 %1006 }
 0x57e   : > { %v2053_v45 = vpop.eup %2052 }
 0x57f   : > { %v781_v46 = vmul.f32 %v2053_v45, %v2051_v39  ;;  %v1005_v51 = vpop.permute.xlu0 %1004  ;;  %v1526_v45 = vld [vmem:[%s2400_s7 + $0x18] sm:$0xff] }
 0x581   : > { %1900 = vmatmul.mubr.msk.f32.vlgmr.msra.gmra.mrb[8].mxu0 %vm529_vm2, %v781_v46 }
 0x582   : > { %1903 = vmatpush3.msra.mxu0 %v523_v47  ;;  %1904 = vmatprep.mubr.msk.f32.mxu0 %vm2075_vm0, %v2076_v6  ;;  %v1608_v47 = vld [vmem:[%s2402_s9] sm:$0xff] }
 0x583   : > { %1912 = vmatprep.subr.mxu0 %v2076_v6 }
 0x654   : > { %v854_v49 = vpop.f32.mrb[8].mxu0 }
 0x655   : > { %v1901_v50 = vpop.f32.mrb[9].mxu0  ;;  %1905 = vmatmul.mubr.msk.f32.vlgmr.msra.gmra.mrb[10].mxu0 %vm529_vm2, %v854_v49  ;;  %v1610_v49 = vld [vmem:[%s2402_s9 + $0x10] sm:$0xff] }
 0x656   : > { %1913 = vmatpush3.xpose.msk.msra.mxu0 %vm529_vm2, %v1007_v48  ;;  %1914 = vmatprep.mubr.msk.f32.mxu0 %vm2075_vm0, %v2076_v6  ;;  %v1609_v48 = vld [vmem:[%s2402_s9 + $0x8] sm:$0xff] }
 0x657   : > { %1922 = vmatprep.subr.mxu0 %v2076_v6  ;;  %v2001_v50 = vpack.c.bf16 %v1609_v48, %v1608_v47 }
 0x659   : > { %1915 = vmatmul.mubr.msk.f32.vlgmr.msra.gmra.mrb[12].mxu0 %vm529_vm2, %v1005_v51  ;;  %v1611_v51 = vld [vmem:[%s2402_s9 + $0x18] sm:$0xff] }
 0x65a   : > { %1924 = vmatprep.mubr.msk.f32.mxu0 %vm2075_vm0, %v2076_v6  ;;  %1923 = vmatpush3.msra.mxu0 %v524_v9 }
 0x65b   : > { %1932 = vmatprep.subr.mxu0 %v2076_v6 }
 0x728   : > { %v927_v52 = vpop.f32.mrb[10].mxu0 }
 0x729   : > { %v1001_v53 = vadd.f32 %v1000_v41, %v927_v52  ;;  %v1906_v54 = vpop.f32.mrb[11].mxu0  ;;  %v2004_v52 = vpack.c.bf16 %v1611_v51, %v1610_v49 }
 0x72a   : > { %v1613_v54 = vld [vmem:[%s2402_s9 + $0x28] sm:$0xff] }
 0x72c   : > { %v1078_v55 = vpop.f32.mrb[12].mxu0 }
 0x72d   : > { %v1082_v56 = vmul.f32 0.35355338, %v1078_v55  ;;  %v1916_v57 = vpop.f32.mrb[13].mxu0 }
 0x72e   : > { %v1615_v57 = vld [vmem:[%s2402_s9 + $0x38] sm:$0xff] }
 0x72f   : > { %v1083_v58 = vsel %vm529_vm2, %v1082_v56, -inf }
 0x730   : > { %1084 = vmax.xlane.f32.xlu1 %v1083_v58 }
 0x741   : > { %1094 = vrot.lane.b32.xlu1 %v2203_v11, %s2084_s21 }
 0x745   : > { %1246 = vrot.lane.b32.xlu1 %v2203_v11, %s2085_s22 }
 0x749   : > { %1244 = vrot.lane.b32.xlu1 %v2203_v11, %s2086_s23 }
 0x7bd   : > { %v1085_v59 = vpop.xlane.xlu1 %1084 }
 0x7be   : > { %v1086_v60 = vsub.f32 %v1082_v56, %v1085_v59  ;;  %v1614_v56 = vld [vmem:[%s2402_s9 + $0x30] sm:$0xff]  ;;  %v1616_v59 = vld [vmem:[%s2402_s9 + $0x40] sm:$0xff] }
 0x7bf   : > { %v2010_v58 = vpack.c.bf16 %v1615_v57, %v1614_v56 }
 0x7c0   : > { %v1087_v61 = vmul.f32 1.442695, %v1086_v60  ;;  %v1617_v60 = vld [vmem:[%s2402_s9 + $0x48] sm:$0xff] }
 0x7c1   : > { %v1095_v62 = vpop.permute.xlu1 %1094 }
 0x7c2   : > { %2054 = vpow2.f32 %v1087_v61  ;;  %1918 = vmatpush3.msra.mxu1 %v1095_v62  ;;  %v2013_v61 = vpack.c.bf16 %v1617_v60, %v1616_v59  ;;  %v1618_v62 = vld [vmem:[%s2402_s9 + $0x50] sm:$0xff] }
 0x7c3   : > { %1927 = vmatprep.subr.mxu1 %v2076_v6 }
 0x7c5   : > { %v1247_v4 = vpop.permute.xlu1 %1246 }
 0x7c9   : > { %v1245_v7 = vpop.permute.xlu1 %1244 }
 0x7cc   : > { %v2055_v63 = vpop.eup %2054 }
 0x7cd   : > { %v1089_v0 = vsel %vm529_vm2, %v2055_v63, 0.0 }
 0x7ce   : > { %1090 = vadd.xlane.f32.xlu0 %v1089_v0 }
 0x85b   : > { %v1091_v1 = vpop.xlane.xlu0 %1090 }
 0x85c   : > { %2056 = vrcp.f32 %v1091_v1  ;;  %v1620_v1 = vld [vmem:[%s2402_s9 + $0x60] sm:$0xff] }
 0x866   : > { %v2057_v2 = vpop.eup %2056 }
 0x867   : > { %v1093_v5 = vmul.f32 %v2057_v2, %v2055_v63  ;;  %v1619_v63 = vld [vmem:[%s2402_s9 + $0x58] sm:$0xff]  ;;  %v1621_v2 = vld [vmem:[%s2402_s9 + $0x68] sm:$0xff] }
 0x868   : > { %v2016_v0 = vpack.c.bf16 %v1619_v63, %v1618_v62 }
 0x869   : > { %1920 = vmatmul.mubr.msk.f32.vlgmr.msra.gmra.mrb[2].mxu1 %vm529_vm2, %v1093_v5 }
 0x86a   : > { %1928 = vmatpush3.xpose.msk.msra.mxu1 %vm529_vm2, %v1247_v4  ;;  %1929 = vmatprep.mubr.msk.f32.mxu1 %vm2075_vm0, %v2076_v6  ;;  %v2019_v4 = vpack.c.bf16 %v1621_v2, %v1620_v1 }
 0x86b   : > { %1937 = vmatprep.subr.mxu1 %v2076_v6 }
 0x86d   : > { %1930 = vmatmul.mubr.msk.f32.vlgmr.msra.gmra.mrb[4].mxu1 %vm529_vm2, %v1245_v7 }
 0x86e   : > { %1939 = vmatprep.mubr.msk.f32.mxu1 %vm2075_vm0, %v2076_v6  ;;  %1938 = vmatpush3.msra.mxu1 %v525_v22 }
 0x86f   : > { %2000 = vmatprep.subr.bf16.mxu1 %v2074_v3 }
 0x93c   : > { %v1166_v10 = vpop.f32.mrb[2].mxu1 }
 0x93d   : > { %v1921_v12 = vpop.f32.mrb[3].mxu1  ;;  %1925 = vmatmul.mubr.msk.f32.vlgmr.msra.gmra.mrb[14].mxu0 %vm529_vm2, %v1166_v10 }
 0x93e   : > { %1934 = vmatprep.mubr.msk.f32.mxu0 %vm2075_vm0, %v2076_v6  ;;  %v1811_v12 = vld [vmem:[%s2398_s5] ss:$0 sm:$0xff] }
 0x940   : > { %v1318_v13 = vpop.f32.mrb[4].mxu1 }
 0x941   : > { %v1322_v14 = vmul.f32 0.35355338, %v1318_v13  ;;  %v1931_v15 = vpop.f32.mrb[5].mxu1 }
 0x943   : > { %v1323_v16 = vsel %vm529_vm2, %v1322_v14, -inf }
 0x944   : > { %1324 = vmax.xlane.f32.xlu1 %v1323_v16 }
 0x9d1   : > { %v1325_v17 = vpop.xlane.xlu1 %1324 }
 0x9d2   : > { %v1326_v18 = vsub.f32 %v1322_v14, %v1325_v17  ;;  %v1812_v14 = vld [vmem:[%s2399_s6] ss:$0 sm:$0xff]  ;;  %v1623_v17 = vld [vmem:[%s2402_s9 + $0x78] sm:$0xff] }
 0x9d4   : > { %v1327_v19 = vmul.f32 1.442695, %v1326_v18 }
 0x9d6   : > { %2058 = vpow2.f32 %v1327_v19  ;;  %v1813_v19 = vld [vmem:[%s2401_s8] ss:$0 sm:$0xff] }
 0x9e0   : > { %v2059_v20 = vpop.eup %2058 }
 0x9e1   : > { %v1329_v21 = vsel %vm529_vm2, %v2059_v20, 0.0 }
 0x9e2   : > { %1330 = vadd.xlane.f32.xlu0 %v1329_v21 }
 0x9f8   : > { %1334 = vrot.lane.b32.xlu0 %v2203_v11, %s2087_s28 }
 0xa10   : > { %v1239_v23 = vpop.f32.mrb[14].mxu0 }
 0xa11   : > { %v1243_v24 = vadd.f32 %v1239_v23, %v1001_v53  ;;  %v1926_v25 = vpop.f32.mrb[15].mxu0  ;;  %v1612_v53 = vld [vmem:[%s2402_s9 + $0x20] sm:$0xff] }
 0xa12   : > { %v2007_v55 = vpack.c.bf16 %v1613_v54, %v1612_v53 }
 0xa6f   : > { %v1331_v26 = vpop.xlane.xlu0 %1330 }
 0xa70   : > { %2060 = vrcp.f32 %v1331_v26 }
 0xa73   : > { %v1335_v27 = vpop.permute.xlu0 %1334 }
 0xa74   : > { %1933 = vmatpush3.msra.mxu0 %v1335_v27 }
 0xa75   : > { %1994 = vmatprep.subr.bf16.mxu0 %v2074_v3 }
 0xa7a   : > { %v2061_v28 = vpop.eup %2060 }
 0xa7b   : > { %v1333_v29 = vmul.f32 %v2061_v28, %v2059_v20 }
 0xa7d   : > { %1935 = vmatmul.mubr.msk.f32.vlgmr.msra.gmra.mrb[16].mxu0 %vm529_vm2, %v1333_v29 }
 0xa7e   : > { %1950 = vmatprep.mubr.msk.f32.mxu0 %vm2075_vm0, %v2076_v6 }
 0xb50   : > { %v1406_v11 = vpop.f32.mrb[16].mxu0 }
 0xb51   : > { %v1936_v30 = vpop.f32.mrb[17].mxu0  ;;  %1940 = vmatmul.mubr.msk.f32.vlgmr.msra.gmra.mrb[6].mxu1 %vm529_vm2, %v1406_v11 }
 0xb52   : > { %1985 = vmatprep.mubr.msk.f32.mxu1 %vm2075_vm0, %v2076_v6  ;;  %v1523_v6 = vld [vmem:[%s2400_s7] sm:$0xff]  ;;  %2002 = vmatpush3.bf16.msra.mxu1 %v2001_v50 }
 0xb53   : > { %v1995_v44 = vpack.c.bf16 %v1524_v43, %v1523_v6  ;;  %2003 = vmatprep.subr.bf16.mxu1 %v2074_v3 }
 0xb55   : > { %1996 = vmatpush3.bf16.msra.mxu0 %v1995_v44 }
 0xb56   : > { %1997 = vmatprep.subr.bf16.mxu0 %v2074_v3  ;;  %2005 = vmatpush3.bf16.msra.mxu1 %v2004_v52 }
 0xb57   : > { %2006 = vmatprep.subr.bf16.mxu1 %v2074_v3 }
 0xb5a   : > { %2008 = vmatpush3.bf16.msra.mxu1 %v2007_v55 }
 0xb5b   : > { %2009 = vmatprep.subr.bf16.mxu1 %v2074_v3 }
 0xb5e   : > { %2011 = vmatpush3.bf16.msra.mxu1 %v2010_v58 }
 0xb5f   : > { %2012 = vmatprep.subr.bf16.mxu1 %v2074_v3 }
 0xb62   : > { %2014 = vmatpush3.bf16.msra.mxu1 %v2013_v61 }
 0xb63   : > { %2015 = vmatprep.subr.bf16.mxu1 %v2074_v3 }
 0xb66   : > { %2017 = vmatpush3.bf16.msra.mxu1 %v2016_v0 }
 0xb67   : > { %2018 = vmatprep.subr.bf16.mxu1 %v2074_v3 }
 0xb6a   : > { %2020 = vmatpush3.bf16.msra.mxu1 %v2019_v4 }
 0xb6b   : > { %2021 = vmatprep.subr.bf16.mxu1 %v2074_v3  ;;  %v1622_v3 = vld [vmem:[%s2402_s9 + $0x70] sm:$0xff] }
 0xb6c   : > { %v2022_v18 = vpack.c.bf16 %v1623_v17, %v1622_v3 }
 0xb6e   : > { %2023 = vmatpush3.bf16.msra.mxu1 %v2022_v18 }
 0xc24   : > { %v1479_v31 = vpop.f32.mrb[6].mxu1 }
 0xc25   : > { %v1483_v33 = vadd.f32 %v1479_v31, %v1243_v24  ;;  %v1941_v34 = vpop.f32.mrb[7].mxu1  ;;  %v1815_v24 = vld [vmem:[%s2403_s10] ss:$0 sm:$0xff] }
 0xc27   : > { %v1491_v35 = vadd.f32 %v1810_v32, %v1483_v33 }
 0xc29   : > { %v1492_v36 = vadd.f32 %v1491_v35, %v2193_v8  ;;  %v1525_v8 = vld [vmem:[%s2400_s7 + $0x10] sm:$0xff] }
 0xc2a   : > { %v1998_v46 = vpack.c.bf16 %v1526_v45, %v1525_v8 }
 0xc2b   : > { %v1495_v37 = vsel %vm448_vm1, %v1492_v36, 0.0 }
 0xc2c   : > { %1496 = vadd.xlane.f32.xlu0 %v1495_v37  ;;  %1999 = vmatpush3.bf16.msra.mxu0 %v1998_v46 }
 0xcb9   : > { %v1497_v38 = vpop.xlane.xlu0 %1496 }
 0xcba   : > { %v1499_v39 = vmul.f32 0.03125, %v1497_v38  ;;  %v1816_v38 = vld [vmem:[%s2404_s11] ss:$0 sm:$0xff] }
 0xcbc   : > { %v1500_v40 = vsub.f32 %v1492_v36, %v1499_v39 }
 0xcbe   : > { %v1501_v41 = vmul.f32 %v1500_v40, %v1500_v40 }
 0xcc0   : > { %v1502_v42 = vsel %vm448_vm1, %v1501_v41, 0.0 }
 0xcc1   : > { %1503 = vadd.xlane.f32.xlu1 %v1502_v42 }
 0xd4e   : > { %v1504_v5 = vpop.xlane.xlu1 %1503 }
 0xd4f   : > { %v1505_v7 = vmul.f32 0.03125, %v1504_v5 }
 0xd51   : > { %v1506_v9 = vadd.f32 1e-05, %v1505_v7 }
 0xd53   : > { %2062 = vrsqrt.f32 %v1506_v9 }
 0xd5d   : > { %v2063_v10 = vpop.eup %2062 }
 0xd5e   : > { %v1508_v13 = vmul.f32 %v2063_v10, %v1500_v40  ;;  %v1817_v40 = vld [vmem:[%s2405_s12] ss:$0 sm:$0xff] }
 0xd60   : > { %v1515_v15 = vmul.f32 %v1811_v12, %v1508_v13 }
 0xd62   : > { %v1522_v16 = vadd.f32 %v1812_v14, %v1515_v15 }
 0xd64   : > { %1951 = vmatmul.mubr.msk.f32.vlgmr.msra.gmra.mrb[18].mxu0 %vm448_vm1, %v1522_v16 }
 0xe37   : > { %v1603_v20 = vpop.f32.mrb[18].mxu0 }
 0xe38   : > { %v1604_v21 = vadd.f32 %v1813_v19, %v1603_v20  ;;  %v1952_v22 = vpop.f32.mrb[19].mxu0 }
 0xe3a   : > { %v1607_v23 = vmax.f32 %v1604_v21, 0.0 }
 0xe3c   : > { %1986 = vmatmul.mubr.f32.vlgmr.msra.gmra.mrb[8].mxu1 %v1607_v23 }
 0xf0f   : > { %v1697_v25 = vpop.f32.mrb[8].mxu1 }
 0xf10   : > { %v1698_v26 = vadd.f32 %v1815_v24, %v1697_v25  ;;  %v1987_v27 = vpop.f32.mrb[9].mxu1 }
 0xf12   : > { %v1701_v28 = vadd.f32 %v1698_v26, %v1522_v16 }
 0xf14   : > { %v1704_v29 = vsel %vm448_vm1, %v1701_v28, 0.0 }
 0xf15   : > { %1705 = vadd.xlane.f32.xlu1 %v1704_v29 }
 0xfa2   : > { %v1706_v11 = vpop.xlane.xlu1 %1705 }
 0xfa3   : > { %v1707_v30 = vmul.f32 0.03125, %v1706_v11 }
 0xfa5   : > { %v1708_v31 = vsub.f32 %v1701_v28, %v1707_v30 }
 0xfa7   : > { %v1709_v32 = vmul.f32 %v1708_v31, %v1708_v31 }
 0xfa9   : > { %v1710_v33 = vsel %vm448_vm1, %v1709_v32, 0.0 }
 0xfaa   : > { %1711 = vadd.xlane.f32.xlu1 %v1710_v33 }
0x1037   : > { %v1712_v34 = vpop.xlane.xlu1 %1711 }
0x1038   : > { %v1713_v35 = vmul.f32 0.03125, %v1712_v34 }
0x103a   : > { %v1714_v36 = vadd.f32 1e-05, %v1713_v35 }
0x103c   : > { %2064 = vrsqrt.f32 %v1714_v36 }
0x1046   : > { %v2065_v37 = vpop.eup %2064 }
0x1047   : > { %v1716_v39 = vmul.f32 %v2065_v37, %v1708_v31 }
0x1049   : > { %v1723_v41 = vmul.f32 %v1816_v38, %v1716_v39 }
0x104b   : > { %v1730_v42 = vadd.f32 %v1817_v40, %v1723_v41 }
0x104d   : > { %1731 = vst.msk [vmem:[%s435_s14] sm:$0xff] %vm448_vm1, %v1730_v42 }
0x104e PF: > { %s23_s25 = sadd.s32 1, %s2072_s25  }
0x104f   : > { %p20_p4 = scmp.ge.s32.totalorder %s23_s25, 4  }
0x1051   :  { %22 = sbr.rel (!%p20_p4) target bundleno = 1 (0x1), region = 102 }

// kernel: transformer_forward.10
= control target key start
LH: loop header
LB: loop body
LE: loop exit
PB: predicated region body
PF: predicated region fallthrough
CT: control target
= control target key end

     0   :  { %s4238_s0 = inlined_call_operand.vmem [shape: f32[2,8,32], index: 0, kind: input, shape index: {}]   ;;  %s4239_s1 = inlined_call_operand.vmem [shape: f32[2,8,32], index: 1, kind: input, shape index: {}]   ;;  %s4240_s2 = inlined_call_operand.vmem [shape: f32[32,96], index: 2, kind: input, shape index: {}]   ;;  %s4241_s3 = inlined_call_operand.vmem [shape: f32[1,96], index: 3, kind: input, shape index: {}]   ;;  %s4242_s4 = inlined_call_operand.vmem [shape: f32[32,32], index: 4, kind: input, shape index: {}]   ;;  %s4243_s5 = inlined_call_operand.vmem [shape: f32[1,32], index: 5, kind: input, shape index: {}]   ;;  %s4244_s6 = inlined_call_operand.vmem [shape: f32[1,32], index: 6, kind: input, shape index: {}]   ;;  %s4245_s7 = inlined_call_operand.vmem [shape: f32[1,32], index: 7, kind: input, shape index: {}]   ;;  %s4246_s8 = inlined_call_operand.vmem [shape: f32[32,32], index: 8, kind: input, shape index: {}]   ;;  %s4247_s9 = inlined_call_operand.vmem [shape: f32[1,32], index: 9, kind: input, shape index: {}]   ;;  %s4248_s10 = inlined_call_operand.vmem [shape: f32[32,64], index: 10, kind: input, shape index: {}]   ;;  %s4249_s11 = inlined_call_operand.vmem [shape: f32[1,64], index: 11, kind: input, shape index: {}]   ;;  %s4250_s12 = inlined_call_operand.vmem [shape: f32[32,32], index: 12, kind: input, shape index: {}]   ;;  %s4251_s13 = inlined_call_operand.vmem [shape: f32[1,32], index: 13, kind: input, shape index: {}]   ;;  %s4252_s14 = inlined_call_operand.vmem [shape: f32[1,32], index: 14, kind: input, shape index: {}]   ;;  %s4253_s15 = inlined_call_operand.vmem [shape: f32[1,32], index: 15, kind: input, shape index: {}]   ;;  %s4254_s16 = inlined_call_operand.vmem [shape: f32[32,128], index: 16, kind: input, shape index: {}]   ;;  %s4255_s17 = inlined_call_operand.vmem [shape: f32[1,128], index: 17, kind: input, shape index: {}]   ;;  %s4256_s18 = inlined_call_operand.vmem [shape: f32[128,32], index: 18, kind: input, shape index: {}]   ;;  %s4257_s19 = inlined_call_operand.vmem [shape: f32[1,32], index: 19, kind: input, shape index: {}]   ;;  %s4258_s20 = inlined_call_operand.vmem [shape: f32[1,32], index: 20, kind: input, shape index: {}]   ;;  %s4259_s21 = inlined_call_operand.vmem [shape: f32[1,32], index: 21, kind: input, shape index: {}]   ;;  %s4260_s22 = inlined_call_operand.vmem [shape: f32[2,8,32], index: 22, kind: output, shape index: {}]  }
   0x1   :  { %4271 = sst [smem:[#allocation2_spill]] %s4238_s0 }
   0x2   :  { %4272 = sst [smem:[#allocation3_spill]] %s4239_s1 }
   0x3   :  { %4273 = sst [smem:[#allocation4_spill]] %s4240_s2 }
   0x4   :  { %4274 = sst [smem:[#allocation5_spill]] %s4241_s3  ;;  %s3821_s3 = smov 0  }
   0x5   :  { %4275 = sst [smem:[#allocation6_spill]] %s4242_s4 }
   0x6   :  { %4276 = sst [smem:[#allocation7_spill]] %s4243_s5 }
   0x7   :  { %4277 = sst [smem:[#allocation8_spill]] %s4244_s6 }
   0x8 LB: > { %s3233_s28 = sadd.s32 4294967295, %s3690_s3   ;;  %p3237_p0 = scmp.ge.s32.totalorder %s3690_s3, 1  ;;  %s3690_s3 = sphi %s3821_s3, %s32_s3  }
   0x9   : > { %p620_p1 = scmp.lt.s32.totalorder %s3690_s3, 3 }
   0xb   : > { %p621_p2 = pnand %p3237_p0, %p620_p1 }
   0xc   : > { %s4278_s4 = sld [smem:[#allocation4_spill]] (!%p621_p2)  ;;  %v3692_v3 = vmov (!%p621_p2), 0.0|0.0   ;;  %vm3693_vm0 = vmmov (!%p621_p2), 0   ;;  %v3694_v6 = vmov (!%p621_p2), 0.0   ;;  %p684_p3 = scmp.lt.s32.totalorder (!%p621_p2), %s3233_s28, 1  ;;  %vm709_vm1 = vcmask (!%p621_p2), 261120  }
   0xd   : > { %624 = sbr.rel (%p621_p2) target bundleno = 6547 (0x1993), region = 108  ;;  %3576 = vmatprep.subr.bf16.mxu0 (!%p621_p2), %v3692_v3  ;;  %3385 = vmatprep.mubr.msk.f32.mxu0 (!%p621_p2), %vm3693_vm0, %v3694_v6  ;;  %s4279_s27 = sld [smem:[#allocation2_spill]] (!%p621_p2)  ;;  %vm795_vm2 = vcmask (!%p621_p2), 64512   ;;  %v787_v16 = vlaneseq (!%p621_p2) }
   0xe   : > { %3393 = vmatprep.subr.mxu1 (!%p621_p2), %v3694_v6  ;;  %3395 = vmatprep.mubr.msk.f32.mxu1 (!%p621_p2), %vm3693_vm0, %v3694_v6  ;;  %s4280_s0 = sld [smem:[#allocation5_spill]] (!%p621_p2)  ;;  %s3695_s23 = smov (!%p621_p2), 120  }
   0xf   : > { %s4267_s1 = smov (!%p621_p2), 96   ;;  %s4270_s5 = smov (!%p621_p2), 88   ;;  %v3883_v17 = vshrl.u32 (!%p621_p2), %v787_v16, 7  ;;  %v3885_v18 = vand.u32 (!%p621_p2), 127, %v787_v16 }
  0x10   : > { %s3698_s24 = smov (!%p621_p2), 56   ;;  %s3699_s6 = smov (!%p621_p2), 64  }
  0x11   : > { %vm791_vm3 = vcmp.le.s32.totalorder (!%p621_p2), %v3885_v18, %v3883_v17  ;;  %s4264_s26 = smov (!%p621_p2), 80   ;;  %s4268_s2 = smov (!%p621_p2), 112  }
  0x12   : > { %v698_v0 = vld [vmem:[%s4278_s4] sm:$0xff] (!%p621_p2)  ;;  %v699_v1 = vld [vmem:[%s4278_s4 + $0x8] sm:$0xff] (!%p621_p2)  ;;  %v700_v2 = vld [vmem:[%s4278_s4 + $0x10] sm:$0xff] (!%p621_p2)  ;;  %s4281_s30 = sld [smem:[#allocation6_spill]] (!%p621_p2) }
  0x13   : > { %v3577_v4 = vpack.c.bf16 (!%p621_p2), %v699_v1, %v698_v0  ;;  %v701_v5 = vld [vmem:[%s4278_s4 + $0x18] sm:$0xff] (!%p621_p2) }
  0x14   : > { %v3580_v7 = vpack.c.bf16 %v701_v5, %v700_v2  ;;  %s4292_s28 = smov (!%p684_p3, %s3233_s28), 1  ;;  %v3241_v9 = vld [vmem:[%s4280_s0] ss:$0 sm:$0xff]  ;;  %s3705_s0 = smov 40  }
  0x15   : > { %3578 = vmatpush3.bf16.msra.mxu0 %v3577_v4  ;;  %s3848_s25 = sshll.u32 %s4292_s28, 3  ;;  %s4283_s28 = sld [smem:[#allocation8_spill]] }
  0x16   : > { %3579 = vmatprep.subr.bf16.mxu0 %v3692_v3  ;;  %s687_s29 = scalar_lea.vmem %s4279_s27, %s3848_s25  ;;  %s3704_s27 = smov 48  }
  0x17   : > { %v3854_v8 = vld [vmem:[%s687_s29] sm:$0xff]  ;;  %s4286_s29 = smov 112  }
  0x18   : > { %v784_v39 = vld [vmem:[%s4281_s30 + $0x8] sm:$0xff]  ;;  %v783_v48 = vld [vmem:[%s4281_s30] sm:$0xff]  ;;  %v785_v16 = vld [vmem:[%s4281_s30 + $0x10] sm:$0xff] }
  0x19   : > { %3581 = vmatpush3.bf16.msra.mxu0 %v3580_v7  ;;  %v786_v17 = vld [vmem:[%s4281_s30 + $0x18] sm:$0xff] }
  0x1a   : > { %3388 = vmatprep.subr.mxu0 %v3694_v6 }
  0x1c   : > { %3386 = vmatmul.mubr.msk.f32.vlgmr.msra.gmra.mrb[0].mxu0 %vm709_vm1, %v3854_v8 }
  0x1d   : > { %3390 = vmatprep.mubr.msk.f32.mxu0 %vm3693_vm0, %v3694_v6 }
  0xef   : > { %v779_v10 = vpop.f32.mrb[0].mxu0 }
  0xf0   : > { %v3864_v11 = vadd.f32 %v3241_v9, %v779_v10  ;;  %v3387_v12 = vpop.f32.mrb[1].mxu0 }
  0xf2   : > { %959 = vrot.lane.b32.xlu1 %v3864_v11, %s3695_s23  ;;  %793 = vrot.lane.b32.xlu0 %v3864_v11, %s4267_s1 }
  0xf6   : > { %961 = vrot.lane.b32.xlu0 %v3864_v11, %s4270_s5  ;;  %s4288_s5 = smov 104  }
 0x164   : > { %v794_v13 = vpop.permute.xlu0 %793  ;;  %v960_v15 = vpop.permute.xlu1 %959 }
 0x165   : > { %3389 = vmatpush3.xpose.msk.msra.mxu0 %vm795_vm2, %v794_v13 }
 0x166   : > { %3398 = vmatprep.subr.mxu0 %v3694_v6 }
 0x168   : > { %3391 = vmatmul.mubr.msk.f32.vlgmr.msra.gmra.mrb[2].mxu0 %vm795_vm2, %v3864_v11  ;;  %v962_v14 = vpop.permute.xlu0 %961 }
 0x169   : > { %3399 = vmatpush3.xpose.msk.msra.mxu0 %vm795_vm2, %v962_v14  ;;  %3400 = vmatprep.mubr.msk.f32.mxu0 %vm3693_vm0, %v3694_v6 }
 0x16a   : > { %3408 = vmatprep.subr.mxu0 %v3694_v6 }
 0x16c   : > { %3401 = vmatmul.mubr.msk.f32.vlgmr.msra.gmra.mrb[4].mxu0 %vm795_vm2, %v960_v15 }
 0x16d   : > { %3410 = vmatprep.mubr.msk.f32.mxu0 %vm3693_vm0, %v3694_v6  ;;  %3409 = vmatpush3.msra.mxu0 %v784_v39 }
 0x16e   : > { %3418 = vmatprep.subr.mxu0 %v3694_v6 }
 0x23b   : > { %v866_v19 = vpop.f32.mrb[2].mxu0 }
 0x23c   : > { %v870_v20 = vmul.f32 0.35355338, %v866_v19  ;;  %v3392_v21 = vpop.f32.mrb[3].mxu0 }
 0x23e   : > { %v871_v22 = vsel %vm791_vm3, %v870_v20, -1e+30 }
 0x23f   : > { %v1033_v23 = vpop.f32.mrb[4].mxu0  ;;  %v872_v24 = vsel %vm795_vm2, %v871_v22, -inf }
 0x240   : > { %v1037_v25 = vmul.f32 0.35355338, %v1033_v23  ;;  %873 = vmax.xlane.f32.xlu1 %v872_v24  ;;  %v3402_v26 = vpop.f32.mrb[5].mxu0 }
 0x242   : > { %v1038_v27 = vsel %vm791_vm3, %v1037_v25, -1e+30 }
 0x243   : > { %v1039_v28 = vsel %vm795_vm2, %v1038_v27, -inf }
 0x244   : > { %1040 = vmax.xlane.f32.xlu0 %v1039_v28 }
 0x2cd   : > { %v874_v29 = vpop.xlane.xlu1 %873 }
 0x2ce   : > { %v875_v30 = vsub.f32 %v871_v22, %v874_v29 }
 0x2d0   : > { %v876_v31 = vmul.f32 1.442695, %v875_v30 }
 0x2d1   : > { %v1041_v32 = vpop.xlane.xlu0 %1040 }
 0x2d2   : > { %3646 = vpow2.f32 %v876_v31  ;;  %v1042_v33 = vsub.f32 %v1038_v27, %v1041_v32 }
 0x2d4   : > { %v1043_v34 = vmul.f32 1.442695, %v1042_v33 }
 0x2d6   : > { %3648 = vpow2.f32 %v1043_v34 }
 0x2dc   : > { %v3647_v35 = vpop.eup %3646 }
 0x2dd   : > { %v878_v36 = vsel %vm795_vm2, %v3647_v35, 0.0 }
 0x2de   : > { %879 = vadd.xlane.f32.xlu0 %v878_v36 }
 0x2e0   : > { %v3649_v37 = vpop.eup %3648 }
 0x2e1   : > { %v1045_v38 = vsel %vm795_vm2, %v3649_v37, 0.0 }
 0x2e2   : > { %1046 = vadd.xlane.f32.xlu1 %v1045_v38 }
 0x2f3   : > { %1050 = vrot.lane.b32.xlu1 %v3864_v11, %s3698_s24  ;;  %s4263_s24 = smov 72  }
 0x2f4   : > { %883 = vrot.lane.b32.xlu0 %v3864_v11, %s3699_s6  ;;  %s4265_s6 = smov 104  }
 0x2f7   : > { %1274 = vrot.lane.b32.xlu1 %v3864_v11, %s4264_s26  ;;  %s695_s26 = scalar_lea.vmem %s4260_s22, %s3848_s25 }
 0x2f8   : > { %1272 = vrot.lane.b32.xlu0 %v3864_v11, %s4268_s2 }
 0x36b   : > { %v880_v40 = vpop.xlane.xlu0 %879 }
 0x36c   : > { %3650 = vrcp.f32 %v880_v40 }
 0x36f   : > { %v1047_v41 = vpop.xlane.xlu1 %1046  ;;  %v884_v42 = vpop.permute.xlu0 %883 }
 0x370   : > { %3652 = vrcp.f32 %v1047_v41  ;;  %3394 = vmatpush3.msra.mxu1 %v884_v42 }
 0x371   : > { %3403 = vmatprep.subr.mxu1 %v3694_v6 }
 0x373   : > { %v1051_v45 = vpop.permute.xlu1 %1050  ;;  %v1273_v54 = vpop.permute.xlu0 %1272 }
 0x376   : > { %v3651_v43 = vpop.eup %3650 }
 0x377   : > { %v882_v44 = vmul.f32 %v3651_v43, %v3647_v35  ;;  %v1275_v52 = vpop.permute.xlu1 %1274 }
 0x379   : > { %3396 = vmatmul.mubr.msk.f32.vlgmr.msra.gmra.mrb[0].mxu1 %vm795_vm2, %v882_v44 }
 0x37a   : > { %v3653_v46 = vpop.eup %3652  ;;  %3404 = vmatpush3.msra.mxu1 %v1051_v45  ;;  %3405 = vmatprep.mubr.msk.f32.mxu1 %vm3693_vm0, %v3694_v6 }
 0x37b   : > { %v1049_v47 = vmul.f32 %v3653_v46, %v3649_v37  ;;  %3413 = vmatprep.subr.mxu1 %v3694_v6 }
 0x37d   : > { %3406 = vmatmul.mubr.msk.f32.vlgmr.msra.gmra.mrb[2].mxu1 %vm795_vm2, %v1049_v47 }
 0x37e   : > { %3415 = vmatprep.mubr.msk.f32.mxu1 %vm3693_vm0, %v3694_v6  ;;  %3414 = vmatpush3.msra.mxu1 %v783_v48 }
 0x37f   : > { %3423 = vmatprep.subr.mxu1 %v3694_v6 }
 0x44c   : > { %v955_v49 = vpop.f32.mrb[0].mxu1 }
 0x44d   : > { %v3397_v50 = vpop.f32.mrb[1].mxu1  ;;  %3416 = vmatmul.mubr.msk.f32.vlgmr.msra.gmra.mrb[4].mxu1 %vm795_vm2, %v955_v49 }
 0x44e   : > { %3425 = vmatprep.mubr.msk.f32.mxu1 %vm3693_vm0, %v3694_v6  ;;  %v1793_v50 = vld [vmem:[%s4246_s8] sm:$0xff] }
 0x450   : > { %v1122_v51 = vpop.f32.mrb[2].mxu1 }
 0x451   : > { %v3407_v53 = vpop.f32.mrb[3].mxu1  ;;  %3411 = vmatmul.mubr.msk.f32.vlgmr.msra.gmra.mrb[6].mxu0 %vm795_vm2, %v1122_v51  ;;  %v1794_v51 = vld [vmem:[%s4246_s8 + $0x8] sm:$0xff] }
 0x452   : > { %3419 = vmatpush3.xpose.msk.msra.mxu0 %vm795_vm2, %v1275_v52  ;;  %3420 = vmatprep.mubr.msk.f32.mxu0 %vm3693_vm0, %v3694_v6  ;;  %v3583_v52 = vpack.c.bf16 %v1794_v51, %v1793_v50  ;;  %v1796_v53 = vld [vmem:[%s4246_s8 + $0x18] sm:$0xff] }
 0x453   : > { %3428 = vmatprep.subr.mxu0 %v3694_v6 }
 0x455   : > { %3421 = vmatmul.mubr.msk.f32.vlgmr.msra.gmra.mrb[8].mxu0 %vm795_vm2, %v1273_v54 }
 0x456   : > { %3430 = vmatprep.mubr.msk.f32.mxu0 %vm3693_vm0, %v3694_v6  ;;  %3429 = vmatpush3.msra.mxu0 %v785_v16 }
 0x457   : > { %3438 = vmatprep.subr.mxu0 %v3694_v6 }
 0x520   : > { %v1268_v55 = vpop.f32.mrb[4].mxu1 }
 0x521   : > { %v3417_v56 = vpop.f32.mrb[5].mxu1 }
 0x524   : > { %v1195_v57 = vpop.f32.mrb[6].mxu0 }
 0x525   : > { %v3932_v58 = vadd.f32 %v1268_v55, %v1195_v57  ;;  %v3412_v59 = vpop.f32.mrb[7].mxu0 }
 0x526   : > { %v3260_v59 = vld [vmem:[%s4283_s28] ss:$0 sm:$0xff]  ;;  %s4287_s28 = smov 96  }
 0x528   : > { %v1346_v60 = vpop.f32.mrb[8].mxu0 }
 0x529   : > { %v1350_v61 = vmul.f32 0.35355338, %v1346_v60  ;;  %v3422_v62 = vpop.f32.mrb[9].mxu0 }
 0x52a   : > { %v1878_v62 = vld [vmem:[%s4248_s10 + $0x8] sm:$0xff] }
 0x52b   : > { %v1351_v63 = vsel %vm791_vm3, %v1350_v61, -1e+30  ;;  %v1877_v61 = vld [vmem:[%s4248_s10] sm:$0xff] }
 0x52c   : > { %v1352_v0 = vsel %vm795_vm2, %v1351_v63, -inf }
 0x52d   : > { %1353 = vmax.xlane.f32.xlu1 %v1352_v0 }
 0x53e   : > { %1515 = vrot.lane.b32.xlu1 %v3864_v11, %s4263_s24 }
 0x542   : > { %1513 = vrot.lane.b32.xlu1 %v3864_v11, %s4265_s6  ;;  %s4289_s6 = smov 80  }
 0x5ba   : > { %v1354_v1 = vpop.xlane.xlu1 %1353 }
 0x5bb   : > { %v1355_v2 = vsub.f32 %v1351_v63, %v1354_v1  ;;  %v3261_v63 = vld [vmem:[%s4245_s7] ss:$0 sm:$0xff]  ;;  %v3589_v1 = vpack.c.bf16 %v1878_v62, %v1877_v61 }
 0x5bd   : > { %v1356_v4 = vmul.f32 1.442695, %v1355_v2 }
 0x5be   : > { %v1516_v13 = vpop.permute.xlu1 %1515 }
 0x5bf   : > { %3654 = vpow2.f32 %v1356_v4  ;;  %v1879_v4 = vld [vmem:[%s4248_s10 + $0x10] sm:$0xff] }
 0x5c2   : > { %v1514_v15 = vpop.permute.xlu1 %1513 }
 0x5c9   : > { %v3655_v5 = vpop.eup %3654 }
 0x5ca   : > { %v1358_v7 = vsel %vm795_vm2, %v3655_v5, 0.0 }
 0x5cb   : > { %1359 = vadd.xlane.f32.xlu0 %v1358_v7 }
 0x5e1   : > { %1363 = vrot.lane.b32.xlu0 %v3864_v11, %s3704_s27  ;;  %s4282_s27 = sld [smem:[#allocation7_spill]] }
 0x5e7   : > { %v3259_v39 = vld [vmem:[%s4282_s27] ss:$0 sm:$0xff] }
 0x658   : > { %v1360_v9 = vpop.xlane.xlu0 %1359 }
 0x659   : > { %3656 = vrcp.f32 %v1360_v9 }
 0x65c   : > { %v1364_v10 = vpop.permute.xlu0 %1363 }
 0x65d   : > { %3424 = vmatpush3.msra.mxu1 %v1364_v10  ;;  %v3262_v10 = vld [vmem:[%s4247_s9] ss:$0 sm:$0xff] }
 0x65e   : > { %3433 = vmatprep.subr.mxu1 %v3694_v6 }
 0x663   : > { %v3657_v12 = vpop.eup %3656 }
 0x664   : > { %v1362_v14 = vmul.f32 %v3657_v12, %v3655_v5  ;;  %v1880_v5 = vld [vmem:[%s4248_s10 + $0x18] sm:$0xff] }
 0x665   : > { %v3592_v7 = vpack.c.bf16 %v1880_v5, %v1879_v4 }
 0x666   : > { %3426 = vmatmul.mubr.msk.f32.vlgmr.msra.gmra.mrb[6].mxu1 %vm795_vm2, %v1362_v14 }
 0x667   : > { %3434 = vmatpush3.xpose.msk.msra.mxu1 %vm795_vm2, %v1516_v13  ;;  %3435 = vmatprep.mubr.msk.f32.mxu1 %vm3693_vm0, %v3694_v6 }
 0x668   : > { %3443 = vmatprep.subr.mxu1 %v3694_v6 }
 0x66a   : > { %3436 = vmatmul.mubr.msk.f32.vlgmr.msra.gmra.mrb[8].mxu1 %vm795_vm2, %v1514_v15  ;;  %v3264_v15 = vld [vmem:[%s4249_s11] ss:$0 sm:$0xff] }
 0x66b   : > { %3445 = vmatprep.mubr.msk.f32.mxu1 %vm3693_vm0, %v3694_v6  ;;  %3444 = vmatpush3.msra.mxu1 %v786_v17 }
 0x66c   : > { %3475 = vmatprep.subr.mxu1 %v3694_v6 }
 0x739   : > { %v1435_v19 = vpop.f32.mrb[6].mxu1 }
 0x73a   : > { %v3427_v20 = vpop.f32.mrb[7].mxu1  ;;  %3431 = vmatmul.mubr.msk.f32.vlgmr.msra.gmra.mrb[10].mxu0 %vm795_vm2, %v1435_v19 }
 0x73b   : > { %3440 = vmatprep.mubr.msk.f32.mxu0 %vm3693_vm0, %v3694_v6 }
 0x73d   : > { %v1587_v21 = vpop.f32.mrb[8].mxu1 }
 0x73e   : > { %v1591_v22 = vmul.f32 0.35355338, %v1587_v21  ;;  %v3437_v23 = vpop.f32.mrb[9].mxu1 }
 0x740   : > { %v1592_v24 = vsel %vm791_vm3, %v1591_v22, -1e+30 }
 0x741   : > { %v1593_v25 = vsel %vm795_vm2, %v1592_v24, -inf }
 0x742   : > { %1594 = vmax.xlane.f32.xlu0 %v1593_v25 }
 0x758   : > { %1604 = vrot.lane.b32.xlu0 %v3864_v11, %s3705_s0  ;;  %s4284_s0 = sld [smem:[#allocation3_spill]] }
 0x75e   : > { %s691_s1 = scalar_lea.vmem %s4284_s0, %s3848_s25 }
 0x75f   : > { %v697_v9 = vld [vmem:[%s691_s1] sm:$0xff] }
 0x7cf   : > { %v1595_v26 = vpop.xlane.xlu0 %1594 }
 0x7d0   : > { %v1596_v27 = vsub.f32 %v1592_v24, %v1595_v26 }
 0x7d2   : > { %v1597_v28 = vmul.f32 1.442695, %v1596_v27 }
 0x7d3   : > { %v1605_v29 = vpop.permute.xlu0 %1604 }
 0x7d4   : > { %3658 = vpow2.f32 %v1597_v28  ;;  %3439 = vmatpush3.msra.mxu0 %v1605_v29 }
 0x7d5   : > { %3582 = vmatprep.subr.bf16.mxu0 %v3692_v3 }
 0x7de   : > { %v3659_v30 = vpop.eup %3658 }
 0x7df   : > { %v1599_v31 = vsel %vm795_vm2, %v3659_v30, 0.0 }
 0x7e0   : > { %1600 = vadd.xlane.f32.xlu1 %v1599_v31 }
 0x80d   : > { %v1508_v11 = vpop.f32.mrb[10].mxu0 }
 0x80e   : > { %v1512_v18 = vadd.f32 %v1508_v11, %v3932_v58  ;;  %v3432_v32 = vpop.f32.mrb[11].mxu0 }
 0x86d   : > { %v1601_v33 = vpop.xlane.xlu1 %1600 }
 0x86e   : > { %3660 = vrcp.f32 %v1601_v33 }
 0x878   : > { %v3661_v34 = vpop.eup %3660 }
 0x879   : > { %v1603_v35 = vmul.f32 %v3661_v34, %v3659_v30 }
 0x87b   : > { %3441 = vmatmul.mubr.msk.f32.vlgmr.msra.gmra.mrb[12].mxu0 %vm795_vm2, %v1603_v35 }
 0x87c   : > { %3456 = vmatprep.mubr.msk.f32.mxu0 %vm3693_vm0, %v3694_v6  ;;  %3584 = vmatpush3.bf16.msra.mxu0 %v3583_v52 }
 0x87d   : > { %3585 = vmatprep.subr.bf16.mxu0 %v3692_v3 }
 0x94e   : > { %v1676_v36 = vpop.f32.mrb[12].mxu0 }
 0x94f   : > { %v3442_v37 = vpop.f32.mrb[13].mxu0  ;;  %3446 = vmatmul.mubr.msk.f32.vlgmr.msra.gmra.mrb[10].mxu1 %vm795_vm2, %v1676_v36 }
 0x950   : > { %3477 = vmatprep.mubr.msk.f32.mxu1 %vm3693_vm0, %v3694_v6 }
 0xa22   : > { %v1749_v38 = vpop.f32.mrb[10].mxu1 }
 0xa23   : > { %v1753_v40 = vadd.f32 %v1749_v38, %v1512_v18  ;;  %v3447_v41 = vpop.f32.mrb[11].mxu1 }
 0xa25   : > { %v1761_v42 = vadd.f32 %v3259_v39, %v1753_v40 }
 0xa27   : > { %v1762_v43 = vadd.f32 %v1761_v42, %v3854_v8  ;;  %v1795_v8 = vld [vmem:[%s4246_s8 + $0x10] sm:$0xff] }
 0xa28   : > { %v3586_v54 = vpack.c.bf16 %v1796_v53, %v1795_v8 }
 0xa29   : > { %v1765_v44 = vsel %vm709_vm1, %v1762_v43, 0.0 }
 0xa2a   : > { %1766 = vadd.xlane.f32.xlu1 %v1765_v44  ;;  %3587 = vmatpush3.bf16.msra.mxu0 %v3586_v54 }
 0xa2b   : > { %3588 = vmatprep.subr.bf16.mxu0 %v3692_v3 }
 0xab7   : > { %v1767_v45 = vpop.xlane.xlu1 %1766 }
 0xab8   : > { %v1769_v46 = vmul.f32 0.03125, %v1767_v45 }
 0xaba   : > { %v1770_v47 = vsub.f32 %v1762_v43, %v1769_v46  ;;  %v1961_v46 = vld [vmem:[%s4250_s12] sm:$0xff] }
 0xabc   : > { %v1771_v48 = vmul.f32 %v1770_v47, %v1770_v47 }
 0xabe   : > { %v1772_v49 = vsel %vm709_vm1, %v1771_v48, 0.0 }
 0xabf   : > { %1773 = vadd.xlane.f32.xlu1 %v1772_v49 }
 0xb4c   : > { %v1774_v55 = vpop.xlane.xlu1 %1773 }
 0xb4d   : > { %v1775_v56 = vmul.f32 0.03125, %v1774_v55 }
 0xb4f   : > { %v1776_v57 = vadd.f32 1e-05, %v1775_v56 }
 0xb51   : > { %3662 = vrsqrt.f32 %v1776_v57 }
 0xb5b   : > { %v3663_v58 = vpop.eup %3662 }
 0xb5c   : > { %v1778_v60 = vmul.f32 %v3663_v58, %v1770_v47  ;;  %v1962_v47 = vld [vmem:[%s4250_s12 + $0x8] sm:$0xff] }
 0xb5e   : > { %v1785_v0 = vmul.f32 %v3260_v59, %v1778_v60 }
 0xb60   : > { %v4010_v2 = vadd.f32 %v3261_v63, %v1785_v0 }
 0xb62   : > { %3457 = vmatmul.mubr.msk.f32.vlgmr.msra.gmra.mrb[14].mxu0 %vm709_vm1, %v4010_v2 }
 0xb63   : > { %3590 = vmatpush3.bf16.msra.mxu0 %v3589_v1  ;;  %3467 = vmatprep.mubr.msk.f32.mxu0 %vm3693_vm0, %v3694_v6 }
 0xb64   : > { %3591 = vmatprep.subr.bf16.mxu0 %v3692_v3 }
 0xb67   : > { %3593 = vmatpush3.bf16.msra.mxu0 %v3592_v7 }
 0xb68   : > { %3470 = vmatprep.subr.mxu0 %v3694_v6 }
 0xb6a   : > { %3468 = vmatmul.mubr.msk.f32.vlgmr.msra.gmra.mrb[16].mxu0 %vm709_vm1, %v697_v9 }
 0xb6b   : > { %3472 = vmatprep.mubr.msk.f32.mxu0 %vm3693_vm0, %v3694_v6 }
 0xc35   : > { %v1873_v12 = vpop.f32.mrb[14].mxu0 }
 0xc36   : > { %v4034_v13 = vadd.f32 %v3262_v10, %v1873_v12  ;;  %v3458_v14 = vpop.f32.mrb[15].mxu0 }
 0xc37   : > { %v1963_v14 = vld [vmem:[%s4250_s12 + $0x10] sm:$0xff] }
 0xc38   : > { %2129 = vrot.lane.b32.xlu0 %v4034_v13, %s3695_s23 }
 0xc3d   : > { %v1957_v16 = vpop.f32.mrb[16].mxu0 }
 0xc3e   : > { %v4041_v19 = vadd.f32 %v3264_v15, %v1957_v16  ;;  %v3469_v20 = vpop.f32.mrb[17].mxu0 }
 0xc40   : > { %2131 = vrot.lane.b32.xlu1 %v4041_v19, %s3695_s23  ;;  %3471 = vmatpush3.xpose.msk.msra.mxu0 %vm795_vm2, %v4041_v19  ;;  %s4285_s23 = smov 88  }
 0xc41   : > { %3480 = vmatprep.subr.mxu0 %v3694_v6 }
 0xc43   : > { %3473 = vmatmul.mubr.msk.f32.vlgmr.msra.gmra.mrb[18].mxu0 %vm795_vm2, %v4034_v13 }
 0xc44   : > { %3482 = vmatprep.mubr.msk.f32.mxu0 %vm3693_vm0, %v3694_v6 }
 0xcaa   : > { %v2130_v22 = vpop.permute.xlu0 %2129 }
 0xcb2   : > { %v2132_v21 = vpop.permute.xlu1 %2131 }
 0xcb3   : > { %3481 = vmatpush3.xpose.msk.msra.mxu0 %vm795_vm2, %v2132_v21 }
 0xcb4   : > { %3490 = vmatprep.subr.mxu0 %v3694_v6 }
 0xcb6   : > { %3483 = vmatmul.mubr.msk.f32.vlgmr.msra.gmra.mrb[20].mxu0 %vm795_vm2, %v2130_v22 }
 0xcb7   : > { %3492 = vmatprep.mubr.msk.f32.mxu0 %vm3693_vm0, %v3694_v6  ;;  %3491 = vmatpush3.msra.mxu0 %v1962_v47  ;;  %v2960_v47 = vld [vmem:[%s4254_s16 + $0x8] sm:$0xff] }
 0xcb8   : > { %3500 = vmatprep.subr.mxu0 %v3694_v6 }
 0xd16   : > { %v2037_v23 = vpop.f32.mrb[18].mxu0 }
 0xd17   : > { %v2041_v24 = vmul.f32 0.35355338, %v2037_v23  ;;  %v3474_v25 = vpop.f32.mrb[19].mxu0 }
 0xd19   : > { %v2042_v26 = vsel %vm795_vm2, %v2041_v24, -inf }
 0xd1a   : > { %2043 = vmax.xlane.f32.xlu0 %v2042_v26 }
 0xd89   : > { %v2203_v27 = vpop.f32.mrb[20].mxu0 }
 0xd8a   : > { %v2207_v28 = vmul.f32 0.35355338, %v2203_v27  ;;  %v3484_v29 = vpop.f32.mrb[21].mxu0 }
 0xd8c   : > { %v2208_v30 = vsel %vm795_vm2, %v2207_v28, -inf }
 0xd8d   : > { %2209 = vmax.xlane.f32.xlu1 %v2208_v30  ;;  %v1964_v30 = vld [vmem:[%s4250_s12 + $0x18] sm:$0xff] }
 0xd9e   : > { %2219 = vrot.lane.b32.xlu1 %v4041_v19, %s4285_s23  ;;  %s4290_s23 = smov 72  }
 0xda2   : > { %2443 = vrot.lane.b32.xlu1 %v4041_v19, %s4286_s29 }
 0xda7   : > { %v2044_v31 = vpop.xlane.xlu0 %2043 }
 0xda8   : > { %v2045_v17 = vsub.f32 %v2041_v24, %v2044_v31 }
 0xdaa   : > { %v2046_v11 = vmul.f32 1.442695, %v2045_v17 }
 0xdac   : > { %3664 = vpow2.f32 %v2046_v11 }
 0xdb6   : > { %v3665_v18 = vpop.eup %3664 }
 0xdb7   : > { %v2048_v32 = vsel %vm795_vm2, %v3665_v18, 0.0 }
 0xdb8   : > { %2049 = vadd.xlane.f32.xlu0 %v2048_v32 }
 0xe1a   : > { %v2210_v33 = vpop.xlane.xlu1 %2209 }
 0xe1b   : > { %v2211_v34 = vsub.f32 %v2207_v28, %v2210_v33 }
 0xe1d   : > { %v2212_v35 = vmul.f32 1.442695, %v2211_v34 }
 0xe1e   : > { %v2220_v43 = vpop.permute.xlu1 %2219 }
 0xe1f   : > { %3666 = vpow2.f32 %v2212_v35 }
 0xe22   : > { %v2444_v51 = vpop.permute.xlu1 %2443 }
 0xe29   : > { %v3667_v36 = vpop.eup %3666 }
 0xe2a   : > { %v2214_v37 = vsel %vm795_vm2, %v3667_v36, 0.0 }
 0xe2b   : > { %2215 = vadd.xlane.f32.xlu0 %v2214_v37 }
 0xe41   : > { %2053 = vrot.lane.b32.xlu0 %v4041_v19, %s4287_s28 }
 0xe45   : > { %2441 = vrot.lane.b32.xlu0 %v4034_v13, %s4286_s29  ;;  %v2050_v38 = vpop.xlane.xlu0 %2049 }
 0xe46   : > { %3668 = vrcp.f32 %v2050_v38 }
 0xe50   : > { %v3669_v40 = vpop.eup %3668 }
 0xe51   : > { %v2052_v41 = vmul.f32 %v3669_v40, %v3665_v18 }
 0xeb8   : > { %v2216_v39 = vpop.xlane.xlu0 %2215 }
 0xeb9   : > { %3670 = vrcp.f32 %v2216_v39 }
 0xebc   : > { %v2054_v42 = vpop.permute.xlu0 %2053 }
 0xebd   : > { %3476 = vmatpush3.msra.mxu1 %v2054_v42 }
 0xebe   : > { %3478 = vmatmul.mubr.msk.f32.vlgmr.msra.gmra.mrb[12].mxu1 %vm795_vm2, %v2052_v41  ;;  %3485 = vmatprep.subr.mxu1 %v3694_v6 }
 0xebf   : > { %3486 = vmatpush3.msra.mxu1 %v2220_v43  ;;  %3487 = vmatprep.mubr.msk.f32.mxu1 %vm3693_vm0, %v3694_v6 }
 0xec0   : > { %3495 = vmatprep.subr.mxu1 %v3694_v6  ;;  %v2442_v8 = vpop.permute.xlu0 %2441 }
 0xec3   : > { %v3671_v44 = vpop.eup %3670 }
 0xec4   : > { %v2218_v45 = vmul.f32 %v3671_v44, %v3667_v36  ;;  %v3282_v36 = vld [vmem:[%s4251_s13] ss:$0 sm:$0xff] }
 0xec6   : > { %3488 = vmatmul.mubr.msk.f32.vlgmr.msra.gmra.mrb[14].mxu1 %vm795_vm2, %v2218_v45 }
 0xec7   : > { %3497 = vmatprep.mubr.msk.f32.mxu1 %vm3693_vm0, %v3694_v6  ;;  %3496 = vmatpush3.msra.mxu1 %v1961_v46 }
 0xec8   : > { %3505 = vmatprep.subr.mxu1 %v3694_v6 }
 0xf91   : > { %v2125_v48 = vpop.f32.mrb[12].mxu1 }
 0xf92   : > { %v3479_v49 = vpop.f32.mrb[13].mxu1  ;;  %3498 = vmatmul.mubr.msk.f32.vlgmr.msra.gmra.mrb[16].mxu1 %vm795_vm2, %v2125_v48 }
 0xf93   : > { %3507 = vmatprep.mubr.msk.f32.mxu1 %vm3693_vm0, %v3694_v6  ;;  %v2962_v49 = vld [vmem:[%s4254_s16 + $0x18] sm:$0xff] }
 0xf99   : > { %v2291_v50 = vpop.f32.mrb[14].mxu1 }
 0xf9a   : > { %v3489_v52 = vpop.f32.mrb[15].mxu1  ;;  %3493 = vmatmul.mubr.msk.f32.vlgmr.msra.gmra.mrb[22].mxu0 %vm795_vm2, %v2291_v50 }
 0xf9b   : > { %3501 = vmatpush3.xpose.msk.msra.mxu0 %vm795_vm2, %v2444_v51  ;;  %3502 = vmatprep.mubr.msk.f32.mxu0 %vm3693_vm0, %v3694_v6  ;;  %v3044_v51 = vld [vmem:[%s4256_s18] sm:$0xff]  ;;  %v3045_v52 = vld [vmem:[%s4256_s18 + $0x8] sm:$0xff] }
 0xf9c   : > { %3510 = vmatprep.subr.mxu0 %v3694_v6 }
 0xf9e   : > { %3503 = vmatmul.mubr.msk.f32.vlgmr.msra.gmra.mrb[24].mxu0 %vm795_vm2, %v2442_v8  ;;  %v3046_v8 = vld [vmem:[%s4256_s18 + $0x10] sm:$0xff] }
 0xf9f   : > { %3512 = vmatprep.mubr.msk.f32.mxu0 %vm3693_vm0, %v3694_v6  ;;  %3511 = vmatpush3.msra.mxu0 %v1963_v14 }
 0xfa0   : > { %3520 = vmatprep.subr.mxu0 %v3694_v6 }
0x1065   : > { %v2437_v53 = vpop.f32.mrb[16].mxu1 }
0x1066   : > { %v3499_v54 = vpop.f32.mrb[17].mxu1 }
0x1067   : > { %v3047_v54 = vld [vmem:[%s4256_s18 + $0x18] sm:$0xff] }
0x106d   : > { %v2364_v55 = vpop.f32.mrb[22].mxu0 }
0x106e   : > { %v2438_v56 = vadd.f32 %v2437_v53, %v2364_v55  ;;  %v3494_v57 = vpop.f32.mrb[23].mxu0  ;;  %v3601_v53 = vpack.c.bf16 %v3045_v52, %v3044_v51  ;;  %v3604_v55 = vpack.c.bf16 %v3047_v54, %v3046_v8 }
0x106f   : > { %v3049_v57 = vld [vmem:[%s4256_s18 + $0x28] sm:$0xff] }
0x1071   : > { %v2515_v58 = vpop.f32.mrb[24].mxu0 }
0x1072   : > { %v2519_v59 = vmul.f32 0.35355338, %v2515_v58  ;;  %v3504_v60 = vpop.f32.mrb[25].mxu0 }
0x1073   : > { %v3051_v60 = vld [vmem:[%s4256_s18 + $0x38] sm:$0xff] }
0x1074   : > { %v2520_v61 = vsel %vm795_vm2, %v2519_v59, -inf }
0x1075   : > { %2521 = vmax.xlane.f32.xlu1 %v2520_v61 }
0x1086   : > { %2683 = vrot.lane.b32.xlu1 %v4041_v19, %s4288_s5 }
0x108a   : > { %2681 = vrot.lane.b32.xlu1 %v4034_v13, %s4288_s5 }
0x1102   : > { %v2522_v62 = vpop.xlane.xlu1 %2521 }
0x1103   : > { %v2523_v63 = vsub.f32 %v2519_v59, %v2522_v62  ;;  %v3050_v59 = vld [vmem:[%s4256_s18 + $0x30] sm:$0xff]  ;;  %v3052_v62 = vld [vmem:[%s4256_s18 + $0x40] sm:$0xff] }
0x1104   : > { %v3610_v61 = vpack.c.bf16 %v3051_v60, %v3050_v59 }
0x1105   : > { %v2524_v0 = vmul.f32 1.442695, %v2523_v63  ;;  %v3053_v63 = vld [vmem:[%s4256_s18 + $0x48] sm:$0xff] }
0x1106   : > { %v2684_v10 = vpop.permute.xlu1 %2683 }
0x1107   : > { %3672 = vpow2.f32 %v2524_v0  ;;  %v3613_v0 = vpack.c.bf16 %v3053_v63, %v3052_v62 }
0x110a   : > { %v2682_v13 = vpop.permute.xlu1 %2681 }
0x1111   : > { %v3673_v1 = vpop.eup %3672 }
0x1112   : > { %v2526_v4 = vsel %vm795_vm2, %v3673_v1, 0.0 }
0x1113   : > { %2527 = vadd.xlane.f32.xlu0 %v2526_v4  ;;  %v3055_v4 = vld [vmem:[%s4256_s18 + $0x58] sm:$0xff] }
0x1129   : > { %2531 = vrot.lane.b32.xlu0 %v4041_v19, %s4289_s6 }
0x11a0   : > { %v2528_v5 = vpop.xlane.xlu0 %2527 }
0x11a1   : > { %3674 = vrcp.f32 %v2528_v5 }
0x11a4   : > { %v2532_v7 = vpop.permute.xlu0 %2531 }
0x11a5   : > { %3506 = vmatpush3.msra.mxu1 %v2532_v7  ;;  %v3056_v7 = vld [vmem:[%s4256_s18 + $0x60] sm:$0xff] }
0x11a6   : > { %3515 = vmatprep.subr.mxu1 %v3694_v6 }
0x11ab   : > { %v3675_v9 = vpop.eup %3674 }
0x11ac   : > { %v2530_v12 = vmul.f32 %v3675_v9, %v3673_v1  ;;  %v3054_v1 = vld [vmem:[%s4256_s18 + $0x50] sm:$0xff]  ;;  %v3057_v9 = vld [vmem:[%s4256_s18 + $0x68] sm:$0xff] }
0x11ad   : > { %v3616_v5 = vpack.c.bf16 %v3055_v4, %v3054_v1 }
0x11ae   : > { %3508 = vmatmul.mubr.msk.f32.vlgmr.msra.gmra.mrb[18].mxu1 %vm795_vm2, %v2530_v12 }
0x11af   : > { %3516 = vmatpush3.xpose.msk.msra.mxu1 %vm795_vm2, %v2684_v10  ;;  %3517 = vmatprep.mubr.msk.f32.mxu1 %vm3693_vm0, %v3694_v6  ;;  %v3619_v10 = vpack.c.bf16 %v3057_v9, %v3056_v7 }
0x11b0   : > { %3525 = vmatprep.subr.mxu1 %v3694_v6 }
0x11b2   : > { %3518 = vmatmul.mubr.msk.f32.vlgmr.msra.gmra.mrb[20].mxu1 %vm795_vm2, %v2682_v13 }
0x11b3   : > { %3527 = vmatprep.mubr.msk.f32.mxu1 %vm3693_vm0, %v3694_v6  ;;  %3526 = vmatpush3.msra.mxu1 %v1964_v30 }
0x11b4   : > { %3600 = vmatprep.subr.bf16.mxu1 %v3692_v3 }
0x1281   : > { %v2603_v15 = vpop.f32.mrb[18].mxu1 }
0x1282   : > { %v3509_v16 = vpop.f32.mrb[19].mxu1  ;;  %3513 = vmatmul.mubr.msk.f32.vlgmr.msra.gmra.mrb[26].mxu0 %vm795_vm2, %v2603_v15 }
0x1283   : > { %3522 = vmatprep.mubr.msk.f32.mxu0 %vm3693_vm0, %v3694_v6  ;;  %v3283_v16 = vld [vmem:[%s4252_s14] ss:$0 sm:$0xff] }
0x1285   : > { %v2755_v20 = vpop.f32.mrb[20].mxu1 }
0x1286   : > { %v2759_v21 = vmul.f32 0.35355338, %v2755_v20  ;;  %v3519_v22 = vpop.f32.mrb[21].mxu1 }
0x1288   : > { %v2760_v23 = vsel %vm795_vm2, %v2759_v21, -inf }
0x1289   : > { %2761 = vmax.xlane.f32.xlu0 %v2760_v23 }
0x129f   : > { %2771 = vrot.lane.b32.xlu0 %v4041_v19, %s4290_s23 }
0x1316   : > { %v2762_v24 = vpop.xlane.xlu0 %2761 }
0x1317   : > { %v2763_v25 = vsub.f32 %v2759_v21, %v2762_v24  ;;  %v3284_v21 = vld [vmem:[%s4253_s15] ss:$0 sm:$0xff]  ;;  %v3059_v24 = vld [vmem:[%s4256_s18 + $0x78] sm:$0xff] }
0x1319   : > { %v2764_v26 = vmul.f32 1.442695, %v2763_v25 }
0x131a   : > { %v2772_v27 = vpop.permute.xlu0 %2771 }
0x131b   : > { %3676 = vpow2.f32 %v2764_v26  ;;  %3521 = vmatpush3.msra.mxu0 %v2772_v27  ;;  %v3285_v26 = vld [vmem:[%s4255_s17] ss:$0 sm:$0xff] }
0x131c   : > { %3594 = vmatprep.subr.bf16.mxu0 %v3692_v3 }
0x1325   : > { %v3677_v28 = vpop.eup %3676 }
0x1326   : > { %v2766_v29 = vsel %vm795_vm2, %v3677_v28, 0.0 }
0x1327   : > { %2767 = vadd.xlane.f32.xlu1 %v2766_v29 }
0x1355   : > { %v2676_v19 = vpop.f32.mrb[26].mxu0 }
0x1356   : > { %v2680_v31 = vadd.f32 %v2676_v19, %v2438_v56  ;;  %v3514_v17 = vpop.f32.mrb[27].mxu0  ;;  %v3048_v56 = vld [vmem:[%s4256_s18 + $0x20] sm:$0xff] }
0x1357   : > { %v3607_v58 = vpack.c.bf16 %v3049_v57, %v3048_v56  ;;  %v3287_v19 = vld [vmem:[%s4257_s19] ss:$0 sm:$0xff] }
0x13b4   : > { %v2768_v11 = vpop.xlane.xlu1 %2767 }
0x13b5   : > { %3678 = vrcp.f32 %v2768_v11 }
0x13bf   : > { %v3679_v18 = vpop.eup %3678 }
0x13c0   : > { %v2770_v32 = vmul.f32 %v3679_v18, %v3677_v28 }
0x13c2   : > { %3523 = vmatmul.mubr.msk.f32.vlgmr.msra.gmra.mrb[28].mxu0 %vm795_vm2, %v2770_v32 }
0x13c3   : > { %3538 = vmatprep.mubr.msk.f32.mxu0 %vm3693_vm0, %v3694_v6 }
0x1495   : > { %v2843_v33 = vpop.f32.mrb[28].mxu0 }
0x1496   : > { %v3524_v34 = vpop.f32.mrb[29].mxu0  ;;  %3528 = vmatmul.mubr.msk.f32.vlgmr.msra.gmra.mrb[22].mxu1 %vm795_vm2, %v2843_v33 }
0x1497   : > { %3573 = vmatprep.mubr.msk.f32.mxu1 %vm3693_vm0, %v3694_v6  ;;  %v2959_v6 = vld [vmem:[%s4254_s16] sm:$0xff]  ;;  %3602 = vmatpush3.bf16.msra.mxu1 %v3601_v53 }
0x1498   : > { %v3595_v48 = vpack.c.bf16 %v2960_v47, %v2959_v6  ;;  %3603 = vmatprep.subr.bf16.mxu1 %v3692_v3 }
0x149a   : > { %3596 = vmatpush3.bf16.msra.mxu0 %v3595_v48 }
0x149b   : > { %3597 = vmatprep.subr.bf16.mxu0 %v3692_v3  ;;  %3605 = vmatpush3.bf16.msra.mxu1 %v3604_v55 }
0x149c   : > { %3606 = vmatprep.subr.bf16.mxu1 %v3692_v3 }
0x149f   : > { %3608 = vmatpush3.bf16.msra.mxu1 %v3607_v58 }
0x14a0   : > { %3609 = vmatprep.subr.bf16.mxu1 %v3692_v3 }
0x14a3   : > { %3611 = vmatpush3.bf16.msra.mxu1 %v3610_v61 }
0x14a4   : > { %3612 = vmatprep.subr.bf16.mxu1 %v3692_v3 }
0x14a7   : > { %3614 = vmatpush3.bf16.msra.mxu1 %v3613_v0 }
0x14a8   : > { %3615 = vmatprep.subr.bf16.mxu1 %v3692_v3 }
0x14ab   : > { %3617 = vmatpush3.bf16.msra.mxu1 %v3616_v5 }
0x14ac   : > { %3618 = vmatprep.subr.bf16.mxu1 %v3692_v3 }
0x14af   : > { %3620 = vmatpush3.bf16.msra.mxu1 %v3619_v10 }
0x14b0   : > { %3621 = vmatprep.subr.bf16.mxu1 %v3692_v3  ;;  %v3058_v3 = vld [vmem:[%s4256_s18 + $0x70] sm:$0xff] }
0x14b1   : > { %v3622_v25 = vpack.c.bf16 %v3059_v24, %v3058_v3 }
0x14b3   : > { %3623 = vmatpush3.bf16.msra.mxu1 %v3622_v25 }
0x1569   : > { %v2916_v35 = vpop.f32.mrb[22].mxu1 }
0x156a   : > { %v2920_v37 = vadd.f32 %v2916_v35, %v2680_v31  ;;  %v3529_v38 = vpop.f32.mrb[23].mxu1 }
0x156c   : > { %v2928_v39 = vadd.f32 %v3282_v36, %v2920_v37 }
0x156e   : > { %v2929_v40 = vadd.f32 %v2928_v39, %v4010_v2  ;;  %v2961_v2 = vld [vmem:[%s4254_s16 + $0x10] sm:$0xff] }
0x156f   : > { %v3598_v50 = vpack.c.bf16 %v2962_v49, %v2961_v2 }
0x1570   : > { %v2932_v41 = vsel %vm709_vm1, %v2929_v40, 0.0 }
0x1571   : > { %2933 = vadd.xlane.f32.xlu1 %v2932_v41  ;;  %3599 = vmatpush3.bf16.msra.mxu0 %v3598_v50 }
0x15fe   : > { %v2934_v42 = vpop.xlane.xlu1 %2933 }
0x15ff   : > { %v2935_v43 = vmul.f32 0.03125, %v2934_v42  ;;  %v3288_v42 = vld [vmem:[%s4258_s20] ss:$0 sm:$0xff] }
0x1601   : > { %v2936_v44 = vsub.f32 %v2929_v40, %v2935_v43 }
0x1603   : > { %v2937_v45 = vmul.f32 %v2936_v44, %v2936_v44 }
0x1605   : > { %v2938_v46 = vsel %vm709_vm1, %v2937_v45, 0.0 }
0x1606   : > { %2939 = vadd.xlane.f32.xlu1 %v2938_v46 }
0x1693   : > { %v2940_v12 = vpop.xlane.xlu1 %2939 }
0x1694   : > { %v2941_v13 = vmul.f32 0.03125, %v2940_v12 }
0x1696   : > { %v2942_v14 = vadd.f32 1e-05, %v2941_v13 }
0x1698   : > { %3680 = vrsqrt.f32 %v2942_v14 }
0x16a2   : > { %v3681_v15 = vpop.eup %3680 }
0x16a3   : > { %v2944_v20 = vmul.f32 %v3681_v15, %v2936_v44  ;;  %v3289_v44 = vld [vmem:[%s4259_s21] ss:$0 sm:$0xff] }
0x16a5   : > { %v2951_v22 = vmul.f32 %v3283_v16, %v2944_v20 }
0x16a7   : > { %v2958_v23 = vadd.f32 %v3284_v21, %v2951_v22 }
0x16a9   : > { %3539 = vmatmul.mubr.msk.f32.vlgmr.msra.gmra.mrb[30].mxu0 %vm709_vm1, %v2958_v23 }
0x177c   : > { %v3039_v27 = vpop.f32.mrb[30].mxu0 }
0x177d   : > { %v3040_v28 = vadd.f32 %v3285_v26, %v3039_v27  ;;  %v3540_v29 = vpop.f32.mrb[31].mxu0 }
0x177f   : > { %v3043_v30 = vmax.f32 %v3040_v28, 0.0 }
0x1781   : > { %3574 = vmatmul.mubr.f32.vlgmr.msra.gmra.mrb[24].mxu1 %v3043_v30 }
0x1854   : > { %v3133_v31 = vpop.f32.mrb[24].mxu1 }
0x1855   : > { %v3134_v17 = vadd.f32 %v3287_v19, %v3133_v31  ;;  %v3575_v11 = vpop.f32.mrb[25].mxu1 }
0x1857   : > { %v3137_v18 = vadd.f32 %v3134_v17, %v2958_v23 }
0x1859   : > { %v3140_v32 = vsel %vm709_vm1, %v3137_v18, 0.0 }
0x185a   : > { %3141 = vadd.xlane.f32.xlu1 %v3140_v32 }
0x18e7   : > { %v3142_v33 = vpop.xlane.xlu1 %3141 }
0x18e8   : > { %v3143_v34 = vmul.f32 0.03125, %v3142_v33 }
0x18ea   : > { %v3144_v35 = vsub.f32 %v3137_v18, %v3143_v34 }
0x18ec   : > { %v3145_v36 = vmul.f32 %v3144_v35, %v3144_v35 }
0x18ee   : > { %v3146_v37 = vsel %vm709_vm1, %v3145_v36, 0.0 }
0x18ef   : > { %3147 = vadd.xlane.f32.xlu1 %v3146_v37 }
0x197c   : > { %v3148_v38 = vpop.xlane.xlu1 %3147 }
0x197d   : > { %v3149_v39 = vmul.f32 0.03125, %v3148_v38 }
0x197f   : > { %v3150_v40 = vadd.f32 1e-05, %v3149_v39 }
0x1981   : > { %3682 = vrsqrt.f32 %v3150_v40 }
0x198b   : > { %v3683_v41 = vpop.eup %3682 }
0x198c   : > { %v3152_v43 = vmul.f32 %v3683_v41, %v3144_v35 }
0x198e   : > { %v3159_v45 = vmul.f32 %v3288_v42, %v3152_v43 }
0x1990   : > { %v3166_v46 = vadd.f32 %v3289_v44, %v3159_v45 }
0x1992   : > { %3167 = vst.msk [vmem:[%s695_s26] sm:$0xff] %vm709_vm1, %v3166_v46 }
0x1993 PF: > { %s32_s3 = sadd.s32 1, %s3690_s3  }
0x1994   : > { %p29_p4 = scmp.ge.s32.totalorder %s32_s3, 4  }
0x1996   :  { %31 = sbr.rel (!%p29_p4) target bundleno = 8 (0x8), region = 141 }

// kernel: transformer_forward.9
= control target key start
LH: loop header
LB: loop body
LE: loop exit
PB: predicated region body
PF: predicated region fallthrough
CT: control target
= control target key end

     0   :  { %s5757_s0 = inlined_call_operand.vmem [shape: f32[2,8,32], index: 0, kind: input, shape index: {}, may-alias: {0,1}]   ;;  %s5758_s1 = inlined_call_operand.vmem [shape: f32[2,8,32], index: 1, kind: input, shape index: {}, may-alias: {0,1}]   ;;  %s5759_s2 = inlined_call_operand.hbm [shape: f32[32,96], index: 2, kind: input, shape index: {}]   ;;  %s5760_s3 = inlined_call_operand.vmem [shape: f32[1,96], index: 3, kind: input, shape index: {}]   ;;  %s5761_s4 = inlined_call_operand.hbm [shape: f32[32,32], index: 4, kind: input, shape index: {}]   ;;  %s5762_s5 = inlined_call_operand.hbm [shape: f32[1,32], index: 5, kind: input, shape index: {}]   ;;  %s5763_s6 = inlined_call_operand.hbm [shape: f32[1,32], index: 6, kind: input, shape index: {}]   ;;  %s5764_s7 = inlined_call_operand.hbm [shape: f32[1,32], index: 7, kind: input, shape index: {}]   ;;  %s5765_s8 = inlined_call_operand.hbm [shape: f32[32,32], index: 8, kind: input, shape index: {}]   ;;  %s5766_s9 = inlined_call_operand.hbm [shape: f32[1,32], index: 9, kind: input, shape index: {}]   ;;  %s5767_s10 = inlined_call_operand.hbm [shape: f32[32,64], index: 10, kind: input, shape index: {}]   ;;  %s5768_s11 = inlined_call_operand.hbm [shape: f32[1,64], index: 11, kind: input, shape index: {}]   ;;  %s5769_s12 = inlined_call_operand.hbm [shape: f32[32,32], index: 12, kind: input, shape index: {}]   ;;  %s5770_s13 = inlined_call_operand.hbm [shape: f32[1,32], index: 13, kind: input, shape index: {}]   ;;  %s5771_s14 = inlined_call_operand.hbm [shape: f32[1,32], index: 14, kind: input, shape index: {}]   ;;  %s5772_s15 = inlined_call_operand.hbm [shape: f32[1,32], index: 15, kind: input, shape index: {}]   ;;  %s5773_s16 = inlined_call_operand.hbm [shape: f32[32,128], index: 16, kind: input, shape index: {}]   ;;  %s5774_s17 = inlined_call_operand.hbm [shape: f32[1,128], index: 17, kind: input, shape index: {}]   ;;  %s5775_s18 = inlined_call_operand.vmem [shape: f32[128,32], index: 18, kind: input, shape index: {}]   ;;  %s5776_s19 = inlined_call_operand.hbm [shape: f32[1,32], index: 19, kind: input, shape index: {}]   ;;  %s5777_s20 = inlined_call_operand.hbm [shape: f32[1,32], index: 20, kind: input, shape index: {}]   ;;  %s5778_s21 = inlined_call_operand.hbm [shape: f32[1,32], index: 21, kind: input, shape index: {}]   ;;  %s5779_s22 = inlined_call_operand.vmem [shape: f32[2,8,32], index: 22, kind: output, shape index: {}]  }
   0x1   :  { %5795 = sst [smem:[#allocation43_spill]] %s5757_s0 }
   0x2   :  { %5796 = sst [smem:[#allocation44_spill]] %s5758_s1 }
   0x3   :  { %5797 = sst [smem:[#allocation45_spill]] %s5759_s2 }
   0x4   :  { %5798 = sst [smem:[#allocation46_spill]] %s5760_s3 }
   0x5   :  { %5799 = sst [smem:[#allocation47_spill]] %s5761_s4 }
   0x6   :  { %5800 = sst [smem:[#allocation48_spill]] %s5762_s5 }
   0x7   :  { %5801 = sst [smem:[#allocation49_spill]] %s5763_s6 }
   0x8   :  { %5802 = sst [smem:[#allocation50_spill]] %s5775_s18 }
   0x9   :  { %5803 = sst [smem:[#allocation51_spill]] %s5777_s20 }
   0xa   :  { %5804 = sst [smem:[#allocation52_spill]] %s5778_s21 }
   0xb   :  { %5805 = sst [smem:[#allocation53_spill]] %s5779_s22 }
   0xc   :  { %27 = vsyncpa [#allocation3], 0 }
   0xd   :  { %28 = vsyncpa [#allocation5], 0 }
   0xe   :  { %29 = vsyncpa [#allocation8], 0 }
   0xf   :  { %30 = vsyncpa [#allocation11], 0 }
  0x10   :  { %31 = vsyncpa [#allocation14], 0 }
  0x11   :  { %32 = vsyncpa [#allocation17], 0 }
  0x12   :  { %33 = vsyncpa [#allocation20], 0 }
  0x13   :  { %34 = vsyncpa [#allocation23], 0 }
  0x14   :  { %35 = vsyncpa [#allocation26], 0 }
  0x15   :  { %36 = vsyncpa [#allocation29], 0  ;;  %s5016_s3 = smov 0  }
  0x16 LB: > { %5806 = sst [smem:[#allocation40_spill]] %s4865_s3  ;;  %s5022_s28 = sadd.s32 4294967295, %s4865_s3   ;;  %s4865_s3 = sphi %s5016_s3, %s42_s3  }
  0x17   : > { %5807 = sst [smem:[#allocation41_spill]] %s5022_s28  ;;  %p3647_p0 = scmp.ge.s32.totalorder %s4865_s3, 1 }
  0x18   : > { %p545_p1 = scmp.lt.s32.totalorder %s4865_s3, 3  ;;  %p5791_p2 = scmp.eq.s32.totalorder %s5022_s28, 0 }
  0x19   : > { %s4867_s30 = smov [#allocation4]   ;;  %s4868_s0 = smov [#allocation7]  }
  0x1a   : > { %p5027_p3 = pnand %p3647_p0, %p545_p1  ;;  %s573_s4 = sshll.u32 %s4867_s30, 4  ;;  %s5031_s4 = int_to_ptr.vmem [resolvable:$true] %s573_s4 }
  0x1b   : > { %s598_s23 = sshll.u32 %s4868_s0, 4  ;;  %s4869_s5 = smov [#allocation10]   ;;  %s5035_s23 = int_to_ptr.vmem [resolvable:$true] %s598_s23 }
  0x1c   : > { %s5808_s29 = scalar_select %p5027_p3, 1, 0 }
  0x1d   : > { %p4144_p4 = pneg %p5027_p3  ;;  %s619_s24 = sshll.u32 %s4869_s5, 4  ;;  %s5043_s24 = int_to_ptr.vmem [resolvable:$true] %s619_s24 }
  0x1e   : > { %5809 = sst [smem:[#allocation42_spill]] %s5808_s29  ;;  %s4870_s6 = smov [#allocation13]  }
  0x1f   : > { %p5039_p5 = pnand %p5791_p2, %p4144_p4  ;;  %s5045_s25 = sshll.u32 %s4870_s6, 4  ;;  %s644_s25 = int_to_ptr.vmem [resolvable:$true] %s5045_s25 }
  0x20   : > { %s5811_s27 = sld [smem:[#allocation47_spill]] }
  0x21   : > { %p5055_p7 = pneg %p5039_p5 }
  0x26   : > { %s4315_s30 = scalar_lea.hbm %s5811_s27, 512 }
  0x27   : > { %p4316_p6 = scmp.ne.s32.totalorder %s5811_s27, %s4315_s30  ;;  %p4322_p10 = scmp.lt.u32.totalorder %s4315_s30, %s5811_s27 }
  0x29   : > { %p4318_p8 = pnand %p5055_p7, %p4316_p6 }
  0x2b   : > { %p4319_p9 = pneg %p4318_p8 }
  0x2d   : > { %p4324_p11 = pnand %p4322_p10, %p4319_p9 }
  0x2f   : > { %4327 = shalt.err (!%p4324_p11)
}
  0x30   : > { %s4328_s3 = scalar_lea.vmem %s5031_s4, 512  ;;  %p4336_p1 = scmp.lt.s32.totalorder %s5031_s4, %s5031_s4 }
  0x31   : > { %p4329_p12 = scmp.ne.s32.totalorder %s5031_s4, %s4328_s3  ;;  %p4337_p4 = scmp.lt.s32.totalorder %s4328_s3, %s4328_s3 }
  0x33   : > { %p4331_p13 = pnand %p4329_p12, %p5055_p7  ;;  %p4338_p6 = por %p4337_p4, %p4336_p1 }
  0x35   : > { %p4332_p0 = pneg %p4331_p13 }
  0x37   : > { %p4339_p8 = pnand %p4338_p6, %p4332_p0 }
  0x39   : > { %4342 = shalt.err (!%p4339_p8)
}
  0x3a   : > { %s5793_s26 = smov 128   ;;  %s4872_s2 = smov 8  }
  0x3b   : > { %4150 = dma.hbm_to_vmem [thread:$0]  (!%p5039_p5), %s5811_s27, 512, %s5031_s4, [#allocation5], %s5793_s26, %s5793_s26, %s4872_s2  }
  0x3c   : > { %s5813_s18 = sld [smem:[#allocation49_spill]] }
  0x42   : > { %s4343_s3 = scalar_lea.hbm %s5813_s18, 16 }
  0x43   : > { %p4344_p9 = scmp.ne.s32.totalorder %s5813_s18, %s4343_s3  ;;  %p4350_p12 = scmp.lt.u32.totalorder %s4343_s3, %s5813_s18 }
  0x45   : > { %p4346_p10 = pnand %p4344_p9, %p5055_p7 }
  0x47   : > { %p4347_p11 = pneg %p4346_p10 }
  0x49   : > { %p4352_p13 = pnand %p4350_p12, %p4347_p11 }
  0x4b   : > { %4355 = shalt.err (!%p4352_p13)
}
  0x4c   : > { %s4356_s4 = scalar_lea.vmem %s5035_s23, 16  ;;  %s4363_s28 = scalar_lea.vmem %s5035_s23, 32 }
  0x4d   : > { %p4357_p0 = scmp.ne.s32.totalorder %s5035_s23, %s4356_s4  ;;  %p4364_p6 = scmp.lt.s32.totalorder %s5035_s23, %s5035_s23 }
  0x4e   : > { %p4365_p8 = scmp.lt.s32.totalorder %s4363_s28, %s4356_s4 }
  0x4f   : > { %p4359_p1 = pnand %p4357_p0, %p5055_p7 }
  0x50   : > { %p4366_p9 = por %p4365_p8, %p4364_p6 }
  0x51   : > { %p4360_p4 = pneg %p4359_p1 }
  0x53   : > { %p4367_p10 = pnand %p4366_p9, %p4360_p4 }
  0x55   : > { %4370 = shalt.err (!%p4367_p10)
}
  0x56   : > { %4156 = dma.hbm_to_vmem [thread:$0]  (!%p5039_p5), %s5813_s18, 16, %s5035_s23, [#allocation8]  }
  0x57   : > { %s4371_s0 = scalar_lea.hbm %s5765_s8, 512 }
  0x58   : > { %p4372_p11 = scmp.ne.s32.totalorder %s5765_s8, %s4371_s0  ;;  %p4378_p0 = scmp.lt.u32.totalorder %s4371_s0, %s5765_s8 }
  0x5a   : > { %p4374_p12 = pnand %p4372_p11, %p5055_p7 }
  0x5c   : > { %p4375_p13 = pneg %p4374_p12 }
  0x5e   : > { %p4380_p1 = pnand %p4378_p0, %p4375_p13 }
  0x60   : > { %4383 = shalt.err (!%p4380_p1)
}
  0x61   : > { %s4384_s23 = scalar_lea.vmem %s5043_s24, 512  ;;  %p4392_p9 = scmp.lt.s32.totalorder %s5043_s24, %s5043_s24 }
  0x62   : > { %p4385_p4 = scmp.ne.s32.totalorder %s5043_s24, %s4384_s23  ;;  %p4393_p10 = scmp.lt.s32.totalorder %s4384_s23, %s4384_s23 }
  0x64   : > { %p4387_p6 = pnand %p4385_p4, %p5055_p7  ;;  %p4394_p11 = por %p4393_p10, %p4392_p9 }
  0x66   : > { %p4388_p8 = pneg %p4387_p6 }
  0x68   : > { %p4395_p12 = pnand %p4394_p11, %p4388_p8 }
  0x6a   : > { %4398 = shalt.err (!%p4395_p12)
}
  0x6b   : > { %4162 = dma.hbm_to_vmem [thread:$0]  (!%p5039_p5), %s5765_s8, 512, %s5043_s24, [#allocation11], %s5793_s26, %s5793_s26, %s4872_s2  }
  0x6c   : > { %s4399_s30 = scalar_lea.hbm %s5767_s10, 512 }
  0x6d   : > { %p4400_p13 = scmp.ne.s32.totalorder %s5767_s10, %s4399_s30  ;;  %p4406_p4 = scmp.lt.u32.totalorder %s4399_s30, %s5767_s10 }
  0x6f   : > { %p4402_p0 = pnand %p4400_p13, %p5055_p7 }
  0x71   : > { %p4403_p1 = pneg %p4402_p0 }
  0x73   : > { %p4408_p6 = pnand %p4406_p4, %p4403_p1 }
  0x75   : > { %4411 = shalt.err (!%p4408_p6)
}
  0x76   : > { %s4412_s4 = scalar_lea.vmem %s644_s25, 512  ;;  %p4420_p11 = scmp.lt.s32.totalorder %s644_s25, %s644_s25 }
  0x77   : > { %p4413_p8 = scmp.ne.s32.totalorder %s644_s25, %s4412_s4  ;;  %p4421_p12 = scmp.lt.s32.totalorder %s4412_s4, %s4412_s4 }
  0x79   : > { %p4415_p9 = pnand %p4413_p8, %p5055_p7  ;;  %p4422_p2 = por %p4421_p12, %p4420_p11 }
  0x7b   : > { %p4416_p10 = pneg %p4415_p9 }
  0x7d   : > { %p4423_p3 = pnand %p4422_p2, %p4416_p10 }
  0x7f   : > { %4426 = shalt.err (!%p4423_p3)
}
  0x80   : > { %4168 = dma.hbm_to_vmem [thread:$0]  (!%p5039_p5), %s5767_s10, 512, %s644_s25, [#allocation14], %s5793_s26, %s5793_s26, %s4872_s2  }
  0x81   : > { %s4873_s28 = smov [#allocation16]   ;;  %s4874_s21 = smov [#allocation19]  }
  0x82   : > { %s667_s20 = sshll.u32 %s4873_s28, 4  ;;  %s692_s29 = sshll.u32 %s4874_s21, 4  ;;  %s668_s20 = int_to_ptr.vmem [resolvable:$true] %s667_s20  ;;  %s693_s29 = int_to_ptr.vmem [resolvable:$true] %s692_s29 }
  0x83   : > { %s4427_s5 = scalar_lea.hbm %s5769_s12, 512 }
  0x84   : > { %p4428_p2 = scmp.ne.s32.totalorder %s5769_s12, %s4427_s5  ;;  %p4434_p0 = scmp.lt.u32.totalorder %s4427_s5, %s5769_s12 }
  0x86   : > { %p4430_p3 = pnand %p4428_p2, %p5055_p7 }
  0x88   : > { %p4431_p13 = pneg %p4430_p3 }
  0x8a   : > { %p4436_p1 = pnand %p4434_p0, %p4431_p13 }
  0x8c   : > { %4439 = shalt.err (!%p4436_p1)
}
  0x8d   : > { %s4440_s25 = scalar_lea.vmem %s668_s20, 512  ;;  %p4448_p9 = scmp.lt.s32.totalorder %s668_s20, %s668_s20 }
  0x8e   : > { %p4441_p4 = scmp.ne.s32.totalorder %s668_s20, %s4440_s25  ;;  %p4449_p10 = scmp.lt.s32.totalorder %s4440_s25, %s4440_s25 }
  0x90   : > { %p4443_p6 = pnand %p4441_p4, %p5055_p7  ;;  %p4450_p11 = por %p4449_p10, %p4448_p9 }
  0x92   : > { %p4444_p8 = pneg %p4443_p6 }
  0x94   : > { %p4451_p12 = pnand %p4450_p11, %p4444_p8 }
  0x96   : > { %4454 = shalt.err (!%p4451_p12)
}
  0x97   : > { %4174 = dma.hbm_to_vmem [thread:$0]  (!%p5039_p5), %s5769_s12, 512, %s668_s20, [#allocation17], %s5793_s26, %s5793_s26, %s4872_s2  }
  0x98   : > { %s4455_s0 = scalar_lea.hbm %s5771_s14, 16 }
  0x99   : > { %p4456_p2 = scmp.ne.s32.totalorder %s5771_s14, %s4455_s0  ;;  %p4462_p0 = scmp.lt.u32.totalorder %s4455_s0, %s5771_s14 }
  0x9b   : > { %p4458_p3 = pnand %p4456_p2, %p5055_p7 }
  0x9d   : > { %p4459_p13 = pneg %p4458_p3 }
  0x9f   : > { %p4464_p1 = pnand %p4462_p0, %p4459_p13 }
  0xa1   : > { %4467 = shalt.err (!%p4464_p1)
}
  0xa2   : > { %s4468_s24 = scalar_lea.vmem %s693_s29, 16  ;;  %s4475_s20 = scalar_lea.vmem %s693_s29, 32 }
  0xa3   : > { %p4469_p4 = scmp.ne.s32.totalorder %s693_s29, %s4468_s24  ;;  %p4476_p9 = scmp.lt.s32.totalorder %s693_s29, %s693_s29 }
  0xa4   : > { %p4477_p10 = scmp.lt.s32.totalorder %s4475_s20, %s4468_s24 }
  0xa5   : > { %p4471_p6 = pnand %p4469_p4, %p5055_p7 }
  0xa6   : > { %p4478_p11 = por %p4477_p10, %p4476_p9 }
  0xa7   : > { %p4472_p8 = pneg %p4471_p6 }
  0xa9   : > { %p4479_p12 = pnand %p4478_p11, %p4472_p8 }
  0xab   : > { %4482 = shalt.err (!%p4479_p12)
}
  0xac   : > { %4180 = dma.hbm_to_vmem [thread:$0]  (!%p5039_p5), %s5771_s14, 16, %s693_s29, [#allocation20]  }
  0xad   : > { %s4875_s28 = smov [#allocation22]   ;;  %s4876_s30 = smov [#allocation25]  }
  0xae   : > { %s713_s21 = sshll.u32 %s4875_s28, 4  ;;  %s741_s0 = sshll.u32 %s4876_s30, 4  ;;  %s714_s21 = int_to_ptr.vmem [resolvable:$true] %s713_s21  ;;  %s742_s0 = int_to_ptr.vmem [resolvable:$true] %s741_s0 }
  0xaf   : > { %s4483_s3 = scalar_lea.hbm %s5773_s16, 512 }
  0xb0   : > { %p4484_p2 = scmp.ne.s32.totalorder %s5773_s16, %s4483_s3  ;;  %p4490_p0 = scmp.lt.u32.totalorder %s4483_s3, %s5773_s16 }
  0xb2   : > { %p4486_p3 = pnand %p4484_p2, %p5055_p7 }
  0xb4   : > { %p4487_p13 = pneg %p4486_p3 }
  0xb6   : > { %p4492_p1 = pnand %p4490_p0, %p4487_p13 }
  0xb8   : > { %4495 = shalt.err (!%p4492_p1)
}
  0xb9   : > { %s4496_s29 = scalar_lea.vmem %s714_s21, 512  ;;  %p4504_p9 = scmp.lt.s32.totalorder %s714_s21, %s714_s21 }
  0xba   : > { %p4497_p4 = scmp.ne.s32.totalorder %s714_s21, %s4496_s29  ;;  %p4505_p10 = scmp.lt.s32.totalorder %s4496_s29, %s4496_s29 }
  0xbc   : > { %p4499_p6 = pnand %p4497_p4, %p5055_p7  ;;  %p4506_p11 = por %p4505_p10, %p4504_p9 }
  0xbe   : > { %p4500_p8 = pneg %p4499_p6 }
  0xc0   : > { %p4507_p12 = pnand %p4506_p11, %p4500_p8 }
  0xc2   : > { %4510 = shalt.err (!%p4507_p12)
}
  0xc3   : > { %4186 = dma.hbm_to_vmem [thread:$0]  (!%p5039_p5), %s5773_s16, 512, %s714_s21, [#allocation23], %s5793_s26, %s5793_s26, %s4872_s2  }
  0xc4   : > { %s4511_s6 = scalar_lea.hbm %s5776_s19, 16 }
  0xc5   : > { %p4512_p2 = scmp.ne.s32.totalorder %s5776_s19, %s4511_s6  ;;  %p4518_p0 = scmp.lt.u32.totalorder %s4511_s6, %s5776_s19 }
  0xc7   : > { %p4514_p3 = pnand %p4512_p2, %p5055_p7 }
  0xc9   : > { %p4515_p13 = pneg %p4514_p3 }
  0xcb   : > { %p4520_p1 = pnand %p4518_p0, %p4515_p13 }
  0xcd   : > { %4523 = shalt.err (!%p4520_p1)
}
  0xce   : > { %s4524_s25 = scalar_lea.vmem %s742_s0, 16  ;;  %s4531_s21 = scalar_lea.vmem %s742_s0, 32 }
  0xcf   : > { %p4525_p4 = scmp.ne.s32.totalorder %s742_s0, %s4524_s25  ;;  %p4532_p9 = scmp.lt.s32.totalorder %s742_s0, %s742_s0 }
  0xd0   : > { %p4533_p10 = scmp.lt.s32.totalorder %s4531_s21, %s4524_s25 }
  0xd1   : > { %p4527_p6 = pnand %p4525_p4, %p5055_p7 }
  0xd2   : > { %p4534_p11 = por %p4533_p10, %p4532_p9 }
  0xd3   : > { %p4528_p8 = pneg %p4527_p6 }
  0xd5   : > { %p4535_p12 = pnand %p4534_p11, %p4528_p8 }
  0xd7   : > { %4538 = shalt.err (!%p4535_p12)
}
  0xd8   : > { %4192 = dma.hbm_to_vmem [thread:$0]  (!%p5039_p5), %s5776_s19, 16, %s742_s0, [#allocation26]  }
  0xd9   : > { %s4877_s28 = smov [#allocation2]   ;;  %s4878_s5 = smov [#allocation6]  }
  0xda   : > { %s557_s30 = sshll.u32 %s4877_s28, 4  ;;  %s587_s6 = sshll.u32 %s4878_s5, 4  ;;  %s558_s30 = int_to_ptr.vmem [resolvable:$true] %s557_s30  ;;  %s588_s6 = int_to_ptr.vmem [resolvable:$true] %s587_s6 }
  0xdb   : > { %s5814_s24 = sld [smem:[#allocation45_spill]] }
  0xe1   : > { %s4539_s20 = scalar_lea.hbm %s5814_s24, 512 }
  0xe2   : > { %p4540_p2 = scmp.ne.s32.totalorder %s5814_s24, %s4539_s20  ;;  %p4546_p0 = scmp.lt.u32.totalorder %s4539_s20, %s5814_s24 }
  0xe4   : > { %p4542_p3 = pnand %p4540_p2, %p5055_p7 }
  0xe6   : > { %p4543_p13 = pneg %p4542_p3 }
  0xe8   : > { %p4548_p1 = pnand %p4546_p0, %p4543_p13 }
  0xea   : > { %4551 = shalt.err (!%p4548_p1)
}
  0xeb   : > { %s4552_s0 = scalar_lea.vmem %s558_s30, 512  ;;  %p4560_p9 = scmp.lt.s32.totalorder %s558_s30, %s558_s30 }
  0xec   : > { %p4553_p4 = scmp.ne.s32.totalorder %s558_s30, %s4552_s0  ;;  %p4561_p10 = scmp.lt.s32.totalorder %s4552_s0, %s4552_s0 }
  0xee   : > { %p4555_p6 = pnand %p4553_p4, %p5055_p7  ;;  %p4562_p11 = por %p4561_p10, %p4560_p9 }
  0xf0   : > { %p4556_p8 = pneg %p4555_p6 }
  0xf2   : > { %p4563_p12 = pnand %p4562_p11, %p4556_p8 }
  0xf4   : > { %4566 = shalt.err (!%p4563_p12)
}
  0xf5   : > { %s5815_s23 = smov 128   ;;  %s5816_s4 = sld [smem:[#allocation48_spill]] }
  0xf6   : > { %4147 = dma.hbm_to_vmem [thread:$0]  (!%p5039_p5), %s5814_s24, 512, %s558_s30, [#allocation3], %s5815_s23, %s5815_s23, %s4872_s2  }
  0xfb   : > { %s4567_s20 = scalar_lea.hbm %s5816_s4, 16 }
  0xfc   : > { %p4568_p2 = scmp.ne.s32.totalorder %s5816_s4, %s4567_s20  ;;  %p4574_p0 = scmp.lt.u32.totalorder %s4567_s20, %s5816_s4 }
  0xfe   : > { %p4570_p3 = pnand %p4568_p2, %p5055_p7 }
 0x100   : > { %p4571_p13 = pneg %p4570_p3 }
 0x102   : > { %p4576_p1 = pnand %p4574_p0, %p4571_p13 }
 0x104   : > { %4579 = shalt.err (!%p4576_p1)
}
 0x105   : > { %s4580_s26 = scalar_lea.vmem %s588_s6, 16  ;;  %s4587_s2 = scalar_lea.vmem %s588_s6, 32 }
 0x106   : > { %p4581_p4 = scmp.ne.s32.totalorder %s588_s6, %s4580_s26  ;;  %p4588_p9 = scmp.lt.s32.totalorder %s588_s6, %s588_s6 }
 0x107   : > { %p4589_p10 = scmp.lt.s32.totalorder %s4587_s2, %s4580_s26 }
 0x108   : > { %p4583_p6 = pnand %p4581_p4, %p5055_p7 }
 0x109   : > { %p4590_p11 = por %p4589_p10, %p4588_p9 }
 0x10a   : > { %p4584_p8 = pneg %p4583_p6 }
 0x10c   : > { %p4591_p12 = pnand %p4590_p11, %p4584_p8 }
 0x10e   : > { %4594 = shalt.err (!%p4591_p12)
}
 0x10f   : > { %4153 = dma.hbm_to_vmem [thread:$0]  (!%p5039_p5), %s5816_s4, 16, %s588_s6, [#allocation5]  }
 0x110   : > { %s4879_s28 = smov [#allocation9]   ;;  %s4880_s3 = smov [#allocation12]  }
 0x111   : > { %s609_s5 = sshll.u32 %s4879_s28, 4  ;;  %s633_s20 = sshll.u32 %s4880_s3, 4  ;;  %s610_s5 = int_to_ptr.vmem [resolvable:$true] %s609_s5  ;;  %s634_s20 = int_to_ptr.vmem [resolvable:$true] %s633_s20 }
 0x112   : > { %s4595_s29 = scalar_lea.hbm %s5764_s7, 16 }
 0x113   : > { %p4596_p2 = scmp.ne.s32.totalorder %s5764_s7, %s4595_s29  ;;  %p4602_p0 = scmp.lt.u32.totalorder %s4595_s29, %s5764_s7 }
 0x115   : > { %p4598_p3 = pnand %p4596_p2, %p5055_p7 }
 0x117   : > { %p4599_p13 = pneg %p4598_p3 }
 0x119   : > { %p4604_p1 = pnand %p4602_p0, %p4599_p13 }
 0x11b   : > { %4607 = shalt.err (!%p4604_p1)
}
 0x11c   : > { %s4608_s6 = scalar_lea.vmem %s610_s5, 16  ;;  %s4615_s23 = scalar_lea.vmem %s610_s5, 32 }
 0x11d   : > { %p4609_p4 = scmp.ne.s32.totalorder %s610_s5, %s4608_s6  ;;  %p4616_p9 = scmp.lt.s32.totalorder %s610_s5, %s610_s5 }
 0x11e   : > { %p4617_p10 = scmp.lt.s32.totalorder %s4615_s23, %s4608_s6 }
 0x11f   : > { %p4611_p6 = pnand %p4609_p4, %p5055_p7 }
 0x120   : > { %p4618_p11 = por %p4617_p10, %p4616_p9 }
 0x121   : > { %p4612_p8 = pneg %p4611_p6 }
 0x123   : > { %p4619_p12 = pnand %p4618_p11, %p4612_p8 }
 0x125   : > { %4622 = shalt.err (!%p4619_p12)
}
 0x126   : > { %4159 = dma.hbm_to_vmem [thread:$0]  (!%p5039_p5), %s5764_s7, 16, %s610_s5, [#allocation8]  }
 0x127   : > { %s4623_s29 = scalar_lea.hbm %s5766_s9, 16 }
 0x128   : > { %p4624_p2 = scmp.ne.s32.totalorder %s5766_s9, %s4623_s29  ;;  %p4630_p0 = scmp.lt.u32.totalorder %s4623_s29, %s5766_s9 }
 0x12a   : > { %p4626_p3 = pnand %p4624_p2, %p5055_p7 }
 0x12c   : > { %p4627_p13 = pneg %p4626_p3 }
 0x12e   : > { %p4632_p1 = pnand %p4630_p0, %p4627_p13 }
 0x130   : > { %4635 = shalt.err (!%p4632_p1)
}
 0x131   : > { %s4636_s6 = scalar_lea.vmem %s634_s20, 16  ;;  %s4643_s5 = scalar_lea.vmem %s634_s20, 32 }
 0x132   : > { %p4637_p4 = scmp.ne.s32.totalorder %s634_s20, %s4636_s6  ;;  %p4644_p9 = scmp.lt.s32.totalorder %s634_s20, %s634_s20 }
 0x133   : > { %p4645_p10 = scmp.lt.s32.totalorder %s4643_s5, %s4636_s6 }
 0x134   : > { %p4639_p6 = pnand %p4637_p4, %p5055_p7 }
 0x135   : > { %p4646_p11 = por %p4645_p10, %p4644_p9 }
 0x136   : > { %p4640_p8 = pneg %p4639_p6 }
 0x138   : > { %p4647_p12 = pnand %p4646_p11, %p4640_p8 }
 0x13a   : > { %4650 = shalt.err (!%p4647_p12)
}
 0x13b   : > { %4165 = dma.hbm_to_vmem [thread:$0]  (!%p5039_p5), %s5766_s9, 16, %s634_s20, [#allocation11]  }
 0x13c   : > { %s4881_s3 = smov [#allocation15]   ;;  %s4882_s21 = smov [#allocation18]  }
 0x13d   : > { %s657_s25 = sshll.u32 %s4881_s3, 4  ;;  %s681_s29 = sshll.u32 %s4882_s21, 4  ;;  %s658_s25 = int_to_ptr.vmem [resolvable:$true] %s657_s25  ;;  %s682_s29 = int_to_ptr.vmem [resolvable:$true] %s681_s29 }
 0x13e   : > { %s4651_s2 = scalar_lea.hbm %s5768_s11, 16 }
 0x13f   : > { %p4652_p2 = scmp.ne.s32.totalorder %s5768_s11, %s4651_s2  ;;  %p4658_p0 = scmp.lt.u32.totalorder %s4651_s2, %s5768_s11 }
 0x141   : > { %p4654_p3 = pnand %p4652_p2, %p5055_p7 }
 0x143   : > { %p4655_p13 = pneg %p4654_p3 }
 0x145   : > { %p4660_p1 = pnand %p4658_p0, %p4655_p13 }
 0x147   : > { %4663 = shalt.err (!%p4660_p1)
}
 0x148   : > { %s4664_s20 = scalar_lea.vmem %s658_s25, 16  ;;  %s4671_s28 = scalar_lea.vmem %s658_s25, 32 }
 0x149   : > { %p4665_p4 = scmp.ne.s32.totalorder %s658_s25, %s4664_s20  ;;  %p4672_p9 = scmp.lt.s32.totalorder %s658_s25, %s658_s25 }
 0x14a   : > { %p4673_p10 = scmp.lt.s32.totalorder %s4671_s28, %s4664_s20 }
 0x14b   : > { %p4667_p6 = pnand %p4665_p4, %p5055_p7 }
 0x14c   : > { %p4674_p11 = por %p4673_p10, %p4672_p9 }
 0x14d   : > { %p4668_p8 = pneg %p4667_p6 }
 0x14f   : > { %p4675_p12 = pnand %p4674_p11, %p4668_p8 }
 0x151   : > { %4678 = shalt.err (!%p4675_p12)
}
 0x152   : > { %4171 = dma.hbm_to_vmem [thread:$0]  (!%p5039_p5), %s5768_s11, 16, %s658_s25, [#allocation14]  }
 0x153   : > { %s4679_s2 = scalar_lea.hbm %s5770_s13, 16 }
 0x154   : > { %p4680_p2 = scmp.ne.s32.totalorder %s5770_s13, %s4679_s2  ;;  %p4686_p0 = scmp.lt.u32.totalorder %s4679_s2, %s5770_s13 }
 0x156   : > { %p4682_p3 = pnand %p4680_p2, %p5055_p7 }
 0x158   : > { %p4683_p13 = pneg %p4682_p3 }
 0x15a   : > { %p4688_p1 = pnand %p4686_p0, %p4683_p13 }
 0x15c   : > { %4691 = shalt.err (!%p4688_p1)
}
 0x15d   : > { %s4692_s20 = scalar_lea.vmem %s682_s29, 16  ;;  %s4699_s25 = scalar_lea.vmem %s682_s29, 32 }
 0x15e   : > { %p4693_p4 = scmp.ne.s32.totalorder %s682_s29, %s4692_s20  ;;  %p4700_p9 = scmp.lt.s32.totalorder %s682_s29, %s682_s29 }
 0x15f   : > { %p4701_p10 = scmp.lt.s32.totalorder %s4699_s25, %s4692_s20 }
 0x160   : > { %p4695_p6 = pnand %p4693_p4, %p5055_p7 }
 0x161   : > { %p4702_p11 = por %p4701_p10, %p4700_p9 }
 0x162   : > { %p4696_p8 = pneg %p4695_p6 }
 0x164   : > { %p4703_p12 = pnand %p4702_p11, %p4696_p8 }
 0x166   : > { %4706 = shalt.err (!%p4703_p12)
}
 0x167   : > { %4177 = dma.hbm_to_vmem [thread:$0]  (!%p5039_p5), %s5770_s13, 16, %s682_s29, [#allocation17]  }
 0x168   : > { %s4883_s21 = smov [#allocation21]   ;;  %s4884_s26 = smov [#allocation24]  }
 0x169   : > { %s703_s0 = sshll.u32 %s4883_s21, 4  ;;  %s727_s2 = sshll.u32 %s4884_s26, 4  ;;  %s704_s0 = int_to_ptr.vmem [resolvable:$true] %s703_s0  ;;  %s728_s2 = int_to_ptr.vmem [resolvable:$true] %s727_s2 }
 0x16a   : > { %s4707_s5 = scalar_lea.hbm %s5772_s15, 16 }
 0x16b   : > { %p4708_p2 = scmp.ne.s32.totalorder %s5772_s15, %s4707_s5  ;;  %p4714_p0 = scmp.lt.u32.totalorder %s4707_s5, %s5772_s15 }
 0x16d   : > { %p4710_p3 = pnand %p4708_p2, %p5055_p7 }
 0x16f   : > { %p4711_p13 = pneg %p4710_p3 }
 0x171   : > { %p4716_p1 = pnand %p4714_p0, %p4711_p13 }
 0x173   : > { %4719 = shalt.err (!%p4716_p1)
}
 0x174   : > { %s4720_s29 = scalar_lea.vmem %s704_s0, 16  ;;  %s4727_s3 = scalar_lea.vmem %s704_s0, 32 }
 0x175   : > { %p4721_p4 = scmp.ne.s32.totalorder %s704_s0, %s4720_s29  ;;  %p4728_p9 = scmp.lt.s32.totalorder %s704_s0, %s704_s0 }
 0x176   : > { %p4729_p10 = scmp.lt.s32.totalorder %s4727_s3, %s4720_s29 }
 0x177   : > { %p4723_p6 = pnand %p4721_p4, %p5055_p7 }
 0x178   : > { %p4730_p11 = por %p4729_p10, %p4728_p9 }
 0x179   : > { %p4724_p8 = pneg %p4723_p6 }
 0x17b   : > { %p4731_p12 = pnand %p4730_p11, %p4724_p8 }
 0x17d   : > { %4734 = shalt.err (!%p4731_p12)
}
 0x17e   : > { %4183 = dma.hbm_to_vmem [thread:$0]  (!%p5039_p5), %s5772_s15, 16, %s704_s0, [#allocation20]  }
 0x17f   : > { %s4735_s5 = scalar_lea.hbm %s5774_s17, 16 }
 0x180   : > { %p4736_p2 = scmp.ne.s32.totalorder %s5774_s17, %s4735_s5  ;;  %p4742_p0 = scmp.lt.u32.totalorder %s4735_s5, %s5774_s17 }
 0x182   : > { %p4738_p3 = pnand %p4736_p2, %p5055_p7 }
 0x184   : > { %p4739_p13 = pneg %p4738_p3 }
 0x186   : > { %p4744_p1 = pnand %p4742_p0, %p4739_p13 }
 0x188   : > { %4747 = shalt.err (!%p4744_p1)
}
 0x189   : > { %s4748_s29 = scalar_lea.vmem %s728_s2, 16  ;;  %s4755_s0 = scalar_lea.vmem %s728_s2, 32 }
 0x18a   : > { %p4749_p4 = scmp.ne.s32.totalorder %s728_s2, %s4748_s29  ;;  %p4756_p9 = scmp.lt.s32.totalorder %s728_s2, %s728_s2 }
 0x18b   : > { %p4757_p10 = scmp.lt.s32.totalorder %s4755_s0, %s4748_s29 }
 0x18c   : > { %p4751_p6 = pnand %p4749_p4, %p5055_p7 }
 0x18d   : > { %p4758_p11 = por %p4757_p10, %p4756_p9 }
 0x18e   : > { %p4752_p8 = pneg %p4751_p6 }
 0x190   : > { %p4759_p12 = pnand %p4758_p11, %p4752_p8 }
 0x192   : > { %4762 = shalt.err (!%p4759_p12)
}
 0x193   : > { %4189 = dma.hbm_to_vmem [thread:$0]  (!%p5039_p5), %s5774_s17, 16, %s728_s2, [#allocation23]  }
 0x194   : > { %s4885_s26 = smov [#allocation27]   ;;  %s4886_s6 = smov [#allocation28]  }
 0x195   : > { %s752_s30 = sshll.u32 %s4885_s26, 4  ;;  %s763_s5 = sshll.u32 %s4886_s6, 4  ;;  %s753_s30 = int_to_ptr.vmem [resolvable:$true] %s752_s30  ;;  %s764_s5 = int_to_ptr.vmem [resolvable:$true] %s763_s5 }
 0x196   : > { %s5817_s25 = sld [smem:[#allocation51_spill]] }
 0x19c   : > { %s4763_s28 = scalar_lea.hbm %s5817_s25, 16 }
 0x19d   : > { %p4764_p2 = scmp.ne.s32.totalorder %s5817_s25, %s4763_s28  ;;  %p4770_p0 = scmp.lt.u32.totalorder %s4763_s28, %s5817_s25 }
 0x19f   : > { %p4766_p3 = pnand %p4764_p2, %p5055_p7 }
 0x1a1   : > { %p4767_p13 = pneg %p4766_p3 }
 0x1a3   : > { %p4772_p1 = pnand %p4770_p0, %p4767_p13 }
 0x1a5   : > { %4775 = shalt.err (!%p4772_p1)
}
 0x1a6   : > { %s4776_s2 = scalar_lea.vmem %s753_s30, 16  ;;  %s4783_s21 = scalar_lea.vmem %s753_s30, 32 }
 0x1a7   : > { %p4777_p4 = scmp.ne.s32.totalorder %s753_s30, %s4776_s2  ;;  %p4784_p9 = scmp.lt.s32.totalorder %s753_s30, %s753_s30 }
 0x1a8   : > { %p4785_p10 = scmp.lt.s32.totalorder %s4783_s21, %s4776_s2 }
 0x1a9   : > { %p4779_p6 = pnand %p4777_p4, %p5055_p7 }
 0x1aa   : > { %p4786_p11 = por %p4785_p10, %p4784_p9 }
 0x1ab   : > { %p4780_p8 = pneg %p4779_p6 }
 0x1ad   : > { %p4787_p12 = pnand %p4786_p11, %p4780_p8 }
 0x1af   : > { %4790 = shalt.err (!%p4787_p12)
}
 0x1b0   : > { %4195 = dma.hbm_to_vmem [thread:$0]  (!%p5039_p5), %s5817_s25, 16, %s753_s30, [#allocation26]  }
 0x1b1   : > { %s5818_s20 = sld [smem:[#allocation52_spill]] }
 0x1b7   : > { %s4791_s28 = scalar_lea.hbm %s5818_s20, 16 }
 0x1b8   : > { %p4792_p2 = scmp.ne.s32.totalorder %s5818_s20, %s4791_s28  ;;  %p4798_p0 = scmp.lt.u32.totalorder %s4791_s28, %s5818_s20 }
 0x1ba   : > { %p4794_p3 = pnand %p4792_p2, %p5055_p7 }
 0x1bc   : > { %p4795_p13 = pneg %p4794_p3 }
 0x1be   : > { %p4800_p1 = pnand %p4798_p0, %p4795_p13 }
 0x1c0   : > { %4803 = shalt.err (!%p4800_p1)
}
 0x1c1   : > { %s4804_s21 = scalar_lea.vmem %s764_s5, 16  ;;  %s4811_s30 = scalar_lea.vmem %s764_s5, 32 }
 0x1c2   : > { %p4805_p4 = scmp.ne.s32.totalorder %s764_s5, %s4804_s21  ;;  %p4812_p9 = scmp.lt.s32.totalorder %s764_s5, %s764_s5 }
 0x1c3   : > { %p4813_p10 = scmp.lt.s32.totalorder %s4811_s30, %s4804_s21 }
 0x1c4   : > { %p4807_p6 = pnand %p4805_p4, %p5055_p7 }
 0x1c5   : > { %p4814_p11 = por %p4813_p10, %p4812_p9 }
 0x1c6   : > { %p4808_p8 = pneg %p4807_p6 }
 0x1c8   : > { %p4815_p12 = pnand %p4814_p11, %p4808_p8 }
 0x1ca   : > { %4818 = shalt.err (!%p4815_p12)
}
 0x1cb   : > { %4198 = dma.hbm_to_vmem [thread:$0]  (!%p5039_p5), %s5818_s20, 16, %s764_s5, [#allocation29]  }
 0x1cc   : > { %s5819_s4 = sld [smem:[#allocation42_spill]] }
 0x1d2   : > { %p5820_p2 = scmp.ne.s32.totalorder %s5819_s4, 0 }
 0x1d3   : > { %s5821_s23 = sld [smem:[#allocation41_spill]] (!%p5820_p2) }
 0x1d4   : > { %790 = sbr.rel (%p5820_p2) target bundleno = 7034 (0x1b7a), region = 108 }
 0x1d9   : > { %p5822_p3 = scmp.eq.s32.totalorder (!%p5820_p2), %s5821_s23, 0 }
 0x1db   : > { %4824 = dma.done.wait (%p5822_p3), [#allocation3], 512   ;;  %p5823_p7 = pmov %p5822_p3 }
 0x1dc   : > { %p5824_p13 = pmov %p5822_p3 }
 0x1dd   : > { %4826 = vsyncadd (%p5823_p7), [#allocation3], 4294966784 }
 0x1de   : > { %4828 = dma.done.wait (%p5824_p13), [#allocation5], 528   ;;  %p5825_p0 = pmov %p5822_p3 }
 0x1e0   : > { %4830 = vsyncadd (%p5825_p0), [#allocation5], 4294966768  ;;  %p5826_p1 = pmov %p5825_p0 }
 0x1e1   : > { %p5827_p5 = pmov %p5825_p0 }
 0x1e2   : > { %4832 = dma.done.wait (%p5826_p1), [#allocation8], 32  }
 0x1e3   : > { %4834 = vsyncadd (%p5827_p5), [#allocation8], 4294967264  ;;  %p5828_p4 = pmov %p5825_p0 }
 0x1e4   : > { %p5829_p6 = pmov %p5825_p0 }
 0x1e5   : > { %4836 = dma.done.wait (%p5828_p4), [#allocation11], 528  }
 0x1e6   : > { %4838 = vsyncadd (%p5829_p6), [#allocation11], 4294966768  ;;  %p5830_p8 = pmov %p5825_p0 }
 0x1e7   : > { %p5831_p9 = pmov %p5825_p0 }
 0x1e8   : > { %4840 = dma.done.wait (%p5830_p8), [#allocation14], 528  }
 0x1e9   : > { %4842 = vsyncadd (%p5831_p9), [#allocation14], 4294966768  ;;  %p5832_p10 = pmov %p5825_p0 }
 0x1ea   : > { %p5833_p11 = pmov %p5825_p0 }
 0x1eb   : > { %4844 = dma.done.wait (%p5832_p10), [#allocation17], 528  }
 0x1ec   : > { %4846 = vsyncadd (%p5833_p11), [#allocation17], 4294966768  ;;  %p5834_p12 = pmov %p5825_p0 }
 0x1ed   : > { %p5835_p2 = pmov %p5825_p0 }
 0x1ee   : > { %4848 = dma.done.wait (%p5834_p12), [#allocation20], 32  }
 0x1ef   : > { %4850 = vsyncadd (%p5835_p2), [#allocation20], 4294967264  ;;  %p5836_p3 = pmov %p5825_p0 }
 0x1f0   : > { %p5837_p7 = pmov %p5825_p0 }
 0x1f1   : > { %4852 = dma.done.wait (%p5836_p3), [#allocation23], 528  }
 0x1f2   : > { %4854 = vsyncadd (%p5837_p7), [#allocation23], 4294966768  ;;  %p5838_p13 = pmov %p5825_p0 }
 0x1f4   : > { %4856 = dma.done.wait (%p5838_p13), [#allocation26], 32  }
 0x1f5   : > { %4858 = vsyncadd (%p5825_p0), [#allocation26], 4294967264  ;;  %p5839_p1 = pmov %p5825_p0 }
 0x1f6   : > { %p5840_p5 = pmov %p5825_p0 }
 0x1f7   : > { %4860 = dma.done.wait (%p5839_p1), [#allocation29], 16  }
 0x1f8   : > { %4862 = vsyncadd (%p5840_p5), [#allocation29], 4294967280  ;;  %p922_p4 = scmp.lt.s32.totalorder %s5821_s23, 1  ;;  %v4887_v0 = vmov 0.0|0.0   ;;  %vm4888_vm0 = vmmov 0   ;;  %v4889_v1 = vmov 0.0   ;;  %v1025_v16 = vlaneseq }
 0x1f9   : > { %4024 = vmatprep.subr.bf16.mxu0 %v4887_v0  ;;  %3833 = vmatprep.mubr.msk.f32.mxu0 %vm4888_vm0, %v4889_v1  ;;  %v936_v2 = vld [vmem:[#allocation2] sm:$0xff]  ;;  %v937_v3 = vld [vmem:[#allocation2 + $0x8] sm:$0xff]  ;;  %v938_v4 = vld [vmem:[#allocation2 + $0x10] sm:$0xff]  ;;  %s5841_s28 = sld [smem:[#allocation43_spill]]  ;;  %vm947_vm1 = vcmask 261120   ;;  %s5842_s2 = sld [smem:[#allocation46_spill]] }
 0x1fa   : > { %3841 = vmatprep.subr.mxu1 %v4889_v1  ;;  %3843 = vmatprep.mubr.msk.f32.mxu1 %vm4888_vm0, %v4889_v1  ;;  %s5848_s23 = smov (!%p922_p4, %s5821_s23), 1  ;;  %v4025_v5 = vpack.c.bf16 %v937_v3, %v936_v2  ;;  %v939_v6 = vld [vmem:[#allocation2 + $0x18] sm:$0xff]  ;;  %s4890_s21 = smov 120   ;;  %vm1033_vm2 = vcmask 64512   ;;  %v5498_v17 = vshrl.u32 %v1025_v16, 7  ;;  %v5500_v18 = vand.u32 127, %v1025_v16 }
 0x1fb   : > { %s5462_s22 = sshll.u32 %s5848_s23, 3  ;;  %v4028_v7 = vpack.c.bf16 %v939_v6, %v938_v4  ;;  %s4891_s30 = smov 96   ;;  %v1022_v39 = vld [vmem:[#allocation4 + $0x8] sm:$0xff]  ;;  %v1021_v48 = vld [vmem:[#allocation4] sm:$0xff]  ;;  %v1023_v16 = vld [vmem:[#allocation4 + $0x10] sm:$0xff] }
 0x1fc   : > { %4026 = vmatpush3.bf16.msra.mxu0 %v4025_v5  ;;  %s4892_s26 = smov 88   ;;  %vm1029_vm3 = vcmp.le.s32.totalorder %v5500_v18, %v5498_v17  ;;  %s4893_s6 = smov 56   ;;  %v1024_v17 = vld [vmem:[#allocation4 + $0x18] sm:$0xff] }
 0x1fd   : > { %4027 = vmatprep.subr.bf16.mxu0 %v4887_v0  ;;  %s4894_s4 = smov 64   ;;  %s4895_s23 = smov 80  }
 0x1fe   : > { %s4896_s1 = smov 112   ;;  %s4897_s5 = smov 72  }
 0x1ff   : > { %s925_s29 = scalar_lea.vmem %s5841_s28, %s5462_s22  ;;  %v3689_v9 = vld [vmem:[%s5842_s2] ss:$0 sm:$0xff]  ;;  %s4898_s28 = smov 104  }
 0x200   : > { %4029 = vmatpush3.bf16.msra.mxu0 %v4028_v7  ;;  %v5469_v8 = vld [vmem:[%s925_s29] sm:$0xff]  ;;  %s4899_s29 = smov 48   ;;  %s4900_s0 = smov 40  }
 0x201   : > { %3836 = vmatprep.subr.mxu0 %v4889_v1 }
 0x203   : > { %3834 = vmatmul.mubr.msk.f32.vlgmr.msra.gmra.mrb[0].mxu0 %vm947_vm1, %v5469_v8 }
 0x204   : > { %3838 = vmatprep.mubr.msk.f32.mxu0 %vm4888_vm0, %v4889_v1 }
 0x2d6   : > { %v1017_v10 = vpop.f32.mrb[0].mxu0 }
 0x2d7   : > { %v5479_v11 = vadd.f32 %v3689_v9, %v1017_v10  ;;  %v3835_v12 = vpop.f32.mrb[1].mxu0 }
 0x2d9   : > { %1197 = vrot.lane.b32.xlu1 %v5479_v11, %s4890_s21  ;;  %1031 = vrot.lane.b32.xlu0 %v5479_v11, %s4891_s30 }
 0x2dd   : > { %1199 = vrot.lane.b32.xlu0 %v5479_v11, %s4892_s26 }
 0x34b   : > { %v1032_v13 = vpop.permute.xlu0 %1031  ;;  %v1198_v15 = vpop.permute.xlu1 %1197 }
 0x34c   : > { %3837 = vmatpush3.xpose.msk.msra.mxu0 %vm1033_vm2, %v1032_v13 }
 0x34d   : > { %3846 = vmatprep.subr.mxu0 %v4889_v1 }
 0x34f   : > { %3839 = vmatmul.mubr.msk.f32.vlgmr.msra.gmra.mrb[2].mxu0 %vm1033_vm2, %v5479_v11  ;;  %v1200_v14 = vpop.permute.xlu0 %1199 }
 0x350   : > { %3847 = vmatpush3.xpose.msk.msra.mxu0 %vm1033_vm2, %v1200_v14  ;;  %3848 = vmatprep.mubr.msk.f32.mxu0 %vm4888_vm0, %v4889_v1 }
 0x351   : > { %3856 = vmatprep.subr.mxu0 %v4889_v1 }
 0x353   : > { %3849 = vmatmul.mubr.msk.f32.vlgmr.msra.gmra.mrb[4].mxu0 %vm1033_vm2, %v1198_v15 }
 0x354   : > { %3858 = vmatprep.mubr.msk.f32.mxu0 %vm4888_vm0, %v4889_v1  ;;  %3857 = vmatpush3.msra.mxu0 %v1022_v39  ;;  %v3707_v39 = vld [vmem:[#allocation6] ss:$0 sm:$0xff] }
 0x355   : > { %3866 = vmatprep.subr.mxu0 %v4889_v1 }
 0x422   : > { %v1104_v19 = vpop.f32.mrb[2].mxu0 }
 0x423   : > { %v1108_v20 = vmul.f32 0.35355338, %v1104_v19  ;;  %v3840_v21 = vpop.f32.mrb[3].mxu0 }
 0x425   : > { %v1109_v22 = vsel %vm1029_vm3, %v1108_v20, -1e+30 }
 0x426   : > { %v1271_v23 = vpop.f32.mrb[4].mxu0  ;;  %v1110_v24 = vsel %vm1033_vm2, %v1109_v22, -inf }
 0x427   : > { %v1275_v25 = vmul.f32 0.35355338, %v1271_v23  ;;  %1111 = vmax.xlane.f32.xlu1 %v1110_v24  ;;  %v3850_v26 = vpop.f32.mrb[5].mxu0 }
 0x429   : > { %v1276_v27 = vsel %vm1029_vm3, %v1275_v25, -1e+30 }
 0x42a   : > { %v1277_v28 = vsel %vm1033_vm2, %v1276_v27, -inf }
 0x42b   : > { %1278 = vmax.xlane.f32.xlu0 %v1277_v28 }
 0x4b4   : > { %v1112_v29 = vpop.xlane.xlu1 %1111 }
 0x4b5   : > { %v1113_v30 = vsub.f32 %v1109_v22, %v1112_v29 }
 0x4b7   : > { %v1114_v31 = vmul.f32 1.442695, %v1113_v30 }
 0x4b8   : > { %v1279_v32 = vpop.xlane.xlu0 %1278 }
 0x4b9   : > { %4277 = vpow2.f32 %v1114_v31  ;;  %v1280_v33 = vsub.f32 %v1276_v27, %v1279_v32 }
 0x4bb   : > { %v1281_v34 = vmul.f32 1.442695, %v1280_v33 }
 0x4bd   : > { %4279 = vpow2.f32 %v1281_v34 }
 0x4c3   : > { %v4278_v35 = vpop.eup %4277 }
 0x4c4   : > { %v1116_v36 = vsel %vm1033_vm2, %v4278_v35, 0.0 }
 0x4c5   : > { %1117 = vadd.xlane.f32.xlu0 %v1116_v36 }
 0x4c7   : > { %v4280_v37 = vpop.eup %4279 }
 0x4c8   : > { %v1283_v38 = vsel %vm1033_vm2, %v4280_v37, 0.0 }
 0x4c9   : > { %1284 = vadd.xlane.f32.xlu1 %v1283_v38 }
 0x4da   : > { %1288 = vrot.lane.b32.xlu1 %v5479_v11, %s4893_s6  ;;  %s5843_s6 = sld [smem:[#allocation44_spill]] }
 0x4db   : > { %1121 = vrot.lane.b32.xlu0 %v5479_v11, %s4894_s4 }
 0x4de   : > { %1512 = vrot.lane.b32.xlu1 %v5479_v11, %s4895_s23 }
 0x4df   : > { %1510 = vrot.lane.b32.xlu0 %v5479_v11, %s4896_s1 }
 0x4e0   : > { %s929_s4 = scalar_lea.vmem %s5843_s6, %s5462_s22  ;;  %s5845_s6 = sld [smem:[#allocation53_spill]] }
 0x552   : > { %v1118_v40 = vpop.xlane.xlu0 %1117 }
 0x553   : > { %4281 = vrcp.f32 %v1118_v40 }
 0x556   : > { %v1285_v41 = vpop.xlane.xlu1 %1284  ;;  %v1122_v42 = vpop.permute.xlu0 %1121 }
 0x557   : > { %4283 = vrcp.f32 %v1285_v41  ;;  %3842 = vmatpush3.msra.mxu1 %v1122_v42 }
 0x558   : > { %3851 = vmatprep.subr.mxu1 %v4889_v1 }
 0x55a   : > { %v1289_v45 = vpop.permute.xlu1 %1288  ;;  %v1511_v54 = vpop.permute.xlu0 %1510 }
 0x55d   : > { %v4282_v43 = vpop.eup %4281 }
 0x55e   : > { %v1120_v44 = vmul.f32 %v4282_v43, %v4278_v35  ;;  %v1513_v52 = vpop.permute.xlu1 %1512 }
 0x560   : > { %3844 = vmatmul.mubr.msk.f32.vlgmr.msra.gmra.mrb[0].mxu1 %vm1033_vm2, %v1120_v44 }
 0x561   : > { %v4284_v46 = vpop.eup %4283  ;;  %3852 = vmatpush3.msra.mxu1 %v1289_v45  ;;  %3853 = vmatprep.mubr.msk.f32.mxu1 %vm4888_vm0, %v4889_v1 }
 0x562   : > { %v1287_v47 = vmul.f32 %v4284_v46, %v4280_v37  ;;  %3861 = vmatprep.subr.mxu1 %v4889_v1 }
 0x564   : > { %3854 = vmatmul.mubr.msk.f32.vlgmr.msra.gmra.mrb[2].mxu1 %vm1033_vm2, %v1287_v47 }
 0x565   : > { %3863 = vmatprep.mubr.msk.f32.mxu1 %vm4888_vm0, %v4889_v1  ;;  %3862 = vmatpush3.msra.mxu1 %v1021_v48 }
 0x566   : > { %3871 = vmatprep.subr.mxu1 %v4889_v1 }
 0x633   : > { %v1193_v49 = vpop.f32.mrb[0].mxu1 }
 0x634   : > { %v3845_v50 = vpop.f32.mrb[1].mxu1  ;;  %3864 = vmatmul.mubr.msk.f32.vlgmr.msra.gmra.mrb[4].mxu1 %vm1033_vm2, %v1193_v49 }
 0x635   : > { %3873 = vmatprep.mubr.msk.f32.mxu1 %vm4888_vm0, %v4889_v1  ;;  %v2031_v50 = vld [vmem:[#allocation10] sm:$0xff] }
 0x637   : > { %v1360_v51 = vpop.f32.mrb[2].mxu1 }
 0x638   : > { %v3855_v53 = vpop.f32.mrb[3].mxu1  ;;  %3859 = vmatmul.mubr.msk.f32.vlgmr.msra.gmra.mrb[6].mxu0 %vm1033_vm2, %v1360_v51  ;;  %v2032_v51 = vld [vmem:[#allocation10 + $0x8] sm:$0xff] }
 0x639   : > { %3867 = vmatpush3.xpose.msk.msra.mxu0 %vm1033_vm2, %v1513_v52  ;;  %3868 = vmatprep.mubr.msk.f32.mxu0 %vm4888_vm0, %v4889_v1  ;;  %v4031_v52 = vpack.c.bf16 %v2032_v51, %v2031_v50  ;;  %v2033_v53 = vld [vmem:[#allocation10 + $0x10] sm:$0xff] }
 0x63a   : > { %3876 = vmatprep.subr.mxu0 %v4889_v1 }
 0x63c   : > { %3869 = vmatmul.mubr.msk.f32.vlgmr.msra.gmra.mrb[8].mxu0 %vm1033_vm2, %v1511_v54  ;;  %v2034_v54 = vld [vmem:[#allocation10 + $0x18] sm:$0xff] }
 0x63d   : > { %3878 = vmatprep.mubr.msk.f32.mxu0 %vm4888_vm0, %v4889_v1  ;;  %3877 = vmatpush3.msra.mxu0 %v1023_v16 }
 0x63e   : > { %3886 = vmatprep.subr.mxu0 %v4889_v1 }
 0x707   : > { %v1506_v55 = vpop.f32.mrb[4].mxu1 }
 0x708   : > { %v3865_v56 = vpop.f32.mrb[5].mxu1 }
 0x70b   : > { %v1433_v57 = vpop.f32.mrb[6].mxu0 }
 0x70c   : > { %v5541_v58 = vadd.f32 %v1506_v55, %v1433_v57  ;;  %v3860_v59 = vpop.f32.mrb[7].mxu0  ;;  %v4034_v55 = vpack.c.bf16 %v2034_v54, %v2033_v53 }
 0x70d   : > { %v3708_v59 = vld [vmem:[#allocation7] ss:$0 sm:$0xff] }
 0x70f   : > { %v1584_v60 = vpop.f32.mrb[8].mxu0 }
 0x710   : > { %v1588_v61 = vmul.f32 0.35355338, %v1584_v60  ;;  %v3870_v62 = vpop.f32.mrb[9].mxu0 }
 0x711   : > { %v2116_v62 = vld [vmem:[#allocation13 + $0x8] sm:$0xff] }
 0x712   : > { %v1589_v63 = vsel %vm1029_vm3, %v1588_v61, -1e+30  ;;  %v2115_v61 = vld [vmem:[#allocation13] sm:$0xff] }
 0x713   : > { %v1590_v2 = vsel %vm1033_vm2, %v1589_v63, -inf }
 0x714   : > { %1591 = vmax.xlane.f32.xlu1 %v1590_v2 }
 0x725   : > { %1753 = vrot.lane.b32.xlu1 %v5479_v11, %s4897_s5 }
 0x729   : > { %1751 = vrot.lane.b32.xlu1 %v5479_v11, %s4898_s28 }
 0x7a1   : > { %v1592_v3 = vpop.xlane.xlu1 %1591 }
 0x7a2   : > { %v1593_v4 = vsub.f32 %v1589_v63, %v1592_v3  ;;  %v3709_v63 = vld [vmem:[#allocation9] ss:$0 sm:$0xff]  ;;  %v4037_v3 = vpack.c.bf16 %v2116_v62, %v2115_v61 }
 0x7a4   : > { %v1594_v5 = vmul.f32 1.442695, %v1593_v4 }
 0x7a5   : > { %v1754_v13 = vpop.permute.xlu1 %1753 }
 0x7a6   : > { %4285 = vpow2.f32 %v1594_v5  ;;  %v2117_v5 = vld [vmem:[#allocation13 + $0x10] sm:$0xff] }
 0x7a9   : > { %v1752_v15 = vpop.permute.xlu1 %1751 }
 0x7b0   : > { %v4286_v6 = vpop.eup %4285 }
 0x7b1   : > { %v1596_v7 = vsel %vm1033_vm2, %v4286_v6, 0.0 }
 0x7b2   : > { %1597 = vadd.xlane.f32.xlu0 %v1596_v7 }
 0x7c8   : > { %1601 = vrot.lane.b32.xlu0 %v5479_v11, %s4899_s29 }
 0x83f   : > { %v1598_v9 = vpop.xlane.xlu0 %1597 }
 0x840   : > { %4287 = vrcp.f32 %v1598_v9  ;;  %v935_v9 = vld [vmem:[%s929_s4] sm:$0xff]  ;;  %s933_s4 = scalar_lea.vmem %s5845_s6, %s5462_s22 }
 0x843   : > { %v1602_v10 = vpop.permute.xlu0 %1601 }
 0x844   : > { %3872 = vmatpush3.msra.mxu1 %v1602_v10  ;;  %v3710_v10 = vld [vmem:[#allocation12] ss:$0 sm:$0xff] }
 0x845   : > { %3881 = vmatprep.subr.mxu1 %v4889_v1 }
 0x84a   : > { %v4288_v12 = vpop.eup %4287 }
 0x84b   : > { %v1600_v14 = vmul.f32 %v4288_v12, %v4286_v6  ;;  %v2118_v6 = vld [vmem:[#allocation13 + $0x18] sm:$0xff] }
 0x84c   : > { %v4040_v7 = vpack.c.bf16 %v2118_v6, %v2117_v5 }
 0x84d   : > { %3874 = vmatmul.mubr.msk.f32.vlgmr.msra.gmra.mrb[6].mxu1 %vm1033_vm2, %v1600_v14 }
 0x84e   : > { %3882 = vmatpush3.xpose.msk.msra.mxu1 %vm1033_vm2, %v1754_v13  ;;  %3883 = vmatprep.mubr.msk.f32.mxu1 %vm4888_vm0, %v4889_v1 }
 0x84f   : > { %3891 = vmatprep.subr.mxu1 %v4889_v1 }
 0x851   : > { %3884 = vmatmul.mubr.msk.f32.vlgmr.msra.gmra.mrb[8].mxu1 %vm1033_vm2, %v1752_v15  ;;  %v3712_v15 = vld [vmem:[#allocation15] ss:$0 sm:$0xff] }
 0x852   : > { %3893 = vmatprep.mubr.msk.f32.mxu1 %vm4888_vm0, %v4889_v1  ;;  %3892 = vmatpush3.msra.mxu1 %v1024_v17 }
 0x853   : > { %3923 = vmatprep.subr.mxu1 %v4889_v1 }
 0x920   : > { %v1673_v19 = vpop.f32.mrb[6].mxu1 }
 0x921   : > { %v3875_v20 = vpop.f32.mrb[7].mxu1  ;;  %3879 = vmatmul.mubr.msk.f32.vlgmr.msra.gmra.mrb[10].mxu0 %vm1033_vm2, %v1673_v19 }
 0x922   : > { %3888 = vmatprep.mubr.msk.f32.mxu0 %vm4888_vm0, %v4889_v1 }
 0x924   : > { %v1825_v21 = vpop.f32.mrb[8].mxu1 }
 0x925   : > { %v1829_v22 = vmul.f32 0.35355338, %v1825_v21  ;;  %v3885_v23 = vpop.f32.mrb[9].mxu1 }
 0x927   : > { %v1830_v24 = vsel %vm1029_vm3, %v1829_v22, -1e+30 }
 0x928   : > { %v1831_v25 = vsel %vm1033_vm2, %v1830_v24, -inf }
 0x929   : > { %1832 = vmax.xlane.f32.xlu0 %v1831_v25 }
 0x93f   : > { %1842 = vrot.lane.b32.xlu0 %v5479_v11, %s4900_s0 }
 0x9b6   : > { %v1833_v26 = vpop.xlane.xlu0 %1832 }
 0x9b7   : > { %v1834_v27 = vsub.f32 %v1830_v24, %v1833_v26 }
 0x9b9   : > { %v1835_v28 = vmul.f32 1.442695, %v1834_v27 }
 0x9ba   : > { %v1843_v29 = vpop.permute.xlu0 %1842 }
 0x9bb   : > { %4289 = vpow2.f32 %v1835_v28  ;;  %3887 = vmatpush3.msra.mxu0 %v1843_v29 }
 0x9bc   : > { %4030 = vmatprep.subr.bf16.mxu0 %v4887_v0 }
 0x9c5   : > { %v4290_v30 = vpop.eup %4289 }
 0x9c6   : > { %v1837_v31 = vsel %vm1033_vm2, %v4290_v30, 0.0 }
 0x9c7   : > { %1838 = vadd.xlane.f32.xlu1 %v1837_v31 }
 0x9f4   : > { %v1746_v18 = vpop.f32.mrb[10].mxu0 }
 0x9f5   : > { %v1750_v32 = vadd.f32 %v1746_v18, %v5541_v58  ;;  %v3880_v11 = vpop.f32.mrb[11].mxu0 }
 0xa54   : > { %v1839_v33 = vpop.xlane.xlu1 %1838 }
 0xa55   : > { %4291 = vrcp.f32 %v1839_v33 }
 0xa5f   : > { %v4292_v34 = vpop.eup %4291 }
 0xa60   : > { %v1841_v35 = vmul.f32 %v4292_v34, %v4290_v30 }
 0xa62   : > { %3889 = vmatmul.mubr.msk.f32.vlgmr.msra.gmra.mrb[12].mxu0 %vm1033_vm2, %v1841_v35 }
 0xa63   : > { %3904 = vmatprep.mubr.msk.f32.mxu0 %vm4888_vm0, %v4889_v1  ;;  %4032 = vmatpush3.bf16.msra.mxu0 %v4031_v52 }
 0xa64   : > { %4033 = vmatprep.subr.bf16.mxu0 %v4887_v0 }
 0xa67   : > { %4035 = vmatpush3.bf16.msra.mxu0 %v4034_v55 }
 0xa68   : > { %4036 = vmatprep.subr.bf16.mxu0 %v4887_v0 }
 0xb35   : > { %v1914_v36 = vpop.f32.mrb[12].mxu0 }
 0xb36   : > { %v3890_v37 = vpop.f32.mrb[13].mxu0  ;;  %3894 = vmatmul.mubr.msk.f32.vlgmr.msra.gmra.mrb[10].mxu1 %vm1033_vm2, %v1914_v36 }
 0xb37   : > { %3925 = vmatprep.mubr.msk.f32.mxu1 %vm4888_vm0, %v4889_v1 }
 0xc09   : > { %v1987_v38 = vpop.f32.mrb[10].mxu1 }
 0xc0a   : > { %v1991_v40 = vadd.f32 %v1987_v38, %v1750_v32  ;;  %v3895_v41 = vpop.f32.mrb[11].mxu1 }
 0xc0c   : > { %v1999_v42 = vadd.f32 %v3707_v39, %v1991_v40 }
 0xc0e   : > { %v2000_v43 = vadd.f32 %v1999_v42, %v5469_v8 }
 0xc10   : > { %v2003_v44 = vsel %vm947_vm1, %v2000_v43, 0.0 }
 0xc11   : > { %2004 = vadd.xlane.f32.xlu1 %v2003_v44 }
 0xc9e   : > { %v2005_v45 = vpop.xlane.xlu1 %2004 }
 0xc9f   : > { %v2007_v46 = vmul.f32 0.03125, %v2005_v45 }
 0xca1   : > { %v2008_v47 = vsub.f32 %v2000_v43, %v2007_v46  ;;  %v2199_v46 = vld [vmem:[#allocation16] sm:$0xff] }
 0xca3   : > { %v2009_v48 = vmul.f32 %v2008_v47, %v2008_v47 }
 0xca5   : > { %v2010_v49 = vsel %vm947_vm1, %v2009_v48, 0.0 }
 0xca6   : > { %2011 = vadd.xlane.f32.xlu1 %v2010_v49 }
 0xd33   : > { %v2012_v8 = vpop.xlane.xlu1 %2011 }
 0xd34   : > { %v2013_v56 = vmul.f32 0.03125, %v2012_v8 }
 0xd36   : > { %v2014_v57 = vadd.f32 1e-05, %v2013_v56 }
 0xd38   : > { %4293 = vrsqrt.f32 %v2014_v57 }
 0xd42   : > { %v4294_v58 = vpop.eup %4293 }
 0xd43   : > { %v2016_v60 = vmul.f32 %v4294_v58, %v2008_v47  ;;  %v2200_v47 = vld [vmem:[#allocation16 + $0x8] sm:$0xff] }
 0xd45   : > { %v2023_v2 = vmul.f32 %v3708_v59, %v2016_v60 }
 0xd47   : > { %v5586_v4 = vadd.f32 %v3709_v63, %v2023_v2 }
 0xd49   : > { %3905 = vmatmul.mubr.msk.f32.vlgmr.msra.gmra.mrb[14].mxu0 %vm947_vm1, %v5586_v4 }
 0xd4a   : > { %4038 = vmatpush3.bf16.msra.mxu0 %v4037_v3  ;;  %3915 = vmatprep.mubr.msk.f32.mxu0 %vm4888_vm0, %v4889_v1 }
 0xd4b   : > { %4039 = vmatprep.subr.bf16.mxu0 %v4887_v0 }
 0xd4e   : > { %4041 = vmatpush3.bf16.msra.mxu0 %v4040_v7 }
 0xd4f   : > { %3918 = vmatprep.subr.mxu0 %v4889_v1 }
 0xd51   : > { %3916 = vmatmul.mubr.msk.f32.vlgmr.msra.gmra.mrb[16].mxu0 %vm947_vm1, %v935_v9 }
 0xd52   : > { %3920 = vmatprep.mubr.msk.f32.mxu0 %vm4888_vm0, %v4889_v1 }
 0xe1c   : > { %v2111_v12 = vpop.f32.mrb[14].mxu0 }
 0xe1d   : > { %v5601_v13 = vadd.f32 %v3710_v10, %v2111_v12  ;;  %v3906_v14 = vpop.f32.mrb[15].mxu0 }
 0xe1e   : > { %v2201_v14 = vld [vmem:[#allocation16 + $0x10] sm:$0xff] }
 0xe1f   : > { %2367 = vrot.lane.b32.xlu0 %v5601_v13, %s4890_s21 }
 0xe24   : > { %v2195_v16 = vpop.f32.mrb[16].mxu0 }
 0xe25   : > { %v5605_v19 = vadd.f32 %v3712_v15, %v2195_v16  ;;  %v3917_v20 = vpop.f32.mrb[17].mxu0 }
 0xe27   : > { %2369 = vrot.lane.b32.xlu1 %v5605_v19, %s4890_s21  ;;  %3919 = vmatpush3.xpose.msk.msra.mxu0 %vm1033_vm2, %v5605_v19 }
 0xe28   : > { %3928 = vmatprep.subr.mxu0 %v4889_v1 }
 0xe2a   : > { %3921 = vmatmul.mubr.msk.f32.vlgmr.msra.gmra.mrb[18].mxu0 %vm1033_vm2, %v5601_v13 }
 0xe2b   : > { %3930 = vmatprep.mubr.msk.f32.mxu0 %vm4888_vm0, %v4889_v1 }
 0xe91   : > { %v2368_v22 = vpop.permute.xlu0 %2367 }
 0xe99   : > { %v2370_v21 = vpop.permute.xlu1 %2369 }
 0xe9a   : > { %3929 = vmatpush3.xpose.msk.msra.mxu0 %vm1033_vm2, %v2370_v21 }
 0xe9b   : > { %3938 = vmatprep.subr.mxu0 %v4889_v1 }
 0xe9d   : > { %3931 = vmatmul.mubr.msk.f32.vlgmr.msra.gmra.mrb[20].mxu0 %vm1033_vm2, %v2368_v22 }
 0xe9e   : > { %3940 = vmatprep.mubr.msk.f32.mxu0 %vm4888_vm0, %v4889_v1  ;;  %3939 = vmatpush3.msra.mxu0 %v2200_v47  ;;  %v3197_v47 = vld [vmem:[#allocation22] sm:$0xff] }
 0xe9f   : > { %3948 = vmatprep.subr.mxu0 %v4889_v1 }
 0xefd   : > { %v2275_v23 = vpop.f32.mrb[18].mxu0 }
 0xefe   : > { %v2279_v24 = vmul.f32 0.35355338, %v2275_v23  ;;  %v3922_v25 = vpop.f32.mrb[19].mxu0 }
 0xf00   : > { %v2280_v26 = vsel %vm1033_vm2, %v2279_v24, -inf }
 0xf01   : > { %2281 = vmax.xlane.f32.xlu0 %v2280_v26 }
 0xf70   : > { %v2441_v27 = vpop.f32.mrb[20].mxu0 }
 0xf71   : > { %v2445_v28 = vmul.f32 0.35355338, %v2441_v27  ;;  %v3932_v29 = vpop.f32.mrb[21].mxu0 }
 0xf73   : > { %v2446_v30 = vsel %vm1033_vm2, %v2445_v28, -inf }
 0xf74   : > { %2447 = vmax.xlane.f32.xlu1 %v2446_v30  ;;  %v2202_v30 = vld [vmem:[#allocation16 + $0x18] sm:$0xff] }
 0xf85   : > { %2457 = vrot.lane.b32.xlu1 %v5605_v19, %s4892_s26  ;;  %s5844_s26 = sld [smem:[#allocation50_spill]] }
 0xf89   : > { %2681 = vrot.lane.b32.xlu1 %v5605_v19, %s4896_s1 }
 0xf8e   : > { %v2282_v31 = vpop.xlane.xlu0 %2281 }
 0xf8f   : > { %v2283_v17 = vsub.f32 %v2279_v24, %v2282_v31 }
 0xf91   : > { %v2284_v18 = vmul.f32 1.442695, %v2283_v17 }
 0xf93   : > { %4295 = vpow2.f32 %v2284_v18 }
 0xf9d   : > { %v4296_v32 = vpop.eup %4295 }
 0xf9e   : > { %v2286_v11 = vsel %vm1033_vm2, %v4296_v32, 0.0 }
 0xf9f   : > { %2287 = vadd.xlane.f32.xlu0 %v2286_v11 }
0x1001   : > { %v2448_v33 = vpop.xlane.xlu1 %2447 }
0x1002   : > { %v2449_v34 = vsub.f32 %v2445_v28, %v2448_v33 }
0x1004   : > { %v2450_v35 = vmul.f32 1.442695, %v2449_v34 }
0x1005   : > { %v2458_v43 = vpop.permute.xlu1 %2457 }
0x1006   : > { %4297 = vpow2.f32 %v2450_v35 }
0x1009   : > { %v2682_v51 = vpop.permute.xlu1 %2681 }
0x1010   : > { %v4298_v36 = vpop.eup %4297 }
0x1011   : > { %v2452_v37 = vsel %vm1033_vm2, %v4298_v36, 0.0 }
0x1012   : > { %2453 = vadd.xlane.f32.xlu0 %v2452_v37 }
0x1028   : > { %2291 = vrot.lane.b32.xlu0 %v5605_v19, %s4891_s30 }
0x102c   : > { %2679 = vrot.lane.b32.xlu0 %v5601_v13, %s4896_s1  ;;  %v2288_v38 = vpop.xlane.xlu0 %2287 }
0x102d   : > { %4299 = vrcp.f32 %v2288_v38 }
0x1037   : > { %v4300_v40 = vpop.eup %4299 }
0x1038   : > { %v2290_v41 = vmul.f32 %v4300_v40, %v4296_v32 }
0x109f   : > { %v2454_v39 = vpop.xlane.xlu0 %2453 }
0x10a0   : > { %4301 = vrcp.f32 %v2454_v39 }
0x10a3   : > { %v2292_v42 = vpop.permute.xlu0 %2291 }
0x10a4   : > { %3924 = vmatpush3.msra.mxu1 %v2292_v42 }
0x10a5   : > { %3926 = vmatmul.mubr.msk.f32.vlgmr.msra.gmra.mrb[12].mxu1 %vm1033_vm2, %v2290_v41  ;;  %3933 = vmatprep.subr.mxu1 %v4889_v1 }
0x10a6   : > { %3934 = vmatpush3.msra.mxu1 %v2458_v43  ;;  %3935 = vmatprep.mubr.msk.f32.mxu1 %vm4888_vm0, %v4889_v1 }
0x10a7   : > { %3943 = vmatprep.subr.mxu1 %v4889_v1  ;;  %v2680_v53 = vpop.permute.xlu0 %2679 }
0x10aa   : > { %v4302_v44 = vpop.eup %4301 }
0x10ab   : > { %v2456_v45 = vmul.f32 %v4302_v44, %v4298_v36  ;;  %v3730_v36 = vld [vmem:[#allocation18] ss:$0 sm:$0xff] }
0x10ad   : > { %3936 = vmatmul.mubr.msk.f32.vlgmr.msra.gmra.mrb[14].mxu1 %vm1033_vm2, %v2456_v45 }
0x10ae   : > { %3945 = vmatprep.mubr.msk.f32.mxu1 %vm4888_vm0, %v4889_v1  ;;  %3944 = vmatpush3.msra.mxu1 %v2199_v46 }
0x10af   : > { %3953 = vmatprep.subr.mxu1 %v4889_v1 }
0x1178   : > { %v2363_v48 = vpop.f32.mrb[12].mxu1 }
0x1179   : > { %v3927_v49 = vpop.f32.mrb[13].mxu1  ;;  %3946 = vmatmul.mubr.msk.f32.vlgmr.msra.gmra.mrb[16].mxu1 %vm1033_vm2, %v2363_v48  ;;  %v3198_v48 = vld [vmem:[#allocation22 + $0x8] sm:$0xff] }
0x117a   : > { %3955 = vmatprep.mubr.msk.f32.mxu1 %vm4888_vm0, %v4889_v1  ;;  %v3199_v49 = vld [vmem:[#allocation22 + $0x10] sm:$0xff] }
0x1180   : > { %v2529_v50 = vpop.f32.mrb[14].mxu1 }
0x1181   : > { %v3937_v52 = vpop.f32.mrb[15].mxu1  ;;  %3941 = vmatmul.mubr.msk.f32.vlgmr.msra.gmra.mrb[22].mxu0 %vm1033_vm2, %v2529_v50  ;;  %v3200_v50 = vld [vmem:[#allocation22 + $0x18] sm:$0xff] }
0x1182   : > { %3949 = vmatpush3.xpose.msk.msra.mxu0 %vm1033_vm2, %v2682_v51  ;;  %3950 = vmatprep.mubr.msk.f32.mxu0 %vm4888_vm0, %v4889_v1  ;;  %v4046_v51 = vpack.c.bf16 %v3200_v50, %v3199_v49  ;;  %v3283_v52 = vld [vmem:[%s5844_s26 + $0x8] sm:$0xff] }
0x1183   : > { %3958 = vmatprep.subr.mxu0 %v4889_v1 }
0x1185   : > { %3951 = vmatmul.mubr.msk.f32.vlgmr.msra.gmra.mrb[24].mxu0 %vm1033_vm2, %v2680_v53  ;;  %v3284_v53 = vld [vmem:[%s5844_s26 + $0x10] sm:$0xff] }
0x1186   : > { %3960 = vmatprep.mubr.msk.f32.mxu0 %vm4888_vm0, %v4889_v1  ;;  %3959 = vmatpush3.msra.mxu0 %v2201_v14 }
0x1187   : > { %3968 = vmatprep.subr.mxu0 %v4889_v1 }
0x124c   : > { %v2675_v54 = vpop.f32.mrb[16].mxu1 }
0x124d   : > { %v3947_v55 = vpop.f32.mrb[17].mxu1 }
0x124e   : > { %v3285_v55 = vld [vmem:[%s5844_s26 + $0x18] sm:$0xff] }
0x1254   : > { %v2602_v8 = vpop.f32.mrb[22].mxu0 }
0x1255   : > { %v2676_v56 = vadd.f32 %v2675_v54, %v2602_v8  ;;  %v3942_v57 = vpop.f32.mrb[23].mxu0  ;;  %v4052_v8 = vpack.c.bf16 %v3285_v55, %v3284_v53 }
0x1256   : > { %v3287_v57 = vld [vmem:[%s5844_s26 + $0x28] sm:$0xff] }
0x1258   : > { %v2753_v58 = vpop.f32.mrb[24].mxu0 }
0x1259   : > { %v2757_v59 = vmul.f32 0.35355338, %v2753_v58  ;;  %v3952_v60 = vpop.f32.mrb[25].mxu0 }
0x125a   : > { %v3289_v60 = vld [vmem:[%s5844_s26 + $0x38] sm:$0xff] }
0x125b   : > { %v2758_v61 = vsel %vm1033_vm2, %v2757_v59, -inf }
0x125c   : > { %2759 = vmax.xlane.f32.xlu1 %v2758_v61 }
0x126d   : > { %2921 = vrot.lane.b32.xlu1 %v5605_v19, %s4898_s28 }
0x1271   : > { %2919 = vrot.lane.b32.xlu1 %v5601_v13, %s4898_s28 }
0x12e9   : > { %v2760_v62 = vpop.xlane.xlu1 %2759 }
0x12ea   : > { %v2761_v63 = vsub.f32 %v2757_v59, %v2760_v62  ;;  %v3288_v59 = vld [vmem:[%s5844_s26 + $0x30] sm:$0xff]  ;;  %v3290_v62 = vld [vmem:[%s5844_s26 + $0x40] sm:$0xff] }
0x12eb   : > { %v4058_v61 = vpack.c.bf16 %v3289_v60, %v3288_v59 }
0x12ec   : > { %v2762_v2 = vmul.f32 1.442695, %v2761_v63  ;;  %v3291_v63 = vld [vmem:[%s5844_s26 + $0x48] sm:$0xff] }
0x12ed   : > { %v2922_v10 = vpop.permute.xlu1 %2921 }
0x12ee   : > { %4303 = vpow2.f32 %v2762_v2  ;;  %v4061_v2 = vpack.c.bf16 %v3291_v63, %v3290_v62 }
0x12f1   : > { %v2920_v13 = vpop.permute.xlu1 %2919 }
0x12f8   : > { %v4304_v3 = vpop.eup %4303 }
0x12f9   : > { %v2764_v5 = vsel %vm1033_vm2, %v4304_v3, 0.0 }
0x12fa   : > { %2765 = vadd.xlane.f32.xlu0 %v2764_v5  ;;  %v3293_v5 = vld [vmem:[%s5844_s26 + $0x58] sm:$0xff] }
0x1310   : > { %2769 = vrot.lane.b32.xlu0 %v5605_v19, %s4895_s23 }
0x1387   : > { %v2766_v6 = vpop.xlane.xlu0 %2765 }
0x1388   : > { %4305 = vrcp.f32 %v2766_v6 }
0x138b   : > { %v2770_v7 = vpop.permute.xlu0 %2769 }
0x138c   : > { %3954 = vmatpush3.msra.mxu1 %v2770_v7  ;;  %v3294_v7 = vld [vmem:[%s5844_s26 + $0x60] sm:$0xff] }
0x138d   : > { %3963 = vmatprep.subr.mxu1 %v4889_v1 }
0x1392   : > { %v4306_v9 = vpop.eup %4305 }
0x1393   : > { %v2768_v12 = vmul.f32 %v4306_v9, %v4304_v3  ;;  %v3292_v3 = vld [vmem:[%s5844_s26 + $0x50] sm:$0xff]  ;;  %v3295_v9 = vld [vmem:[%s5844_s26 + $0x68] sm:$0xff] }
0x1394   : > { %v4064_v6 = vpack.c.bf16 %v3293_v5, %v3292_v3 }
0x1395   : > { %3956 = vmatmul.mubr.msk.f32.vlgmr.msra.gmra.mrb[18].mxu1 %vm1033_vm2, %v2768_v12 }
0x1396   : > { %3964 = vmatpush3.xpose.msk.msra.mxu1 %vm1033_vm2, %v2922_v10  ;;  %3965 = vmatprep.mubr.msk.f32.mxu1 %vm4888_vm0, %v4889_v1  ;;  %v4067_v10 = vpack.c.bf16 %v3295_v9, %v3294_v7 }
0x1397   : > { %3973 = vmatprep.subr.mxu1 %v4889_v1 }
0x1399   : > { %3966 = vmatmul.mubr.msk.f32.vlgmr.msra.gmra.mrb[20].mxu1 %vm1033_vm2, %v2920_v13 }
0x139a   : > { %3975 = vmatprep.mubr.msk.f32.mxu1 %vm4888_vm0, %v4889_v1  ;;  %3974 = vmatpush3.msra.mxu1 %v2202_v30 }
0x139b   : > { %4048 = vmatprep.subr.bf16.mxu1 %v4887_v0 }
0x1468   : > { %v2841_v15 = vpop.f32.mrb[18].mxu1 }
0x1469   : > { %v3957_v16 = vpop.f32.mrb[19].mxu1  ;;  %3961 = vmatmul.mubr.msk.f32.vlgmr.msra.gmra.mrb[26].mxu0 %vm1033_vm2, %v2841_v15 }
0x146a   : > { %3970 = vmatprep.mubr.msk.f32.mxu0 %vm4888_vm0, %v4889_v1  ;;  %v3731_v16 = vld [vmem:[#allocation19] ss:$0 sm:$0xff] }
0x146c   : > { %v2993_v20 = vpop.f32.mrb[20].mxu1 }
0x146d   : > { %v2997_v21 = vmul.f32 0.35355338, %v2993_v20  ;;  %v3967_v22 = vpop.f32.mrb[21].mxu1 }
0x146f   : > { %v2998_v23 = vsel %vm1033_vm2, %v2997_v21, -inf }
0x1470   : > { %2999 = vmax.xlane.f32.xlu0 %v2998_v23 }
0x1486   : > { %3009 = vrot.lane.b32.xlu0 %v5605_v19, %s4897_s5 }
0x14fd   : > { %v3000_v24 = vpop.xlane.xlu0 %2999 }
0x14fe   : > { %v3001_v25 = vsub.f32 %v2997_v21, %v3000_v24  ;;  %v3732_v21 = vld [vmem:[#allocation21] ss:$0 sm:$0xff]  ;;  %v3296_v24 = vld [vmem:[%s5844_s26 + $0x70] sm:$0xff] }
0x1500   : > { %v3002_v26 = vmul.f32 1.442695, %v3001_v25 }
0x1501   : > { %v3010_v27 = vpop.permute.xlu0 %3009 }
0x1502   : > { %4307 = vpow2.f32 %v3002_v26  ;;  %3969 = vmatpush3.msra.mxu0 %v3010_v27  ;;  %v3733_v26 = vld [vmem:[#allocation24] ss:$0 sm:$0xff] }
0x1503   : > { %4042 = vmatprep.subr.bf16.mxu0 %v4887_v0 }
0x150c   : > { %v4308_v28 = vpop.eup %4307 }
0x150d   : > { %v3004_v29 = vsel %vm1033_vm2, %v4308_v28, 0.0 }
0x150e   : > { %3005 = vadd.xlane.f32.xlu1 %v3004_v29 }
0x153c   : > { %v2914_v31 = vpop.f32.mrb[26].mxu0 }
0x153d   : > { %v2918_v17 = vadd.f32 %v2914_v31, %v2676_v56  ;;  %v3962_v18 = vpop.f32.mrb[27].mxu0  ;;  %v3286_v56 = vld [vmem:[%s5844_s26 + $0x20] sm:$0xff]  ;;  %v3735_v31 = vld [vmem:[#allocation25] ss:$0 sm:$0xff] }
0x153e   : > { %v4055_v58 = vpack.c.bf16 %v3287_v57, %v3286_v56 }
0x159b   : > { %v3006_v19 = vpop.xlane.xlu1 %3005 }
0x159c   : > { %4309 = vrcp.f32 %v3006_v19 }
0x15a6   : > { %v4310_v32 = vpop.eup %4309 }
0x15a7   : > { %v3008_v11 = vmul.f32 %v4310_v32, %v4308_v28 }
0x15a9   : > { %3971 = vmatmul.mubr.msk.f32.vlgmr.msra.gmra.mrb[28].mxu0 %vm1033_vm2, %v3008_v11 }
0x15aa   : > { %3986 = vmatprep.mubr.msk.f32.mxu0 %vm4888_vm0, %v4889_v1 }
0x167c   : > { %v3081_v33 = vpop.f32.mrb[28].mxu0 }
0x167d   : > { %v3972_v34 = vpop.f32.mrb[29].mxu0  ;;  %3976 = vmatmul.mubr.msk.f32.vlgmr.msra.gmra.mrb[22].mxu1 %vm1033_vm2, %v3081_v33 }
0x167e   : > { %4021 = vmatprep.mubr.msk.f32.mxu1 %vm4888_vm0, %v4889_v1  ;;  %v4043_v1 = vpack.c.bf16 %v3198_v48, %v3197_v47 }
0x1680   : > { %4044 = vmatpush3.bf16.msra.mxu0 %v4043_v1 }
0x1681   : > { %4045 = vmatprep.subr.bf16.mxu0 %v4887_v0 }
0x1684   : > { %4047 = vmatpush3.bf16.msra.mxu0 %v4046_v51 }
0x1750   : > { %v3154_v35 = vpop.f32.mrb[22].mxu1 }
0x1751   : > { %v3158_v37 = vadd.f32 %v3154_v35, %v2918_v17  ;;  %v3977_v38 = vpop.f32.mrb[23].mxu1 }
0x1753   : > { %v3166_v39 = vadd.f32 %v3730_v36, %v3158_v37 }
0x1755   : > { %v3167_v40 = vadd.f32 %v3166_v39, %v5586_v4  ;;  %v3282_v4 = vld [vmem:[%s5844_s26] sm:$0xff] }
0x1756   : > { %v4049_v54 = vpack.c.bf16 %v3283_v52, %v3282_v4 }
0x1757   : > { %v3170_v41 = vsel %vm947_vm1, %v3167_v40, 0.0 }
0x1758   : > { %3171 = vadd.xlane.f32.xlu1 %v3170_v41  ;;  %4050 = vmatpush3.bf16.msra.mxu1 %v4049_v54 }
0x1759   : > { %4051 = vmatprep.subr.bf16.mxu1 %v4887_v0 }
0x175c   : > { %4053 = vmatpush3.bf16.msra.mxu1 %v4052_v8 }
0x175d   : > { %4054 = vmatprep.subr.bf16.mxu1 %v4887_v0 }
0x1760   : > { %4056 = vmatpush3.bf16.msra.mxu1 %v4055_v58 }
0x1761   : > { %4057 = vmatprep.subr.bf16.mxu1 %v4887_v0 }
0x1764   : > { %4059 = vmatpush3.bf16.msra.mxu1 %v4058_v61 }
0x1765   : > { %4060 = vmatprep.subr.bf16.mxu1 %v4887_v0 }
0x1768   : > { %4062 = vmatpush3.bf16.msra.mxu1 %v4061_v2 }
0x1769   : > { %4063 = vmatprep.subr.bf16.mxu1 %v4887_v0 }
0x176c   : > { %4065 = vmatpush3.bf16.msra.mxu1 %v4064_v6 }
0x176d   : > { %4066 = vmatprep.subr.bf16.mxu1 %v4887_v0 }
0x1770   : > { %4068 = vmatpush3.bf16.msra.mxu1 %v4067_v10 }
0x1771   : > { %4069 = vmatprep.subr.bf16.mxu1 %v4887_v0  ;;  %v3297_v0 = vld [vmem:[%s5844_s26 + $0x78] sm:$0xff] }
0x1772   : > { %v4070_v25 = vpack.c.bf16 %v3297_v0, %v3296_v24 }
0x1774   : > { %4071 = vmatpush3.bf16.msra.mxu1 %v4070_v25 }
0x17e5   : > { %v3172_v42 = vpop.xlane.xlu1 %3171 }
0x17e6   : > { %v3173_v43 = vmul.f32 0.03125, %v3172_v42  ;;  %v3736_v42 = vld [vmem:[#allocation27] ss:$0 sm:$0xff] }
0x17e8   : > { %v3174_v44 = vsub.f32 %v3167_v40, %v3173_v43 }
0x17ea   : > { %v3175_v45 = vmul.f32 %v3174_v44, %v3174_v44 }
0x17ec   : > { %v3176_v46 = vsel %vm947_vm1, %v3175_v45, 0.0 }
0x17ed   : > { %3177 = vadd.xlane.f32.xlu1 %v3176_v46 }
0x187a   : > { %v3178_v12 = vpop.xlane.xlu1 %3177 }
0x187b   : > { %v3179_v13 = vmul.f32 0.03125, %v3178_v12 }
0x187d   : > { %v3180_v14 = vadd.f32 1e-05, %v3179_v13 }
0x187f   : > { %4311 = vrsqrt.f32 %v3180_v14 }
0x1889   : > { %v4312_v15 = vpop.eup %4311 }
0x188a   : > { %v3182_v20 = vmul.f32 %v4312_v15, %v3174_v44  ;;  %v3737_v44 = vld [vmem:[#allocation28] ss:$0 sm:$0xff] }
0x188c   : > { %v3189_v22 = vmul.f32 %v3731_v16, %v3182_v20 }
0x188e   : > { %v3196_v23 = vadd.f32 %v3732_v21, %v3189_v22 }
0x1890   : > { %3987 = vmatmul.mubr.msk.f32.vlgmr.msra.gmra.mrb[30].mxu0 %vm947_vm1, %v3196_v23 }
0x1963   : > { %v3277_v27 = vpop.f32.mrb[30].mxu0 }
0x1964   : > { %v3278_v28 = vadd.f32 %v3733_v26, %v3277_v27  ;;  %v3988_v29 = vpop.f32.mrb[31].mxu0 }
0x1966   : > { %v3281_v30 = vmax.f32 %v3278_v28, 0.0 }
0x1968   : > { %4022 = vmatmul.mubr.f32.vlgmr.msra.gmra.mrb[24].mxu1 %v3281_v30 }
0x1a3b   : > { %v3371_v17 = vpop.f32.mrb[24].mxu1 }
0x1a3c   : > { %v3372_v18 = vadd.f32 %v3735_v31, %v3371_v17  ;;  %v4023_v19 = vpop.f32.mrb[25].mxu1 }
0x1a3e   : > { %v3375_v32 = vadd.f32 %v3372_v18, %v3196_v23 }
0x1a40   : > { %v3378_v11 = vsel %vm947_vm1, %v3375_v32, 0.0 }
0x1a41   : > { %3379 = vadd.xlane.f32.xlu1 %v3378_v11 }
0x1ace   : > { %v3380_v33 = vpop.xlane.xlu1 %3379 }
0x1acf   : > { %v3381_v34 = vmul.f32 0.03125, %v3380_v33 }
0x1ad1   : > { %v3382_v35 = vsub.f32 %v3375_v32, %v3381_v34 }
0x1ad3   : > { %v3383_v36 = vmul.f32 %v3382_v35, %v3382_v35 }
0x1ad5   : > { %v3384_v37 = vsel %vm947_vm1, %v3383_v36, 0.0 }
0x1ad6   : > { %3385 = vadd.xlane.f32.xlu1 %v3384_v37 }
0x1b63   : > { %v3386_v38 = vpop.xlane.xlu1 %3385 }
0x1b64   : > { %v3387_v39 = vmul.f32 0.03125, %v3386_v38 }
0x1b66   : > { %v3388_v40 = vadd.f32 1e-05, %v3387_v39 }
0x1b68   : > { %4313 = vrsqrt.f32 %v3388_v40 }
0x1b72   : > { %v4314_v41 = vpop.eup %4313 }
0x1b73   : > { %v3390_v43 = vmul.f32 %v4314_v41, %v3382_v35 }
0x1b75   : > { %v3397_v45 = vmul.f32 %v3736_v42, %v3390_v43 }
0x1b77   : > { %v3404_v46 = vadd.f32 %v3737_v44, %v3397_v45 }
0x1b79   : > { %3405 = vst.msk [vmem:[%s933_s4] sm:$0xff] %vm947_vm1, %v3404_v46 }
0x1b7a PF: > { %s5846_s21 = sld [smem:[#allocation40_spill]] }
0x1b80   : > { %s42_s3 = sadd.s32 1, %s5846_s21  }
0x1b81   : > { %p39_p6 = scmp.ge.s32.totalorder %s42_s3, 4  }
0x1b83   :  { %41 = sbr.rel (!%p39_p6) target bundleno = 22 (0x16), region = 214 }
0x1b8a   :  { %3425 = vsyncpa [#allocation3], 1 }
0x1b8b   :  { %3427 = vsyncpa [#allocation3 + $0x1], 1 }
0x1b8c   :  { %3428 = vsyncpa [#allocation5], 1 }
0x1b8d   :  { %3429 = vsyncpa [#allocation8], 1 }
0x1b8e   :  { %3430 = vsyncpa [#allocation11], 1 }
0x1b8f   :  { %3431 = vsyncpa [#allocation14], 1 }
0x1b90   :  { %3432 = vsyncpa [#allocation17], 1 }
0x1b91   :  { %3433 = vsyncpa [#allocation20], 1 }
0x1b92   :  { %3434 = vsyncpa [#allocation23], 1 }
0x1b93   :  { %3435 = vsyncpa [#allocation26], 1 }
0x1b94   :  { %3436 = vsyncpa [#allocation29], 1 }

// kernel: transformer_forward.11
= control target key start
LH: loop header
LB: loop body
LE: loop exit
PB: predicated region body
PF: predicated region fallthrough
CT: control target
= control target key end

     0   :  { %v194_v3 = vlaneseq  ;;  %v1390_v8 = vmov 0.0   ;;  %v1391_v9 = vmov 1983009808   ;;  %vm238_vm0 = vcmask 130048   ;;  %s2197_s0 = inlined_call_operand.vmem [shape: f32[2,272], index: 0, kind: input, shape index: {}]   ;;  %s2198_s1 = inlined_call_operand.vmem [shape: f32[272,544], index: 1, kind: input, shape index: {}]   ;;  %s2199_s2 = inlined_call_operand.vmem [shape: f32[1,544], index: 2, kind: input, shape index: {}]   ;;  %s2200_s3 = inlined_call_operand.vmem [shape: f32[544,4], index: 3, kind: input, shape index: {}]   ;;  %s2201_s4 = inlined_call_operand.vmem [shape: f32[1,4], index: 4, kind: input, shape index: {}]   ;;  %s2202_s5 = inlined_call_operand.hbm [shape: f32[2,4], index: 5, kind: output, shape index: {}]  }
   0x1   :  { %v23_v0 = vld [vmem:[%s2198_s1 + $0x8] sm:$0xff]  ;;  %v28_v1 = vld [vmem:[%s2198_s1 + $0x30] sm:$0xff]  ;;  %v22_v2 = vld [vmem:[%s2198_s1] sm:$0xff]  ;;  %376 = vmatprep.mubr.f32.mxu1 %v1390_v8  ;;  %v222_v10 = vunpack.c.l.s4 %v1391_v9 }
   0x2   :  { %v1111_v4 = vpack.c.bf16 %v28_v1, %v23_v0  ;;  %v27_v5 = vld [vmem:[%s2198_s1 + $0x28] sm:$0xff]  ;;  %v188_v7 = vld [vmem:[%s2198_s1 + $0x530] sm:$0xff]  ;;  %v182_v13 = vld [vmem:[%s2198_s1 + $0x500] sm:$0xff]  ;;  %v1453_v16 = vshrl.u32 %v194_v3, 7 }
   0x3   :  { %v183_v6 = vld [vmem:[%s2198_s1 + $0x508] sm:$0xff]  ;;  %v1113_v11 = vpack.c.bf16 %v27_v5, %v22_v2  ;;  %v33_v15 = vld [vmem:[%s2198_s1 + $0x58] sm:$0xff]  ;;  %v38_v18 = vld [vmem:[%s2198_s1 + $0x80] sm:$0xff]  ;;  %v223_v21 = vunpack.c.0.s8 %v222_v10 }
   0x4   :  { %v1175_v12 = vpack.c.bf16 %v188_v7, %v183_v6  ;;  %v187_v14 = vld [vmem:[%s2198_s1 + $0x528] sm:$0xff]  ;;  %1112 = vmatprep.subr.bf16.mxu0 %v1111_v4  ;;  %v32_v19 = vld [vmem:[%s2198_s1 + $0x50] sm:$0xff]  ;;  %v37_v20 = vld [vmem:[%s2198_s1 + $0x78] sm:$0xff]  ;;  %v1115_v22 = vpack.c.bf16 %v38_v18, %v33_v15 }
   0x5   :  { %v1177_v17 = vpack.c.bf16 %v187_v14, %v182_v13  ;;  %1114 = vmatpush1.bf16.msra.mxu0 %v1113_v11  ;;  %v1117_v23 = vpack.c.bf16 %v37_v20, %v32_v19  ;;  %v25_v24 = vld [vmem:[%s2198_s1 + $0x18] sm:$0xff]  ;;  %v30_v25 = vld [vmem:[%s2198_s1 + $0x40] sm:$0xff]  ;;  %v226_v29 = vsub.s32 %v223_v21, %v1453_v16  ;;  %v24_v30 = vld [vmem:[%s2198_s1 + $0x10] sm:$0xff] }
   0x6   :  { %1176 = vmatprep.subr.bf16.mxu1 %v1175_v12  ;;  %v21_v26 = vld [vmem:[%s2197_s0] sm:$0x3f]  ;;  %v1179_v27 = vpack.c.bf16 %v30_v25, %v25_v24  ;;  %v29_v31 = vld [vmem:[%s2198_s1 + $0x38] sm:$0xff]  ;;  %v43_v32 = vld [vmem:[%s2198_s1 + $0xa8] sm:$0xff]  ;;  %1116 = vmatprep.subr.bf16.mxu0 %v1115_v22 }
   0x7   :  { %1178 = vmatpush1.bf16.msra.mxu1 %v1177_v17  ;;  %v220_v28 = vcombine.high %v21_v26, %v21_v26  ;;  %v1181_v33 = vpack.c.bf16 %v29_v31, %v24_v30  ;;  %v48_v34 = vld [vmem:[%s2198_s1 + $0xd0] sm:$0xff]  ;;  %v42_v35 = vld [vmem:[%s2198_s1 + $0xa0] sm:$0xff]  ;;  %v47_v36 = vld [vmem:[%s2198_s1 + $0xc8] sm:$0xff]  ;;  %v1492_v37 = vrot.slane %v21_v26, %v226_v29 }
   0x8   :  { %1180 = vmatprep.subr.bf16.mxu1 %v1179_v27  ;;  %v1119_v39 = vpack.c.bf16 %v48_v34, %v43_v32  ;;  %v35_v40 = vld [vmem:[%s2198_s1 + $0x68] sm:$0xff]  ;;  %v40_v41 = vld [vmem:[%s2198_s1 + $0x90] sm:$0xff]  ;;  %v34_v42 = vld [vmem:[%s2198_s1 + $0x60] sm:$0xff]  ;;  %v1121_v43 = vpack.c.bf16 %v47_v36, %v42_v35 }
   0x9   :  { %v1494_v38 = vrot.slane %v220_v28, %v226_v29  ;;  %1118 = vmatpush1.bf16.msra.mxu0 %v1117_v23  ;;  %v1183_v44 = vpack.c.bf16 %v40_v41, %v35_v40  ;;  %v39_v45 = vld [vmem:[%s2198_s1 + $0x88] sm:$0xff]  ;;  %v53_v46 = vld [vmem:[%s2198_s1 + $0xf8] sm:$0xff]  ;;  %v58_v47 = vld [vmem:[%s2198_s1 + $0x120] sm:$0xff]  ;;  %v1527_v52 = vcombine.high %v1492_v37, %v1492_v37 }
   0xa   :  { %1120 = vmatprep.subr.bf16.mxu0 %v1119_v39  ;;  %v1123_v48 = vpack.c.bf16 %v58_v47, %v53_v46  ;;  %v52_v49 = vld [vmem:[%s2198_s1 + $0xf0] sm:$0xff]  ;;  %v57_v50 = vld [vmem:[%s2198_s1 + $0x118] sm:$0xff]  ;;  %v1185_v53 = vpack.c.bf16 %v39_v45, %v34_v42  ;;  %v50_v54 = vld [vmem:[%s2198_s1 + $0xe0] sm:$0xff] }
   0xb   :  { %975 = vmatmul.mubr.msk.f32.vlgmr.msra.gmra.mrb[0].mxu1 %vm238_vm0, %v1494_v38  ;;  %v45_v51 = vld [vmem:[%s2198_s1 + $0xb8] sm:$0xff]  ;;  %v44_v55 = vld [vmem:[%s2198_s1 + $0xb0] sm:$0xff]  ;;  %v63_v58 = vld [vmem:[%s2198_s1 + $0x148] sm:$0xff]  ;;  %305 = vmatprep.mubr.f32.mxu0 %v1527_v52  ;;  %v1125_v60 = vpack.c.bf16 %v57_v50, %v52_v49 }
   0xc   :  { %1182 = vmatpush1.bf16.msra.mxu1 %v1181_v33  ;;  %v1187_v56 = vpack.c.bf16 %v50_v54, %v45_v51  ;;  %v49_v57 = vld [vmem:[%s2198_s1 + $0xd8] sm:$0xff]  ;;  %v68_v59 = vld [vmem:[%s2198_s1 + $0x170] sm:$0xff]  ;;  %v55_v61 = vld [vmem:[%s2198_s1 + $0x108] sm:$0xff]  ;;  %447 = vmatprep.mubr.f32.mxu1 %v1527_v52 }
   0xd   :  { %1184 = vmatprep.subr.bf16.mxu1 %v1183_v44  ;;  %1122 = vmatpush1.bf16.msra.mxu0 %v1121_v43  ;;  %v60_v62 = vld [vmem:[%s2198_s1 + $0x130] sm:$0xff]  ;;  %v1127_v63 = vpack.c.bf16 %v68_v59, %v63_v58  ;;  %v62_v0 = vld [vmem:[%s2198_s1 + $0x140] sm:$0xff]  ;;  %v67_v1 = vld [vmem:[%s2198_s1 + $0x168] sm:$0xff]  ;;  %v1189_v2 = vpack.c.bf16 %v49_v57, %v44_v55 }
   0xe   :  { %1124 = vmatprep.subr.bf16.mxu0 %v1123_v48  ;;  %v73_v3 = vld [vmem:[%s2198_s1 + $0x198] sm:$0xff]  ;;  %v78_v4 = vld [vmem:[%s2198_s1 + $0x1c0] sm:$0xff]  ;;  %v1191_v5 = vpack.c.bf16 %v60_v62, %v55_v61  ;;  %v59_v7 = vld [vmem:[%s2198_s1 + $0x128] sm:$0xff]  ;;  %v1129_v9 = vpack.c.bf16 %v67_v1, %v62_v0 }
   0xf   :  { %v54_v6 = vld [vmem:[%s2198_s1 + $0x100] sm:$0xff]  ;;  %v65_v10 = vld [vmem:[%s2198_s1 + $0x158] sm:$0xff]  ;;  %v1131_v12 = vpack.c.bf16 %v78_v4, %v73_v3  ;;  %v72_v13 = vld [vmem:[%s2198_s1 + $0x190] sm:$0xff] }
  0x10   :  { %1186 = vmatpush1.bf16.msra.mxu1 %v1185_v53  ;;  %v70_v11 = vld [vmem:[%s2198_s1 + $0x180] sm:$0xff]  ;;  %v77_v14 = vld [vmem:[%s2198_s1 + $0x1b8] sm:$0xff]  ;;  %v1193_v15 = vpack.c.bf16 %v59_v7, %v54_v6  ;;  %v83_v17 = vld [vmem:[%s2198_s1 + $0x1e8] sm:$0xff] }
  0x11   :  { %1188 = vmatprep.subr.bf16.mxu1 %v1187_v56  ;;  %1126 = vmatpush1.bf16.msra.mxu0 %v1125_v60  ;;  %v88_v18 = vld [vmem:[%s2198_s1 + $0x210] sm:$0xff]  ;;  %v1195_v19 = vpack.c.bf16 %v70_v11, %v65_v10  ;;  %v69_v21 = vld [vmem:[%s2198_s1 + $0x178] sm:$0xff]  ;;  %v1133_v22 = vpack.c.bf16 %v77_v14, %v72_v13  ;;  %v75_v23 = vld [vmem:[%s2198_s1 + $0x1a8] sm:$0xff] }
  0x12   :  { %1128 = vmatprep.subr.bf16.mxu0 %v1127_v63  ;;  %v64_v20 = vld [vmem:[%s2198_s1 + $0x150] sm:$0xff]  ;;  %v1135_v25 = vpack.c.bf16 %v88_v18, %v83_v17  ;;  %v82_v26 = vld [vmem:[%s2198_s1 + $0x1e0] sm:$0xff]  ;;  %v87_v27 = vld [vmem:[%s2198_s1 + $0x208] sm:$0xff] }
  0x13   :  { %v80_v24 = vld [vmem:[%s2198_s1 + $0x1d0] sm:$0xff]  ;;  %v1197_v28 = vpack.c.bf16 %v69_v21, %v64_v20  ;;  %v93_v29 = vld [vmem:[%s2198_s1 + $0x238] sm:$0xff]  ;;  %v98_v30 = vld [vmem:[%s2198_s1 + $0x260] sm:$0xff]  ;;  %v1137_v34 = vpack.c.bf16 %v87_v27, %v82_v26 }
  0x14   :  { %1190 = vmatpush1.bf16.msra.mxu1 %v1189_v2  ;;  %v1199_v31 = vpack.c.bf16 %v80_v24, %v75_v23  ;;  %v74_v32 = vld [vmem:[%s2198_s1 + $0x1a0] sm:$0xff]  ;;  %v79_v33 = vld [vmem:[%s2198_s1 + $0x1c8] sm:$0xff]  ;;  %v85_v35 = vld [vmem:[%s2198_s1 + $0x1f8] sm:$0xff]  ;;  %v1139_v39 = vpack.c.bf16 %v98_v30, %v93_v29 }
  0x15   :  { %1192 = vmatprep.subr.bf16.mxu1 %v1191_v5  ;;  %1130 = vmatpush1.bf16.msra.mxu0 %v1129_v9  ;;  %v90_v36 = vld [vmem:[%s2198_s1 + $0x220] sm:$0xff]  ;;  %v92_v40 = vld [vmem:[%s2198_s1 + $0x230] sm:$0xff]  ;;  %v97_v41 = vld [vmem:[%s2198_s1 + $0x258] sm:$0xff]  ;;  %v1201_v42 = vpack.c.bf16 %v79_v33, %v74_v32 }
  0x16   :  { %1132 = vmatprep.subr.bf16.mxu0 %v1131_v12  ;;  %v103_v43 = vld [vmem:[%s2198_s1 + $0x288] sm:$0xff]  ;;  %v108_v44 = vld [vmem:[%s2198_s1 + $0x2b0] sm:$0xff]  ;;  %v1203_v45 = vpack.c.bf16 %v90_v36, %v85_v35  ;;  %v89_v47 = vld [vmem:[%s2198_s1 + $0x218] sm:$0xff]  ;;  %v1141_v48 = vpack.c.bf16 %v97_v41, %v92_v40 }
  0x17   :  { %v84_v46 = vld [vmem:[%s2198_s1 + $0x1f0] sm:$0xff]  ;;  %v95_v49 = vld [vmem:[%s2198_s1 + $0x248] sm:$0xff]  ;;  %v1143_v51 = vpack.c.bf16 %v108_v44, %v103_v43  ;;  %v102_v53 = vld [vmem:[%s2198_s1 + $0x280] sm:$0xff] }
  0x18   :  { %1194 = vmatpush1.bf16.msra.mxu1 %v1193_v15  ;;  %v100_v50 = vld [vmem:[%s2198_s1 + $0x270] sm:$0xff]  ;;  %v107_v54 = vld [vmem:[%s2198_s1 + $0x2a8] sm:$0xff]  ;;  %v1205_v55 = vpack.c.bf16 %v89_v47, %v84_v46  ;;  %v113_v56 = vld [vmem:[%s2198_s1 + $0x2d8] sm:$0xff] }
  0x19   :  { %1196 = vmatprep.subr.bf16.mxu1 %v1195_v19  ;;  %1134 = vmatpush1.bf16.msra.mxu0 %v1133_v22  ;;  %v118_v57 = vld [vmem:[%s2198_s1 + $0x300] sm:$0xff]  ;;  %v1207_v58 = vpack.c.bf16 %v100_v50, %v95_v49  ;;  %v99_v60 = vld [vmem:[%s2198_s1 + $0x268] sm:$0xff]  ;;  %v1145_v61 = vpack.c.bf16 %v107_v54, %v102_v53  ;;  %v105_v62 = vld [vmem:[%s2198_s1 + $0x298] sm:$0xff] }
  0x1a   :  { %1136 = vmatprep.subr.bf16.mxu0 %v1135_v25  ;;  %v94_v59 = vld [vmem:[%s2198_s1 + $0x240] sm:$0xff]  ;;  %v1147_v0 = vpack.c.bf16 %v118_v57, %v113_v56  ;;  %v112_v1 = vld [vmem:[%s2198_s1 + $0x2d0] sm:$0xff]  ;;  %v117_v2 = vld [vmem:[%s2198_s1 + $0x2f8] sm:$0xff] }
  0x1b   :  { %v110_v63 = vld [vmem:[%s2198_s1 + $0x2c0] sm:$0xff]  ;;  %v1209_v3 = vpack.c.bf16 %v99_v60, %v94_v59  ;;  %v123_v4 = vld [vmem:[%s2198_s1 + $0x328] sm:$0xff]  ;;  %v128_v5 = vld [vmem:[%s2198_s1 + $0x350] sm:$0xff]  ;;  %v1149_v10 = vpack.c.bf16 %v117_v2, %v112_v1 }
  0x1c   :  { %1198 = vmatpush1.bf16.msra.mxu1 %v1197_v28  ;;  %v1211_v6 = vpack.c.bf16 %v110_v63, %v105_v62  ;;  %v104_v7 = vld [vmem:[%s2198_s1 + $0x290] sm:$0xff]  ;;  %v109_v9 = vld [vmem:[%s2198_s1 + $0x2b8] sm:$0xff]  ;;  %v115_v11 = vld [vmem:[%s2198_s1 + $0x2e8] sm:$0xff]  ;;  %v1151_v13 = vpack.c.bf16 %v128_v5, %v123_v4 }
  0x1d   :  { %1200 = vmatprep.subr.bf16.mxu1 %v1199_v31  ;;  %1138 = vmatpush1.bf16.msra.mxu0 %v1137_v34  ;;  %v120_v12 = vld [vmem:[%s2198_s1 + $0x310] sm:$0xff]  ;;  %v122_v14 = vld [vmem:[%s2198_s1 + $0x320] sm:$0xff]  ;;  %v127_v15 = vld [vmem:[%s2198_s1 + $0x348] sm:$0xff]  ;;  %v1213_v17 = vpack.c.bf16 %v109_v9, %v104_v7 }
  0x1e   :  { %1140 = vmatprep.subr.bf16.mxu0 %v1139_v39  ;;  %v133_v18 = vld [vmem:[%s2198_s1 + $0x378] sm:$0xff]  ;;  %v138_v19 = vld [vmem:[%s2198_s1 + $0x3a0] sm:$0xff]  ;;  %v1215_v20 = vpack.c.bf16 %v120_v12, %v115_v11  ;;  %v119_v22 = vld [vmem:[%s2198_s1 + $0x308] sm:$0xff]  ;;  %v1153_v23 = vpack.c.bf16 %v127_v15, %v122_v14 }
  0x1f   :  { %v114_v21 = vld [vmem:[%s2198_s1 + $0x2e0] sm:$0xff]  ;;  %v125_v24 = vld [vmem:[%s2198_s1 + $0x338] sm:$0xff]  ;;  %v1155_v26 = vpack.c.bf16 %v138_v19, %v133_v18  ;;  %v132_v27 = vld [vmem:[%s2198_s1 + $0x370] sm:$0xff] }
  0x20   :  { %1202 = vmatpush1.bf16.msra.mxu1 %v1201_v42  ;;  %v130_v25 = vld [vmem:[%s2198_s1 + $0x360] sm:$0xff]  ;;  %v137_v28 = vld [vmem:[%s2198_s1 + $0x398] sm:$0xff]  ;;  %v1217_v29 = vpack.c.bf16 %v119_v22, %v114_v21  ;;  %v143_v30 = vld [vmem:[%s2198_s1 + $0x3c8] sm:$0xff] }
  0x21   :  { %1204 = vmatprep.subr.bf16.mxu1 %v1203_v45  ;;  %1142 = vmatpush1.bf16.msra.mxu0 %v1141_v48  ;;  %v148_v31 = vld [vmem:[%s2198_s1 + $0x3f0] sm:$0xff]  ;;  %v1219_v32 = vpack.c.bf16 %v130_v25, %v125_v24  ;;  %v129_v34 = vld [vmem:[%s2198_s1 + $0x358] sm:$0xff]  ;;  %v1157_v35 = vpack.c.bf16 %v137_v28, %v132_v27  ;;  %v135_v36 = vld [vmem:[%s2198_s1 + $0x388] sm:$0xff] }
  0x22   :  { %1144 = vmatprep.subr.bf16.mxu0 %v1143_v51  ;;  %v124_v33 = vld [vmem:[%s2198_s1 + $0x330] sm:$0xff]  ;;  %v1159_v40 = vpack.c.bf16 %v148_v31, %v143_v30  ;;  %v142_v41 = vld [vmem:[%s2198_s1 + $0x3c0] sm:$0xff]  ;;  %v147_v42 = vld [vmem:[%s2198_s1 + $0x3e8] sm:$0xff] }
  0x23   :  { %v140_v39 = vld [vmem:[%s2198_s1 + $0x3b0] sm:$0xff]  ;;  %v1221_v43 = vpack.c.bf16 %v129_v34, %v124_v33  ;;  %v153_v44 = vld [vmem:[%s2198_s1 + $0x418] sm:$0xff]  ;;  %v158_v45 = vld [vmem:[%s2198_s1 + $0x440] sm:$0xff]  ;;  %v1161_v49 = vpack.c.bf16 %v147_v42, %v142_v41 }
  0x24   :  { %1206 = vmatpush1.bf16.msra.mxu1 %v1205_v55  ;;  %v1223_v46 = vpack.c.bf16 %v140_v39, %v135_v36  ;;  %v134_v47 = vld [vmem:[%s2198_s1 + $0x380] sm:$0xff]  ;;  %v139_v48 = vld [vmem:[%s2198_s1 + $0x3a8] sm:$0xff]  ;;  %v145_v50 = vld [vmem:[%s2198_s1 + $0x3d8] sm:$0xff]  ;;  %v1163_v53 = vpack.c.bf16 %v158_v45, %v153_v44 }
  0x25   :  { %1208 = vmatprep.subr.bf16.mxu1 %v1207_v58  ;;  %1146 = vmatpush1.bf16.msra.mxu0 %v1145_v61  ;;  %v150_v51 = vld [vmem:[%s2198_s1 + $0x400] sm:$0xff]  ;;  %v152_v54 = vld [vmem:[%s2198_s1 + $0x410] sm:$0xff]  ;;  %v157_v55 = vld [vmem:[%s2198_s1 + $0x438] sm:$0xff]  ;;  %v1225_v56 = vpack.c.bf16 %v139_v48, %v134_v47 }
  0x26   :  { %1148 = vmatprep.subr.bf16.mxu0 %v1147_v0  ;;  %v163_v57 = vld [vmem:[%s2198_s1 + $0x468] sm:$0xff]  ;;  %v168_v58 = vld [vmem:[%s2198_s1 + $0x490] sm:$0xff]  ;;  %v1227_v59 = vpack.c.bf16 %v150_v51, %v145_v50  ;;  %v149_v61 = vld [vmem:[%s2198_s1 + $0x3f8] sm:$0xff]  ;;  %v1165_v62 = vpack.c.bf16 %v157_v55, %v152_v54 }
  0x27   :  { %v144_v60 = vld [vmem:[%s2198_s1 + $0x3d0] sm:$0xff]  ;;  %v155_v63 = vld [vmem:[%s2198_s1 + $0x428] sm:$0xff]  ;;  %v1167_v1 = vpack.c.bf16 %v168_v58, %v163_v57  ;;  %v162_v2 = vld [vmem:[%s2198_s1 + $0x460] sm:$0xff] }
  0x28   :  { %1210 = vmatpush1.bf16.msra.mxu1 %v1209_v3  ;;  %v160_v0 = vld [vmem:[%s2198_s1 + $0x450] sm:$0xff]  ;;  %v167_v3 = vld [vmem:[%s2198_s1 + $0x488] sm:$0xff]  ;;  %v1229_v4 = vpack.c.bf16 %v149_v61, %v144_v60  ;;  %v173_v5 = vld [vmem:[%s2198_s1 + $0x4b8] sm:$0xff] }
  0x29   :  { %1212 = vmatprep.subr.bf16.mxu1 %v1211_v6  ;;  %1150 = vmatpush1.bf16.msra.mxu0 %v1149_v10  ;;  %v178_v6 = vld [vmem:[%s2198_s1 + $0x4e0] sm:$0xff]  ;;  %v1231_v7 = vpack.c.bf16 %v160_v0, %v155_v63  ;;  %v159_v10 = vld [vmem:[%s2198_s1 + $0x448] sm:$0xff]  ;;  %v1169_v11 = vpack.c.bf16 %v167_v3, %v162_v2  ;;  %v165_v12 = vld [vmem:[%s2198_s1 + $0x478] sm:$0xff] }
  0x2a   :  { %1152 = vmatprep.subr.bf16.mxu0 %v1151_v13  ;;  %v154_v9 = vld [vmem:[%s2198_s1 + $0x420] sm:$0xff]  ;;  %v1171_v14 = vpack.c.bf16 %v178_v6, %v173_v5  ;;  %v172_v15 = vld [vmem:[%s2198_s1 + $0x4b0] sm:$0xff] }
  0x2b   :  { %v170_v13 = vld [vmem:[%s2198_s1 + $0x4a0] sm:$0xff] }
  0x2c   :  { %1214 = vmatpush1.bf16.msra.mxu1 %v1213_v17  ;;  %v177_v17 = vld [vmem:[%s2198_s1 + $0x4d8] sm:$0xff] }
  0x2d   :  { %1216 = vmatprep.subr.bf16.mxu1 %v1215_v20  ;;  %1154 = vmatpush1.bf16.msra.mxu0 %v1153_v23 }
  0x2e   :  { %1156 = vmatprep.subr.bf16.mxu0 %v1155_v26 }
  0x30   :  { %1218 = vmatpush1.bf16.msra.mxu1 %v1217_v29 }
  0x31   :  { %1220 = vmatprep.subr.bf16.mxu1 %v1219_v32  ;;  %1158 = vmatpush1.bf16.msra.mxu0 %v1157_v35 }
  0x32   :  { %1160 = vmatprep.subr.bf16.mxu0 %v1159_v40 }
  0x34   :  { %1222 = vmatpush1.bf16.msra.mxu1 %v1221_v43 }
  0x35   :  { %1224 = vmatprep.subr.bf16.mxu1 %v1223_v46  ;;  %1162 = vmatpush1.bf16.msra.mxu0 %v1161_v49 }
  0x36   :  { %1164 = vmatprep.subr.bf16.mxu0 %v1163_v53 }
  0x38   :  { %1226 = vmatpush1.bf16.msra.mxu1 %v1225_v56 }
  0x39   :  { %1228 = vmatprep.subr.bf16.mxu1 %v1227_v59  ;;  %1166 = vmatpush1.bf16.msra.mxu0 %v1165_v62 }
  0x3a   :  { %1168 = vmatprep.subr.bf16.mxu0 %v1167_v1 }
  0x3b   :  { %10 = vsyncpa [#allocation3], 0  ;;  %v1233_v18 = vpack.c.bf16 %v159_v10, %v154_v9  ;;  %v106_v19 = vld [vmem:[%s2198_s1 + $0x2a0] sm:$0xff]  ;;  %v111_v20 = vld [vmem:[%s2198_s1 + $0x2c8] sm:$0xff]  ;;  %v1235_v21 = vpack.c.bf16 %v170_v13, %v165_v12  ;;  %v1173_v24 = vpack.c.bf16 %v177_v17, %v172_v15  ;;  %v1392_v63 = vmov 0.0|0.0   ;;  %s1394_s26 = smov [#allocation2]  }
  0x3c   :  { %1230 = vmatpush1.bf16.msra.mxu1 %v1229_v4  ;;  %v164_v22 = vld [vmem:[%s2198_s1 + $0x470] sm:$0xff]  ;;  %v169_v23 = vld [vmem:[%s2198_s1 + $0x498] sm:$0xff]  ;;  %v175_v25 = vld [vmem:[%s2198_s1 + $0x4c8] sm:$0xff]  ;;  %v1247_v27 = vpack.c.bf16 %v111_v20, %v106_v19  ;;  %vm1393_vm1 = vmmov 0   ;;  %vm745_vm2 = vcmask 261120   ;;  %s967_s27 = sshll.u32 %s1394_s26, 4  ;;  %s968_s27 = int_to_ptr.vmem [resolvable:$true] %s967_s27 }
  0x3d   :  { %1232 = vmatprep.subr.bf16.mxu1 %v1231_v7  ;;  %1170 = vmatpush1.bf16.msra.mxu0 %v1169_v11  ;;  %v180_v26 = vld [vmem:[%s2198_s1 + $0x4f0] sm:$0xff]  ;;  %v26_v28 = vld [vmem:[%s2198_s1 + $0x20] sm:$0xff]  ;;  %v31_v29 = vld [vmem:[%s2198_s1 + $0x48] sm:$0xff]  ;;  %v1237_v30 = vpack.c.bf16 %v169_v23, %v164_v22  ;;  %vm959_vm3 = vcmask 25600   ;;  %s1366_s28 = scalar_lea.vmem %s968_s27, 32  ;;  %p1371_p1 = scmp.lt.s32.totalorder %s968_s27, %s968_s27 }
  0x3e   :  { %1172 = vmatprep.subr.bf16.mxu0 %v1171_v14  ;;  %v116_v31 = vld [vmem:[%s2198_s1 + $0x2f0] sm:$0xff]  ;;  %v121_v32 = vld [vmem:[%s2198_s1 + $0x318] sm:$0xff]  ;;  %v1239_v33 = vpack.c.bf16 %v180_v26, %v175_v25  ;;  %v174_v34 = vld [vmem:[%s2198_s1 + $0x4c0] sm:$0xff]  ;;  %v1249_v36 = vpack.c.bf16 %v31_v29, %v26_v28  ;;  %p1367_p0 = scmp.ne.s32.totalorder %s968_s27, %s1366_s28  ;;  %p1372_p2 = scmp.lt.s32.totalorder %s1366_s28, %s1366_s28 }
  0x3f   :  { %v179_v35 = vld [vmem:[%s2198_s1 + $0x4e8] sm:$0xff]  ;;  %v185_v39 = vld [vmem:[%s2198_s1 + $0x518] sm:$0xff]  ;;  %v190_v40 = vld [vmem:[%s2198_s1 + $0x540] sm:$0xff]  ;;  %v1251_v41 = vpack.c.bf16 %v121_v32, %v116_v31 }
  0x40   :  { %1234 = vmatpush1.bf16.msra.mxu1 %v1233_v18  ;;  %v36_v42 = vld [vmem:[%s2198_s1 + $0x70] sm:$0xff]  ;;  %v41_v43 = vld [vmem:[%s2198_s1 + $0x98] sm:$0xff]  ;;  %v1241_v44 = vpack.c.bf16 %v179_v35, %v174_v34  ;;  %v126_v45 = vld [vmem:[%s2198_s1 + $0x340] sm:$0xff]  ;;  %v1243_v47 = vpack.c.bf16 %v190_v40, %v185_v39  ;;  %p1373_p3 = por %p1372_p2, %p1371_p1 }
  0x41   :  { %1236 = vmatprep.subr.bf16.mxu1 %v1235_v21  ;;  %1174 = vmatpush1.bf16.msra.mxu0 %v1173_v24  ;;  %v131_v46 = vld [vmem:[%s2198_s1 + $0x368] sm:$0xff]  ;;  %v184_v48 = vld [vmem:[%s2198_s1 + $0x510] sm:$0xff]  ;;  %v189_v49 = vld [vmem:[%s2198_s1 + $0x538] sm:$0xff]  ;;  %v1253_v50 = vpack.c.bf16 %v41_v43, %v36_v42 }
  0x42   :  { %1248 = vmatprep.subr.bf16.mxu0 %v1247_v27  ;;  %v1255_v51 = vpack.c.bf16 %v131_v46, %v126_v45  ;;  %v46_v53 = vld [vmem:[%s2198_s1 + $0xc0] sm:$0xff]  ;;  %v51_v54 = vld [vmem:[%s2198_s1 + $0xe8] sm:$0xff]  ;;  %v1245_v55 = vpack.c.bf16 %v189_v49, %v184_v48  ;;  %v136_v56 = vld [vmem:[%s2198_s1 + $0x390] sm:$0xff]  ;;  %p1374_p4 = pnand %p1373_p3, %p1367_p0 }
  0x43   :  { %v1257_v57 = vpack.c.bf16 %v51_v54, %v46_v53  ;;  %v56_v59 = vld [vmem:[%s2198_s1 + $0x110] sm:$0xff]  ;;  %v61_v60 = vld [vmem:[%s2198_s1 + $0x138] sm:$0xff]  ;;  %v146_v61 = vld [vmem:[%s2198_s1 + $0x3e0] sm:$0xff] }
  0x44   :  { %1238 = vmatpush1.bf16.msra.mxu1 %v1237_v30  ;;  %306 = vmatmul.mubr.f32.vlgmr.msra.gmra.mrb[0].mxu0 %v1492_v37  ;;  %v151_v62 = vld [vmem:[%s2198_s1 + $0x408] sm:$0xff]  ;;  %v186_v0 = vld [vmem:[%s2198_s1 + $0x520] sm:$0xff]  ;;  %v1261_v2 = vpack.c.bf16 %v61_v60, %v56_v59  ;;  %v156_v6 = vld [vmem:[%s2198_s1 + $0x430] sm:$0xff] }
  0x45   :  { %1240 = vmatprep.subr.bf16.mxu1 %v1239_v33  ;;  %1250 = vmatpush3.bf16.msra.mxu0 %v1249_v36  ;;  %v191_v1 = vld [vmem:[%s2198_s1 + $0x548] sm:$0xff]  ;;  %v1263_v3 = vpack.c.bf16 %v151_v62, %v146_v61  ;;  %v66_v4 = vld [vmem:[%s2198_s1 + $0x160] sm:$0xff]  ;;  %v161_v7 = vld [vmem:[%s2198_s1 + $0x458] sm:$0xff] }
  0x46   :  { %589 = vmatprep.mubr.f32.mxu0 %v1527_v52  ;;  %1252 = vmatprep.subr.bf16.mxu0 %v1251_v41  ;;  %v141_v52 = vld [vmem:[%s2198_s1 + $0x3b8] sm:$0xff]  ;;  %v71_v5 = vld [vmem:[%s2198_s1 + $0x188] sm:$0xff]  ;;  %v1280_v9 = vpack.c.bf16 %v191_v1, %v186_v0  ;;  %v1267_v11 = vpack.c.bf16 %v161_v7, %v156_v6  ;;  %v76_v12 = vld [vmem:[%s2198_s1 + $0x1b0] sm:$0xff] }
  0x47   :  { %v1259_v58 = vpack.c.bf16 %v141_v52, %v136_v56  ;;  %v1265_v10 = vpack.c.bf16 %v71_v5, %v66_v4  ;;  %v81_v13 = vld [vmem:[%s2198_s1 + $0x1d8] sm:$0xff]  ;;  %v166_v14 = vld [vmem:[%s2198_s1 + $0x480] sm:$0xff]  ;;  %v171_v15 = vld [vmem:[%s2198_s1 + $0x4a8] sm:$0xff] }
  0x48   :  { %1242 = vmatpush1.bf16.msra.mxu1 %v1241_v44  ;;  %v1269_v17 = vpack.c.bf16 %v81_v13, %v76_v12  ;;  %v1271_v18 = vpack.c.bf16 %v171_v15, %v166_v14  ;;  %v86_v19 = vld [vmem:[%s2198_s1 + $0x200] sm:$0xff]  ;;  %v91_v20 = vld [vmem:[%s2198_s1 + $0x228] sm:$0xff]  ;;  %v176_v21 = vld [vmem:[%s2198_s1 + $0x4d0] sm:$0xff] }
  0x49   :  { %1244 = vmatprep.subr.bf16.mxu1 %v1243_v47  ;;  %1254 = vmatpush3.bf16.msra.mxu0 %v1253_v50  ;;  %v181_v22 = vld [vmem:[%s2198_s1 + $0x4f8] sm:$0xff]  ;;  %v1273_v23 = vpack.c.bf16 %v91_v20, %v86_v19  ;;  %v96_v25 = vld [vmem:[%s2198_s1 + $0x250] sm:$0xff]  ;;  %v686_v27 = vld [vmem:[%s2200_s3 + $0x80] sm:$0xff] }
  0x4a   :  { %1256 = vmatprep.subr.bf16.mxu0 %v1255_v51  ;;  %v1275_v24 = vpack.c.bf16 %v181_v22, %v176_v21  ;;  %v687_v28 = vld [vmem:[%s2200_s3 + $0x88] sm:$0xff]  ;;  %v670_v29 = vld [vmem:[%s2200_s3] sm:$0xff]  ;;  %v688_v32 = vld [vmem:[%s2200_s3 + $0x90] sm:$0xff] }
  0x4b   :  { %448 = vmatmul.mubr.f32.vlgmr.msra.gmra.mrb[2].mxu1 %v1492_v37  ;;  %v1282_v30 = vpack.c.bf16 %v687_v28, %v686_v27  ;;  %v671_v31 = vld [vmem:[%s2200_s3 + $0x8] sm:$0xff]  ;;  %v689_v33 = vld [vmem:[%s2200_s3 + $0x98] sm:$0xff]  ;;  %v672_v36 = vld [vmem:[%s2200_s3 + $0x10] sm:$0xff] }
  0x4c   :  { %1246 = vmatpush1.bf16.msra.mxu1 %v1245_v55  ;;  %518 = vmatprep.mubr.f32.mxu1 %v1390_v8  ;;  %v1284_v34 = vpack.c.bf16 %v671_v31, %v670_v29  ;;  %v1286_v35 = vpack.c.bf16 %v689_v33, %v688_v32  ;;  %v673_v39 = vld [vmem:[%s2200_s3 + $0x18] sm:$0xff]  ;;  %v690_v40 = vld [vmem:[%s2200_s3 + $0xa0] sm:$0xff]  ;;  %v691_v41 = vld [vmem:[%s2200_s3 + $0xa8] sm:$0xff] }
  0x4d   :  { %1279 = vmatprep.subr.bf16.mxu1 %v1392_v63  ;;  %1258 = vmatpush3.bf16.msra.mxu0 %v1257_v57  ;;  %v1288_v42 = vpack.c.bf16 %v673_v39, %v672_v36  ;;  %v674_v43 = vld [vmem:[%s2200_s3 + $0x20] sm:$0xff]  ;;  %v719_v45 = vld [vmem:[%s2200_s3 + $0x188] sm:$0xff]  ;;  %v1290_v46 = vpack.c.bf16 %v691_v41, %v690_v40  ;;  %v692_v51 = vld [vmem:[%s2200_s3 + $0xb0] sm:$0xff] }
  0x4e   :  { %1260 = vmatprep.subr.bf16.mxu0 %v1259_v58  ;;  %v718_v44 = vld [vmem:[%s2200_s3 + $0x180] sm:$0xff]  ;;  %v675_v47 = vld [vmem:[%s2200_s3 + $0x28] sm:$0xff]  ;;  %v693_v53 = vld [vmem:[%s2200_s3 + $0xb8] sm:$0xff] }
  0x4f   :  { %v1314_v48 = vpack.c.bf16 %v719_v45, %v718_v44  ;;  %v702_v49 = vld [vmem:[%s2200_s3 + $0x100] sm:$0xff]  ;;  %v703_v50 = vld [vmem:[%s2200_s3 + $0x108] sm:$0xff]  ;;  %v720_v55 = vld [vmem:[%s2200_s3 + $0x190] sm:$0xff]  ;;  %v1294_v60 = vpack.c.bf16 %v693_v53, %v692_v51 }
  0x50   :  { %v1316_v54 = vpack.c.bf16 %v703_v50, %v702_v49  ;;  %v721_v56 = vld [vmem:[%s2200_s3 + $0x198] sm:$0xff]  ;;  %v676_v52 = vld [vmem:[%s2200_s3 + $0x30] sm:$0xff]  ;;  %v722_v0 = vld [vmem:[%s2200_s3 + $0x1a0] sm:$0xff] }
  0x51   :  { %1262 = vmatpush3.bf16.msra.mxu0 %v1261_v2  ;;  %v1318_v57 = vpack.c.bf16 %v721_v56, %v720_v55  ;;  %v704_v58 = vld [vmem:[%s2200_s3 + $0x110] sm:$0xff]  ;;  %v705_v59 = vld [vmem:[%s2200_s3 + $0x118] sm:$0xff]  ;;  %v723_v1 = vld [vmem:[%s2200_s3 + $0x1a8] sm:$0xff] }
  0x52   :  { %1264 = vmatprep.subr.bf16.mxu0 %v1263_v3  ;;  %v677_v61 = vld [vmem:[%s2200_s3 + $0x38] sm:$0xff]  ;;  %v1320_v62 = vpack.c.bf16 %v705_v59, %v704_v58  ;;  %v694_v2 = vld [vmem:[%s2200_s3 + $0xc0] sm:$0xff]  ;;  %v695_v3 = vld [vmem:[%s2200_s3 + $0xc8] sm:$0xff]  ;;  %v1322_v4 = vpack.c.bf16 %v723_v1, %v722_v0 }
  0x53   :  { %976 = vmatmul.mubr.msk.f32.vlgmr.msra.gmra.mrb[2].mxu1 %vm238_vm0, %v1494_v38  ;;  %v706_v5 = vld [vmem:[%s2200_s3 + $0x120] sm:$0xff]  ;;  %v707_v6 = vld [vmem:[%s2200_s3 + $0x128] sm:$0xff]  ;;  %v1296_v7 = vpack.c.bf16 %v677_v61, %v676_v52  ;;  %v696_v13 = vld [vmem:[%s2200_s3 + $0xd0] sm:$0xff] }
  0x54   :  { %1281 = vmatpush3.bf16.msra.mxu1 %v1280_v9  ;;  %1097 = vmatprep.mubr.msk.f32.mxu1 %vm1393_vm1, %v1390_v8  ;;  %v1324_v9 = vpack.c.bf16 %v707_v6, %v706_v5  ;;  %v679_v12 = vld [vmem:[%s2200_s3 + $0x48] sm:$0xff]  ;;  %v697_v14 = vld [vmem:[%s2200_s3 + $0xd8] sm:$0xff]  ;;  %v724_v21 = vld [vmem:[%s2200_s3 + $0x1b0] sm:$0xff] }
  0x55   :  { %1266 = vmatpush3.bf16.msra.mxu0 %v1265_v10  ;;  %1283 = vmatprep.subr.bf16.mxu1 %v1282_v30  ;;  %v1298_v10 = vpack.c.bf16 %v695_v3, %v694_v2  ;;  %v681_v19 = vld [vmem:[%s2200_s3 + $0x58] sm:$0xff]  ;;  %v682_v28 = vld [vmem:[%s2200_s3 + $0x60] sm:$0xff]  ;;  %v683_v29 = vld [vmem:[%s2200_s3 + $0x68] sm:$0xff]  ;;  %v196_v2 = vsub.s32 0, %v1453_v16 }
  0x56   :  { %1268 = vmatprep.subr.bf16.mxu0 %v1267_v11  ;;  %v678_v11 = vld [vmem:[%s2200_s3 + $0x40] sm:$0xff]  ;;  %v725_v22 = vld [vmem:[%s2200_s3 + $0x1b8] sm:$0xff]  ;;  %v1308_v31 = vpack.c.bf16 %v683_v29, %v682_v28  ;;  %v727_v33 = vld [vmem:[%s2200_s3 + $0x1c8] sm:$0xff] }
  0x57   :  { %1098 = vmatmul.mubr.msk.f32.vlgmr.msra.gmra.mrb[4].mxu1 %vm238_vm0, %v1494_v38  ;;  %v101_v38 = vld [vmem:[%s2198_s1 + $0x278] sm:$0xff]  ;;  %v1300_v15 = vpack.c.bf16 %v679_v12, %v678_v11  ;;  %v726_v32 = vld [vmem:[%s2200_s3 + $0x1c0] sm:$0xff]  ;;  %v711_v41 = vld [vmem:[%s2200_s3 + $0x148] sm:$0xff] }
  0x58   :  { %v1277_v26 = vpack.c.bf16 %v101_v38, %v96_v25  ;;  %1285 = vmatpush3.bf16.msra.mxu1 %v1284_v34  ;;  %v699_v25 = vld [vmem:[%s2200_s3 + $0xe8] sm:$0xff]  ;;  %v708_v38 = vld [vmem:[%s2200_s3 + $0x130] sm:$0xff]  ;;  %v709_v27 = vld [vmem:[%s2200_s3 + $0x138] sm:$0xff]  ;;  %v1330_v34 = vpack.c.bf16 %v727_v33, %v726_v32 }
  0x59   :  { %1270 = vmatpush3.bf16.msra.mxu0 %v1269_v17  ;;  %1287 = vmatprep.subr.bf16.mxu1 %v1286_v35  ;;  %v1302_v17 = vpack.c.bf16 %v697_v14, %v696_v13  ;;  %v1328_v30 = vpack.c.bf16 %v709_v27, %v708_v38  ;;  %v700_v35 = vld [vmem:[%s2200_s3 + $0xf0] sm:$0xff]  ;;  %v701_v36 = vld [vmem:[%s2200_s3 + $0xf8] sm:$0xff]  ;;  %v710_v39 = vld [vmem:[%s2200_s3 + $0x140] sm:$0xff] }
  0x5a   :  { %1272 = vmatprep.subr.bf16.mxu0 %v1271_v18  ;;  %v680_v18 = vld [vmem:[%s2200_s3 + $0x50] sm:$0xff]  ;;  %v1310_v40 = vpack.c.bf16 %v701_v36, %v700_v35  ;;  %v1332_v44 = vpack.c.bf16 %v711_v41, %v710_v39  ;;  %v713_v50 = vld [vmem:[%s2200_s3 + $0x158] sm:$0xff]  ;;  %v730_v53 = vld [vmem:[%s2200_s3 + $0x1e0] sm:$0xff] }
  0x5b   :  { %v1304_v20 = vpack.c.bf16 %v681_v19, %v680_v18  ;;  %v712_v49 = vld [vmem:[%s2200_s3 + $0x150] sm:$0xff]  ;;  %v714_v56 = vld [vmem:[%s2200_s3 + $0x160] sm:$0xff]  ;;  %v733_v58 = vld [vmem:[%s2200_s3 + $0x1f8] sm:$0xff] }
  0x5c   :  { %1289 = vmatpush3.bf16.msra.mxu1 %v1288_v42  ;;  %v684_v42 = vld [vmem:[%s2200_s3 + $0x70] sm:$0xff]  ;;  %v1336_v51 = vpack.c.bf16 %v713_v50, %v712_v49  ;;  %v717_v61 = vld [vmem:[%s2200_s3 + $0x178] sm:$0xff]  ;;  %v192_v3 = vld [vmem:[%s2199_s2] sm:$0x1f] }
  0x5d   :  { %1274 = vmatpush3.bf16.msra.mxu0 %v1273_v23  ;;  %1291 = vmatprep.subr.bf16.mxu1 %v1290_v46  ;;  %v1326_v23 = vpack.c.bf16 %v725_v22, %v724_v21  ;;  %v728_v46 = vld [vmem:[%s2200_s3 + $0x1d0] sm:$0xff]  ;;  %v197_v5 = vrot.slane %v192_v3, %v196_v2  ;;  %v734_v13 = vld [vmem:[%s2200_s3 + $0x200] sm:$0xff]  ;;  %v735_v14 = vld [vmem:[%s2200_s3 + $0x208] sm:$0xff] }
  0x5e   :  { %1276 = vmatprep.subr.bf16.mxu0 %v1275_v24  ;;  %v698_v24 = vld [vmem:[%s2200_s3 + $0xe0] sm:$0xff]  ;;  %v1347_v18 = vpack.c.bf16 %v735_v14, %v734_v13  ;;  %v736_v21 = vld [vmem:[%s2200_s3 + $0x210] sm:$0xff]  ;;  %v737_v22 = vld [vmem:[%s2200_s3 + $0x218] sm:$0xff] }
  0x61   :  { %1278 = vmatpush3.bf16.msra.mxu0 %v1277_v26  ;;  %v1306_v26 = vpack.c.bf16 %v699_v25, %v698_v24  ;;  %v1350_v24 = vpack.c.bf16 %v737_v22, %v736_v21 }
  0x62   :  { %1315 = vmatprep.subr.bf16.mxu0 %v1314_v48 }
  0x64   :  { %590 = vmatmul.mubr.f32.vlgmr.msra.gmra.mrb[2].mxu0 %v1492_v37  ;;  %v1292_v37 = vpack.c.bf16 %v675_v47, %v674_v43  ;;  %v685_v43 = vld [vmem:[%s2200_s3 + $0x78] sm:$0xff] }
  0x65   :  { %1317 = vmatpush3.bf16.msra.mxu0 %v1316_v54  ;;  %v1312_v45 = vpack.c.bf16 %v685_v43, %v684_v42  ;;  %v729_v47 = vld [vmem:[%s2200_s3 + $0x1d8] sm:$0xff]  ;;  %v731_v54 = vld [vmem:[%s2200_s3 + $0x1e8] sm:$0xff] }
  0x66   :  { %1319 = vmatprep.subr.bf16.mxu0 %v1318_v57  ;;  %1293 = vmatpush3.bf16.msra.mxu1 %v1292_v37  ;;  %v1334_v48 = vpack.c.bf16 %v729_v47, %v728_v46  ;;  %v1338_v55 = vpack.c.bf16 %v731_v54, %v730_v53  ;;  %v715_v37 = vld [vmem:[%s2200_s3 + $0x168] sm:$0xff]  ;;  %v732_v57 = vld [vmem:[%s2200_s3 + $0x1f0] sm:$0xff] }
  0x67   :  { %1295 = vmatprep.subr.bf16.mxu1 %v1294_v60  ;;  %v1340_v52 = vpack.c.bf16 %v715_v37, %v714_v56  ;;  %v1342_v59 = vpack.c.bf16 %v733_v58, %v732_v57  ;;  %v716_v60 = vld [vmem:[%s2200_s3 + $0x170] sm:$0xff] }
  0x69   :  { %1321 = vmatpush3.bf16.msra.mxu0 %v1320_v62  ;;  %v1344_v62 = vpack.c.bf16 %v717_v61, %v716_v60 }
  0x6a   :  { %1323 = vmatprep.subr.bf16.mxu0 %v1322_v4  ;;  %1297 = vmatpush3.bf16.msra.mxu1 %v1296_v7  ;;  %v200_v4 = vsub.s32 1, %v1453_v16 }
  0x6b   :  { %1299 = vmatprep.subr.bf16.mxu1 %v1298_v10 }
  0x6c   :  { %v201_v6 = vrot.slane %v192_v3, %v200_v4 }
  0x6d   :  { %1325 = vmatpush3.bf16.msra.mxu0 %v1324_v9 }
  0x6e   :  { %1301 = vmatpush3.bf16.msra.mxu1 %v1300_v15  ;;  %1327 = vmatprep.subr.bf16.mxu0 %v1326_v23  ;;  %v208_v23 = vsub.s32 3, %v1453_v16 }
  0x6f   :  { %1303 = vmatprep.subr.bf16.mxu1 %v1302_v17 }
  0x70   :  { %v209_v38 = vrot.slane %v192_v3, %v208_v23 }
  0x71   :  { %1329 = vmatpush3.bf16.msra.mxu0 %v1328_v30 }
  0x72   :  { %1305 = vmatpush3.bf16.msra.mxu1 %v1304_v20  ;;  %1331 = vmatprep.subr.bf16.mxu0 %v1330_v34  ;;  %v204_v20 = vsub.s32 2, %v1453_v16  ;;  %v212_v34 = vsub.s32 4, %v1453_v16 }
  0x73   :  { %1307 = vmatprep.subr.bf16.mxu1 %v1306_v26 }
  0x74   :  { %v205_v25 = vrot.slane %v192_v3, %v204_v20  ;;  %v213_v36 = vrot.slane %v192_v3, %v212_v34 }
  0x75   :  { %1333 = vmatpush3.bf16.msra.mxu0 %v1332_v44 }
  0x76   :  { %1309 = vmatpush3.bf16.msra.mxu1 %v1308_v31  ;;  %1335 = vmatprep.subr.bf16.mxu0 %v1334_v48 }
  0x77   :  { %1311 = vmatprep.subr.bf16.mxu1 %v1310_v40 }
  0x79   :  { %1337 = vmatpush3.bf16.msra.mxu0 %v1336_v51 }
  0x7a   :  { %1313 = vmatpush3.bf16.msra.mxu1 %v1312_v45  ;;  %1339 = vmatprep.subr.bf16.mxu0 %v1338_v55  ;;  %v978_v45 = vld [vmem:[%s2201_s4] ss:$0 sm:$0xff] }
  0x7b   :  { %1346 = vmatprep.subr.bf16.mxu1 %v1392_v63 }
  0x7d   :  { %1341 = vmatpush3.bf16.msra.mxu0 %v1340_v52 }
  0x7e   :  { %1343 = vmatprep.subr.bf16.mxu0 %v1342_v59 }
  0x81   :  { %1345 = vmatpush3.bf16.msra.mxu0 %v1344_v62 }
  0xde   :  { %v378_v0 = vpop.f32.mrb[0].mxu1 }
  0xdf   :  { %v380_v1 = vpop.f32.mrb[1].mxu1 }
 0x117   :  { %v307_v7 = vpop.f32.mrb[0].mxu0 }
 0x118   :  { %v308_v9 = vadd.f32 %v307_v7, %v197_v5  ;;  %v309_v10 = vpop.f32.mrb[1].mxu0 }
 0x119   :  { %v310_v11 = vadd.f32 %v309_v10, %v201_v6 }
 0x11a   :  { %v379_v12 = vadd.f32 %v378_v0, %v308_v9 }
 0x11b   :  { %v381_v15 = vadd.f32 %v380_v1, %v310_v11 }
 0x11c   :  { %v665_v19 = vmax.f32 %v379_v12, 0.0 }
 0x11d   :  { %v666_v17 = vmax.f32 %v381_v15, 0.0 }
 0x11f   :  { %813 = vmatprep.mubr.f32.mxu1 %v666_v17 }
 0x120   :  { %814 = vmatmul.mubr.f32.vlgmr.msra.gmra.mrb[6].mxu1 %v665_v19 }
 0x121   :  { %1348 = vmatpush3.bf16.msra.mxu1 %v1347_v18  ;;  %1108 = vmatprep.mubr.msk.f32.mxu1 %vm1393_vm1, %v1390_v8 }
 0x122   :  { %1349 = vmatprep.subr.bf16.mxu1 %v1392_v63 }
 0x125   :  { %1351 = vmatpush3.bf16.msra.mxu1 %v1350_v24 }
 0x126   :  { %v520_v26 = vpop.f32.mrb[2].mxu1 }
 0x127   :  { %v1356_v27 = vadd.f32 %v520_v26, %v205_v25  ;;  %v522_v28 = vpop.f32.mrb[3].mxu1 }
 0x128   :  { %v1357_v29 = vadd.f32 %v522_v28, %v209_v38 }
 0x129   :  { %v667_v30 = vmax.f32 %v1356_v27, 0.0 }
 0x12a   :  { %v668_v31 = vmax.f32 %v1357_v29, 0.0  ;;  %v661_v32 = vpop.f32.mrb[4].mxu1 }
 0x12b   :  { %v1099_v33 = vpop.f32.mrb[5].mxu1 }
 0x12c   :  { %883 = vmatprep.mubr.f32.mxu0 %v668_v31 }
 0x12d   :  { %884 = vmatmul.mubr.f32.vlgmr.msra.gmra.mrb[4].mxu0 %v667_v30 }
 0x137   :  { %v1012_v35 = vpop.f32.mrb[2].mxu0 }
 0x138   :  { %v1013_v8 = vpop.f32.mrb[3].mxu0 }
 0x139   :  { %v1014_v39 = vadd.f32 %v1013_v8, %v1012_v35 }
 0x13b   :  { %v592_v40 = vadd.f32 %v1014_v39, %v213_v36 }
 0x13d   :  { %v662_v63 = vadd.f32 %v661_v32, %v592_v40 }
 0x13f   :  { %v669_v41 = vmax.f32 %v662_v63, 0.0 }
 0x141   :  { %1109 = vmatmul.mubr.msk.f32.vlgmr.msra.gmra.mrb[8].mxu1 %vm745_vm2, %v669_v41 }
 0x1f3   :  { %v1050_v42 = vpop.f32.mrb[6].mxu1 }
 0x1f4   :  { %v1051_v43 = vpop.f32.mrb[7].mxu1 }
 0x1f5   :  { %v1052_v44 = vadd.f32 %v1051_v43, %v1050_v42 }
 0x1f7   :  { %v816_v48 = vadd.f32 %v1052_v44, %v978_v45 }
 0x200   :  { %v1085_v46 = vpop.f32.mrb[4].mxu0 }
 0x201   :  { %v1086_v47 = vpop.f32.mrb[5].mxu0 }
 0x202   :  { %v1087_v16 = vadd.f32 %v1086_v47, %v1085_v46 }
 0x204   :  { %v886_v49 = vadd.f32 %v1087_v16, %v816_v48 }
 0x214   :  { %v955_v50 = vpop.f32.mrb[8].mxu1 }
 0x215   :  { %v956_v51 = vadd.f32 %v955_v50, %v886_v49  ;;  %v1110_v53 = vpop.f32.mrb[9].mxu1 }
 0x217   :  { %960 = vst.msk [vmem:[#allocation2] sm:$0x3] %vm959_vm3, %v956_v51 }
 0x218   :  { %1377 = shalt.err (!%p1374_p4)
}
 0x219   :  { %s1378_s29 = scalar_lea.hbm %s2202_s5, 32 }
 0x21a   :  { %p1379_p5 = scmp.ne.s32.totalorder %s2202_s5, %s1378_s29  ;;  %p1382_p6 = scmp.lt.u32.totalorder %s1378_s29, %s2202_s5 }
 0x21c   :  { %p1384_p7 = pnand %p1382_p6, %p1379_p5 }
 0x21e   :  { %1387 = shalt.err (!%p1384_p7)
}
 0x21f   :  { %970 = dma.vmem_to_hbm [thread:$0]  %s968_s27, 32, %s2202_s5, [#allocation3]  }
 0x220   :  { %1388 = dma.done.wait [#allocation3], 32  }
 0x221   :  { %1389 = vsyncadd [#allocation3], 4294967264 }
 0x222   :  { %974 = vsyncpa [#allocation3], 1 }

</bundles_post_ra>
